<compile_context>
chip_gen: v6e
topology: v6e:2x2x1
jax: 0.10.0
libtpu: 0.0.40
codegen_flags: <defaults>
</compile_context>

<pallas_src>
import math
from functools import lru_cache

import jax
import jax.numpy as jnp
from jax.experimental import pallas as pl
from jax.experimental.pallas import tpu as pltpu

_MXU_PREC = jax.lax.Precision.HIGHEST


# =============================================================================
# Pallas kernel 1: fused cascade of grouped circular 3x3 convs
#   (implements a whole Conv_mimc_1 / Conv_mimc_2 block, or init_conv)
# =============================================================================
@lru_cache(maxsize=None)
def _build_cascade(B, HW, W, cin, couts):
    """Stage s consumes concat([x, out_0, ..., out_{s-1}]) channel-wise; the
    concat is realized by one densified weight slice per input piece."""
    n_stages = len(couts)
    w_shapes = []
    for s in range(n_stages):
        for pc in [cin] + list(couts[:s]):
            w_shapes.append((9, couts[s], pc))
    n_w = len(w_shapes)

    def kernel(*refs):
        w_refs = refs[:n_w]
        x_ref = refs[n_w]
        o_ref = refs[n_w + 1]

        lane = jax.lax.broadcasted_iota(jnp.int32, (1, HW), 1) % W
        left_edge = lane == 0
        right_edge = lane == W - 1

        def acc_piece(piece, w_ref, acc):
            # 9 circular taps of `piece` ([Cp, HW]); each tap is consumed
            # immediately by an MXU matmul -> bounded live ranges, no spills.
            for kx, dx in enumerate((-1, 0, 1)):
                if dx == 0:
                    xh = piece
                elif dx == 1:
                    # x[h, (w+1) mod W] : flat roll by -1, fixed up at w=W-1
                    xh = jnp.where(right_edge,
                                   pltpu.roll(piece, W - 1, axis=1),
                                   pltpu.roll(piece, HW - 1, axis=1))
                else:
                    # x[h, (w-1) mod W] : flat roll by +1, fixed up at w=0
                    xh = jnp.where(left_edge,
                                   pltpu.roll(piece, HW - (W - 1), axis=1),
                                   pltpu.roll(piece, 1, axis=1))
                for ky, dy in enumerate((-1, 0, 1)):
                    # vertical circular shift is an exact roll of the flat axis
                    shift = (-dy * W) % HW
                    tap = xh if shift == 0 else pltpu.roll(xh, shift, axis=1)
                    acc = acc + jnp.dot(w_ref[ky * 3 + kx], tap,
                                        preferred_element_type=jnp.float32,
                                        precision=_MXU_PREC)
            return acc

        pieces = [x_ref[...]]            # concat-by-indexing: keep pieces apart
        wi = 0
        for s in range(n_stages):
            acc = jnp.zeros((couts[s], HW), jnp.float32)
            for piece in pieces:
                acc = acc_piece(piece, w_refs[wi], acc)
                wi += 1
            pieces.append(acc)
        o_ref[...] = pieces[-1]

    in_specs = [pl.BlockSpec(shape, lambda b: (0, 0, 0)) for shape in w_shapes]
    in_specs.append(pl.BlockSpec((None, cin, HW), lambda b: (b, 0, 0)))
    return pl.pallas_call(
        kernel,
        out_shape=jax.ShapeDtypeStruct((B, couts[-1], HW), jnp.float32),
        grid_spec=pltpu.PrefetchScalarGridSpec(
            num_scalar_prefetch=0,
            grid=(B,),
            in_specs=in_specs,
            out_specs=pl.BlockSpec((None, couts[-1], HW), lambda b: (b, 0, 0)),
        ),
        compiler_params=pltpu.CompilerParams(dimension_semantics=("parallel",)),
    )


def _dense_tap_weight(w, groups):
    """Grouped conv weight [Cout, cin_pg, 3, 3] -> per-tap dense weight
    [9, Cout, Cin] (zeros outside each channel group), tap t = ky*3 + kx."""
    cout, cin_pg = int(w.shape[0]), int(w.shape[1])
    cout_pg = cout // groups
    dense = jnp.zeros((9, cout, cin_pg * groups), jnp.float32)
    co = jnp.arange(cout)
    grp = co // cout_pg
    for ci in range(cin_pg):
        cols = grp * cin_pg + ci
        vals = w[:, ci, :, :].reshape(cout, 9).T          # [9, Cout]
        dense = dense.at[:, co, cols].set(vals)
    return dense


def conv_cascade(conv_ws, groups_list, x_flat, W):
    """x_flat: [B, cin, H*W]; conv_ws: grouped 3x3 weights of the cascade."""
    B, cin, HW = (int(d) for d in x_flat.shape)
    couts = tuple(int(w.shape[0]) for w in conv_ws)
    dense_ws = []
    piece_channels = [cin]
    for w, g in zip(conv_ws, groups_list):
        dense = _dense_tap_weight(w, g)
        off = 0
        for pc in piece_channels:                          # split per input piece
            dense_ws.append(dense[:, :, off:off + pc])
            off += pc
        piece_channels.append(int(w.shape[0]))
    fn = _build_cascade(B, HW, int(W), cin, couts)
    return fn(*dense_ws, x_flat)


def conv_mimc_1(p, x_flat, W):
    return conv_cascade((p["conv1"], p["conv2"], p["conv3"]), (1, 3, 6), x_flat, W)


def conv_mimc_2(p, x_flat, W):
    return conv_cascade((p["conv1"], p["conv2"], p["conv3"]), (4, 8, 12), x_flat, W)


# =============================================================================
# Pallas kernel 2: pwl() Fourier-series layer, one grid step per batch element
# =============================================================================
@lru_cache(maxsize=None)
def _build_pwl(B, C, HW, K):
    def kernel(wa_ref, wb_ref, bias_ref, x_ref, out_ref, sd_ref):
        x = x_ref[...]                                    # [C, HW], lane-dense
        s1 = jnp.sin(math.pi * x)
        c1 = jnp.cos(math.pi * x)
        s, c = s1, c1
        acc0 = wa_ref[0, 0] * s + wb_ref[0, 0] * c
        acc1 = wa_ref[1, 0] * s + wb_ref[1, 0] * c
        for k in range(1, K):
            # angle-addition recurrence: only 2 transcendentals total
            s, c = s * c1 + c * s1, c * c1 - s * s1
            acc0 = acc0 + wa_ref[0, k] * s + wb_ref[0, k] * c
            acc1 = acc1 + wa_ref[1, k] * s + wb_ref[1, k] * c
        out_ref[...] = acc0 + bias_ref[0]
        sd_ref[...] = acc1 + bias_ref[1]

    blk = pl.BlockSpec((None, C, HW), lambda b: (b, 0, 0))
    return pl.pallas_call(
        kernel,
        out_shape=(jax.ShapeDtypeStruct((B, C, HW), jnp.float32),
                   jax.ShapeDtypeStruct((B, C, HW), jnp.float32)),
        grid_spec=pltpu.PrefetchScalarGridSpec(
            num_scalar_prefetch=0,
            grid=(B,),
            in_specs=[
                pl.BlockSpec((2, K, C, 1), lambda b: (0, 0, 0, 0)),  # weight_a
                pl.BlockSpec((2, K, C, 1), lambda b: (0, 0, 0, 0)),  # weight_b
                pl.BlockSpec((2, C, 1), lambda b: (0, 0, 0)),        # bias
                blk,
            ],
            out_specs=(blk, blk),
        ),
        compiler_params=pltpu.CompilerParams(dimension_semantics=("parallel",)),
    )


def pwl(layer, x_flat):
    B, C, HW = (int(d) for d in x_flat.shape)
    wa, wb, bias = layer["weight_a"], layer["weight_b"], layer["bias"]  # [2,C,K],[2,C,K],[2,C]
    K = int(wa.shape[-1])
    wa_e = jnp.transpose(wa, (0, 2, 1))[..., None]        # [2, K, C, 1]
    wb_e = jnp.transpose(wb, (0, 2, 1))[..., None]
    bias_e = bias[..., None]                              # [2, C, 1]
    return _build_pwl(B, C, HW, K)(wa_e, wb_e, bias_e, x_flat)


# =============================================================================
# Module composition (matches the PyTorch forward passes), all in [B, C, H*W]
# =============================================================================
def _rgb_channel_sum(t, cm):
    return jnp.stack((t[:, :cm].sum(axis=1),
                      t[:, cm:2 * cm].sum(axis=1),
                      t[:, 2 * cm:].sum(axis=1)), axis=1)


def com_fun(layer, u_in, z, lambda_in, sigma, epoch, M, W):
    cm = M // 3
    f_u = conv_mimc_1(layer["simc"][-1], u_in, W)
    th, dri = pwl(layer, lambda_in / sigma + f_u)
    out = (conv_mimc_2(layer["mimc"][-1], lambda_in, W)
           + sigma * conv_mimc_2(layer["mimc"][-1], f_u - th, W))
    # channel-group sums / residual adds / clip are tiny elementwise glue in JAX
    out = _rgb_channel_sum(out, cm) + u_in - z
    f_f_o = conv_mimc_1(layer["simc"][epoch], out, W)
    f_f_o = conv_mimc_2(layer["mimc"][epoch], f_f_o * (1.0 - dri), W)
    grad = _rgb_channel_sum(sigma * f_f_o, cm) + out
    return out, grad


def img_update(layer, state, M, W):
    u_in, lambda_in = state["u_out"], state["lambda_out"]
    sigma, z = state["sigma"], state["z"]
    N_2 = int(layer["eta"].shape[0])
    u_out = u_in
    for epoch in range(N_2):
        _, grad = com_fun(layer, u_out, z, lambda_in, sigma, epoch, M, W)
        u_out = u_out - layer["eta"][epoch] * grad
    f_o = conv_mimc_1(layer["simc"][-1], u_out, W)
    p_out, _ = pwl(layer, lambda_in / sigma + f_o)
    new_state = dict(state)
    new_state["u_out"] = u_out
    new_state["lambda_out"] = lambda_in + sigma * (
        conv_mimc_1(layer["simc"][-2], u_out, W) - p_out)
    new_state["sigma"] = layer["c"].reshape(1, M, 1) * sigma
    return new_state


@jax.jit
def newton_modify_forward(params, x):
    B, Cx, H, W = x.shape
    HW = H * W
    M = int(params["init_conv"].shape[0])
    x_flat = x.reshape(B, Cx, HW)                         # lane-dense layout
    state = {
        "z": x_flat,
        "u_out": x_flat,
        "lambda_out": conv_cascade((params["init_conv"],), (3,), x_flat, W),
        "sigma": jnp.ones((1, M, 1), jnp.float32),
    }
    for layer in params["layers"]:
        state = img_update(layer, state, M, W)
    return jnp.clip(state["u_out"], 0.0, 1.0).reshape(B, Cx, H, W)


# =============================================================================
# Deterministic synthetic parameter initialization (PyTorch-like shapes)
# =============================================================================
def _conv_w(key, cout, cin_pg):
    std = 1.0 / math.sqrt(cin_pg * 9)
    return std * jax.random.normal(key, (cout, cin_pg, 3, 3), jnp.float32)


def _mimc1_params(key):
    k1, k2, k3 = jax.random.split(key, 3)
    return {"conv1": _conv_w(k1, 6, 3),    # Conv2d(3  -> 6,  groups=1)
            "conv2": _conv_w(k2, 9, 3),    # Conv2d(9  -> 9,  groups=3)
            "conv3": _conv_w(k3, 12, 3)}   # Conv2d(18 -> 12, groups=6)


def _mimc2_params(key):
    k1, k2, k3 = jax.random.split(key, 3)
    return {"conv1": _conv_w(k1, 4, 3),    # Conv2d(12 -> 4,  groups=4)
            "conv2": _conv_w(k2, 8, 2),    # Conv2d(16 -> 8,  groups=8)
            "conv3": _conv_w(k3, 12, 2)}   # Conv2d(24 -> 12, groups=12)


def init_newton_params(key, N_1, N_2, M_arg, con_num):
    M = 3 * M_arg
    assert M == 12, "Conv_mimc_2 in the reference hard-codes 12 channels (args['M'] == 4)."
    k = jax.random.split(key, 5)
    weight_a = 0.01 * jax.random.normal(k[0], (N_1, 2, M, con_num), jnp.float32)
    weight_b = 0.01 * jax.random.normal(k[1], (N_1, 2, M, con_num), jnp.float32)
    bias = 0.01 * jax.random.normal(k[2], (N_1, 2, M), jnp.float32)
    c = jnp.ones((N_1, M), jnp.float32)
    eta = jnp.full((N_1, N_2), 0.001, jnp.float32)
    init_conv = _conv_w(k[3], M, 1)        # Conv2d(3 -> 12, groups=3)
    layers = []
    for i, lk in enumerate(jax.random.split(k[4], N_1)):
        sk = jax.random.split(lk, (N_2 + 2) + (N_2 + 1))
        simc = [_mimc1_params(sk[j]) for j in range(N_2 + 2)]
        mimc = [_mimc2_params(sk[N_2 + 2 + j]) for j in range(N_2 + 1)]
        layers.append({"weight_a": weight_a[i], "weight_b": weight_b[i],
                       "bias": bias[i], "c": c[i], "eta": eta[i],
                       "simc": simc, "mimc": mimc})
    return {"init_conv": init_conv, "layers": layers}


# =============================================================================
# Self-check: Pallas kernels vs plain-JAX references (guards the lane-dense
# flatten + in-kernel circular wrap against the correctness concern raised)
# =============================================================================
def _ref_grouped_conv(x, w, groups):
    xp = jnp.pad(x, ((0, 0), (0, 0), (1, 1), (1, 1)), mode="wrap")
    return jax.lax.conv_general_dilated(
        xp, w, window_strides=(1, 1), padding="VALID",
        dimension_numbers=("NCHW", "OIHW", "NCHW"),
        feature_group_count=groups)


def _ref_cascade(conv_ws, groups_list, x):
    pieces = [x]
    for w, g in zip(conv_ws, groups_list):
        pieces.append(_ref_grouped_conv(jnp.concatenate(pieces, axis=1), w, g))
    return pieces[-1]


def _assert_close(got, ref, name, tol=2e-3):
    err = float(jnp.max(jnp.abs(got - ref)))
    assert err < tol, f"{name}: max abs error {err}"


def _self_check(params, x):
    B, Cx, H, W = x.shape
    HW = H * W
    x_flat = x.reshape(B, Cx, HW)
    layer0 = params["layers"][0]

    simc = layer0["simc"][-1]
    got1 = conv_mimc_1(simc, x_flat, W).reshape(B, -1, H, W)
    ref1 = _ref_cascade((simc["conv1"], simc["conv2"], simc["conv3"]), (1, 3, 6), x)
    _assert_close(got1, ref1, "Conv_mimc_1")

    lam = conv_cascade((params["init_conv"],), (3,), x_flat, W)
    _assert_close(lam.reshape(B, -1, H, W),
                  _ref_grouped_conv(x, params["init_conv"], 3), "init_conv")

    mimc = layer0["mimc"][-1]
    lam_img = lam.reshape(B, -1, H, W)
    got2 = conv_mimc_2(mimc, lam, W).reshape(B, -1, H, W)
    ref2 = _ref_cascade((mimc["conv1"], mimc["conv2"], mimc["conv3"]), (4, 8, 12), lam_img)
    _assert_close(got2, ref2, "Conv_mimc_2")

    out_p, sd_p = pwl(layer0, lam)
    wa, wb, bias = layer0["weight_a"], layer0["weight_b"], layer0["bias"]
    K = int(wa.shape[-1])
    freq = jnp.arange(1, K + 1, dtype=jnp.float32) * math.pi
    ang = lam_img[..., None] * freq
    s_, c_ = jnp.sin(ang), jnp.cos(ang)
    ref_out = (wa[0][None, :, None, None, :] * s_
               + wb[0][None, :, None, None, :] * c_).sum(-1) + bias[0][None, :, None, None]
    ref_sd = (wa[1][None, :, None, None, :] * s_
              + wb[1][None, :, None, None, :] * c_).sum(-1) + bias[1][None, :, None, None]
    _assert_close(out_p.reshape(B, -1, H, W), ref_out, "pwl_out")
    _assert_close(sd_p.reshape(B, -1, H, W), ref_sd, "pwl_sd")


if __name__ == "__main__":
    key = jax.random.PRNGKey(0)
    kx, kp = jax.random.split(key)
    B, H, W = 2, 16, 16
    N_1, N_2, M_arg, con_num = 2, 2, 4, 8
    x = jax.random.uniform(kx, (B, 3, H, W), dtype=jnp.float32)   # RGB input, NCHW
    params = init_newton_params(kp, N_1, N_2, M_arg, con_num)

    _self_check(params, x)            # Pallas kernels vs plain-JAX references

    out = newton_modify_forward(params, x)
    out = jax.block_until_ready(out)
    assert out.shape == (B, 3, H, W)
    assert bool(jnp.all(jnp.isfinite(out)))
    print("KERNEL_OK")
</pallas_src>

<mosaic_0001>
module attributes {stable_mosaic.version = 11 : i64} {
  func.func @kernel(%arg0: i32, %arg1: memref<9x6x3xf32, #tpu.memory_space<vmem>>, %arg2: memref<9x9x3xf32, #tpu.memory_space<vmem>>, %arg3: memref<9x9x6xf32, #tpu.memory_space<vmem>>, %arg4: memref<9x12x3xf32, #tpu.memory_space<vmem>>, %arg5: memref<9x12x6xf32, #tpu.memory_space<vmem>>, %arg6: memref<9x12x9xf32, #tpu.memory_space<vmem>>, %arg7: memref<1x3x256xf32, #tpu.memory_space<vmem>>, %arg8: memref<1x12x256xf32, #tpu.memory_space<vmem>>) attributes {dimension_semantics = [#tpu.dimension_semantics<parallel>], iteration_bounds = array<i64: 2>, scalar_prefetch = 0 : i64, scratch_operands = 0 : i64, tpu.core_type = #tpu.core_type<tc>, window_params = [{pipeline_mode = #tpu.pipeline_mode<synchronous>, transform_indices = @transform_0, window_bounds = array<i64: 9, 6, 3>}, {pipeline_mode = #tpu.pipeline_mode<synchronous>, transform_indices = @transform_1, window_bounds = array<i64: 9, 9, 3>}, {pipeline_mode = #tpu.pipeline_mode<synchronous>, transform_indices = @transform_2, window_bounds = array<i64: 9, 9, 6>}, {pipeline_mode = #tpu.pipeline_mode<synchronous>, transform_indices = @transform_3, window_bounds = array<i64: 9, 12, 3>}, {pipeline_mode = #tpu.pipeline_mode<synchronous>, transform_indices = @transform_4, window_bounds = array<i64: 9, 12, 6>}, {pipeline_mode = #tpu.pipeline_mode<synchronous>, transform_indices = @transform_5, window_bounds = array<i64: 9, 12, 9>}, {transform_indices = @transform_6, window_bounds = array<i64: 1, 3, 256>}, {transform_indices = @transform_7, window_bounds = array<i64: 1, 12, 256>}]} {
    %0 = tpu.iota {dimensions = array<i32: 1>} : vector<1x256xi32>
    %c16_i32 = arith.constant 16 : i32
    %c0_i32 = arith.constant 0 : i32
    %1 = arith.cmpi eq, %c16_i32, %c0_i32 : i32
    %c1_i32 = arith.constant 1 : i32
    %2 = arith.select %1, %c1_i32, %c16_i32 : i32
    %3 = vector.broadcast %2 : i32 to vector<1x256xi32>
    %4 = arith.remsi %0, %3 : vector<1x256xi32>
    %c0_i32_0 = arith.constant 0 : i32
    %5 = vector.broadcast %c0_i32_0 : i32 to vector<1x256xi32>
    %6 = arith.cmpi ne, %4, %5 : vector<1x256xi32>
    %c0_i32_1 = arith.constant 0 : i32
    %7 = vector.broadcast %c0_i32_1 : i32 to vector<1x256xi32>
    %8 = arith.cmpi slt, %4, %7 : vector<1x256xi32>
    %c0_i32_2 = arith.constant 0 : i32
    %9 = arith.cmpi slt, %2, %c0_i32_2 : i32
    %10 = vector.broadcast %9 : i1 to vector<1x256xi1>
    %11 = vector.broadcast %10 : vector<1x256xi1> to vector<1x256xi1>
    %12 = arith.xori %8, %11 : vector<1x256xi1>
    %13 = arith.andi %12, %6 : vector<1x256xi1>
    %14 = vector.broadcast %2 : i32 to vector<1x256xi32>
    %15 = arith.addi %4, %14 : vector<1x256xi32>
    %16 = arith.select %13, %15, %4 : vector<1x256xi1>, vector<1x256xi32>
    %c0_i32_3 = arith.constant 0 : i32
    %17 = vector.broadcast %c0_i32_3 : i32 to vector<1x256xi32>
    %18 = arith.cmpi eq, %16, %17 : vector<1x256xi32>
    %c15_i32 = arith.constant 15 : i32
    %19 = vector.broadcast %c15_i32 : i32 to vector<1x256xi32>
    %20 = arith.cmpi eq, %16, %19 : vector<1x256xi32>
    %c0 = arith.constant 0 : index
    %c0_4 = arith.constant 0 : index
    %c0_5 = arith.constant 0 : index
    %21 = vector.load %arg7[%c0, %c0_4, %c0_5] : memref<1x3x256xf32, #tpu.memory_space<vmem>>, vector<1x3x256xf32>
    %22 = vector.shape_cast %21 : vector<1x3x256xf32> to vector<3x256xf32>
    %cst = arith.constant 0.000000e+00 : f32
    %23 = vector.broadcast %cst : f32 to vector<6x256xf32>
    %c241_i32 = arith.constant 241 : i32
    %24 = tpu.dynamic_rotate %22 by %c241_i32 dim 1 : vector<3x256xf32>, i32 -> vector<3x256xf32>
    %c1_i32_6 = arith.constant 1 : i32
    %25 = tpu.dynamic_rotate %22 by %c1_i32_6 dim 1 : vector<3x256xf32>, i32 -> vector<3x256xf32>
    %26 = vector.shape_cast %18 : vector<1x256xi1> to vector<1x256xi1>
    %27 = vector.broadcast %26 : vector<1x256xi1> to vector<3x256xi1>
    %28 = arith.select %27, %24, %25 : vector<3x256xi1>, vector<3x256xf32>
    %c16_i32_7 = arith.constant 16 : i32
    %29 = tpu.dynamic_rotate %28 by %c16_i32_7 dim 1 : vector<3x256xf32>, i32 -> vector<3x256xf32>
    %c0_8 = arith.constant 0 : index
    %c0_9 = arith.constant 0 : index
    %c0_10 = arith.constant 0 : index
    %30 = vector.load %arg1[%c0_8, %c0_9, %c0_10] : memref<9x6x3xf32, #tpu.memory_space<vmem>>, vector<1x6x3xf32>
    %31 = vector.shape_cast %30 : vector<1x6x3xf32> to vector<6x3xf32>
    %cst_11 = arith.constant dense<0.000000e+00> : vector<6x256xf32>
    %32 = tpu.matmul %31, %29, %cst_11 {dimension_numbers = #tpu.dot_dimension_numbers<[1], [0], [0], [1], [0, 0, 1, 1], [], []>, precision = #tpu.contract_precision<fp32>} : vector<6x3xf32>, vector<3x256xf32>, vector<6x256xf32> -> vector<6x256xf32>
    %33 = arith.addf %23, %32 : vector<6x256xf32>
    %c3 = arith.constant 3 : index
    %c0_12 = arith.constant 0 : index
    %c0_13 = arith.constant 0 : index
    %34 = vector.load %arg1[%c3, %c0_12, %c0_13] : memref<9x6x3xf32, #tpu.memory_space<vmem>>, vector<1x6x3xf32>
    %35 = vector.shape_cast %34 : vector<1x6x3xf32> to vector<6x3xf32>
    %cst_14 = arith.constant dense<0.000000e+00> : vector<6x256xf32>
    %36 = tpu.matmul %35, %28, %cst_14 {dimension_numbers = #tpu.dot_dimension_numbers<[1], [0], [0], [1], [0, 0, 1, 1], [], []>, precision = #tpu.contract_precision<fp32>} : vector<6x3xf32>, vector<3x256xf32>, vector<6x256xf32> -> vector<6x256xf32>
    %37 = arith.addf %33, %36 : vector<6x256xf32>
    %c240_i32 = arith.constant 240 : i32
    %38 = tpu.dynamic_rotate %28 by %c240_i32 dim 1 : vector<3x256xf32>, i32 -> vector<3x256xf32>
    %c6 = arith.constant 6 : index
    %c0_15 = arith.constant 0 : index
    %c0_16 = arith.constant 0 : index
    %39 = vector.load %arg1[%c6, %c0_15, %c0_16] : memref<9x6x3xf32, #tpu.memory_space<vmem>>, vector<1x6x3xf32>
    %40 = vector.shape_cast %39 : vector<1x6x3xf32> to vector<6x3xf32>
    %cst_17 = arith.constant dense<0.000000e+00> : vector<6x256xf32>
    %41 = tpu.matmul %40, %38, %cst_17 {dimension_numbers = #tpu.dot_dimension_numbers<[1], [0], [0], [1], [0, 0, 1, 1], [], []>, precision = #tpu.contract_precision<fp32>} : vector<6x3xf32>, vector<3x256xf32>, vector<6x256xf32> -> vector<6x256xf32>
    %42 = arith.addf %37, %41 : vector<6x256xf32>
    %c16_i32_18 = arith.constant 16 : i32
    %43 = tpu.dynamic_rotate %22 by %c16_i32_18 dim 1 : vector<3x256xf32>, i32 -> vector<3x256xf32>
    %c1 = arith.constant 1 : index
    %c0_19 = arith.constant 0 : index
    %c0_20 = arith.constant 0 : index
    %44 = vector.load %arg1[%c1, %c0_19, %c0_20] : memref<9x6x3xf32, #tpu.memory_space<vmem>>, vector<1x6x3xf32>
    %45 = vector.shape_cast %44 : vector<1x6x3xf32> to vector<6x3xf32>
    %cst_21 = arith.constant dense<0.000000e+00> : vector<6x256xf32>
    %46 = tpu.matmul %45, %43, %cst_21 {dimension_numbers = #tpu.dot_dimension_numbers<[1], [0], [0], [1], [0, 0, 1, 1], [], []>, precision = #tpu.contract_precision<fp32>} : vector<6x3xf32>, vector<3x256xf32>, vector<6x256xf32> -> vector<6x256xf32>
    %47 = arith.addf %42, %46 : vector<6x256xf32>
    %c4 = arith.constant 4 : index
    %c0_22 = arith.constant 0 : index
    %c0_23 = arith.constant 0 : index
    %48 = vector.load %arg1[%c4, %c0_22, %c0_23] : memref<9x6x3xf32, #tpu.memory_space<vmem>>, vector<1x6x3xf32>
    %49 = vector.shape_cast %48 : vector<1x6x3xf32> to vector<6x3xf32>
    %cst_24 = arith.constant dense<0.000000e+00> : vector<6x256xf32>
    %50 = tpu.matmul %49, %22, %cst_24 {dimension_numbers = #tpu.dot_dimension_numbers<[1], [0], [0], [1], [0, 0, 1, 1], [], []>, precision = #tpu.contract_precision<fp32>} : vector<6x3xf32>, vector<3x256xf32>, vector<6x256xf32> -> vector<6x256xf32>
    %51 = arith.addf %47, %50 : vector<6x256xf32>
    %c240_i32_25 = arith.constant 240 : i32
    %52 = tpu.dynamic_rotate %22 by %c240_i32_25 dim 1 : vector<3x256xf32>, i32 -> vector<3x256xf32>
    %c7 = arith.constant 7 : index
    %c0_26 = arith.constant 0 : index
    %c0_27 = arith.constant 0 : index
    %53 = vector.load %arg1[%c7, %c0_26, %c0_27] : memref<9x6x3xf32, #tpu.memory_space<vmem>>, vector<1x6x3xf32>
    %54 = vector.shape_cast %53 : vector<1x6x3xf32> to vector<6x3xf32>
    %cst_28 = arith.constant dense<0.000000e+00> : vector<6x256xf32>
    %55 = tpu.matmul %54, %52, %cst_28 {dimension_numbers = #tpu.dot_dimension_numbers<[1], [0], [0], [1], [0, 0, 1, 1], [], []>, precision = #tpu.contract_precision<fp32>} : vector<6x3xf32>, vector<3x256xf32>, vector<6x256xf32> -> vector<6x256xf32>
    %56 = arith.addf %51, %55 : vector<6x256xf32>
    %c15_i32_29 = arith.constant 15 : i32
    %57 = tpu.dynamic_rotate %22 by %c15_i32_29 dim 1 : vector<3x256xf32>, i32 -> vector<3x256xf32>
    %c255_i32 = arith.constant 255 : i32
    %58 = tpu.dynamic_rotate %22 by %c255_i32 dim 1 : vector<3x256xf32>, i32 -> vector<3x256xf32>
    %59 = vector.shape_cast %20 : vector<1x256xi1> to vector<1x256xi1>
    %60 = vector.broadcast %59 : vector<1x256xi1> to vector<3x256xi1>
    %61 = arith.select %60, %57, %58 : vector<3x256xi1>, vector<3x256xf32>
    %c16_i32_30 = arith.constant 16 : i32
    %62 = tpu.dynamic_rotate %61 by %c16_i32_30 dim 1 : vector<3x256xf32>, i32 -> vector<3x256xf32>
    %c2 = arith.constant 2 : index
    %c0_31 = arith.constant 0 : index
    %c0_32 = arith.constant 0 : index
    %63 = vector.load %arg1[%c2, %c0_31, %c0_32] : memref<9x6x3xf32, #tpu.memory_space<vmem>>, vector<1x6x3xf32>
    %64 = vector.shape_cast %63 : vector<1x6x3xf32> to vector<6x3xf32>
    %cst_33 = arith.constant dense<0.000000e+00> : vector<6x256xf32>
    %65 = tpu.matmul %64, %62, %cst_33 {dimension_numbers = #tpu.dot_dimension_numbers<[1], [0], [0], [1], [0, 0, 1, 1], [], []>, precision = #tpu.contract_precision<fp32>} : vector<6x3xf32>, vector<3x256xf32>, vector<6x256xf32> -> vector<6x256xf32>
    %66 = arith.addf %56, %65 : vector<6x256xf32>
    %c5 = arith.constant 5 : index
    %c0_34 = arith.constant 0 : index
    %c0_35 = arith.constant 0 : index
    %67 = vector.load %arg1[%c5, %c0_34, %c0_35] : memref<9x6x3xf32, #tpu.memory_space<vmem>>, vector<1x6x3xf32>
    %68 = vector.shape_cast %67 : vector<1x6x3xf32> to vector<6x3xf32>
    %cst_36 = arith.constant dense<0.000000e+00> : vector<6x256xf32>
    %69 = tpu.matmul %68, %61, %cst_36 {dimension_numbers = #tpu.dot_dimension_numbers<[1], [0], [0], [1], [0, 0, 1, 1], [], []>, precision = #tpu.contract_precision<fp32>} : vector<6x3xf32>, vector<3x256xf32>, vector<6x256xf32> -> vector<6x256xf32>
    %70 = arith.addf %66, %69 : vector<6x256xf32>
    %c240_i32_37 = arith.constant 240 : i32
    %71 = tpu.dynamic_rotate %61 by %c240_i32_37 dim 1 : vector<3x256xf32>, i32 -> vector<3x256xf32>
    %c8 = arith.constant 8 : index
    %c0_38 = arith.constant 0 : index
    %c0_39 = arith.constant 0 : index
    %72 = vector.load %arg1[%c8, %c0_38, %c0_39] : memref<9x6x3xf32, #tpu.memory_space<vmem>>, vector<1x6x3xf32>
    %73 = vector.shape_cast %72 : vector<1x6x3xf32> to vector<6x3xf32>
    %cst_40 = arith.constant dense<0.000000e+00> : vector<6x256xf32>
    %74 = tpu.matmul %73, %71, %cst_40 {dimension_numbers = #tpu.dot_dimension_numbers<[1], [0], [0], [1], [0, 0, 1, 1], [], []>, precision = #tpu.contract_precision<fp32>} : vector<6x3xf32>, vector<3x256xf32>, vector<6x256xf32> -> vector<6x256xf32>
    %75 = arith.addf %70, %74 : vector<6x256xf32>
    %cst_41 = arith.constant 0.000000e+00 : f32
    %76 = vector.broadcast %cst_41 : f32 to vector<9x256xf32>
    %c241_i32_42 = arith.constant 241 : i32
    %77 = tpu.dynamic_rotate %22 by %c241_i32_42 dim 1 : vector<3x256xf32>, i32 -> vector<3x256xf32>
    %c1_i32_43 = arith.constant 1 : i32
    %78 = tpu.dynamic_rotate %22 by %c1_i32_43 dim 1 : vector<3x256xf32>, i32 -> vector<3x256xf32>
    %79 = vector.shape_cast %18 : vector<1x256xi1> to vector<1x256xi1>
    %80 = vector.broadcast %79 : vector<1x256xi1> to vector<3x256xi1>
    %81 = arith.select %80, %77, %78 : vector<3x256xi1>, vector<3x256xf32>
    %c16_i32_44 = arith.constant 16 : i32
    %82 = tpu.dynamic_rotate %81 by %c16_i32_44 dim 1 : vector<3x256xf32>, i32 -> vector<3x256xf32>
    %c0_45 = arith.constant 0 : index
    %c0_46 = arith.constant 0 : index
    %c0_47 = arith.constant 0 : index
    %83 = vector.load %arg2[%c0_45, %c0_46, %c0_47] : memref<9x9x3xf32, #tpu.memory_space<vmem>>, vector<1x9x3xf32>
    %84 = vector.shape_cast %83 : vector<1x9x3xf32> to vector<9x3xf32>
    %cst_48 = arith.constant dense<0.000000e+00> : vector<9x256xf32>
    %85 = tpu.matmul %84, %82, %cst_48 {dimension_numbers = #tpu.dot_dimension_numbers<[1], [0], [0], [1], [0, 0, 1, 1], [], []>, precision = #tpu.contract_precision<fp32>} : vector<9x3xf32>, vector<3x256xf32>, vector<9x256xf32> -> vector<9x256xf32>
    %86 = arith.addf %76, %85 : vector<9x256xf32>
    %c3_49 = arith.constant 3 : index
    %c0_50 = arith.constant 0 : index
    %c0_51 = arith.constant 0 : index
    %87 = vector.load %arg2[%c3_49, %c0_50, %c0_51] : memref<9x9x3xf32, #tpu.memory_space<vmem>>, vector<1x9x3xf32>
    %88 = vector.shape_cast %87 : vector<1x9x3xf32> to vector<9x3xf32>
    %cst_52 = arith.constant dense<0.000000e+00> : vector<9x256xf32>
    %89 = tpu.matmul %88, %81, %cst_52 {dimension_numbers = #tpu.dot_dimension_numbers<[1], [0], [0], [1], [0, 0, 1, 1], [], []>, precision = #tpu.contract_precision<fp32>} : vector<9x3xf32>, vector<3x256xf32>, vector<9x256xf32> -> vector<9x256xf32>
    %90 = arith.addf %86, %89 : vector<9x256xf32>
    %c240_i32_53 = arith.constant 240 : i32
    %91 = tpu.dynamic_rotate %81 by %c240_i32_53 dim 1 : vector<3x256xf32>, i32 -> vector<3x256xf32>
    %c6_54 = arith.constant 6 : index
    %c0_55 = arith.constant 0 : index
    %c0_56 = arith.constant 0 : index
    %92 = vector.load %arg2[%c6_54, %c0_55, %c0_56] : memref<9x9x3xf32, #tpu.memory_space<vmem>>, vector<1x9x3xf32>
    %93 = vector.shape_cast %92 : vector<1x9x3xf32> to vector<9x3xf32>
    %cst_57 = arith.constant dense<0.000000e+00> : vector<9x256xf32>
    %94 = tpu.matmul %93, %91, %cst_57 {dimension_numbers = #tpu.dot_dimension_numbers<[1], [0], [0], [1], [0, 0, 1, 1], [], []>, precision = #tpu.contract_precision<fp32>} : vector<9x3xf32>, vector<3x256xf32>, vector<9x256xf32> -> vector<9x256xf32>
    %95 = arith.addf %90, %94 : vector<9x256xf32>
    %c16_i32_58 = arith.constant 16 : i32
    %96 = tpu.dynamic_rotate %22 by %c16_i32_58 dim 1 : vector<3x256xf32>, i32 -> vector<3x256xf32>
    %c1_59 = arith.constant 1 : index
    %c0_60 = arith.constant 0 : index
    %c0_61 = arith.constant 0 : index
    %97 = vector.load %arg2[%c1_59, %c0_60, %c0_61] : memref<9x9x3xf32, #tpu.memory_space<vmem>>, vector<1x9x3xf32>
    %98 = vector.shape_cast %97 : vector<1x9x3xf32> to vector<9x3xf32>
    %cst_62 = arith.constant dense<0.000000e+00> : vector<9x256xf32>
    %99 = tpu.matmul %98, %96, %cst_62 {dimension_numbers = #tpu.dot_dimension_numbers<[1], [0], [0], [1], [0, 0, 1, 1], [], []>, precision = #tpu.contract_precision<fp32>} : vector<9x3xf32>, vector<3x256xf32>, vector<9x256xf32> -> vector<9x256xf32>
    %100 = arith.addf %95, %99 : vector<9x256xf32>
    %c4_63 = arith.constant 4 : index
    %c0_64 = arith.constant 0 : index
    %c0_65 = arith.constant 0 : index
    %101 = vector.load %arg2[%c4_63, %c0_64, %c0_65] : memref<9x9x3xf32, #tpu.memory_space<vmem>>, vector<1x9x3xf32>
    %102 = vector.shape_cast %101 : vector<1x9x3xf32> to vector<9x3xf32>
    %cst_66 = arith.constant dense<0.000000e+00> : vector<9x256xf32>
    %103 = tpu.matmul %102, %22, %cst_66 {dimension_numbers = #tpu.dot_dimension_numbers<[1], [0], [0], [1], [0, 0, 1, 1], [], []>, precision = #tpu.contract_precision<fp32>} : vector<9x3xf32>, vector<3x256xf32>, vector<9x256xf32> -> vector<9x256xf32>
    %104 = arith.addf %100, %103 : vector<9x256xf32>
    %c240_i32_67 = arith.constant 240 : i32
    %105 = tpu.dynamic_rotate %22 by %c240_i32_67 dim 1 : vector<3x256xf32>, i32 -> vector<3x256xf32>
    %c7_68 = arith.constant 7 : index
    %c0_69 = arith.constant 0 : index
    %c0_70 = arith.constant 0 : index
    %106 = vector.load %arg2[%c7_68, %c0_69, %c0_70] : memref<9x9x3xf32, #tpu.memory_space<vmem>>, vector<1x9x3xf32>
    %107 = vector.shape_cast %106 : vector<1x9x3xf32> to vector<9x3xf32>
    %cst_71 = arith.constant dense<0.000000e+00> : vector<9x256xf32>
    %108 = tpu.matmul %107, %105, %cst_71 {dimension_numbers = #tpu.dot_dimension_numbers<[1], [0], [0], [1], [0, 0, 1, 1], [], []>, precision = #tpu.contract_precision<fp32>} : vector<9x3xf32>, vector<3x256xf32>, vector<9x256xf32> -> vector<9x256xf32>
    %109 = arith.addf %104, %108 : vector<9x256xf32>
    %c15_i32_72 = arith.constant 15 : i32
    %110 = tpu.dynamic_rotate %22 by %c15_i32_72 dim 1 : vector<3x256xf32>, i32 -> vector<3x256xf32>
    %c255_i32_73 = arith.constant 255 : i32
    %111 = tpu.dynamic_rotate %22 by %c255_i32_73 dim 1 : vector<3x256xf32>, i32 -> vector<3x256xf32>
    %112 = vector.shape_cast %20 : vector<1x256xi1> to vector<1x256xi1>
    %113 = vector.broadcast %112 : vector<1x256xi1> to vector<3x256xi1>
    %114 = arith.select %113, %110, %111 : vector<3x256xi1>, vector<3x256xf32>
    %c16_i32_74 = arith.constant 16 : i32
    %115 = tpu.dynamic_rotate %114 by %c16_i32_74 dim 1 : vector<3x256xf32>, i32 -> vector<3x256xf32>
    %c2_75 = arith.constant 2 : index
    %c0_76 = arith.constant 0 : index
    %c0_77 = arith.constant 0 : index
    %116 = vector.load %arg2[%c2_75, %c0_76, %c0_77] : memref<9x9x3xf32, #tpu.memory_space<vmem>>, vector<1x9x3xf32>
    %117 = vector.shape_cast %116 : vector<1x9x3xf32> to vector<9x3xf32>
    %cst_78 = arith.constant dense<0.000000e+00> : vector<9x256xf32>
    %118 = tpu.matmul %117, %115, %cst_78 {dimension_numbers = #tpu.dot_dimension_numbers<[1], [0], [0], [1], [0, 0, 1, 1], [], []>, precision = #tpu.contract_precision<fp32>} : vector<9x3xf32>, vector<3x256xf32>, vector<9x256xf32> -> vector<9x256xf32>
    %119 = arith.addf %109, %118 : vector<9x256xf32>
    %c5_79 = arith.constant 5 : index
    %c0_80 = arith.constant 0 : index
    %c0_81 = arith.constant 0 : index
    %120 = vector.load %arg2[%c5_79, %c0_80, %c0_81] : memref<9x9x3xf32, #tpu.memory_space<vmem>>, vector<1x9x3xf32>
    %121 = vector.shape_cast %120 : vector<1x9x3xf32> to vector<9x3xf32>
    %cst_82 = arith.constant dense<0.000000e+00> : vector<9x256xf32>
    %122 = tpu.matmul %121, %114, %cst_82 {dimension_numbers = #tpu.dot_dimension_numbers<[1], [0], [0], [1], [0, 0, 1, 1], [], []>, precision = #tpu.contract_precision<fp32>} : vector<9x3xf32>, vector<3x256xf32>, vector<9x256xf32> -> vector<9x256xf32>
    %123 = arith.addf %119, %122 : vector<9x256xf32>
    %c240_i32_83 = arith.constant 240 : i32
    %124 = tpu.dynamic_rotate %114 by %c240_i32_83 dim 1 : vector<3x256xf32>, i32 -> vector<3x256xf32>
    %c8_84 = arith.constant 8 : index
    %c0_85 = arith.constant 0 : index
    %c0_86 = arith.constant 0 : index
    %125 = vector.load %arg2[%c8_84, %c0_85, %c0_86] : memref<9x9x3xf32, #tpu.memory_space<vmem>>, vector<1x9x3xf32>
    %126 = vector.shape_cast %125 : vector<1x9x3xf32> to vector<9x3xf32>
    %cst_87 = arith.constant dense<0.000000e+00> : vector<9x256xf32>
    %127 = tpu.matmul %126, %124, %cst_87 {dimension_numbers = #tpu.dot_dimension_numbers<[1], [0], [0], [1], [0, 0, 1, 1], [], []>, precision = #tpu.contract_precision<fp32>} : vector<9x3xf32>, vector<3x256xf32>, vector<9x256xf32> -> vector<9x256xf32>
    %128 = arith.addf %123, %127 : vector<9x256xf32>
    %c241_i32_88 = arith.constant 241 : i32
    %129 = tpu.dynamic_rotate %75 by %c241_i32_88 dim 1 : vector<6x256xf32>, i32 -> vector<6x256xf32>
    %c1_i32_89 = arith.constant 1 : i32
    %130 = tpu.dynamic_rotate %75 by %c1_i32_89 dim 1 : vector<6x256xf32>, i32 -> vector<6x256xf32>
    %131 = vector.shape_cast %18 : vector<1x256xi1> to vector<1x256xi1>
    %132 = vector.broadcast %131 : vector<1x256xi1> to vector<6x256xi1>
    %133 = arith.select %132, %129, %130 : vector<6x256xi1>, vector<6x256xf32>
    %c16_i32_90 = arith.constant 16 : i32
    %134 = tpu.dynamic_rotate %133 by %c16_i32_90 dim 1 : vector<6x256xf32>, i32 -> vector<6x256xf32>
    %c0_91 = arith.constant 0 : index
    %c0_92 = arith.constant 0 : index
    %c0_93 = arith.constant 0 : index
    %135 = vector.load %arg3[%c0_91, %c0_92, %c0_93] : memref<9x9x6xf32, #tpu.memory_space<vmem>>, vector<1x9x6xf32>
    %136 = vector.shape_cast %135 : vector<1x9x6xf32> to vector<9x6xf32>
    %cst_94 = arith.constant dense<0.000000e+00> : vector<9x256xf32>
    %137 = tpu.matmul %136, %134, %cst_94 {dimension_numbers = #tpu.dot_dimension_numbers<[1], [0], [0], [1], [0, 0, 1, 1], [], []>, precision = #tpu.contract_precision<fp32>} : vector<9x6xf32>, vector<6x256xf32>, vector<9x256xf32> -> vector<9x256xf32>
    %138 = arith.addf %128, %137 : vector<9x256xf32>
    %c3_95 = arith.constant 3 : index
    %c0_96 = arith.constant 0 : index
    %c0_97 = arith.constant 0 : index
    %139 = vector.load %arg3[%c3_95, %c0_96, %c0_97] : memref<9x9x6xf32, #tpu.memory_space<vmem>>, vector<1x9x6xf32>
    %140 = vector.shape_cast %139 : vector<1x9x6xf32> to vector<9x6xf32>
    %cst_98 = arith.constant dense<0.000000e+00> : vector<9x256xf32>
    %141 = tpu.matmul %140, %133, %cst_98 {dimension_numbers = #tpu.dot_dimension_numbers<[1], [0], [0], [1], [0, 0, 1, 1], [], []>, precision = #tpu.contract_precision<fp32>} : vector<9x6xf32>, vector<6x256xf32>, vector<9x256xf32> -> vector<9x256xf32>
    %142 = arith.addf %138, %141 : vector<9x256xf32>
    %c240_i32_99 = arith.constant 240 : i32
    %143 = tpu.dynamic_rotate %133 by %c240_i32_99 dim 1 : vector<6x256xf32>, i32 -> vector<6x256xf32>
    %c6_100 = arith.constant 6 : index
    %c0_101 = arith.constant 0 : index
    %c0_102 = arith.constant 0 : index
    %144 = vector.load %arg3[%c6_100, %c0_101, %c0_102] : memref<9x9x6xf32, #tpu.memory_space<vmem>>, vector<1x9x6xf32>
    %145 = vector.shape_cast %144 : vector<1x9x6xf32> to vector<9x6xf32>
    %cst_103 = arith.constant dense<0.000000e+00> : vector<9x256xf32>
    %146 = tpu.matmul %145, %143, %cst_103 {dimension_numbers = #tpu.dot_dimension_numbers<[1], [0], [0], [1], [0, 0, 1, 1], [], []>, precision = #tpu.contract_precision<fp32>} : vector<9x6xf32>, vector<6x256xf32>, vector<9x256xf32> -> vector<9x256xf32>
    %147 = arith.addf %142, %146 : vector<9x256xf32>
    %c16_i32_104 = arith.constant 16 : i32
    %148 = tpu.dynamic_rotate %75 by %c16_i32_104 dim 1 : vector<6x256xf32>, i32 -> vector<6x256xf32>
    %c1_105 = arith.constant 1 : index
    %c0_106 = arith.constant 0 : index
    %c0_107 = arith.constant 0 : index
    %149 = vector.load %arg3[%c1_105, %c0_106, %c0_107] : memref<9x9x6xf32, #tpu.memory_space<vmem>>, vector<1x9x6xf32>
    %150 = vector.shape_cast %149 : vector<1x9x6xf32> to vector<9x6xf32>
    %cst_108 = arith.constant dense<0.000000e+00> : vector<9x256xf32>
    %151 = tpu.matmul %150, %148, %cst_108 {dimension_numbers = #tpu.dot_dimension_numbers<[1], [0], [0], [1], [0, 0, 1, 1], [], []>, precision = #tpu.contract_precision<fp32>} : vector<9x6xf32>, vector<6x256xf32>, vector<9x256xf32> -> vector<9x256xf32>
    %152 = arith.addf %147, %151 : vector<9x256xf32>
    %c4_109 = arith.constant 4 : index
    %c0_110 = arith.constant 0 : index
    %c0_111 = arith.constant 0 : index
    %153 = vector.load %arg3[%c4_109, %c0_110, %c0_111] : memref<9x9x6xf32, #tpu.memory_space<vmem>>, vector<1x9x6xf32>
    %154 = vector.shape_cast %153 : vector<1x9x6xf32> to vector<9x6xf32>
    %cst_112 = arith.constant dense<0.000000e+00> : vector<9x256xf32>
    %155 = tpu.matmul %154, %75, %cst_112 {dimension_numbers = #tpu.dot_dimension_numbers<[1], [0], [0], [1], [0, 0, 1, 1], [], []>, precision = #tpu.contract_precision<fp32>} : vector<9x6xf32>, vector<6x256xf32>, vector<9x256xf32> -> vector<9x256xf32>
    %156 = arith.addf %152, %155 : vector<9x256xf32>
    %c240_i32_113 = arith.constant 240 : i32
    %157 = tpu.dynamic_rotate %75 by %c240_i32_113 dim 1 : vector<6x256xf32>, i32 -> vector<6x256xf32>
    %c7_114 = arith.constant 7 : index
    %c0_115 = arith.constant 0 : index
    %c0_116 = arith.constant 0 : index
    %158 = vector.load %arg3[%c7_114, %c0_115, %c0_116] : memref<9x9x6xf32, #tpu.memory_space<vmem>>, vector<1x9x6xf32>
    %159 = vector.shape_cast %158 : vector<1x9x6xf32> to vector<9x6xf32>
    %cst_117 = arith.constant dense<0.000000e+00> : vector<9x256xf32>
    %160 = tpu.matmul %159, %157, %cst_117 {dimension_numbers = #tpu.dot_dimension_numbers<[1], [0], [0], [1], [0, 0, 1, 1], [], []>, precision = #tpu.contract_precision<fp32>} : vector<9x6xf32>, vector<6x256xf32>, vector<9x256xf32> -> vector<9x256xf32>
    %161 = arith.addf %156, %160 : vector<9x256xf32>
    %c15_i32_118 = arith.constant 15 : i32
    %162 = tpu.dynamic_rotate %75 by %c15_i32_118 dim 1 : vector<6x256xf32>, i32 -> vector<6x256xf32>
    %c255_i32_119 = arith.constant 255 : i32
    %163 = tpu.dynamic_rotate %75 by %c255_i32_119 dim 1 : vector<6x256xf32>, i32 -> vector<6x256xf32>
    %164 = vector.shape_cast %20 : vector<1x256xi1> to vector<1x256xi1>
    %165 = vector.broadcast %164 : vector<1x256xi1> to vector<6x256xi1>
    %166 = arith.select %165, %162, %163 : vector<6x256xi1>, vector<6x256xf32>
    %c16_i32_120 = arith.constant 16 : i32
    %167 = tpu.dynamic_rotate %166 by %c16_i32_120 dim 1 : vector<6x256xf32>, i32 -> vector<6x256xf32>
    %c2_121 = arith.constant 2 : index
    %c0_122 = arith.constant 0 : index
    %c0_123 = arith.constant 0 : index
    %168 = vector.load %arg3[%c2_121, %c0_122, %c0_123] : memref<9x9x6xf32, #tpu.memory_space<vmem>>, vector<1x9x6xf32>
    %169 = vector.shape_cast %168 : vector<1x9x6xf32> to vector<9x6xf32>
    %cst_124 = arith.constant dense<0.000000e+00> : vector<9x256xf32>
    %170 = tpu.matmul %169, %167, %cst_124 {dimension_numbers = #tpu.dot_dimension_numbers<[1], [0], [0], [1], [0, 0, 1, 1], [], []>, precision = #tpu.contract_precision<fp32>} : vector<9x6xf32>, vector<6x256xf32>, vector<9x256xf32> -> vector<9x256xf32>
    %171 = arith.addf %161, %170 : vector<9x256xf32>
    %c5_125 = arith.constant 5 : index
    %c0_126 = arith.constant 0 : index
    %c0_127 = arith.constant 0 : index
    %172 = vector.load %arg3[%c5_125, %c0_126, %c0_127] : memref<9x9x6xf32, #tpu.memory_space<vmem>>, vector<1x9x6xf32>
    %173 = vector.shape_cast %172 : vector<1x9x6xf32> to vector<9x6xf32>
    %cst_128 = arith.constant dense<0.000000e+00> : vector<9x256xf32>
    %174 = tpu.matmul %173, %166, %cst_128 {dimension_numbers = #tpu.dot_dimension_numbers<[1], [0], [0], [1], [0, 0, 1, 1], [], []>, precision = #tpu.contract_precision<fp32>} : vector<9x6xf32>, vector<6x256xf32>, vector<9x256xf32> -> vector<9x256xf32>
    %175 = arith.addf %171, %174 : vector<9x256xf32>
    %c240_i32_129 = arith.constant 240 : i32
    %176 = tpu.dynamic_rotate %166 by %c240_i32_129 dim 1 : vector<6x256xf32>, i32 -> vector<6x256xf32>
    %c8_130 = arith.constant 8 : index
    %c0_131 = arith.constant 0 : index
    %c0_132 = arith.constant 0 : index
    %177 = vector.load %arg3[%c8_130, %c0_131, %c0_132] : memref<9x9x6xf32, #tpu.memory_space<vmem>>, vector<1x9x6xf32>
    %178 = vector.shape_cast %177 : vector<1x9x6xf32> to vector<9x6xf32>
    %cst_133 = arith.constant dense<0.000000e+00> : vector<9x256xf32>
    %179 = tpu.matmul %178, %176, %cst_133 {dimension_numbers = #tpu.dot_dimension_numbers<[1], [0], [0], [1], [0, 0, 1, 1], [], []>, precision = #tpu.contract_precision<fp32>} : vector<9x6xf32>, vector<6x256xf32>, vector<9x256xf32> -> vector<9x256xf32>
    %180 = arith.addf %175, %179 : vector<9x256xf32>
    %cst_134 = arith.constant 0.000000e+00 : f32
    %181 = vector.broadcast %cst_134 : f32 to vector<12x256xf32>
    %c241_i32_135 = arith.constant 241 : i32
    %182 = tpu.dynamic_rotate %22 by %c241_i32_135 dim 1 : vector<3x256xf32>, i32 -> vector<3x256xf32>
    %c1_i32_136 = arith.constant 1 : i32
    %183 = tpu.dynamic_rotate %22 by %c1_i32_136 dim 1 : vector<3x256xf32>, i32 -> vector<3x256xf32>
    %184 = vector.shape_cast %18 : vector<1x256xi1> to vector<1x256xi1>
    %185 = vector.broadcast %184 : vector<1x256xi1> to vector<3x256xi1>
    %186 = arith.select %185, %182, %183 : vector<3x256xi1>, vector<3x256xf32>
    %c16_i32_137 = arith.constant 16 : i32
    %187 = tpu.dynamic_rotate %186 by %c16_i32_137 dim 1 : vector<3x256xf32>, i32 -> vector<3x256xf32>
    %c0_138 = arith.constant 0 : index
    %c0_139 = arith.constant 0 : index
    %c0_140 = arith.constant 0 : index
    %188 = vector.load %arg4[%c0_138, %c0_139, %c0_140] : memref<9x12x3xf32, #tpu.memory_space<vmem>>, vector<1x12x3xf32>
    %189 = vector.shape_cast %188 : vector<1x12x3xf32> to vector<12x3xf32>
    %cst_141 = arith.constant dense<0.000000e+00> : vector<12x256xf32>
    %190 = tpu.matmul %189, %187, %cst_141 {dimension_numbers = #tpu.dot_dimension_numbers<[1], [0], [0], [1], [0, 0, 1, 1], [], []>, precision = #tpu.contract_precision<fp32>} : vector<12x3xf32>, vector<3x256xf32>, vector<12x256xf32> -> vector<12x256xf32>
    %191 = arith.addf %181, %190 : vector<12x256xf32>
    %c3_142 = arith.constant 3 : index
    %c0_143 = arith.constant 0 : index
    %c0_144 = arith.constant 0 : index
    %192 = vector.load %arg4[%c3_142, %c0_143, %c0_144] : memref<9x12x3xf32, #tpu.memory_space<vmem>>, vector<1x12x3xf32>
    %193 = vector.shape_cast %192 : vector<1x12x3xf32> to vector<12x3xf32>
    %cst_145 = arith.constant dense<0.000000e+00> : vector<12x256xf32>
    %194 = tpu.matmul %193, %186, %cst_145 {dimension_numbers = #tpu.dot_dimension_numbers<[1], [0], [0], [1], [0, 0, 1, 1], [], []>, precision = #tpu.contract_precision<fp32>} : vector<12x3xf32>, vector<3x256xf32>, vector<12x256xf32> -> vector<12x256xf32>
    %195 = arith.addf %191, %194 : vector<12x256xf32>
    %c240_i32_146 = arith.constant 240 : i32
    %196 = tpu.dynamic_rotate %186 by %c240_i32_146 dim 1 : vector<3x256xf32>, i32 -> vector<3x256xf32>
    %c6_147 = arith.constant 6 : index
    %c0_148 = arith.constant 0 : index
    %c0_149 = arith.constant 0 : index
    %197 = vector.load %arg4[%c6_147, %c0_148, %c0_149] : memref<9x12x3xf32, #tpu.memory_space<vmem>>, vector<1x12x3xf32>
    %198 = vector.shape_cast %197 : vector<1x12x3xf32> to vector<12x3xf32>
    %cst_150 = arith.constant dense<0.000000e+00> : vector<12x256xf32>
    %199 = tpu.matmul %198, %196, %cst_150 {dimension_numbers = #tpu.dot_dimension_numbers<[1], [0], [0], [1], [0, 0, 1, 1], [], []>, precision = #tpu.contract_precision<fp32>} : vector<12x3xf32>, vector<3x256xf32>, vector<12x256xf32> -> vector<12x256xf32>
    %200 = arith.addf %195, %199 : vector<12x256xf32>
    %c16_i32_151 = arith.constant 16 : i32
    %201 = tpu.dynamic_rotate %22 by %c16_i32_151 dim 1 : vector<3x256xf32>, i32 -> vector<3x256xf32>
    %c1_152 = arith.constant 1 : index
    %c0_153 = arith.constant 0 : index
    %c0_154 = arith.constant 0 : index
    %202 = vector.load %arg4[%c1_152, %c0_153, %c0_154] : memref<9x12x3xf32, #tpu.memory_space<vmem>>, vector<1x12x3xf32>
    %203 = vector.shape_cast %202 : vector<1x12x3xf32> to vector<12x3xf32>
    %cst_155 = arith.constant dense<0.000000e+00> : vector<12x256xf32>
    %204 = tpu.matmul %203, %201, %cst_155 {dimension_numbers = #tpu.dot_dimension_numbers<[1], [0], [0], [1], [0, 0, 1, 1], [], []>, precision = #tpu.contract_precision<fp32>} : vector<12x3xf32>, vector<3x256xf32>, vector<12x256xf32> -> vector<12x256xf32>
    %205 = arith.addf %200, %204 : vector<12x256xf32>
    %c4_156 = arith.constant 4 : index
    %c0_157 = arith.constant 0 : index
    %c0_158 = arith.constant 0 : index
    %206 = vector.load %arg4[%c4_156, %c0_157, %c0_158] : memref<9x12x3xf32, #tpu.memory_space<vmem>>, vector<1x12x3xf32>
    %207 = vector.shape_cast %206 : vector<1x12x3xf32> to vector<12x3xf32>
    %cst_159 = arith.constant dense<0.000000e+00> : vector<12x256xf32>
    %208 = tpu.matmul %207, %22, %cst_159 {dimension_numbers = #tpu.dot_dimension_numbers<[1], [0], [0], [1], [0, 0, 1, 1], [], []>, precision = #tpu.contract_precision<fp32>} : vector<12x3xf32>, vector<3x256xf32>, vector<12x256xf32> -> vector<12x256xf32>
    %209 = arith.addf %205, %208 : vector<12x256xf32>
    %c240_i32_160 = arith.constant 240 : i32
    %210 = tpu.dynamic_rotate %22 by %c240_i32_160 dim 1 : vector<3x256xf32>, i32 -> vector<3x256xf32>
    %c7_161 = arith.constant 7 : index
    %c0_162 = arith.constant 0 : index
    %c0_163 = arith.constant 0 : index
    %211 = vector.load %arg4[%c7_161, %c0_162, %c0_163] : memref<9x12x3xf32, #tpu.memory_space<vmem>>, vector<1x12x3xf32>
    %212 = vector.shape_cast %211 : vector<1x12x3xf32> to vector<12x3xf32>
    %cst_164 = arith.constant dense<0.000000e+00> : vector<12x256xf32>
    %213 = tpu.matmul %212, %210, %cst_164 {dimension_numbers = #tpu.dot_dimension_numbers<[1], [0], [0], [1], [0, 0, 1, 1], [], []>, precision = #tpu.contract_precision<fp32>} : vector<12x3xf32>, vector<3x256xf32>, vector<12x256xf32> -> vector<12x256xf32>
    %214 = arith.addf %209, %213 : vector<12x256xf32>
    %c15_i32_165 = arith.constant 15 : i32
    %215 = tpu.dynamic_rotate %22 by %c15_i32_165 dim 1 : vector<3x256xf32>, i32 -> vector<3x256xf32>
    %c255_i32_166 = arith.constant 255 : i32
    %216 = tpu.dynamic_rotate %22 by %c255_i32_166 dim 1 : vector<3x256xf32>, i32 -> vector<3x256xf32>
    %217 = vector.shape_cast %20 : vector<1x256xi1> to vector<1x256xi1>
    %218 = vector.broadcast %217 : vector<1x256xi1> to vector<3x256xi1>
    %219 = arith.select %218, %215, %216 : vector<3x256xi1>, vector<3x256xf32>
    %c16_i32_167 = arith.constant 16 : i32
    %220 = tpu.dynamic_rotate %219 by %c16_i32_167 dim 1 : vector<3x256xf32>, i32 -> vector<3x256xf32>
    %c2_168 = arith.constant 2 : index
    %c0_169 = arith.constant 0 : index
    %c0_170 = arith.constant 0 : index
    %221 = vector.load %arg4[%c2_168, %c0_169, %c0_170] : memref<9x12x3xf32, #tpu.memory_space<vmem>>, vector<1x12x3xf32>
    %222 = vector.shape_cast %221 : vector<1x12x3xf32> to vector<12x3xf32>
    %cst_171 = arith.constant dense<0.000000e+00> : vector<12x256xf32>
    %223 = tpu.matmul %222, %220, %cst_171 {dimension_numbers = #tpu.dot_dimension_numbers<[1], [0], [0], [1], [0, 0, 1, 1], [], []>, precision = #tpu.contract_precision<fp32>} : vector<12x3xf32>, vector<3x256xf32>, vector<12x256xf32> -> vector<12x256xf32>
    %224 = arith.addf %214, %223 : vector<12x256xf32>
    %c5_172 = arith.constant 5 : index
    %c0_173 = arith.constant 0 : index
    %c0_174 = arith.constant 0 : index
    %225 = vector.load %arg4[%c5_172, %c0_173, %c0_174] : memref<9x12x3xf32, #tpu.memory_space<vmem>>, vector<1x12x3xf32>
    %226 = vector.shape_cast %225 : vector<1x12x3xf32> to vector<12x3xf32>
    %cst_175 = arith.constant dense<0.000000e+00> : vector<12x256xf32>
    %227 = tpu.matmul %226, %219, %cst_175 {dimension_numbers = #tpu.dot_dimension_numbers<[1], [0], [0], [1], [0, 0, 1, 1], [], []>, precision = #tpu.contract_precision<fp32>} : vector<12x3xf32>, vector<3x256xf32>, vector<12x256xf32> -> vector<12x256xf32>
    %228 = arith.addf %224, %227 : vector<12x256xf32>
    %c240_i32_176 = arith.constant 240 : i32
    %229 = tpu.dynamic_rotate %219 by %c240_i32_176 dim 1 : vector<3x256xf32>, i32 -> vector<3x256xf32>
    %c8_177 = arith.constant 8 : index
    %c0_178 = arith.constant 0 : index
    %c0_179 = arith.constant 0 : index
    %230 = vector.load %arg4[%c8_177, %c0_178, %c0_179] : memref<9x12x3xf32, #tpu.memory_space<vmem>>, vector<1x12x3xf32>
    %231 = vector.shape_cast %230 : vector<1x12x3xf32> to vector<12x3xf32>
    %cst_180 = arith.constant dense<0.000000e+00> : vector<12x256xf32>
    %232 = tpu.matmul %231, %229, %cst_180 {dimension_numbers = #tpu.dot_dimension_numbers<[1], [0], [0], [1], [0, 0, 1, 1], [], []>, precision = #tpu.contract_precision<fp32>} : vector<12x3xf32>, vector<3x256xf32>, vector<12x256xf32> -> vector<12x256xf32>
    %233 = arith.addf %228, %232 : vector<12x256xf32>
    %c241_i32_181 = arith.constant 241 : i32
    %234 = tpu.dynamic_rotate %75 by %c241_i32_181 dim 1 : vector<6x256xf32>, i32 -> vector<6x256xf32>
    %c1_i32_182 = arith.constant 1 : i32
    %235 = tpu.dynamic_rotate %75 by %c1_i32_182 dim 1 : vector<6x256xf32>, i32 -> vector<6x256xf32>
    %236 = vector.shape_cast %18 : vector<1x256xi1> to vector<1x256xi1>
    %237 = vector.broadcast %236 : vector<1x256xi1> to vector<6x256xi1>
    %238 = arith.select %237, %234, %235 : vector<6x256xi1>, vector<6x256xf32>
    %c16_i32_183 = arith.constant 16 : i32
    %239 = tpu.dynamic_rotate %238 by %c16_i32_183 dim 1 : vector<6x256xf32>, i32 -> vector<6x256xf32>
    %c0_184 = arith.constant 0 : index
    %c0_185 = arith.constant 0 : index
    %c0_186 = arith.constant 0 : index
    %240 = vector.load %arg5[%c0_184, %c0_185, %c0_186] : memref<9x12x6xf32, #tpu.memory_space<vmem>>, vector<1x12x6xf32>
    %241 = vector.shape_cast %240 : vector<1x12x6xf32> to vector<12x6xf32>
    %cst_187 = arith.constant dense<0.000000e+00> : vector<12x256xf32>
    %242 = tpu.matmul %241, %239, %cst_187 {dimension_numbers = #tpu.dot_dimension_numbers<[1], [0], [0], [1], [0, 0, 1, 1], [], []>, precision = #tpu.contract_precision<fp32>} : vector<12x6xf32>, vector<6x256xf32>, vector<12x256xf32> -> vector<12x256xf32>
    %243 = arith.addf %233, %242 : vector<12x256xf32>
    %c3_188 = arith.constant 3 : index
    %c0_189 = arith.constant 0 : index
    %c0_190 = arith.constant 0 : index
    %244 = vector.load %arg5[%c3_188, %c0_189, %c0_190] : memref<9x12x6xf32, #tpu.memory_space<vmem>>, vector<1x12x6xf32>
    %245 = vector.shape_cast %244 : vector<1x12x6xf32> to vector<12x6xf32>
    %cst_191 = arith.constant dense<0.000000e+00> : vector<12x256xf32>
    %246 = tpu.matmul %245, %238, %cst_191 {dimension_numbers = #tpu.dot_dimension_numbers<[1], [0], [0], [1], [0, 0, 1, 1], [], []>, precision = #tpu.contract_precision<fp32>} : vector<12x6xf32>, vector<6x256xf32>, vector<12x256xf32> -> vector<12x256xf32>
    %247 = arith.addf %243, %246 : vector<12x256xf32>
    %c240_i32_192 = arith.constant 240 : i32
    %248 = tpu.dynamic_rotate %238 by %c240_i32_192 dim 1 : vector<6x256xf32>, i32 -> vector<6x256xf32>
    %c6_193 = arith.constant 6 : index
    %c0_194 = arith.constant 0 : index
    %c0_195 = arith.constant 0 : index
    %249 = vector.load %arg5[%c6_193, %c0_194, %c0_195] : memref<9x12x6xf32, #tpu.memory_space<vmem>>, vector<1x12x6xf32>
    %250 = vector.shape_cast %249 : vector<1x12x6xf32> to vector<12x6xf32>
    %cst_196 = arith.constant dense<0.000000e+00> : vector<12x256xf32>
    %251 = tpu.matmul %250, %248, %cst_196 {dimension_numbers = #tpu.dot_dimension_numbers<[1], [0], [0], [1], [0, 0, 1, 1], [], []>, precision = #tpu.contract_precision<fp32>} : vector<12x6xf32>, vector<6x256xf32>, vector<12x256xf32> -> vector<12x256xf32>
    %252 = arith.addf %247, %251 : vector<12x256xf32>
    %c16_i32_197 = arith.constant 16 : i32
    %253 = tpu.dynamic_rotate %75 by %c16_i32_197 dim 1 : vector<6x256xf32>, i32 -> vector<6x256xf32>
    %c1_198 = arith.constant 1 : index
    %c0_199 = arith.constant 0 : index
    %c0_200 = arith.constant 0 : index
    %254 = vector.load %arg5[%c1_198, %c0_199, %c0_200] : memref<9x12x6xf32, #tpu.memory_space<vmem>>, vector<1x12x6xf32>
    %255 = vector.shape_cast %254 : vector<1x12x6xf32> to vector<12x6xf32>
    %cst_201 = arith.constant dense<0.000000e+00> : vector<12x256xf32>
    %256 = tpu.matmul %255, %253, %cst_201 {dimension_numbers = #tpu.dot_dimension_numbers<[1], [0], [0], [1], [0, 0, 1, 1], [], []>, precision = #tpu.contract_precision<fp32>} : vector<12x6xf32>, vector<6x256xf32>, vector<12x256xf32> -> vector<12x256xf32>
    %257 = arith.addf %252, %256 : vector<12x256xf32>
    %c4_202 = arith.constant 4 : index
    %c0_203 = arith.constant 0 : index
    %c0_204 = arith.constant 0 : index
    %258 = vector.load %arg5[%c4_202, %c0_203, %c0_204] : memref<9x12x6xf32, #tpu.memory_space<vmem>>, vector<1x12x6xf32>
    %259 = vector.shape_cast %258 : vector<1x12x6xf32> to vector<12x6xf32>
    %cst_205 = arith.constant dense<0.000000e+00> : vector<12x256xf32>
    %260 = tpu.matmul %259, %75, %cst_205 {dimension_numbers = #tpu.dot_dimension_numbers<[1], [0], [0], [1], [0, 0, 1, 1], [], []>, precision = #tpu.contract_precision<fp32>} : vector<12x6xf32>, vector<6x256xf32>, vector<12x256xf32> -> vector<12x256xf32>
    %261 = arith.addf %257, %260 : vector<12x256xf32>
    %c240_i32_206 = arith.constant 240 : i32
    %262 = tpu.dynamic_rotate %75 by %c240_i32_206 dim 1 : vector<6x256xf32>, i32 -> vector<6x256xf32>
    %c7_207 = arith.constant 7 : index
    %c0_208 = arith.constant 0 : index
    %c0_209 = arith.constant 0 : index
    %263 = vector.load %arg5[%c7_207, %c0_208, %c0_209] : memref<9x12x6xf32, #tpu.memory_space<vmem>>, vector<1x12x6xf32>
    %264 = vector.shape_cast %263 : vector<1x12x6xf32> to vector<12x6xf32>
    %cst_210 = arith.constant dense<0.000000e+00> : vector<12x256xf32>
    %265 = tpu.matmul %264, %262, %cst_210 {dimension_numbers = #tpu.dot_dimension_numbers<[1], [0], [0], [1], [0, 0, 1, 1], [], []>, precision = #tpu.contract_precision<fp32>} : vector<12x6xf32>, vector<6x256xf32>, vector<12x256xf32> -> vector<12x256xf32>
    %266 = arith.addf %261, %265 : vector<12x256xf32>
    %c15_i32_211 = arith.constant 15 : i32
    %267 = tpu.dynamic_rotate %75 by %c15_i32_211 dim 1 : vector<6x256xf32>, i32 -> vector<6x256xf32>
    %c255_i32_212 = arith.constant 255 : i32
    %268 = tpu.dynamic_rotate %75 by %c255_i32_212 dim 1 : vector<6x256xf32>, i32 -> vector<6x256xf32>
    %269 = vector.shape_cast %20 : vector<1x256xi1> to vector<1x256xi1>
    %270 = vector.broadcast %269 : vector<1x256xi1> to vector<6x256xi1>
    %271 = arith.select %270, %267, %268 : vector<6x256xi1>, vector<6x256xf32>
    %c16_i32_213 = arith.constant 16 : i32
    %272 = tpu.dynamic_rotate %271 by %c16_i32_213 dim 1 : vector<6x256xf32>, i32 -> vector<6x256xf32>
    %c2_214 = arith.constant 2 : index
    %c0_215 = arith.constant 0 : index
    %c0_216 = arith.constant 0 : index
    %273 = vector.load %arg5[%c2_214, %c0_215, %c0_216] : memref<9x12x6xf32, #tpu.memory_space<vmem>>, vector<1x12x6xf32>
    %274 = vector.shape_cast %273 : vector<1x12x6xf32> to vector<12x6xf32>
    %cst_217 = arith.constant dense<0.000000e+00> : vector<12x256xf32>
    %275 = tpu.matmul %274, %272, %cst_217 {dimension_numbers = #tpu.dot_dimension_numbers<[1], [0], [0], [1], [0, 0, 1, 1], [], []>, precision = #tpu.contract_precision<fp32>} : vector<12x6xf32>, vector<6x256xf32>, vector<12x256xf32> -> vector<12x256xf32>
    %276 = arith.addf %266, %275 : vector<12x256xf32>
    %c5_218 = arith.constant 5 : index
    %c0_219 = arith.constant 0 : index
    %c0_220 = arith.constant 0 : index
    %277 = vector.load %arg5[%c5_218, %c0_219, %c0_220] : memref<9x12x6xf32, #tpu.memory_space<vmem>>, vector<1x12x6xf32>
    %278 = vector.shape_cast %277 : vector<1x12x6xf32> to vector<12x6xf32>
    %cst_221 = arith.constant dense<0.000000e+00> : vector<12x256xf32>
    %279 = tpu.matmul %278, %271, %cst_221 {dimension_numbers = #tpu.dot_dimension_numbers<[1], [0], [0], [1], [0, 0, 1, 1], [], []>, precision = #tpu.contract_precision<fp32>} : vector<12x6xf32>, vector<6x256xf32>, vector<12x256xf32> -> vector<12x256xf32>
    %280 = arith.addf %276, %279 : vector<12x256xf32>
    %c240_i32_222 = arith.constant 240 : i32
    %281 = tpu.dynamic_rotate %271 by %c240_i32_222 dim 1 : vector<6x256xf32>, i32 -> vector<6x256xf32>
    %c8_223 = arith.constant 8 : index
    %c0_224 = arith.constant 0 : index
    %c0_225 = arith.constant 0 : index
    %282 = vector.load %arg5[%c8_223, %c0_224, %c0_225] : memref<9x12x6xf32, #tpu.memory_space<vmem>>, vector<1x12x6xf32>
    %283 = vector.shape_cast %282 : vector<1x12x6xf32> to vector<12x6xf32>
    %cst_226 = arith.constant dense<0.000000e+00> : vector<12x256xf32>
    %284 = tpu.matmul %283, %281, %cst_226 {dimension_numbers = #tpu.dot_dimension_numbers<[1], [0], [0], [1], [0, 0, 1, 1], [], []>, precision = #tpu.contract_precision<fp32>} : vector<12x6xf32>, vector<6x256xf32>, vector<12x256xf32> -> vector<12x256xf32>
    %285 = arith.addf %280, %284 : vector<12x256xf32>
    %c241_i32_227 = arith.constant 241 : i32
    %286 = tpu.dynamic_rotate %180 by %c241_i32_227 dim 1 : vector<9x256xf32>, i32 -> vector<9x256xf32>
    %c1_i32_228 = arith.constant 1 : i32
    %287 = tpu.dynamic_rotate %180 by %c1_i32_228 dim 1 : vector<9x256xf32>, i32 -> vector<9x256xf32>
    %288 = vector.shape_cast %18 : vector<1x256xi1> to vector<1x256xi1>
    %289 = vector.broadcast %288 : vector<1x256xi1> to vector<9x256xi1>
    %290 = arith.select %289, %286, %287 : vector<9x256xi1>, vector<9x256xf32>
    %c16_i32_229 = arith.constant 16 : i32
    %291 = tpu.dynamic_rotate %290 by %c16_i32_229 dim 1 : vector<9x256xf32>, i32 -> vector<9x256xf32>
    %c0_230 = arith.constant 0 : index
    %c0_231 = arith.constant 0 : index
    %c0_232 = arith.constant 0 : index
    %292 = vector.load %arg6[%c0_230, %c0_231, %c0_232] : memref<9x12x9xf32, #tpu.memory_space<vmem>>, vector<1x12x9xf32>
    %293 = vector.shape_cast %292 : vector<1x12x9xf32> to vector<12x9xf32>
    %cst_233 = arith.constant dense<0.000000e+00> : vector<12x256xf32>
    %294 = tpu.matmul %293, %291, %cst_233 {dimension_numbers = #tpu.dot_dimension_numbers<[1], [0], [0], [1], [0, 0, 1, 1], [], []>, precision = #tpu.contract_precision<fp32>} : vector<12x9xf32>, vector<9x256xf32>, vector<12x256xf32> -> vector<12x256xf32>
    %295 = arith.addf %285, %294 : vector<12x256xf32>
    %c3_234 = arith.constant 3 : index
    %c0_235 = arith.constant 0 : index
    %c0_236 = arith.constant 0 : index
    %296 = vector.load %arg6[%c3_234, %c0_235, %c0_236] : memref<9x12x9xf32, #tpu.memory_space<vmem>>, vector<1x12x9xf32>
    %297 = vector.shape_cast %296 : vector<1x12x9xf32> to vector<12x9xf32>
    %cst_237 = arith.constant dense<0.000000e+00> : vector<12x256xf32>
    %298 = tpu.matmul %297, %290, %cst_237 {dimension_numbers = #tpu.dot_dimension_numbers<[1], [0], [0], [1], [0, 0, 1, 1], [], []>, precision = #tpu.contract_precision<fp32>} : vector<12x9xf32>, vector<9x256xf32>, vector<12x256xf32> -> vector<12x256xf32>
    %299 = arith.addf %295, %298 : vector<12x256xf32>
    %c240_i32_238 = arith.constant 240 : i32
    %300 = tpu.dynamic_rotate %290 by %c240_i32_238 dim 1 : vector<9x256xf32>, i32 -> vector<9x256xf32>
    %c6_239 = arith.constant 6 : index
    %c0_240 = arith.constant 0 : index
    %c0_241 = arith.constant 0 : index
    %301 = vector.load %arg6[%c6_239, %c0_240, %c0_241] : memref<9x12x9xf32, #tpu.memory_space<vmem>>, vector<1x12x9xf32>
    %302 = vector.shape_cast %301 : vector<1x12x9xf32> to vector<12x9xf32>
    %cst_242 = arith.constant dense<0.000000e+00> : vector<12x256xf32>
    %303 = tpu.matmul %302, %300, %cst_242 {dimension_numbers = #tpu.dot_dimension_numbers<[1], [0], [0], [1], [0, 0, 1, 1], [], []>, precision = #tpu.contract_precision<fp32>} : vector<12x9xf32>, vector<9x256xf32>, vector<12x256xf32> -> vector<12x256xf32>
    %304 = arith.addf %299, %303 : vector<12x256xf32>
    %c16_i32_243 = arith.constant 16 : i32
    %305 = tpu.dynamic_rotate %180 by %c16_i32_243 dim 1 : vector<9x256xf32>, i32 -> vector<9x256xf32>
    %c1_244 = arith.constant 1 : index
    %c0_245 = arith.constant 0 : index
    %c0_246 = arith.constant 0 : index
    %306 = vector.load %arg6[%c1_244, %c0_245, %c0_246] : memref<9x12x9xf32, #tpu.memory_space<vmem>>, vector<1x12x9xf32>
    %307 = vector.shape_cast %306 : vector<1x12x9xf32> to vector<12x9xf32>
    %cst_247 = arith.constant dense<0.000000e+00> : vector<12x256xf32>
    %308 = tpu.matmul %307, %305, %cst_247 {dimension_numbers = #tpu.dot_dimension_numbers<[1], [0], [0], [1], [0, 0, 1, 1], [], []>, precision = #tpu.contract_precision<fp32>} : vector<12x9xf32>, vector<9x256xf32>, vector<12x256xf32> -> vector<12x256xf32>
    %309 = arith.addf %304, %308 : vector<12x256xf32>
    %c4_248 = arith.constant 4 : index
    %c0_249 = arith.constant 0 : index
    %c0_250 = arith.constant 0 : index
    %310 = vector.load %arg6[%c4_248, %c0_249, %c0_250] : memref<9x12x9xf32, #tpu.memory_space<vmem>>, vector<1x12x9xf32>
    %311 = vector.shape_cast %310 : vector<1x12x9xf32> to vector<12x9xf32>
    %cst_251 = arith.constant dense<0.000000e+00> : vector<12x256xf32>
    %312 = tpu.matmul %311, %180, %cst_251 {dimension_numbers = #tpu.dot_dimension_numbers<[1], [0], [0], [1], [0, 0, 1, 1], [], []>, precision = #tpu.contract_precision<fp32>} : vector<12x9xf32>, vector<9x256xf32>, vector<12x256xf32> -> vector<12x256xf32>
    %313 = arith.addf %309, %312 : vector<12x256xf32>
    %c240_i32_252 = arith.constant 240 : i32
    %314 = tpu.dynamic_rotate %180 by %c240_i32_252 dim 1 : vector<9x256xf32>, i32 -> vector<9x256xf32>
    %c7_253 = arith.constant 7 : index
    %c0_254 = arith.constant 0 : index
    %c0_255 = arith.constant 0 : index
    %315 = vector.load %arg6[%c7_253, %c0_254, %c0_255] : memref<9x12x9xf32, #tpu.memory_space<vmem>>, vector<1x12x9xf32>
    %316 = vector.shape_cast %315 : vector<1x12x9xf32> to vector<12x9xf32>
    %cst_256 = arith.constant dense<0.000000e+00> : vector<12x256xf32>
    %317 = tpu.matmul %316, %314, %cst_256 {dimension_numbers = #tpu.dot_dimension_numbers<[1], [0], [0], [1], [0, 0, 1, 1], [], []>, precision = #tpu.contract_precision<fp32>} : vector<12x9xf32>, vector<9x256xf32>, vector<12x256xf32> -> vector<12x256xf32>
    %318 = arith.addf %313, %317 : vector<12x256xf32>
    %c15_i32_257 = arith.constant 15 : i32
    %319 = tpu.dynamic_rotate %180 by %c15_i32_257 dim 1 : vector<9x256xf32>, i32 -> vector<9x256xf32>
    %c255_i32_258 = arith.constant 255 : i32
    %320 = tpu.dynamic_rotate %180 by %c255_i32_258 dim 1 : vector<9x256xf32>, i32 -> vector<9x256xf32>
    %321 = vector.shape_cast %20 : vector<1x256xi1> to vector<1x256xi1>
    %322 = vector.broadcast %321 : vector<1x256xi1> to vector<9x256xi1>
    %323 = arith.select %322, %319, %320 : vector<9x256xi1>, vector<9x256xf32>
    %c16_i32_259 = arith.constant 16 : i32
    %324 = tpu.dynamic_rotate %323 by %c16_i32_259 dim 1 : vector<9x256xf32>, i32 -> vector<9x256xf32>
    %c2_260 = arith.constant 2 : index
    %c0_261 = arith.constant 0 : index
    %c0_262 = arith.constant 0 : index
    %325 = vector.load %arg6[%c2_260, %c0_261, %c0_262] : memref<9x12x9xf32, #tpu.memory_space<vmem>>, vector<1x12x9xf32>
    %326 = vector.shape_cast %325 : vector<1x12x9xf32> to vector<12x9xf32>
    %cst_263 = arith.constant dense<0.000000e+00> : vector<12x256xf32>
    %327 = tpu.matmul %326, %324, %cst_263 {dimension_numbers = #tpu.dot_dimension_numbers<[1], [0], [0], [1], [0, 0, 1, 1], [], []>, precision = #tpu.contract_precision<fp32>} : vector<12x9xf32>, vector<9x256xf32>, vector<12x256xf32> -> vector<12x256xf32>
    %328 = arith.addf %318, %327 : vector<12x256xf32>
    %c5_264 = arith.constant 5 : index
    %c0_265 = arith.constant 0 : index
    %c0_266 = arith.constant 0 : index
    %329 = vector.load %arg6[%c5_264, %c0_265, %c0_266] : memref<9x12x9xf32, #tpu.memory_space<vmem>>, vector<1x12x9xf32>
    %330 = vector.shape_cast %329 : vector<1x12x9xf32> to vector<12x9xf32>
    %cst_267 = arith.constant dense<0.000000e+00> : vector<12x256xf32>
    %331 = tpu.matmul %330, %323, %cst_267 {dimension_numbers = #tpu.dot_dimension_numbers<[1], [0], [0], [1], [0, 0, 1, 1], [], []>, precision = #tpu.contract_precision<fp32>} : vector<12x9xf32>, vector<9x256xf32>, vector<12x256xf32> -> vector<12x256xf32>
    %332 = arith.addf %328, %331 : vector<12x256xf32>
    %c240_i32_268 = arith.constant 240 : i32
    %333 = tpu.dynamic_rotate %323 by %c240_i32_268 dim 1 : vector<9x256xf32>, i32 -> vector<9x256xf32>
    %c8_269 = arith.constant 8 : index
    %c0_270 = arith.constant 0 : index
    %c0_271 = arith.constant 0 : index
    %334 = vector.load %arg6[%c8_269, %c0_270, %c0_271] : memref<9x12x9xf32, #tpu.memory_space<vmem>>, vector<1x12x9xf32>
    %335 = vector.shape_cast %334 : vector<1x12x9xf32> to vector<12x9xf32>
    %cst_272 = arith.constant dense<0.000000e+00> : vector<12x256xf32>
    %336 = tpu.matmul %335, %333, %cst_272 {dimension_numbers = #tpu.dot_dimension_numbers<[1], [0], [0], [1], [0, 0, 1, 1], [], []>, precision = #tpu.contract_precision<fp32>} : vector<12x9xf32>, vector<9x256xf32>, vector<12x256xf32> -> vector<12x256xf32>
    %337 = arith.addf %332, %336 : vector<12x256xf32>
    %c0_273 = arith.constant 0 : index
    %c0_274 = arith.constant 0 : index
    %c0_275 = arith.constant 0 : index
    %338 = vector.load %arg8[%c0_273, %c0_274, %c0_275] : memref<1x12x256xf32, #tpu.memory_space<vmem>>, vector<1x12x256xf32>
    %339 = vector.shape_cast %338 : vector<1x12x256xf32> to vector<12x256xf32>
    %340 = vector.shape_cast %337 : vector<12x256xf32> to vector<1x12x256xf32>
    tpu.vector_store %arg8[%c0_273, %c0_274, %c0_275], %340 {strides = array<i32>} : memref<1x12x256xf32, #tpu.memory_space<vmem>>, vector<1x12x256xf32>,
    return
  }
  func.func @transform_0(%arg0: i32) -> (i32, i32, i32) {
    %c0_i32 = arith.constant 0 : i32
    %c0_i32_0 = arith.constant 0 : i32
    %c0_i32_1 = arith.constant 0 : i32
    %c0_i32_2 = arith.constant 0 : i32
    return %c0_i32, %c0_i32_0, %c0_i32_1 : i32, i32, i32
  }
  func.func @transform_1(%arg0: i32) -> (i32, i32, i32) {
    %c0_i32 = arith.constant 0 : i32
    %c0_i32_0 = arith.constant 0 : i32
    %c0_i32_1 = arith.constant 0 : i32
    %c0_i32_2 = arith.constant 0 : i32
    return %c0_i32, %c0_i32_0, %c0_i32_1 : i32, i32, i32
  }
  func.func @transform_2(%arg0: i32) -> (i32, i32, i32) {
    %c0_i32 = arith.constant 0 : i32
    %c0_i32_0 = arith.constant 0 : i32
    %c0_i32_1 = arith.constant 0 : i32
    %c0_i32_2 = arith.constant 0 : i32
    return %c0_i32, %c0_i32_0, %c0_i32_1 : i32, i32, i32
  }
  func.func @transform_3(%arg0: i32) -> (i32, i32, i32) {
    %c0_i32 = arith.constant 0 : i32
    %c0_i32_0 = arith.constant 0 : i32
    %c0_i32_1 = arith.constant 0 : i32
    %c0_i32_2 = arith.constant 0 : i32
    return %c0_i32, %c0_i32_0, %c0_i32_1 : i32, i32, i32
  }
  func.func @transform_4(%arg0: i32) -> (i32, i32, i32) {
    %c0_i32 = arith.constant 0 : i32
    %c0_i32_0 = arith.constant 0 : i32
    %c0_i32_1 = arith.constant 0 : i32
    %c0_i32_2 = arith.constant 0 : i32
    return %c0_i32, %c0_i32_0, %c0_i32_1 : i32, i32, i32
  }
  func.func @transform_5(%arg0: i32) -> (i32, i32, i32) {
    %c0_i32 = arith.constant 0 : i32
    %c0_i32_0 = arith.constant 0 : i32
    %c0_i32_1 = arith.constant 0 : i32
    %c0_i32_2 = arith.constant 0 : i32
    return %c0_i32, %c0_i32_0, %c0_i32_1 : i32, i32, i32
  }
  func.func @transform_6(%arg0: i32) -> (i32, i32, i32) {
    %c0_i32 = arith.constant 0 : i32
    %c0_i32_0 = arith.constant 0 : i32
    %c0_i32_1 = arith.constant 0 : i32
    return %arg0, %c0_i32, %c0_i32_0 : i32, i32, i32
  }
  func.func @transform_7(%arg0: i32) -> (i32, i32, i32) {
    %c0_i32 = arith.constant 0 : i32
    %c0_i32_0 = arith.constant 0 : i32
    %c0_i32_1 = arith.constant 0 : i32
    return %arg0, %c0_i32, %c0_i32_0 : i32, i32, i32
  }
}

</mosaic_0001>

<bundles_post_ra>
// kernel: tpu_custom_call.1
= control target key start
LH: loop header
LB: loop body
LE: loop exit
PB: predicated region body
PF: predicated region fallthrough
CT: control target
= control target key end

     0   :  { %s29152_s24 = smov 0   ;;  %s34862_s0 = inlined_call_operand.vmem [shape: f32[9,6,3], index: 0, kind: input, shape index: {}]   ;;  %s34863_s1 = inlined_call_operand.vmem [shape: f32[9,9,3], index: 1, kind: input, shape index: {}]   ;;  %s34864_s2 = inlined_call_operand.vmem [shape: f32[9,9,6], index: 2, kind: input, shape index: {}]   ;;  %s34865_s3 = inlined_call_operand.vmem [shape: f32[9,12,3], index: 3, kind: input, shape index: {}]   ;;  %s34866_s4 = inlined_call_operand.vmem [shape: f32[9,12,6], index: 4, kind: input, shape index: {}]   ;;  %s34867_s5 = inlined_call_operand.vmem [shape: f32[9,12,9], index: 5, kind: input, shape index: {}]   ;;  %s34868_s6 = inlined_call_operand.vmem [shape: f32[2,3,256], index: 6, kind: input, shape index: {}]   ;;  %s34869_s7 = inlined_call_operand.vmem [shape: f32[2,12,256], index: 7, kind: output, shape index: {}]  }
   0x1 LB: > { %s28980_s25 = sadd.s32 4294967295, %s29103_s24   ;;  %p28984_p0 = scmp.ge.s32.totalorder %s29103_s24, 1  ;;  %s29103_s24 = sphi %s29152_s24, %s17_s24  }
   0x2   : > { %p237_p1 = scmp.lt.s32.totalorder %s29103_s24, 3 }
   0x4   : > { %p238_p2 = pnand %p28984_p0, %p237_p1 }
   0x6   : > { %241 = sbr.rel (%p238_p2) target bundleno = 1998 (0x7ce), region = 48 }
   0xb   : > { %p269_p3 = scmp.lt.s32.totalorder %s28980_s25, 1  ;;  %v34885_v0 = vmov 0.0   ;;  %s29106_s30 = smov 1   ;;  %v28989_v3 = vld [vmem:[%s34862_s0 + $0x18] sm:$0x3f]  ;;  %vm344_vm0 = vcmask 23552   ;;  %v279_v4 = vlaneseq }
   0xc   : > { %421 = vmatprep.mubr.f32.mxu0 %v34885_v0  ;;  %507 = vmatprep.mubr.f32.mxu1 %v34885_v0  ;;  %s29107_s8 = smov 113   ;;  %s29108_s9 = smov 15   ;;  %v346_v5 = vsel %vm344_vm0, %v28989_v3, 0  ;;  %v35149_v15 = vmov 0  ;;  %v35152_v16 = vmov 0  ;;  %vm348_vm5 = vcmask 1042432  }
   0xd   : > { %s35844_s25 = smov (!%p269_p3, %s28980_s25), 1  ;;  %v29190_v6 = vand.u32 127, %v279_v4  ;;  %v29192_v7 = vand.u32 4294901760, %v346_v5  ;;  %s29109_s12 = smov 16   ;;  %v341_v39 = vld [vmem:[%s34862_s0] sm:$0x3f] }
   0xe   : > { %s29079_s26 = sshll.u32 %s35844_s25, 3  ;;  %s29110_s13 = smov 127   ;;  %v821_v40 = vsel %vm344_vm0, %v341_v39, 0  ;;  %v28990_v43 = vld [vmem:[%s34862_s0 + $0x30] sm:$0x3f]  ;;  %v35165_v60 = vmov 0 }
   0xf   : > { %s273_s29 = scalar_lea.vmem %s34868_s6, %s29079_s26  ;;  %35148 = vst [vmem:[#allocation2_spill] sm:$0xff] %v29190_v6  ;;  %v29195_v8 = vadd.s32 128, %v29190_v6  ;;  %v423_v9 = vsub.f32 %v346_v5, %v29192_v7  ;;  %v286_v11 = vand.u32 15, %v29190_v6  ;;  %vm325_vm1 = vcmp.lt.s32.totalorder %v29190_v6, 1  ;;  %s29111_s14 = smov 112  }
  0x10   : > { %v29168_v1 = vld [vmem:[%s273_s29] sm:$0x77]  ;;  %vm318_vm2 = vcmp.lt.s32.totalorder %v29190_v6, 113  ;;  %v29293_v41 = vand.u32 4294901760, %v821_v40  ;;  %v1304_v47 = vsel %vm344_vm0, %v28990_v43, 0  ;;  %vm338_vm6 = vcmp.lt.s32.totalorder %v29190_v6, 16 }
  0x11   : > { %321 = vrot.lane.b32.xlu1 %v29168_v1, %s29106_s30  ;;  %314 = vrot.lane.b32.xlu0 %v29168_v1, %s29107_s8  ;;  %v29176_v2 = vcombine.high %v29168_v1, %v29168_v1  ;;  %v293_v10 = vand.u32 15, %v29195_v8  ;;  %v424_v14 = vand.u32 4294901760, %v423_v9  ;;  %vm29210_vm4 = vcmp.eq.s32.totalorder %v286_v11, 0  ;;  %v28991_v5 = vld [vmem:[%s34862_s0 + $0x8] sm:$0x3f]  ;;  %s29080_s11 = sshll.u32 %s35844_s25, 5 }
  0x12   : > { %v35153_v16 = vsel %vm29210_vm4, 4294967295, %v35152_v16  ;;  %v29296_v42 = vsub.f32 %v821_v40, %v29293_v41  ;;  %v29307_v49 = vand.u32 4294901760, %v1304_v47  ;;  %vm3227_vm7 = vcmp.lt.s32.totalorder %v29190_v6, 15  ;;  %s278_s25 = scalar_lea.vmem %s34869_s7, %s29080_s11 }
  0x13   : > { %vm29204_vm3 = vcmp.eq.s32.totalorder %v293_v10, 0  ;;  %35154 = vst [vmem:[#allocation4_spill] sm:$0xff] %v35153_v16  ;;  %v425_v19 = vsub.f32 %v423_v9, %v424_v14  ;;  %vm3234_vm8 = vcmp.lt.s32.totalorder %v29190_v6, 127  ;;  %vm29326_vm9 = vcmp.eq.s32.totalorder %v293_v10, 15 }
  0x14   : > { %v35150_v15 = vsel %vm29204_vm3, 4294967295, %v35149_v15  ;;  %v898_v46 = vand.u32 4294901760, %v29296_v42  ;;  %v29318_v57 = vsub.f32 %v1304_v47, %v29307_v49  ;;  %v35166_v60 = vsel %vm29326_vm9, 4294967295, %v35165_v60 }
  0x15   : > { %323 = vrot.lane.b32.xlu1 %v29176_v2, %s29106_s30  ;;  %316 = vrot.lane.b32.xlu0 %v29176_v2, %s29107_s8  ;;  %35151 = vst [vmem:[#allocation3_spill] sm:$0xff] %v35150_v15  ;;  %v426_v30 = vand.u32 4294901760, %v425_v19  ;;  %35167 = vst [vmem:[#allocation15_spill] sm:$0xff] %v35166_v60  ;;  %vm29332_vm10 = vcmp.eq.s32.totalorder %v286_v11, 15  ;;  %v35168_v61 = vmov 0  ;;  %vm1298_vm11 = vcmp.lt.s32.totalorder %v29190_v6, 112 }
  0x16   : > { %v899_v48 = vsub.f32 %v29296_v42, %v898_v46  ;;  %v35169_v61 = vsel %vm29332_vm10, 4294967295, %v35168_v61  ;;  %vm9445_vm12 = vcmask 48128   ;;  %vm9452_vm13 = vcmask 1045504  }
  0x17   : > { %35170 = vst [vmem:[#allocation16_spill] sm:$0xff] %v35169_v61  ;;  %vm23803_vm14 = vcmask 72704   ;;  %vm23810_vm15 = vcmask 1040384  }
  0x18   : > { %v900_v56 = vand.u32 4294901760, %v899_v48 }
  0x19   : > { %3225 = vrot.lane.b32.xlu1 %v29176_v2, %s29108_s9  ;;  %3223 = vrot.lane.b32.xlu0 %v29168_v1, %s29108_s9 }
  0x83   : > { %v322_v12 = vpop.permute.xlu1 %321  ;;  %v315_v13 = vpop.permute.xlu0 %314 }
  0x87   : > { %v324_v17 = vpop.permute.xlu1 %323  ;;  %v317_v18 = vpop.permute.xlu0 %316 }
  0x88   : > { %v326_v20 = vsel %vm325_vm1, %v322_v12, %v324_v17  ;;  %v327_v21 = vsel %vm325_vm1, %v324_v17, %v322_v12  ;;  %v319_v22 = vsel %vm318_vm2, %v315_v13, %v317_v18  ;;  %v320_v23 = vsel %vm318_vm2, %v317_v18, %v315_v13 }
  0x89   : > { %v333_v24 = vsel %vm29204_vm3, %v320_v23, %v326_v20  ;;  %v332_v25 = vsel %vm29210_vm4, %v319_v22, %v327_v21  ;;  %v1381_v13 = vand.u32 4294901760, %v29318_v57  ;;  %v1788_v18 = vsel %vm344_vm0, %v28991_v5, 0 }
  0x8a   : > { %336 = vrot.lane.b32.xlu1 %v333_v24, %s29109_s12  ;;  %v353_v26 = vsel %vm348_vm5, %v333_v24, 0  ;;  %334 = vrot.lane.b32.xlu0 %v332_v25, %s29109_s12  ;;  %v350_v27 = vsel %vm348_vm5, %v332_v25, 0 }
  0x8b   : > { %v29230_v28 = vand.u32 4294901760, %v353_v26  ;;  %v29232_v29 = vand.u32 4294901760, %v350_v27  ;;  %v3226_v44 = vpop.permute.xlu1 %3225  ;;  %v3224_v45 = vpop.permute.xlu0 %3223 }
  0x8c   : > { %v3228_v62 = vsel %vm3227_vm7, %v3224_v45, %v3226_v44  ;;  %v3229_v63 = vsel %vm3227_vm7, %v3226_v44, %v3224_v45 }
  0x8d   : > { %35155 = vst [vmem:[#allocation5_spill] sm:$0xff] %v29230_v28  ;;  %35156 = vst [vmem:[#allocation6_spill] sm:$0xff] %v29232_v29  ;;  %v29235_v31 = vsub.f32 %v353_v26, %v29230_v28  ;;  %v29238_v32 = vsub.f32 %v350_v27, %v29232_v29  ;;  %386 = vmatprep.subr.mxu0 %v29230_v28  ;;  %v29391_v26 = vand.u32 4294901760, %v1788_v18 }
  0x8e   : > { %3232 = vrot.lane.b32.xlu1 %v29176_v2, %s29110_s13  ;;  %3230 = vrot.lane.b32.xlu0 %v29168_v1, %s29110_s13 }
  0x8f   : > { %35157 = vst [vmem:[#allocation7_spill] sm:$0xff] %v29235_v31  ;;  %35158 = vst [vmem:[#allocation8_spill] sm:$0xff] %v29238_v32  ;;  %388 = vmatpush1.msra.mxu0 %v29232_v29  ;;  %v29247_v33 = vand.u32 4294901760, %v29235_v31  ;;  %v29250_v34 = vand.u32 4294901760, %v29238_v32 }
  0x90   : > { %427 = vmatmul.mubr.f32.vlgmr.msra.gmra.mxu0 %v426_v30  ;;  %547 = vmatprep.subr.mxu0 %v29235_v31 }
  0x91   : > { %35159 = vst [vmem:[#allocation9_spill] sm:$0xff] %v29247_v33  ;;  %35160 = vst [vmem:[#allocation10_spill] sm:$0xff] %v29250_v34  ;;  %550 = vmatpush1.msra.mxu0 %v29238_v32  ;;  %583 = vmatprep.mubr.f32.mxu0 %v34885_v0  ;;  %v466_v35 = vsub.f32 %v29235_v31, %v29247_v33  ;;  %v472_v36 = vsub.f32 %v29238_v32, %v29250_v34 }
  0x92   : > { %701 = vmatprep.subr.mxu0 %v29247_v33  ;;  %1296 = vrot.lane.b32.xlu1 %v333_v24, %s29111_s14 }
  0x93   : > { %1294 = vrot.lane.b32.xlu0 %v332_v25, %s29111_s14  ;;  %v29262_v37 = vand.u32 4294901760, %v466_v35  ;;  %v29264_v38 = vand.u32 4294901760, %v472_v36  ;;  %v1382_v25 = vsub.f32 %v29318_v57, %v1381_v13 }
  0x94   : > { %586 = vmatmul.mubr.f32.vlgmr.msra.gmra.mxu0 %v423_v9 }
  0x95   : > { %35161 = vst [vmem:[#allocation11_spill] sm:$0xff] %v29262_v37  ;;  %35162 = vst [vmem:[#allocation12_spill] sm:$0xff] %v29264_v38  ;;  %705 = vmatpush1.msra.mxu0 %v29250_v34  ;;  %468 = vmatprep.subr.mxu1 %v29262_v37  ;;  %v1383_v47 = vand.u32 4294901760, %v1382_v25 }
  0x96   : > { %474 = vmatpush1.msra.mxu1 %v29264_v38  ;;  %1781 = vrot.lane.b32.xlu1 %v29176_v2, %s29109_s12 }
  0x97   : > { %509 = vmatmul.mubr.f32.vlgmr.msra.gmra.mxu1 %v29192_v7  ;;  %623 = vmatprep.subr.mxu1 %v29230_v28 }
  0x98   : > { %625 = vmatpush1.msra.mxu1 %v29232_v29  ;;  %658 = vmatprep.mubr.f32.mxu1 %v34885_v0 }
  0x99   : > { %777 = vmatprep.subr.mxu1 %v29230_v28  ;;  %1779 = vrot.lane.b32.xlu0 %v29168_v1, %s29109_s12 }
  0x9a   : > { %2741 = vrot.lane.b32.xlu1 %v29176_v2, %s29111_s14  ;;  %738 = vmatprep.mubr.f32.mxu0 %v34885_v0 }
  0x9b   : > { %662 = vmatmul.mubr.f32.vlgmr.msra.gmra.mxu1 %v424_v14  ;;  %740 = vmatmul.mubr.f32.vlgmr.msra.gmra.mxu0 %v29192_v7 }
  0x9c   : > { %779 = vmatpush1.msra.mxu1 %v29232_v29  ;;  %895 = vmatprep.mubr.f32.mxu0 %v34885_v0 }
  0x9d   : > { %2739 = vrot.lane.b32.xlu0 %v29168_v1, %s29111_s14  ;;  %812 = vmatprep.mubr.f32.mxu1 %v34885_v0 }
  0x9f   : > { %814 = vmatmul.mubr.f32.vlgmr.msra.gmra.mxu1 %v29192_v7 }
  0xa0   : > { %981 = vmatprep.mubr.f32.mxu1 %v34885_v0 }
  0xfc   : > { %v337_v50 = vpop.permute.xlu1 %336  ;;  %v335_v51 = vpop.permute.xlu0 %334 }
  0xfd   : > { %v339_v52 = vsel %vm338_vm6, %v335_v51, %v337_v50  ;;  %v340_v53 = vsel %vm338_vm6, %v337_v50, %v335_v51  ;;  %v29421_v50 = vsub.f32 %v1788_v18, %v29391_v26 }
  0xfe   : > { %v824_v54 = vsel %vm348_vm5, %v340_v53, 0  ;;  %v827_v55 = vsel %vm348_vm5, %v339_v52, 0 }
  0xff   : > { %v29320_v58 = vand.u32 4294901760, %v827_v55  ;;  %v29322_v59 = vand.u32 4294901760, %v824_v54  ;;  %v1865_v18 = vand.u32 4294901760, %v29421_v50 }
 0x100   : > { %v3233_v3 = vpop.permute.xlu1 %3232  ;;  %v3231_v4 = vpop.permute.xlu0 %3230 }
 0x101   : > { %35163 = vst [vmem:[#allocation13_spill] sm:$0xff] %v29320_v58  ;;  %35164 = vst [vmem:[#allocation14_spill] sm:$0xff] %v29322_v59  ;;  %v29344_v7 = vsub.f32 %v827_v55, %v29320_v58  ;;  %v29347_v8 = vsub.f32 %v824_v54, %v29322_v59  ;;  %v3235_v9 = vsel %vm3234_vm8, %v3231_v4, %v3233_v3  ;;  %860 = vmatprep.subr.mxu0 %v29320_v58 }
 0x102   : > { %v3236_v10 = vsel %vm3234_vm8, %v3233_v3, %v3231_v4  ;;  %862 = vmatpush1.msra.mxu0 %v29322_v59  ;;  %v29361_v12 = vsel %vm29332_vm10, %v3229_v63, %v3235_v9  ;;  %v28992_v4 = vld [vmem:[%s34862_s0 + $0x20] sm:$0x3f] }
 0x103   : > { %35171 = vst [vmem:[#allocation17_spill] sm:$0xff] %v29344_v7  ;;  %35172 = vst [vmem:[#allocation18_spill] sm:$0xff] %v29347_v8  ;;  %v29357_v11 = vsel %vm29326_vm9, %v3228_v62, %v3236_v10  ;;  %901 = vmatmul.mubr.f32.vlgmr.msra.gmra.mxu0 %v900_v56  ;;  %1021 = vmatprep.subr.mxu0 %v29344_v7  ;;  %v29367_v14 = vand.u32 4294901760, %v29344_v7  ;;  %v29370_v17 = vand.u32 4294901760, %v29347_v8 }
 0x104   : > { %3245 = vrot.lane.b32.xlu1 %v29357_v11, %s29109_s12  ;;  %3243 = vrot.lane.b32.xlu0 %v29361_v12, %s29109_s12  ;;  %v1297_v19 = vpop.permute.xlu1 %1296 }
 0x105   : > { %35173 = vst [vmem:[#allocation19_spill] sm:$0xff] %v29367_v14  ;;  %35174 = vst [vmem:[#allocation20_spill] sm:$0xff] %v29370_v17  ;;  %1024 = vmatpush1.msra.mxu0 %v29347_v8  ;;  %v1295_v20 = vpop.permute.xlu0 %1294  ;;  %1057 = vmatprep.mubr.f32.mxu0 %v34885_v0  ;;  %v940_v21 = vsub.f32 %v29344_v7, %v29367_v14  ;;  %v946_v22 = vsub.f32 %v29347_v8, %v29370_v17 }
 0x106   : > { %v1299_v23 = vsel %vm1298_vm11, %v1295_v20, %v1297_v19  ;;  %v1300_v24 = vsel %vm1298_vm11, %v1297_v19, %v1295_v20  ;;  %1175 = vmatprep.subr.mxu0 %v29367_v14  ;;  %v2266_v20 = vsel %vm344_vm0, %v28992_v4, 0 }
 0x107   : > { %v1307_v27 = vsel %vm348_vm5, %v1299_v23, 0  ;;  %v1310_v30 = vsel %vm348_vm5, %v1300_v24, 0  ;;  %1060 = vmatmul.mubr.f32.vlgmr.msra.gmra.mxu0 %v29296_v42  ;;  %v29396_v35 = vand.u32 4294901760, %v940_v21  ;;  %v29398_v36 = vand.u32 4294901760, %v946_v22 }
 0x108   : > { %v29400_v39 = vand.u32 4294901760, %v1310_v30  ;;  %v29402_v40 = vand.u32 4294901760, %v1307_v27  ;;  %1179 = vmatpush1.msra.mxu0 %v29370_v17  ;;  %4207 = vrot.lane.b32.xlu1 %v29357_v11, %s29111_s14  ;;  %v1782_v43 = vpop.permute.xlu1 %1781  ;;  %v1866_v22 = vsub.f32 %v29421_v50, %v1865_v18  ;;  %v29484_v23 = vand.u32 4294901760, %v2266_v20 }
 0x109   : > { %35175 = vst [vmem:[#allocation21_spill] sm:$0xff] %v29396_v35  ;;  %35176 = vst [vmem:[#allocation22_spill] sm:$0xff] %v29398_v36  ;;  %4205 = vrot.lane.b32.xlu0 %v29361_v12, %s29111_s14  ;;  %942 = vmatprep.subr.mxu1 %v29396_v35  ;;  %v2268_v24 = vsel %vm348_vm5, %v29168_v1, 0 }
 0x10a   : > { %35177 = vst [vmem:[#allocation23_spill] sm:$0xff] %v29400_v39  ;;  %35178 = vst [vmem:[#allocation24_spill] sm:$0xff] %v29402_v40  ;;  %v29411_v44 = vsub.f32 %v1310_v30, %v29400_v39  ;;  %v29414_v45 = vsub.f32 %v1307_v27, %v29402_v40  ;;  %1343 = vmatprep.subr.mxu0 %v29400_v39  ;;  %948 = vmatpush1.msra.mxu1 %v29398_v36  ;;  %v1867_v27 = vand.u32 4294901760, %v1866_v22 }
 0x10b   : > { %1212 = vmatprep.mubr.f32.mxu0 %v34885_v0  ;;  %983 = vmatmul.mubr.f32.vlgmr.msra.gmra.mxu1 %v29293_v41  ;;  %v1780_v48 = vpop.permute.xlu0 %1779  ;;  %v29504_v1 = vsub.f32 %v2266_v20, %v29484_v23  ;;  %v29506_v30 = vand.u32 4294901760, %v2268_v24 }
 0x10c   : > { %35179 = vst [vmem:[#allocation25_spill] sm:$0xff] %v29411_v44  ;;  %35180 = vst [vmem:[#allocation26_spill] sm:$0xff] %v29414_v45  ;;  %1097 = vmatprep.subr.mxu1 %v29320_v58  ;;  %1214 = vmatmul.mubr.f32.vlgmr.msra.gmra.mxu0 %v29293_v41  ;;  %v29426_v51 = vand.u32 4294901760, %v29411_v44  ;;  %v29429_v52 = vand.u32 4294901760, %v29414_v45  ;;  %v1783_v53 = vsel %vm338_vm6, %v1780_v48, %v1782_v43 }
 0x10d   : > { %v1784_v54 = vsel %vm338_vm6, %v1782_v43, %v1780_v48  ;;  %1345 = vmatpush1.msra.mxu0 %v29402_v40  ;;  %1099 = vmatpush1.msra.mxu1 %v29322_v59  ;;  %v1794_v56 = vsel %vm348_vm5, %v1783_v53, 0  ;;  %35192 = vst [vmem:[#allocation38_spill] sm:$0xff] %v29506_v30 }
 0x10e   : > { %35181 = vst [vmem:[#allocation27_spill] sm:$0xff] %v29426_v51  ;;  %35182 = vst [vmem:[#allocation28_spill] sm:$0xff] %v29429_v52  ;;  %v1791_v55 = vsel %vm348_vm5, %v1784_v54, 0  ;;  %1504 = vmatprep.subr.mxu0 %v29411_v44  ;;  %1251 = vmatprep.subr.mxu1 %v29320_v58  ;;  %v1423_v62 = vsub.f32 %v29411_v44, %v29426_v51  ;;  %v29443_v63 = vand.u32 4294901760, %v1794_v56 }
 0x10f   : > { %v29445_v3 = vand.u32 4294901760, %v1791_v55  ;;  %1132 = vmatprep.mubr.f32.mxu1 %v34885_v0  ;;  %1378 = vmatprep.mubr.f32.mxu0 %v34885_v0  ;;  %v1429_v5 = vsub.f32 %v29414_v45, %v29429_v52  ;;  %v2740_v48 = vpop.permute.xlu0 %2739 }
 0x110   : > { %35183 = vst [vmem:[#allocation29_spill] sm:$0xff] %v29443_v63  ;;  %1136 = vmatmul.mubr.f32.vlgmr.msra.gmra.mxu1 %v898_v46  ;;  %1384 = vmatmul.mubr.f32.vlgmr.msra.gmra.mxu0 %v1383_v47  ;;  %v29456_v9 = vand.u32 4294901760, %v1423_v62  ;;  %v29459_v10 = vsub.f32 %v1794_v56, %v29443_v63  ;;  %v2270_v46 = vsel %vm348_vm5, %v29176_v2, 0  ;;  %v2742_v47 = vpop.permute.xlu1 %2741  ;;  %v34870_v62 = vand.u32 4294901760, %v29504_v1 }
 0x111   : > { %35184 = vst [vmem:[#allocation30_spill] sm:$0xff] %v29445_v3  ;;  %1253 = vmatpush1.msra.mxu1 %v29322_v59  ;;  %1507 = vmatpush1.msra.mxu0 %v29414_v45  ;;  %v29465_v19 = vsub.f32 %v1791_v55, %v29445_v3  ;;  %v29477_v21 = vand.u32 4294901760, %v1429_v5  ;;  %v29497_v25 = vand.u32 4294901760, %v2270_v46  ;;  %v28993_v55 = vld [vmem:[%s34862_s0 + $0x38] sm:$0x3f]  ;;  %v2744_v56 = vsel %vm1298_vm11, %v2742_v47, %v2740_v48 }
 0x112   : > { %35185 = vst [vmem:[#allocation31_spill] sm:$0xff] %v29456_v9  ;;  %35186 = vst [vmem:[#allocation32_spill] sm:$0xff] %v29459_v10  ;;  %1658 = vmatprep.subr.mxu0 %v29426_v51  ;;  %1425 = vmatprep.subr.mxu1 %v29456_v9  ;;  %v29471_v42 = vand.u32 4294901760, %v29459_v10  ;;  %v29534_v5 = vsub.f32 %v2268_v24, %v29506_v30  ;;  %v2748_v20 = vsel %vm344_vm0, %v28993_v55, 0 }
 0x113   : > { %35187 = vst [vmem:[#allocation33_spill] sm:$0xff] %v29465_v19  ;;  %1286 = vmatprep.mubr.f32.mxu1 %v34885_v0  ;;  %1540 = vmatprep.mubr.f32.mxu0 %v34885_v0  ;;  %35189 = vst [vmem:[#allocation35_spill] sm:$0xff] %v29477_v21  ;;  %v29489_v2 = vand.u32 4294901760, %v29465_v19  ;;  %v29517_v54 = vsub.f32 %v2270_v46, %v29497_v25  ;;  %v2754_v46 = vsel %vm348_vm5, %v2744_v56, 0  ;;  %v29552_v24 = vand.u32 4294901760, %v2748_v20 }
 0x114   : > { %35188 = vst [vmem:[#allocation34_spill] sm:$0xff] %v29471_v42  ;;  %1288 = vmatmul.mubr.f32.vlgmr.msra.gmra.mxu1 %v29293_v41  ;;  %1543 = vmatmul.mubr.f32.vlgmr.msra.gmra.mxu0 %v29318_v57  ;;  %v1907_v41 = vsub.f32 %v29459_v10, %v29471_v42  ;;  %35191 = vst [vmem:[#allocation37_spill] sm:$0xff] %v29497_v25  ;;  %v2342_v22 = vsub.f32 %v29504_v1, %v34870_v62 }
 0x115   : > { %1431 = vmatpush1.msra.mxu1 %v29477_v21  ;;  %1662 = vmatpush1.msra.mxu0 %v29429_v52  ;;  %35190 = vst [vmem:[#allocation36_spill] sm:$0xff] %v29489_v2  ;;  %v1913_v43 = vsub.f32 %v29465_v19, %v29489_v2  ;;  %35194 = vst [vmem:[#allocation40_spill] sm:$0xff] %v29517_v54  ;;  %v29540_v57 = vand.u32 4294901760, %v29517_v54 }
 0x116   : > { %1580 = vmatprep.subr.mxu1 %v29400_v39  ;;  %1464 = vmatprep.mubr.f32.mxu1 %v34885_v0  ;;  %v29514_v53 = vand.u32 4294901760, %v1907_v41  ;;  %35196 = vst [vmem:[#allocation42_spill] sm:$0xff] %v29534_v5  ;;  %v29557_v41 = vand.u32 4294901760, %v29534_v5 }
 0x117   : > { %1695 = vmatprep.mubr.f32.mxu0 %v34885_v0  ;;  %1827 = vmatprep.subr.mxu0 %v29443_v63  ;;  %v29531_v4 = vand.u32 4294901760, %v1913_v43  ;;  %35197 = vst [vmem:[#allocation43_spill] sm:$0xff] %v29540_v57  ;;  %v2383_v43 = vsub.f32 %v29517_v54, %v29540_v57 }
 0x118   : > { %1466 = vmatmul.mubr.f32.vlgmr.msra.gmra.mxu1 %v29307_v49  ;;  %1697 = vmatmul.mubr.f32.vlgmr.msra.gmra.mxu0 %v29307_v49  ;;  %35193 = vst [vmem:[#allocation39_spill] sm:$0xff] %v29514_v53  ;;  %35198 = vst [vmem:[#allocation44_spill] sm:$0xff] %v29557_v41  ;;  %v2389_v56 = vsub.f32 %v29534_v5, %v29557_v41 }
 0x119   : > { %1582 = vmatpush1.msra.mxu1 %v29402_v40  ;;  %1615 = vmatprep.mubr.f32.mxu1 %v34885_v0  ;;  %35195 = vst [vmem:[#allocation41_spill] sm:$0xff] %v29531_v4 }
 0x11a   : > { %1734 = vmatprep.subr.mxu1 %v29400_v39  ;;  %1829 = vmatpush1.msra.mxu0 %v29445_v3  ;;  %v29595_v61 = vand.u32 4294901760, %v2389_v56  ;;  %v35208_v56 = vand.u32 4294901760, %v29504_v1 }
 0x11b   : > { %1862 = vmatprep.mubr.f32.mxu0 %v34885_v0  ;;  %1988 = vmatprep.subr.mxu0 %v29459_v10 }
 0x11c   : > { %1619 = vmatmul.mubr.f32.vlgmr.msra.gmra.mxu1 %v1381_v13  ;;  %1868 = vmatmul.mubr.f32.vlgmr.msra.gmra.mxu0 %v1867_v27  ;;  %v2743_v13 = vsel %vm1298_vm11, %v2740_v48, %v2742_v47  ;;  %v29562_v27 = vand.u32 4294901760, %v2754_v46  ;;  %v2343_v47 = vand.u32 4294901760, %v2342_v22  ;;  %v29571_v48 = vsub.f32 %v2748_v20, %v29552_v24  ;;  %35204 = vst [vmem:[#allocation50_spill] sm:$0xff] %v29595_v61 }
 0x11d   : > { %1736 = vmatpush1.msra.mxu1 %v29402_v40  ;;  %1769 = vmatprep.mubr.f32.mxu1 %v34885_v0  ;;  %v29584_v22 = vand.u32 4294901760, %v2383_v43 }
 0x11e   : > { %1909 = vmatprep.subr.mxu1 %v29514_v53  ;;  %1991 = vmatpush1.msra.mxu0 %v29465_v19  ;;  %35199 = vst [vmem:[#allocation45_spill] sm:$0xff] %v29562_v27  ;;  %v2825_v20 = vand.u32 4294901760, %v29571_v48 }
 0x11f   : > { %2024 = vmatprep.mubr.f32.mxu0 %v34885_v0  ;;  %2142 = vmatprep.subr.mxu0 %v29471_v42  ;;  %35202 = vst [vmem:[#allocation48_spill] sm:$0xff] %v29584_v22 }
 0x120   : > { %1771 = vmatmul.mubr.f32.vlgmr.msra.gmra.mxu1 %v29307_v49  ;;  %2027 = vmatmul.mubr.f32.vlgmr.msra.gmra.mxu0 %v29421_v50  ;;  %v2751_v49 = vsel %vm348_vm5, %v2743_v13, 0  ;;  %v29582_v13 = vsub.f32 %v2754_v46, %v29562_v27  ;;  %v2826_v50 = vsub.f32 %v29571_v48, %v2825_v20 }
 0x121   : > { %1915 = vmatpush1.msra.mxu1 %v29531_v4  ;;  %1948 = vmatprep.mubr.f32.mxu1 %v34885_v0  ;;  %v29575_v55 = vand.u32 4294901760, %v2751_v49 }
 0x122   : > { %2064 = vmatprep.subr.mxu1 %v29443_v63  ;;  %2146 = vmatpush1.msra.mxu0 %v29489_v2  ;;  %35201 = vst [vmem:[#allocation47_spill] sm:$0xff] %v29582_v13  ;;  %v29600_v46 = vand.u32 4294901760, %v29582_v13 }
 0x123   : > { %2179 = vmatprep.mubr.f32.mxu0 %v34885_v0  ;;  %2303 = vmatprep.subr.mxu0 %v29497_v25  ;;  %35200 = vst [vmem:[#allocation46_spill] sm:$0xff] %v29575_v55  ;;  %v29593_v62 = vsub.f32 %v2751_v49, %v29575_v55 }
 0x124   : > { %1950 = vmatmul.mubr.f32.vlgmr.msra.gmra.mxu1 %v29391_v26  ;;  %2181 = vmatmul.mubr.f32.vlgmr.msra.gmra.mxu0 %v29391_v26  ;;  %35205 = vst [vmem:[#allocation51_spill] sm:$0xff] %v29600_v46  ;;  %v2867_v49 = vsub.f32 %v29582_v13, %v29600_v46 }
 0x125   : > { %2066 = vmatpush1.msra.mxu1 %v29445_v3  ;;  %2099 = vmatprep.mubr.f32.mxu1 %v34885_v0  ;;  %35203 = vst [vmem:[#allocation49_spill] sm:$0xff] %v29593_v62 }
 0x126   : > { %2218 = vmatprep.subr.mxu1 %v29443_v63  ;;  %2338 = vmatprep.mubr.f32.mxu0 %v34885_v0 }
 0x127   : > { %2305 = vmatpush1.msra.mxu0 %v29506_v30 }
 0x128   : > { %2103 = vmatmul.mubr.f32.vlgmr.msra.gmra.mxu1 %v1865_v18  ;;  %2344 = vmatmul.mubr.f32.vlgmr.msra.gmra.mxu0 %v2343_v47  ;;  %v29610_v18 = vand.u32 4294901760, %v29593_v62  ;;  %v29626_v47 = vand.u32 4294901760, %v2867_v49 }
 0x129   : > { %2220 = vmatpush1.msra.mxu1 %v29445_v3  ;;  %2253 = vmatprep.mubr.f32.mxu1 %v34885_v0 }
 0x12a   : > { %2385 = vmatprep.subr.mxu1 %v29584_v22  ;;  %2464 = vmatprep.subr.mxu0 %v29517_v54  ;;  %35206 = vst [vmem:[#allocation52_spill] sm:$0xff] %v29610_v18  ;;  %v2873_v43 = vsub.f32 %v29593_v62, %v29610_v18  ;;  %35207 = vst [vmem:[#allocation53_spill] sm:$0xff] %v29626_v47 }
 0x12b   : > { %2467 = vmatpush1.msra.mxu0 %v29534_v5  ;;  %2500 = vmatprep.mubr.f32.mxu0 %v34885_v0 }
 0x12c   : > { %2255 = vmatmul.mubr.f32.vlgmr.msra.gmra.mxu1 %v29391_v26  ;;  %2503 = vmatmul.mubr.f32.vlgmr.msra.gmra.mxu0 %v29504_v1  ;;  %v2827_v26 = vand.u32 4294901760, %v2826_v50  ;;  %v29634_v50 = vand.u32 4294901760, %v2873_v43 }
 0x12d   : > { %2391 = vmatpush1.msra.mxu1 %v29595_v61  ;;  %2424 = vmatprep.mubr.f32.mxu1 %v34885_v0 }
 0x12e   : > { %2540 = vmatprep.subr.mxu1 %v29497_v25  ;;  %2618 = vmatprep.subr.mxu0 %v29540_v57  ;;  %35209 = vst [vmem:[#allocation54_spill] sm:$0xff] %v29634_v50 }
 0x12f   : > { %2622 = vmatpush1.msra.mxu0 %v29557_v41  ;;  %2655 = vmatprep.mubr.f32.mxu0 %v34885_v0 }
 0x130   : > { %2426 = vmatmul.mubr.f32.vlgmr.msra.gmra.mxu1 %v29484_v23  ;;  %2657 = vmatmul.mubr.f32.vlgmr.msra.gmra.mxu0 %v29484_v23 }
 0x131   : > { %2542 = vmatpush1.msra.mxu1 %v29506_v30  ;;  %2575 = vmatprep.mubr.f32.mxu1 %v34885_v0 }
 0x132   : > { %2694 = vmatprep.subr.mxu1 %v29497_v25  ;;  %2787 = vmatprep.subr.mxu0 %v29562_v27 }
 0x133   : > { %2789 = vmatpush1.msra.mxu0 %v29575_v55  ;;  %2822 = vmatprep.mubr.f32.mxu0 %v34885_v0 }
 0x134   : > { %2579 = vmatmul.mubr.f32.vlgmr.msra.gmra.mxu1 %v35208_v56  ;;  %2828 = vmatmul.mubr.f32.vlgmr.msra.gmra.mxu0 %v2827_v26 }
 0x135   : > { %2696 = vmatpush1.msra.mxu1 %v29506_v30  ;;  %2729 = vmatprep.mubr.f32.mxu1 %v34885_v0 }
 0x136   : > { %2869 = vmatprep.subr.mxu1 %v29626_v47  ;;  %2948 = vmatprep.subr.mxu0 %v29582_v13 }
 0x137   : > { %2951 = vmatpush1.msra.mxu0 %v29593_v62  ;;  %2984 = vmatprep.mubr.f32.mxu0 %v34885_v0 }
 0x138   : > { %2731 = vmatmul.mubr.f32.vlgmr.msra.gmra.mxu1 %v29484_v23  ;;  %2987 = vmatmul.mubr.f32.vlgmr.msra.gmra.mxu0 %v29571_v48 }
 0x139   : > { %2875 = vmatpush1.msra.mxu1 %v29634_v50  ;;  %2908 = vmatprep.mubr.f32.mxu1 %v34885_v0 }
 0x13a   : > { %3024 = vmatprep.subr.mxu1 %v29562_v27  ;;  %3102 = vmatprep.subr.mxu0 %v29600_v46 }
 0x13b   : > { %3106 = vmatpush1.msra.mxu0 %v29610_v18  ;;  %3139 = vmatprep.mubr.f32.mxu0 %v34885_v0 }
 0x13c   : > { %2910 = vmatmul.mubr.f32.vlgmr.msra.gmra.mxu1 %v29552_v24  ;;  %3141 = vmatmul.mubr.f32.vlgmr.msra.gmra.mxu0 %v29552_v24 }
 0x13d   : > { %3026 = vmatpush1.msra.mxu1 %v29575_v55  ;;  %3059 = vmatprep.mubr.f32.mxu1 %v34885_v0 }
 0x13e   : > { %3178 = vmatprep.subr.mxu1 %v29562_v27  ;;  %3326 = vmatprep.mubr.f32.mxu0 %v34885_v0 }
 0x140   : > { %3063 = vmatmul.mubr.f32.vlgmr.msra.gmra.mxu1 %v2825_v20 }
 0x141   : > { %3180 = vmatpush1.msra.mxu1 %v29575_v55  ;;  %3213 = vmatprep.mubr.f32.mxu1 %v34885_v0 }
 0x144   : > { %3215 = vmatmul.mubr.f32.vlgmr.msra.gmra.mxu1 %v29552_v24 }
 0x145   : > { %3412 = vmatprep.mubr.f32.mxu1 %v34885_v0  ;;  %v28994_v0 = vld [vmem:[%s34862_s0 + $0x10] sm:$0x3f] }
 0x150   : > { %v428_v23 = vpop.f32.mrf.mxu0 }
 0x152   : > { %v29658_v1 = vpop.f32.mrf.mxu0 }
 0x153   : > { %35210 = vst [vmem:[#allocation55_spill] sm:$0xff] %v29658_v1 }
 0x154   : > { %v587_v48 = vpop.f32.mrf.mxu0 }
 0x156   : > { %v29662_v56 = vpop.f32.mrf.mxu0 }
 0x157   : > { %v510_v49 = vpop.f32.mrf.mxu1  ;;  %35212 = vst [vmem:[#allocation57_spill] sm:$0xff] %v29662_v56 }
 0x158   : > { %v511_v26 = vadd.f32 %v510_v49, %v428_v23  ;;  %v3252_v23 = vsel %vm344_vm0, %v28994_v0, 0  ;;  %v3736_v0 = vsel %vm348_vm5, %v29357_v11, 0  ;;  %v3733_v11 = vsel %vm348_vm5, %v29361_v12, 0  ;;  %v28996_v12 = vld [vmem:[%s34862_s0 + $0x40] sm:$0x3f] }
 0x159   : > { %v29660_v43 = vpop.f32.mrf.mxu1  ;;  %v29672_v49 = vand.u32 4294901760, %v3252_v23  ;;  %v29695_v1 = vand.u32 4294901760, %v3736_v0  ;;  %v4214_v41 = vsel %vm344_vm0, %v28996_v12, 0 }
 0x15a   : > { %35211 = vst [vmem:[#allocation56_spill] sm:$0xff] %v29660_v43  ;;  %v588_v60 = vadd.f32 %v587_v48, %v511_v26 }
 0x15b   : > { %v663_v20 = vpop.f32.mrf.mxu1  ;;  %v741_v18 = vpop.f32.mrf.mxu0  ;;  %v29675_v56 = vsub.f32 %v3252_v23, %v29672_v49  ;;  %35214 = vst [vmem:[#allocation59_spill] sm:$0xff] %v29695_v1 }
 0x15c   : > { %v664_v15 = vadd.f32 %v663_v20, %v588_v60 }
 0x15d   : > { %v29664_v16 = vpop.f32.mrf.mxu1  ;;  %v34887_v60 = vand.u32 4294901760, %v29675_v56 }
 0x15e   : > { %35213 = vst [vmem:[#allocation58_spill] sm:$0xff] %v29664_v16  ;;  %v742_v46 = vadd.f32 %v741_v18, %v664_v15  ;;  %v28995_v15 = vld [vmem:[%s34862_s0 + $0x28] sm:$0x3f] }
 0x15f   : > { %v815_v24 = vpop.f32.mrf.mxu1  ;;  %v3330_v18 = vsub.f32 %v29675_v56, %v34887_v60 }
 0x160   : > { %v29666_v62 = vadd.f32 %v815_v24, %v742_v46  ;;  %v3730_v46 = vsel %vm344_vm0, %v28995_v15, 0 }
 0x161   : > { %v29687_v20 = vand.u32 4294901760, %v3730_v46  ;;  %v3331_v43 = vand.u32 4294901760, %v3330_v18  ;;  %v29713_v18 = vand.u32 4294901760, %v3733_v11 }
 0x163   : > { %v29704_v13 = vsub.f32 %v3730_v46, %v29687_v20  ;;  %35219 = vst [vmem:[#allocation64_spill] sm:$0xff] %v29713_v18  ;;  %v29720_v46 = vsub.f32 %v3736_v0, %v29695_v1  ;;  %v29741_v57 = vsub.f32 %v3733_v11, %v29713_v18 }
 0x165   : > { %35220 = vst [vmem:[#allocation65_spill] sm:$0xff] %v29720_v46  ;;  %35224 = vst [vmem:[#allocation68_spill] sm:$0xff] %v29741_v57  ;;  %v29749_v5 = vand.u32 4294901760, %v29720_v46  ;;  %v35228_v11 = vand.u32 4294901760, %v29704_v13 }
 0x167   : > { %35227 = vst [vmem:[#allocation71_spill] sm:$0xff] %v29749_v5  ;;  %v3808_v12 = vsub.f32 %v29704_v13, %v35228_v11 }
 0x169   : > { %v3809_v11 = vand.u32 4294901760, %v3808_v12  ;;  %v28997_v12 = vld [vmem:[%s34863_s1 + $0x30] sm:$0xff] }
 0x176   : > { %v3246_v48 = vpop.permute.xlu1 %3245  ;;  %v3244_v26 = vpop.permute.xlu0 %3243 }
 0x177   : > { %v3247_v24 = vsel %vm338_vm6, %v3244_v26, %v3246_v48  ;;  %v3248_v23 = vsel %vm338_vm6, %v3246_v48, %v3244_v26 }
 0x178   : > { %v3255_v16 = vsel %vm348_vm5, %v3248_v23, 0  ;;  %v3258_v15 = vsel %vm348_vm5, %v3247_v24, 0 }
 0x179   : > { %v29699_v60 = vand.u32 4294901760, %v3258_v15  ;;  %v29701_v50 = vand.u32 4294901760, %v3255_v16 }
 0x17a   : > { %v4208_v26 = vpop.permute.xlu1 %4207 }
 0x17b   : > { %35215 = vst [vmem:[#allocation60_spill] sm:$0xff] %v29699_v60  ;;  %35216 = vst [vmem:[#allocation61_spill] sm:$0xff] %v29701_v50  ;;  %v29707_v47 = vsub.f32 %v3258_v15, %v29699_v60  ;;  %v29710_v48 = vsub.f32 %v3255_v16, %v29701_v50  ;;  %3291 = vmatprep.subr.mxu0 %v29699_v60  ;;  %v4206_v24 = vpop.permute.xlu0 %4205  ;;  %v35223_v15 = vmov 0.0  }
 0x17c   : > { %3293 = vmatpush1.msra.mxu0 %v29701_v50  ;;  %v4210_v27 = vsel %vm1298_vm11, %v4208_v26, %v4206_v24 }
 0x17d   : > { %35217 = vst [vmem:[#allocation62_spill] sm:$0xff] %v29707_v47  ;;  %35218 = vst [vmem:[#allocation63_spill] sm:$0xff] %v29710_v48  ;;  %3332 = vmatmul.mubr.f32.vlgmr.msra.gmra.mxu0 %v3331_v43  ;;  %3452 = vmatprep.subr.mxu0 %v29707_v47  ;;  %v29724_v16 = vand.u32 4294901760, %v29707_v47  ;;  %v29727_v23 = vand.u32 4294901760, %v29710_v48 }
 0x17e   : > { %3455 = vmatpush1.msra.mxu0 %v29710_v48  ;;  %3488 = vmatprep.mubr.f32.mxu0 %v35223_v15 }
 0x17f   : > { %35221 = vst [vmem:[#allocation66_spill] sm:$0xff] %v29724_v16  ;;  %35222 = vst [vmem:[#allocation67_spill] sm:$0xff] %v29727_v23  ;;  %3606 = vmatprep.subr.mxu0 %v29724_v16  ;;  %v3371_v43 = vsub.f32 %v29707_v47, %v29724_v16  ;;  %v3377_v0 = vsub.f32 %v29710_v48, %v29727_v23  ;;  %v4209_v16 = vsel %vm1298_vm11, %v4206_v24, %v4208_v26 }
 0x180   : > { %v4220_v47 = vsel %vm348_vm5, %v4210_v27, 0  ;;  %v29765_v26 = vand.u32 4294901760, %v29741_v57  ;;  %v4217_v27 = vsel %vm348_vm5, %v4209_v16, 0  ;;  %v35233_v48 = vand.u32 4294901760, %v29675_v56 }
 0x181   : > { %3491 = vmatmul.mubr.f32.vlgmr.msra.gmra.mxu0 %v29675_v56  ;;  %v29744_v61 = vand.u32 4294901760, %v3371_v43  ;;  %v29746_v55 = vand.u32 4294901760, %v3377_v0  ;;  %v29759_v43 = vand.u32 4294901760, %v4214_v41  ;;  %v29768_v24 = vand.u32 4294901760, %v4220_v47 }
 0x182   : > { %3610 = vmatpush1.msra.mxu0 %v29727_v23  ;;  %3643 = vmatprep.mubr.f32.mxu0 %v35223_v15  ;;  %35229 = vst [vmem:[#allocation72_spill] sm:$0xff] %v29765_v26  ;;  %v3849_v0 = vsub.f32 %v29720_v46, %v29749_v5  ;;  %v29781_v16 = vand.u32 4294901760, %v4217_v27  ;;  %v3855_v23 = vsub.f32 %v29741_v57, %v29765_v26 }
 0x183   : > { %35225 = vst [vmem:[#allocation69_spill] sm:$0xff] %v29744_v61  ;;  %35226 = vst [vmem:[#allocation70_spill] sm:$0xff] %v29746_v55  ;;  %3769 = vmatprep.subr.mxu0 %v29695_v1  ;;  %3373 = vmatprep.subr.mxu1 %v29744_v61  ;;  %v29777_v6 = vsub.f32 %v4214_v41, %v29759_v43  ;;  %v29791_v41 = vsub.f32 %v4220_v47, %v29768_v24  ;;  %v4695_v61 = vsel %vm344_vm0, %v28997_v12, 0 }
 0x184   : > { %3379 = vmatpush1.msra.mxu1 %v29746_v55  ;;  %35230 = vst [vmem:[#allocation73_spill] sm:$0xff] %v29768_v24  ;;  %35231 = vst [vmem:[#allocation74_spill] sm:$0xff] %v29781_v16  ;;  %v29796_v55 = vand.u32 4294901760, %v3849_v0  ;;  %v29804_v47 = vsub.f32 %v4217_v27, %v29781_v16  ;;  %v29808_v56 = vand.u32 4294901760, %v3855_v23  ;;  %v29823_v27 = vand.u32 4294901760, %v4695_v61 }
 0x185   : > { %3414 = vmatmul.mubr.f32.vlgmr.msra.gmra.mxu1 %v29672_v49  ;;  %3528 = vmatprep.subr.mxu1 %v29699_v60  ;;  %35232 = vst [vmem:[#allocation75_spill] sm:$0xff] %v29791_v41  ;;  %v29816_v0 = vand.u32 4294901760, %v29791_v41 }
 0x186   : > { %3645 = vmatmul.mubr.f32.vlgmr.msra.gmra.mxu0 %v29672_v49  ;;  %3530 = vmatpush1.msra.mxu1 %v29701_v50  ;;  %35234 = vst [vmem:[#allocation76_spill] sm:$0xff] %v29796_v55  ;;  %35235 = vst [vmem:[#allocation77_spill] sm:$0xff] %v29804_v47 }
 0x187   : > { %3771 = vmatpush1.msra.mxu0 %v29713_v18  ;;  %3682 = vmatprep.subr.mxu1 %v29699_v60  ;;  %35236 = vst [vmem:[#allocation78_spill] sm:$0xff] %v29808_v56  ;;  %35237 = vst [vmem:[#allocation79_spill] sm:$0xff] %v29816_v0  ;;  %v4333_v12 = vsub.f32 %v29791_v41, %v29816_v0 }
 0x188   : > { %3930 = vmatprep.subr.mxu0 %v29720_v46  ;;  %3563 = vmatprep.mubr.f32.mxu1 %v35223_v15  ;;  %v34922_v46 = vand.u32 4294901760, %v29777_v6 }
 0x189   : > { %3804 = vmatprep.mubr.f32.mxu0 %v35223_v15  ;;  %3567 = vmatmul.mubr.f32.vlgmr.msra.gmra.mxu1 %v35233_v48  ;;  %v28998_v48 = vld [vmem:[%s34863_s1 + $0x38] sm:$0x1] }
 0x18a   : > { %3684 = vmatpush1.msra.mxu1 %v29701_v50  ;;  %3810 = vmatmul.mubr.f32.vlgmr.msra.gmra.mxu0 %v3809_v11  ;;  %v4292_v23 = vsub.f32 %v29777_v6, %v34922_v46  ;;  %v4698_v11 = vsel %vm344_vm0, %v28998_v48, 0  ;;  %v29840_v48 = vsub.f32 %v4695_v61, %v29823_v27  ;;  %v29853_v61 = vand.u32 4294901760, %v4333_v12  ;;  %v4689_v12 = vld [vmem:[%s34863_s1] sm:$0xff] }
 0x18b   : > { %3933 = vmatpush1.msra.mxu0 %v29741_v57  ;;  %3851 = vmatprep.subr.mxu1 %v29796_v55 }
 0x18c   : > { %4084 = vmatprep.subr.mxu0 %v29749_v5  ;;  %3717 = vmatprep.mubr.f32.mxu1 %v35223_v15  ;;  %v4293_v46 = vand.u32 4294901760, %v4292_v23  ;;  %v35239_v23 = vand.u32 4294901760, %v29704_v13  ;;  %35240 = vst [vmem:[#allocation81_spill] sm:$0xff] %v29853_v61  ;;  %v34931_v57 = vand.u32 4294901760, %v29840_v48 }
 0x18d   : > { %3966 = vmatprep.mubr.f32.mxu0 %v35223_v15  ;;  %3719 = vmatmul.mubr.f32.vlgmr.msra.gmra.mxu1 %v29672_v49  ;;  %v29831_v49 = vand.u32 4294901760, %v29804_v47 }
 0x18e   : > { %3857 = vmatpush1.msra.mxu1 %v29808_v56  ;;  %3969 = vmatmul.mubr.f32.vlgmr.msra.gmra.mxu0 %v29704_v13 }
 0x18f   : > { %4088 = vmatpush1.msra.mxu0 %v29765_v26  ;;  %4006 = vmatprep.subr.mxu1 %v29695_v1  ;;  %35238 = vst [vmem:[#allocation80_spill] sm:$0xff] %v29831_v49  ;;  %v29842_v26 = vand.u32 4294901760, %v4698_v11  ;;  %v4339_v5 = vsub.f32 %v29804_v47, %v29831_v49 }
 0x190   : > { %4253 = vmatprep.subr.mxu0 %v29768_v24  ;;  %3890 = vmatprep.mubr.f32.mxu1 %v35223_v15 }
 0x191   : > { %4121 = vmatprep.mubr.f32.mxu0 %v35223_v15  ;;  %3892 = vmatmul.mubr.f32.vlgmr.msra.gmra.mxu1 %v29687_v20  ;;  %v29858_v56 = vsub.f32 %v4698_v11, %v29842_v26  ;;  %v29864_v13 = vand.u32 4294901760, %v4339_v5 }
 0x192   : > { %4008 = vmatpush1.msra.mxu1 %v29713_v18  ;;  %4123 = vmatmul.mubr.f32.vlgmr.msra.gmra.mxu0 %v29687_v20 }
 0x193   : > { %4255 = vmatpush1.msra.mxu0 %v29781_v16  ;;  %4160 = vmatprep.subr.mxu1 %v29695_v1  ;;  %35241 = vst [vmem:[#allocation82_spill] sm:$0xff] %v29864_v13  ;;  %v4780_v11 = vand.u32 4294901760, %v29858_v56 }
 0x194   : > { %4414 = vmatprep.subr.mxu0 %v29791_v41  ;;  %4041 = vmatprep.mubr.f32.mxu1 %v35223_v15  ;;  %v35265_v41 = vld [vmem:[#allocation51_spill] sm:$0xff] }
 0x195   : > { %4288 = vmatprep.mubr.f32.mxu0 %v35223_v15  ;;  %4045 = vmatmul.mubr.f32.vlgmr.msra.gmra.mxu1 %v35239_v23  ;;  %v35242_v23 = vand.u32 4294901760, %v29777_v6 }
 0x196   : > { %4162 = vmatpush1.msra.mxu1 %v29713_v18  ;;  %4294 = vmatmul.mubr.f32.vlgmr.msra.gmra.mxu0 %v4293_v46  ;;  %v4770_v46 = vsub.f32 %v29840_v48, %v34931_v57  ;;  %v5215_v57 = vsel %vm344_vm0, %v4689_v12, 0  ;;  %v35243_v12 = vand.u32 4294901760, %v29840_v48 }
 0x197   : > { %4417 = vmatpush1.msra.mxu0 %v29804_v47  ;;  %4335 = vmatprep.subr.mxu1 %v29853_v61  ;;  %v35269_v61 = vld [vmem:[#allocation52_spill] sm:$0xff] }
 0x198   : > { %4568 = vmatprep.subr.mxu0 %v29816_v0  ;;  %4195 = vmatprep.mubr.f32.mxu1 %v35223_v15  ;;  %v4771_v5 = vand.u32 4294901760, %v4770_v46 }
 0x199   : > { %4450 = vmatprep.mubr.f32.mxu0 %v35223_v15  ;;  %4197 = vmatmul.mubr.f32.vlgmr.msra.gmra.mxu1 %v29687_v20  ;;  %v4781_v20 = vsub.f32 %v29858_v56, %v4780_v11 }
 0x19a   : > { %4341 = vmatpush1.msra.mxu1 %v29864_v13  ;;  %4453 = vmatmul.mubr.f32.vlgmr.msra.gmra.mxu0 %v29777_v6  ;;  %v29905_v6 = vand.u32 4294901760, %v5215_v57 }
 0x19b   : > { %4572 = vmatpush1.msra.mxu0 %v29831_v49  ;;  %4490 = vmatprep.subr.mxu1 %v29768_v24  ;;  %v4782_v46 = vand.u32 4294901760, %v4781_v20  ;;  %v35260_v49 = vld [vmem:[#allocation53_spill] sm:$0xff] }
 0x19c   : > { %4731 = vmatprep.subr.mxu0 %v29230_v28  ;;  %4374 = vmatprep.mubr.f32.mxu1 %v35223_v15 }
 0x19d   : > { %4605 = vmatprep.mubr.f32.mxu0 %v35223_v15  ;;  %4376 = vmatmul.mubr.f32.vlgmr.msra.gmra.mxu1 %v29759_v43 }
 0x19e   : > { %4492 = vmatpush1.msra.mxu1 %v29781_v16  ;;  %4607 = vmatmul.mubr.f32.vlgmr.msra.gmra.mxu0 %v29759_v43 }
 0x19f   : > { %4733 = vmatpush1.msra.mxu0 %v29232_v29  ;;  %4644 = vmatprep.subr.mxu1 %v29768_v24 }
 0x1a0   : > { %4910 = vmatprep.subr.mxu0 %v29235_v31  ;;  %4525 = vmatprep.mubr.f32.mxu1 %v35223_v15  ;;  %v4690_v31 = vld [vmem:[%s34863_s1 + $0x8] sm:$0x1] }
 0x1a1   : > { %4766 = vmatprep.mubr.f32.mxu0 %v35223_v15  ;;  %4529 = vmatmul.mubr.f32.vlgmr.msra.gmra.mxu1 %v35242_v23 }
 0x1a2   : > { %4646 = vmatpush1.msra.mxu1 %v29781_v16  ;;  %4772 = vmatmul.mubr.f32.vlgmr.msra.gmra.mxu0 %v4771_v5  ;;  %v5218_v5 = vsel %vm344_vm0, %v4690_v31, 0  ;;  %v35271_v16 = vld [vmem:[#allocation55_spill] sm:$0xff] }
 0x1a3   : > { %4913 = vmatpush1.msra.mxu0 %v29238_v32  ;;  %4824 = vmatprep.subr.mxu1 %v29262_v37  ;;  %v29917_v20 = vand.u32 4294901760, %v5218_v5 }
 0x1a4   : > { %5081 = vmatprep.subr.mxu0 %v29247_v33  ;;  %4679 = vmatprep.mubr.f32.mxu1 %v35223_v15 }
 0x1a5   : > { %4777 = vmatprep.mubr.f32.mxu0 %v35223_v15  ;;  %4681 = vmatmul.mubr.f32.vlgmr.msra.gmra.mxu1 %v29759_v43  ;;  %v29915_v43 = vsub.f32 %v5215_v57, %v29905_v6  ;;  %v29929_v57 = vsub.f32 %v5218_v5, %v29917_v20  ;;  %v28999_v5 = vld [vmem:[%s34863_s1 + $0x60] sm:$0xff] }
 0x1a6   : > { %4783 = vmatmul.mubr.f32.gmra.mxu0 %v4782_v46  ;;  %4830 = vmatpush1.msra.mxu1 %v29264_v38 }
 0x1a7   : > { %4994 = vmatprep.subr.mxu1 %v29230_v28  ;;  %4863 = vmatprep.mubr.f32.mxu1 %v35223_v15  ;;  %v5289_v31 = vand.u32 4294901760, %v29915_v43 }
 0x1a8   : > { %4946 = vmatprep.mubr.f32.mxu0 %v35223_v15 }
 0x1a9   : > { %4865 = vmatmul.mubr.f32.vlgmr.msra.gmra.mxu1 %v29823_v27  ;;  %v5290_v23 = vsub.f32 %v29915_v43, %v5289_v31 }
 0x1aa   : > { %4949 = vmatmul.mubr.f32.vlgmr.msra.gmra.mxu0 %v29840_v48  ;;  %4996 = vmatpush1.msra.mxu1 %v29232_v29 }
 0x1ab   : > { %5085 = vmatpush1.msra.mxu0 %v29250_v34  ;;  %5164 = vmatprep.subr.mxu1 %v29230_v28  ;;  %v5291_v48 = vand.u32 4294901760, %v5290_v23  ;;  %v29000_v23 = vld [vmem:[%s34863_s1 + $0x68] sm:$0x1]  ;;  %v35254_v34 = vld [vmem:[#allocation44_spill] sm:$0xff]  ;;  %v35259_v28 = vld [vmem:[#allocation46_spill] sm:$0xff] }
 0x1ac   : > { %5251 = vmatprep.subr.mxu0 %v29320_v58  ;;  %4870 = vmatprep.mubr.f32.mxu1 %v35223_v15 }
 0x1ad   : > { %4954 = vmatprep.mubr.f32.mxu0 %v35223_v15  ;;  %4872 = vmatmul.mubr.f32.gmra.mxu1 %v29842_v26 }
 0x1ae   : > { %4957 = vmatmul.mubr.f32.gmra.mxu0 %v29858_v56  ;;  %5029 = vmatprep.mubr.f32.mxu1 %v35223_v15  ;;  %v34933_v56 = vand.u32 4294901760, %v29929_v57 }
 0x1af   : > { %5118 = vmatprep.mubr.f32.mxu0 %v35223_v15 }
 0x1b0   : > { %v5301_v46 = vsub.f32 %v29929_v57, %v34933_v56 }
 0x1b1   : > { %5033 = vmatmul.mubr.f32.vlgmr.msra.gmra.mxu1 %v35243_v12  ;;  %v5738_v12 = vsel %vm344_vm0, %v28999_v5, 0 }
 0x1b2   : > { %5120 = vmatmul.mubr.f32.vlgmr.msra.gmra.mxu0 %v29823_v27  ;;  %5166 = vmatpush1.msra.mxu1 %v29232_v29 }
 0x1b3   : > { %5253 = vmatpush1.msra.mxu0 %v29322_v59  ;;  %5344 = vmatprep.subr.mxu1 %v29396_v35 }
 0x1b4   : > { %5430 = vmatprep.subr.mxu0 %v29344_v7  ;;  %5038 = vmatprep.mubr.f32.mxu1 %v35223_v15 }
 0x1b5   : > { %5125 = vmatprep.mubr.f32.mxu0 %v35223_v15  ;;  %5042 = vmatmul.mubr.f32.gmra.mxu1 %v4780_v11  ;;  %v5302_v11 = vand.u32 4294901760, %v5301_v46  ;;  %v29969_v46 = vpop.f32.mrf.mxu0 }
 0x1b6   : > { %5127 = vmatmul.mubr.f32.gmra.mxu0 %v29842_v26  ;;  %5199 = vmatprep.mubr.f32.mxu1 %v35223_v15 }
 0x1b7   : > { %5286 = vmatprep.mubr.f32.mxu0 %v35223_v15 }
 0x1b9   : > { %5201 = vmatmul.mubr.f32.vlgmr.msra.gmra.mxu1 %v29823_v27  ;;  %v29965_v27 = vand.u32 4294901760, %v5738_v12 }
 0x1ba   : > { %5292 = vmatmul.mubr.f32.vlgmr.msra.gmra.mxu0 %v5291_v48  ;;  %5350 = vmatpush1.msra.mxu1 %v29398_v36  ;;  %v5741_v48 = vsel %vm344_vm0, %v29000_v23, 0 }
 0x1bb   : > { %5433 = vmatpush1.msra.mxu0 %v29347_v8  ;;  %5514 = vmatprep.subr.mxu1 %v29320_v58  ;;  %v29975_v5 = vsub.f32 %v5738_v12, %v29965_v27  ;;  %v35244_v8 = vand.u32 4294901760, %v29929_v57 }
 0x1bc   : > { %5601 = vmatprep.subr.mxu0 %v29367_v14  ;;  %5206 = vmatprep.mubr.f32.mxu1 %v35223_v15 }
 0x1bd   : > { %5297 = vmatprep.mubr.f32.mxu0 %v35223_v15  ;;  %5208 = vmatmul.mubr.f32.gmra.mxu1 %v29842_v26  ;;  %v29977_v26 = vand.u32 4294901760, %v5741_v48 }
 0x1be   : > { %5303 = vmatmul.mubr.f32.gmra.mxu0 %v5302_v11  ;;  %5383 = vmatprep.mubr.f32.mxu1 %v35223_v15 }
 0x1bf   : > { %5466 = vmatprep.mubr.f32.mxu0 %v35223_v15  ;;  %v29990_v12 = vsub.f32 %v5741_v48, %v29977_v26 }
 0x1c1   : > { %5385 = vmatmul.mubr.f32.vlgmr.msra.gmra.mxu1 %v29905_v6 }
 0x1c2   : > { %5469 = vmatmul.mubr.f32.vlgmr.msra.gmra.mxu0 %v29915_v43  ;;  %5516 = vmatpush1.msra.mxu1 %v29322_v59  ;;  %v34938_v43 = vand.u32 4294901760, %v29975_v5 }
 0x1c3   : > { %5605 = vmatpush1.msra.mxu0 %v29370_v17  ;;  %5684 = vmatprep.subr.mxu1 %v29320_v58  ;;  %v902_v11 = vpop.f32.mrf.mxu0  ;;  %v29995_v17 = vpop.f32.mrf.mxu1  ;;  %v35252_v58 = vld [vmem:[#allocation43_spill] sm:$0xff] }
 0x1c4   : > { %5774 = vmatprep.subr.mxu0 %v29400_v39  ;;  %5390 = vmatprep.mubr.f32.mxu1 %v35223_v15  ;;  %v903_v23 = vadd.f32 %v902_v11, %v29666_v62  ;;  %v5813_v62 = vsub.f32 %v29975_v5, %v34938_v43  ;;  %v34942_v11 = vand.u32 4294901760, %v29990_v12 }
 0x1c5   : > { %5474 = vmatprep.mubr.f32.mxu0 %v35223_v15  ;;  %5392 = vmatmul.mubr.f32.gmra.mxu1 %v29917_v20  ;;  %v29992_v56 = vpop.f32.mrf.mxu0 }
 0x1c6   : > { %5477 = vmatmul.mubr.f32.gmra.mxu0 %v29929_v57  ;;  %5549 = vmatprep.mubr.f32.mxu1 %v35223_v15  ;;  %v5814_v43 = vand.u32 4294901760, %v5813_v62 }
 0x1c7   : > { %5638 = vmatprep.mubr.f32.mxu0 %v35223_v15  ;;  %v1061_v14 = vpop.f32.mrf.mxu0 }
 0x1c9   : > { %5553 = vmatmul.mubr.f32.vlgmr.msra.gmra.mxu1 %v5289_v31  ;;  %v30017_v7 = vpop.f32.mrf.mxu0 }
 0x1ca   : > { %5640 = vmatmul.mubr.f32.vlgmr.msra.gmra.mxu0 %v29905_v6  ;;  %5686 = vmatpush1.msra.mxu1 %v29322_v59  ;;  %v35251_v59 = vld [vmem:[#allocation50_spill] sm:$0xff] }
 0x1cb   : > { %5776 = vmatpush1.msra.mxu0 %v29402_v40  ;;  %5867 = vmatprep.subr.mxu1 %v29456_v9  ;;  %v984_v48 = vpop.f32.mrf.mxu1  ;;  %v5824_v9 = vsub.f32 %v29990_v12, %v34942_v11 }
 0x1cc   : > { %5953 = vmatprep.subr.mxu0 %v29411_v44  ;;  %5558 = vmatprep.mubr.f32.mxu1 %v35223_v15  ;;  %v985_v31 = vadd.f32 %v984_v48, %v903_v23  ;;  %v1215_v11 = vpop.f32.mrf.mxu0 }
 0x1cd   : > { %5645 = vmatprep.mubr.f32.mxu0 %v35223_v15  ;;  %5562 = vmatmul.mubr.f32.gmra.mxu1 %v35244_v8  ;;  %v30010_v36 = vpop.f32.mrf.mxu1  ;;  %v29001_v8 = vld [vmem:[%s34863_s1 + $0x10] sm:$0xff]  ;;  %v5825_v62 = vand.u32 4294901760, %v5824_v9 }
 0x1ce   : > { %5647 = vmatmul.mubr.f32.gmra.mxu0 %v29917_v20  ;;  %5719 = vmatprep.mubr.f32.mxu1 %v35223_v15  ;;  %v1062_v44 = vadd.f32 %v1061_v14, %v985_v31  ;;  %v6265_v31 = vsel %vm344_vm0, %v29001_v8, 0  ;;  %v30054_v8 = vpop.f32.mrf.mxu0 }
 0x1cf   : > { %5809 = vmatprep.mubr.f32.mxu0 %v35223_v15 }
 0x1d0   : > { %v1137_v23 = vpop.f32.mrf.mxu1 }
 0x1d1   : > { %5721 = vmatmul.mubr.f32.vlgmr.msra.gmra.mxu1 %v29905_v6  ;;  %v1138_v57 = vadd.f32 %v1137_v23, %v1062_v44  ;;  %v29002_v44 = vld [vmem:[%s34863_s1 + $0x18] sm:$0x1] }
 0x1d2   : > { %5815 = vmatmul.mubr.f32.vlgmr.msra.gmra.mxu0 %v5814_v43  ;;  %5873 = vmatpush1.msra.mxu1 %v29477_v21  ;;  %v30025_v48 = vpop.f32.mrf.mxu1  ;;  %v30040_v43 = vand.u32 4294901760, %v6265_v31 }
 0x1d3   : > { %5956 = vmatpush1.msra.mxu0 %v29414_v45  ;;  %6037 = vmatprep.subr.mxu1 %v29400_v39  ;;  %v1216_v14 = vadd.f32 %v1215_v11, %v1138_v57  ;;  %v6268_v11 = vsel %vm344_vm0, %v29002_v44, 0 }
 0x1d4   : > { %6124 = vmatprep.subr.mxu0 %v29426_v51  ;;  %5726 = vmatprep.mubr.f32.mxu1 %v35223_v15  ;;  %v1289_v6 = vpop.f32.mrf.mxu1  ;;  %v30048_v23 = vsub.f32 %v6265_v31, %v30040_v43  ;;  %v35246_v31 = vand.u32 4294901760, %v29975_v5 }
 0x1d5   : > { %5820 = vmatprep.mubr.f32.mxu0 %v35223_v15  ;;  %5728 = vmatmul.mubr.f32.gmra.mxu1 %v29917_v20  ;;  %v30037_v9 = vadd.f32 %v1289_v6, %v1216_v14  ;;  %v30050_v20 = vand.u32 4294901760, %v6268_v11  ;;  %v30067_v14 = vpop.f32.mrf.mxu0 }
 0x1d6   : > { %5826 = vmatmul.mubr.f32.gmra.mxu0 %v5825_v62  ;;  %5906 = vmatprep.mubr.f32.mxu1 %v35223_v15  ;;  %v34944_v57 = vand.u32 4294901760, %v30048_v23  ;;  %v35248_v45 = vand.u32 4294901760, %v30048_v23 }
 0x1d7   : > { %35245 = vst [vmem:[#allocation83_spill] sm:$0xff] %v30037_v9  ;;  %5989 = vmatprep.mubr.f32.mxu0 %v35223_v15  ;;  %v30064_v62 = vsub.f32 %v6268_v11, %v30050_v20  ;;  %v30079_v11 = vpop.f32.mrf.mxu1 }
 0x1d8   : > { %v6340_v6 = vsub.f32 %v30048_v23, %v34944_v57 }
 0x1d9   : > { %5908 = vmatmul.mubr.f32.vlgmr.msra.gmra.mxu1 %v29965_v27  ;;  %v34947_v44 = vand.u32 4294901760, %v30064_v62 }
 0x1da   : > { %5992 = vmatmul.mubr.f32.vlgmr.msra.gmra.mxu0 %v29975_v5  ;;  %6039 = vmatpush1.msra.mxu1 %v29402_v40  ;;  %v35247_v5 = vand.u32 4294901760, %v29990_v12 }
 0x1db   : > { %6128 = vmatpush1.msra.mxu0 %v29429_v52  ;;  %6207 = vmatprep.subr.mxu1 %v29400_v39  ;;  %v30081_v52 = vpop.f32.mrf.mxu0  ;;  %v6351_v57 = vsub.f32 %v30064_v62, %v34947_v44 }
 0x1dc   : > { %6301 = vmatprep.subr.mxu0 %v29443_v63  ;;  %5913 = vmatprep.mubr.f32.mxu1 %v35223_v15 }
 0x1dd   : > { %5997 = vmatprep.mubr.f32.mxu0 %v35223_v15  ;;  %5915 = vmatmul.mubr.f32.gmra.mxu1 %v29977_v26 }
 0x1de   : > { %6000 = vmatmul.mubr.f32.gmra.mxu0 %v29990_v12  ;;  %6072 = vmatprep.mubr.f32.mxu1 %v35223_v15  ;;  %v29003_v12 = vld [vmem:[%s34863_s1 + $0x40] sm:$0xff] }
 0x1df   : > { %6161 = vmatprep.mubr.f32.mxu0 %v35223_v15  ;;  %v6792_v51 = vsel %vm344_vm0, %v29003_v12, 0 }
 0x1e1   : > { %6076 = vmatmul.mubr.f32.vlgmr.msra.gmra.mxu1 %v35246_v31  ;;  %v6341_v31 = vand.u32 4294901760, %v6340_v6  ;;  %v6352_v6 = vand.u32 4294901760, %v6351_v57  ;;  %v30118_v57 = vand.u32 4294901760, %v6792_v51 }
 0x1e2   : > { %6163 = vmatmul.mubr.f32.vlgmr.msra.gmra.mxu0 %v29965_v27  ;;  %6209 = vmatpush1.msra.mxu1 %v29402_v40 }
 0x1e3   : > { %6303 = vmatpush1.msra.mxu0 %v29445_v3  ;;  %6394 = vmatprep.subr.mxu1 %v29514_v53  ;;  %v30093_v53 = vpop.f32.mrf.mxu1 }
 0x1e4   : > { %6480 = vmatprep.subr.mxu0 %v29459_v10  ;;  %6081 = vmatprep.mubr.f32.mxu1 %v35223_v15  ;;  %v30096_v10 = vpop.f32.mrf.mxu0 }
 0x1e5   : > { %6168 = vmatprep.mubr.f32.mxu0 %v35223_v15  ;;  %6085 = vmatmul.mubr.f32.gmra.mxu1 %v35247_v5  ;;  %v30103_v5 = vpop.f32.mrf.mxu1 }
 0x1e6   : > { %6170 = vmatmul.mubr.f32.gmra.mxu0 %v29977_v26  ;;  %6242 = vmatprep.mubr.f32.mxu1 %v35223_v15  ;;  %v30107_v44 = vpop.f32.mrf.mxu0 }
 0x1e7   : > { %6336 = vmatprep.mubr.f32.mxu0 %v35223_v15 }
 0x1e8   : > { %v30122_v12 = vpop.f32.mrf.mxu0 }
 0x1e9   : > { %6244 = vmatmul.mubr.f32.vlgmr.msra.gmra.mxu1 %v29965_v27  ;;  %v29004_v27 = vld [vmem:[%s34863_s1 + $0x48] sm:$0x1] }
 0x1ea   : > { %6342 = vmatmul.mubr.f32.vlgmr.msra.gmra.mxu0 %v6341_v31  ;;  %6400 = vmatpush1.msra.mxu1 %v29531_v4  ;;  %v30120_v31 = vpop.f32.mrf.mxu1  ;;  %v30136_v4 = vpop.f32.mrf.mxu0 }
 0x1eb   : > { %6483 = vmatpush1.msra.mxu0 %v29465_v19  ;;  %6564 = vmatprep.subr.mxu1 %v29443_v63 }
 0x1ec   : > { %6651 = vmatprep.subr.mxu0 %v29471_v42  ;;  %6249 = vmatprep.mubr.f32.mxu1 %v35223_v15  ;;  %v6795_v42 = vsel %vm344_vm0, %v29004_v27, 0  ;;  %v30134_v19 = vpop.f32.mrf.mxu1 }
 0x1ed   : > { %6347 = vmatprep.mubr.f32.mxu0 %v35223_v15  ;;  %6251 = vmatmul.mubr.f32.gmra.mxu1 %v29977_v26  ;;  %v30130_v26 = vsub.f32 %v6792_v51, %v30118_v57 }
 0x1ee   : > { %6353 = vmatmul.mubr.f32.gmra.mxu0 %v6352_v6  ;;  %6433 = vmatprep.mubr.f32.mxu1 %v35223_v15  ;;  %v30132_v6 = vand.u32 4294901760, %v6795_v42 }
 0x1ef   : > { %6516 = vmatprep.mubr.f32.mxu0 %v35223_v15  ;;  %v34961_v51 = vand.u32 4294901760, %v30130_v26  ;;  %v35257_v38 = vand.u32 4294901760, %v30130_v26 }
 0x1f0   : > { %v30148_v27 = vsub.f32 %v6795_v42, %v30132_v6 }
 0x1f1   : > { %6435 = vmatmul.mubr.f32.vlgmr.msra.gmra.mxu1 %v30040_v43  ;;  %v6867_v21 = vsub.f32 %v30130_v26, %v34961_v51 }
 0x1f2   : > { %6519 = vmatmul.mubr.f32.vlgmr.msra.gmra.mxu0 %v30048_v23  ;;  %6566 = vmatpush1.msra.mxu1 %v29445_v3  ;;  %v34966_v42 = vand.u32 4294901760, %v30148_v27 }
 0x1f3   : > { %6655 = vmatpush1.msra.mxu0 %v29489_v2  ;;  %6734 = vmatprep.subr.mxu1 %v29443_v63  ;;  %v30150_v2 = vpop.f32.mrf.mxu1  ;;  %v30152_v63 = vpop.f32.mrf.mxu0  ;;  %v6868_v23 = vand.u32 4294901760, %v6867_v21 }
 0x1f4   : > { %6440 = vmatprep.mubr.f32.mxu1 %v35223_v15  ;;  %6524 = vmatprep.mubr.f32.mxu0 %v35223_v15  ;;  %v6878_v51 = vsub.f32 %v30148_v27, %v34966_v42  ;;  %v35250_v42 = vld [vmem:[#allocation42_spill] sm:$0xff] }
 0x1f5   : > { %6442 = vmatmul.mubr.f32.gmra.mxu1 %v30050_v20  ;;  %6828 = vmatprep.subr.mxu0 %v29497_v25  ;;  %v30163_v40 = vpop.f32.mrf.mxu1  ;;  %v30165_v39 = vpop.f32.mrf.mxu0 }
 0x1f6   : > { %6527 = vmatmul.mubr.f32.gmra.mxu0 %v30064_v62  ;;  %6599 = vmatprep.mubr.f32.mxu1 %v35223_v15  ;;  %v6879_v21 = vand.u32 4294901760, %v6878_v51 }
 0x1f7   : > { %6688 = vmatprep.mubr.f32.mxu0 %v35223_v15  ;;  %v30181_v35 = vpop.f32.mrf.mxu0 }
 0x1f9   : > { %6603 = vmatmul.mubr.f32.vlgmr.msra.gmra.mxu1 %v35248_v45  ;;  %v35249_v45 = vand.u32 4294901760, %v30064_v62  ;;  %v29005_v62 = vld [vmem:[%s34863_s1 + $0x70] sm:$0xff] }
 0x1fa   : > { %6690 = vmatmul.mubr.f32.vlgmr.msra.gmra.mxu0 %v30040_v43  ;;  %6736 = vmatpush1.msra.mxu1 %v29445_v3  ;;  %v30179_v3 = vpop.f32.mrf.mxu1 }
 0x1fb   : > { %6608 = vmatprep.mubr.f32.mxu1 %v35223_v15  ;;  %6695 = vmatprep.mubr.f32.mxu0 %v35223_v15 }
 0x1fc   : > { %6830 = vmatpush1.msra.mxu0 %v29506_v30  ;;  %6921 = vmatprep.subr.mxu1 %v29584_v22  ;;  %v30191_v22 = vpop.f32.mrf.mxu0 }
 0x1fd   : > { %6612 = vmatmul.mubr.f32.gmra.mxu1 %v35249_v45  ;;  %7007 = vmatprep.subr.mxu0 %v29517_v54  ;;  %v30189_v45 = vpop.f32.mrf.mxu1  ;;  %v7319_v54 = vsel %vm344_vm0, %v29005_v62, 0 }
 0x1fe   : > { %6697 = vmatmul.mubr.f32.gmra.mxu0 %v30050_v20  ;;  %6769 = vmatprep.mubr.f32.mxu1 %v35223_v15  ;;  %v30204_v51 = vand.u32 4294901760, %v7319_v54  ;;  %v30208_v62 = vpop.f32.mrf.mxu0 }
 0x1ff   : > { %6863 = vmatprep.mubr.f32.mxu0 %v35223_v15 }
 0x201   : > { %6771 = vmatmul.mubr.f32.vlgmr.msra.gmra.mxu1 %v30040_v43  ;;  %v29006_v43 = vld [vmem:[%s34863_s1 + $0x78] sm:$0x1] }
 0x202   : > { %6869 = vmatmul.mubr.f32.vlgmr.msra.gmra.mxu0 %v6868_v23  ;;  %6776 = vmatprep.mubr.f32.mxu1 %v35223_v15  ;;  %v30206_v23 = vpop.f32.mrf.mxu1 }
 0x203   : > { %6874 = vmatprep.mubr.f32.mxu0 %v35223_v15  ;;  %7010 = vmatpush1.msra.mxu0 %v35250_v42  ;;  %v30222_v42 = vpop.f32.mrf.mxu0 }
 0x204   : > { %6927 = vmatpush1.msra.mxu1 %v35251_v59  ;;  %7178 = vmatprep.subr.mxu0 %v35252_v58  ;;  %v7322_v58 = vsel %vm344_vm0, %v29006_v43, 0  ;;  %v30220_v59 = vpop.f32.mrf.mxu1  ;;  %35253 = vst [vmem:[#allocation84_spill] sm:$0xff] %v30222_v42  ;;  %v35255_v43 = vld [vmem:[#allocation45_spill] sm:$0xff]  ;;  %v35283_v42 = vld [vmem:[#allocation66_spill] sm:$0xff] }
 0x205   : > { %6778 = vmatmul.mubr.f32.gmra.mxu1 %v30050_v20  ;;  %7091 = vmatprep.subr.mxu1 %v29497_v25  ;;  %v30216_v20 = vsub.f32 %v7319_v54, %v30204_v51  ;;  %v30238_v32 = vpop.f32.mrf.mxu0 }
 0x206   : > { %6880 = vmatmul.mubr.f32.gmra.mxu0 %v6879_v21  ;;  %6960 = vmatprep.mubr.f32.mxu1 %v35223_v15  ;;  %v30218_v21 = vand.u32 4294901760, %v7322_v58 }
 0x207   : > { %7043 = vmatprep.mubr.f32.mxu0 %v35223_v15  ;;  %v34985_v54 = vand.u32 4294901760, %v30216_v20  ;;  %v30251_v29 = vpop.f32.mrf.mxu0 }
 0x208   : > { %v30234_v33 = vsub.f32 %v7322_v58, %v30218_v21 }
 0x209   : > { %6962 = vmatmul.mubr.f32.vlgmr.msra.gmra.mxu1 %v30118_v57 }
 0x20a   : > { %7046 = vmatmul.mubr.f32.vlgmr.msra.gmra.mxu0 %v30130_v26  ;;  %6967 = vmatprep.mubr.f32.mxu1 %v35223_v15  ;;  %v34992_v58 = vand.u32 4294901760, %v30234_v33  ;;  %v35261_v26 = vld [vmem:[#allocation47_spill] sm:$0xff] }
 0x20b   : > { %7182 = vmatpush1.msra.mxu0 %v35254_v34  ;;  %7051 = vmatprep.mubr.f32.mxu0 %v35223_v15  ;;  %v30236_v34 = vpop.f32.mrf.mxu1 }
 0x20c   : > { %7355 = vmatprep.subr.mxu0 %v35255_v43  ;;  %7093 = vmatpush1.msra.mxu1 %v29506_v30  ;;  %35256 = vst [vmem:[#allocation85_spill] sm:$0xff] %v30236_v34 }
 0x20d   : > { %6969 = vmatmul.mubr.f32.gmra.mxu1 %v30132_v6  ;;  %7261 = vmatprep.subr.mxu1 %v29497_v25  ;;  %v7394_v25 = vsub.f32 %v30216_v20, %v34985_v54  ;;  %v30249_v37 = vpop.f32.mrf.mxu1 }
 0x20e   : > { %7054 = vmatmul.mubr.f32.gmra.mxu0 %v30148_v27  ;;  %7126 = vmatprep.mubr.f32.mxu1 %v35223_v15  ;;  %35258 = vst [vmem:[#allocation86_spill] sm:$0xff] %v30249_v37 }
 0x20f   : > { %7215 = vmatprep.mubr.f32.mxu0 %v35223_v15  ;;  %v7395_v54 = vand.u32 4294901760, %v7394_v25  ;;  %v30265_v0 = vpop.f32.mrf.mxu1 }
 0x211   : > { %7130 = vmatmul.mubr.f32.vlgmr.msra.gmra.mxu1 %v35257_v38  ;;  %v35262_v38 = vand.u32 4294901760, %v30148_v27  ;;  %v29007_v27 = vld [vmem:[%s34863_s1 + $0x20] sm:$0xff] }
 0x212   : > { %7217 = vmatmul.mubr.f32.vlgmr.msra.gmra.mxu0 %v30118_v57  ;;  %7263 = vmatpush1.msra.mxu1 %v29506_v30  ;;  %v7405_v30 = vsub.f32 %v30234_v33, %v34992_v58  ;;  %v35264_v58 = vld [vmem:[#allocation49_spill] sm:$0xff]  ;;  %v7846_v13 = vsel %vm344_vm0, %v29007_v27, 0 }
 0x213   : > { %7357 = vmatpush1.msra.mxu0 %v35259_v28  ;;  %7448 = vmatprep.subr.mxu1 %v35260_v49  ;;  %v30267_v49 = vpop.f32.mrf.mxu0 }
 0x214   : > { %7534 = vmatprep.subr.mxu0 %v35261_v26  ;;  %7135 = vmatprep.mubr.f32.mxu1 %v35223_v15  ;;  %v7406_v25 = vand.u32 4294901760, %v7405_v30  ;;  %v30275_v26 = vpop.f32.mrf.mxu1  ;;  %v30290_v30 = vand.u32 4294901760, %v7846_v13 }
 0x215   : > { %7222 = vmatprep.mubr.f32.mxu0 %v35223_v15  ;;  %7139 = vmatmul.mubr.f32.gmra.mxu1 %v35262_v38  ;;  %v35263_v38 = vld [vmem:[#allocation54_spill] sm:$0xff]  ;;  %v30277_v47 = vpop.f32.mrf.mxu0 }
 0x216   : > { %7224 = vmatmul.mubr.f32.gmra.mxu0 %v30132_v6  ;;  %7296 = vmatprep.mubr.f32.mxu1 %v35223_v15 }
 0x217   : > { %7390 = vmatprep.mubr.f32.mxu0 %v35223_v15  ;;  %v30294_v27 = vpop.f32.mrf.mxu0 }
 0x218   : > { %35266 = vst [vmem:[#allocation87_spill] sm:$0xff] %v30294_v27  ;;  %v35273_v27 = vand.u32 4294901760, %v30216_v20 }
 0x219   : > { %7298 = vmatmul.mubr.f32.vlgmr.msra.gmra.mxu1 %v30118_v57  ;;  %v29008_v57 = vld [vmem:[%s34863_s1 + $0x28] sm:$0x1] }
 0x21a   : > { %7396 = vmatmul.mubr.f32.vlgmr.msra.gmra.mxu0 %v7395_v54  ;;  %7454 = vmatpush1.msra.mxu1 %v35263_v38  ;;  %v30292_v54 = vpop.f32.mrf.mxu1  ;;  %v30308_v38 = vpop.f32.mrf.mxu0 }
 0x21b   : > { %7537 = vmatpush1.msra.mxu0 %v35264_v58  ;;  %7618 = vmatprep.subr.mxu1 %v35255_v43  ;;  %35268 = vst [vmem:[#allocation89_spill] sm:$0xff] %v30308_v38  ;;  %v35272_v38 = vld [vmem:[#allocation56_spill] sm:$0xff] }
 0x21c   : > { %7705 = vmatprep.subr.mxu0 %v35265_v41  ;;  %7303 = vmatprep.mubr.f32.mxu1 %v35223_v15  ;;  %v7849_v41 = vsel %vm344_vm0, %v29008_v57, 0  ;;  %v30306_v58 = vpop.f32.mrf.mxu1  ;;  %v513_v37 = vadd.f32 %v35272_v38, %v35271_v16  ;;  %v35275_v16 = vld [vmem:[#allocation69_spill] sm:$0xff] }
 0x21d   : > { %7401 = vmatprep.mubr.f32.mxu0 %v35223_v15  ;;  %7305 = vmatmul.mubr.f32.gmra.mxu1 %v30132_v6  ;;  %v30302_v6 = vsub.f32 %v7846_v13, %v30290_v30  ;;  %35267 = vst [vmem:[#allocation88_spill] sm:$0xff] %v30306_v58  ;;  %v35282_v58 = vld [vmem:[#allocation63_spill] sm:$0xff] }
 0x21e   : > { %7407 = vmatmul.mubr.f32.gmra.mxu0 %v7406_v25  ;;  %7487 = vmatprep.mubr.f32.mxu1 %v35223_v15  ;;  %v30304_v25 = vand.u32 4294901760, %v7849_v41 }
 0x21f   : > { %7570 = vmatprep.mubr.f32.mxu0 %v35223_v15  ;;  %v35004_v13 = vand.u32 4294901760, %v30302_v6 }
 0x220   : > { %v30320_v57 = vsub.f32 %v7849_v41, %v30304_v25 }
 0x221   : > { %7489 = vmatmul.mubr.f32.vlgmr.msra.gmra.mxu1 %v30204_v51  ;;  %v7921_v41 = vsub.f32 %v30302_v6, %v35004_v13  ;;  %v35278_v13 = vand.u32 4294901760, %v30234_v33 }
 0x222   : > { %7573 = vmatmul.mubr.f32.vlgmr.msra.gmra.mxu0 %v30216_v20  ;;  %7620 = vmatpush1.msra.mxu1 %v35259_v28  ;;  %v35276_v20 = vld [vmem:[#allocation57_spill] sm:$0xff] }
 0x223   : > { %7709 = vmatpush1.msra.mxu0 %v35269_v61  ;;  %7788 = vmatprep.subr.mxu1 %v35255_v43  ;;  %v30322_v61 = vpop.f32.mrf.mxu1  ;;  %v30324_v43 = vpop.f32.mrf.mxu0  ;;  %v590_v38 = vadd.f32 %v35276_v20, %v513_v37  ;;  %v35280_v20 = vld [vmem:[#allocation58_spill] sm:$0xff] }
 0x224   : > { %7882 = vmatprep.subr.mxu0 %v29699_v60  ;;  %7494 = vmatprep.mubr.f32.mxu1 %v35223_v15  ;;  %35270 = vst [vmem:[#allocation90_spill] sm:$0xff] %v30322_v61  ;;  %v7922_v61 = vand.u32 4294901760, %v7921_v41 }
 0x225   : > { %7578 = vmatprep.mubr.f32.mxu0 %v35223_v15  ;;  %7496 = vmatmul.mubr.f32.gmra.mxu1 %v30218_v21  ;;  %v30337_v24 = vpop.f32.mrf.mxu1  ;;  %v30339_v34 = vpop.f32.mrf.mxu0 }
 0x226   : > { %7581 = vmatmul.mubr.f32.gmra.mxu0 %v30234_v33  ;;  %7653 = vmatprep.mubr.f32.mxu1 %v35223_v15  ;;  %35274 = vst [vmem:[#allocation55_spill] sm:$0xff] %v30337_v24  ;;  %v29009_v33 = vld [vmem:[%s34863_s1 + $0x50] sm:$0xff] }
 0x227   : > { %7742 = vmatprep.mubr.f32.mxu0 %v35223_v15  ;;  %v30354_v24 = vpop.f32.mrf.mxu1  ;;  %v30356_v37 = vpop.f32.mrf.mxu0 }
 0x229   : > { %7657 = vmatmul.mubr.f32.vlgmr.msra.gmra.mxu1 %v35273_v27  ;;  %v35277_v27 = vld [vmem:[#allocation62_spill] sm:$0xff]  ;;  %v30365_v9 = vpop.f32.mrf.mxu1 }
 0x22a   : > { %7744 = vmatmul.mubr.f32.vlgmr.msra.gmra.mxu0 %v30204_v51  ;;  %7790 = vmatpush1.msra.mxu1 %v35259_v28  ;;  %v35279_v28 = vand.u32 4294901760, %v30320_v57 }
 0x22b   : > { %7884 = vmatpush1.msra.mxu0 %v29701_v50  ;;  %7975 = vmatprep.subr.mxu1 %v35275_v16 }
 0x22c   : > { %8061 = vmatprep.subr.mxu0 %v35277_v27  ;;  %7662 = vmatprep.mubr.f32.mxu1 %v35223_v15  ;;  %v7932_v16 = vsub.f32 %v30320_v57, %v35279_v28  ;;  %v666_v27 = vadd.f32 %v35280_v20, %v590_v38  ;;  %v30367_v28 = vpop.f32.mrf.mxu0  ;;  %v8373_v38 = vsel %vm344_vm0, %v29009_v33, 0 }
 0x22d   : > { %7749 = vmatprep.mubr.f32.mxu0 %v35223_v15  ;;  %7666 = vmatmul.mubr.f32.gmra.mxu1 %v35278_v13  ;;  %v35281_v13 = vld [vmem:[#allocation70_spill] sm:$0xff] }
 0x22e   : > { %7751 = vmatmul.mubr.f32.gmra.mxu0 %v30218_v21  ;;  %7823 = vmatprep.mubr.f32.mxu1 %v35223_v15  ;;  %v7933_v41 = vand.u32 4294901760, %v7932_v16  ;;  %v744_v20 = vadd.f32 %v29969_v46, %v666_v27  ;;  %v30383_v16 = vpop.f32.mrf.mxu1  ;;  %v30385_v46 = vpop.f32.mrf.mxu0 }
 0x22f   : > { %7917 = vmatprep.mubr.f32.mxu0 %v35223_v15  ;;  %35284 = vst [vmem:[#allocation56_spill] sm:$0xff] %v30385_v46 }
 0x230   : > { %v818_v33 = vadd.f32 %v29995_v17, %v744_v20 }
 0x231   : > { %7825 = vmatmul.mubr.f32.vlgmr.msra.gmra.mxu1 %v30204_v51  ;;  %v30381_v51 = vand.u32 4294901760, %v8373_v38 }
 0x232   : > { %7923 = vmatmul.mubr.f32.vlgmr.msra.gmra.mxu0 %v7922_v61  ;;  %7981 = vmatpush1.msra.mxu1 %v35281_v13  ;;  %v29010_v61 = vld [vmem:[%s34863_s1 + $0x58] sm:$0x1]  ;;  %v35286_v13 = vld [vmem:[#allocation67_spill] sm:$0xff]  ;;  %v905_v17 = vadd.f32 %v29992_v56, %v818_v33 }
 0x233   : > { %8064 = vmatpush1.msra.mxu0 %v35282_v58  ;;  %8145 = vmatprep.subr.mxu1 %v29699_v60  ;;  %v8376_v27 = vsel %vm344_vm0, %v29010_v61, 0  ;;  %v30400_v58 = vpop.f32.mrf.mxu0 }
 0x234   : > { %8232 = vmatprep.subr.mxu0 %v35283_v42  ;;  %7830 = vmatprep.mubr.f32.mxu1 %v35223_v15  ;;  %v30398_v42 = vpop.f32.mrf.mxu1  ;;  %35285 = vst [vmem:[#allocation57_spill] sm:$0xff] %v30400_v58  ;;  %v35288_v58 = vand.u32 4294901760, %v30302_v6 }
 0x235   : > { %7928 = vmatprep.mubr.f32.mxu0 %v35223_v15  ;;  %7832 = vmatmul.mubr.f32.gmra.mxu1 %v30218_v21  ;;  %v30394_v21 = vsub.f32 %v8373_v38, %v30381_v51 }
 0x236   : > { %7934 = vmatmul.mubr.f32.gmra.mxu0 %v7933_v41  ;;  %8014 = vmatprep.mubr.f32.mxu1 %v35223_v15  ;;  %v30396_v41 = vand.u32 4294901760, %v8376_v27  ;;  %v30417_v56 = vpop.f32.mrf.mxu1 }
 0x237   : > { %8097 = vmatprep.mubr.f32.mxu0 %v35223_v15  ;;  %v35008_v20 = vand.u32 4294901760, %v30394_v21  ;;  %35287 = vst [vmem:[#allocation58_spill] sm:$0xff] %v30417_v56 }
 0x238   : > { %v30415_v61 = vsub.f32 %v8376_v27, %v30396_v41  ;;  %v1470_v27 = vadd.f32 %v30103_v5, %v30081_v52  ;;  %v1952_v5 = vadd.f32 %v30179_v3, %v30152_v63 }
 0x239   : > { %8016 = vmatmul.mubr.f32.vlgmr.msra.gmra.mxu1 %v30290_v30  ;;  %v8448_v56 = vsub.f32 %v30394_v21, %v35008_v20  ;;  %v35290_v20 = vand.u32 4294901760, %v30320_v57 }
 0x23a   : > { %8100 = vmatmul.mubr.f32.vlgmr.msra.gmra.mxu0 %v30302_v6  ;;  %8147 = vmatpush1.msra.mxu1 %v29701_v50 }
 0x23b   : > { %8236 = vmatpush1.msra.mxu0 %v35286_v13  ;;  %8315 = vmatprep.subr.mxu1 %v29699_v60  ;;  %v987_v13 = vadd.f32 %v30010_v36, %v905_v17  ;;  %v1468_v60 = vadd.f32 %v30093_v53, %v30067_v14  ;;  %v30437_v17 = vpop.f32.mrf.mxu1  ;;  %v1547_v36 = vadd.f32 %v30107_v44, %v1470_v27  ;;  %v8449_v3 = vand.u32 4294901760, %v8448_v56 }
 0x23c   : > { %8409 = vmatprep.subr.mxu0 %v29695_v1  ;;  %8021 = vmatprep.mubr.f32.mxu1 %v35223_v15  ;;  %v2428_v27 = vadd.f32 %v30265_v0, %v30238_v32  ;;  %v2430_v32 = vadd.f32 %v30275_v26, %v30251_v29  ;;  %v35293_v0 = vld [vmem:[#allocation68_spill] sm:$0xff]  ;;  %v2912_v26 = vadd.f32 %v30354_v24, %v30324_v43 }
 0x23d   : > { %8105 = vmatprep.mubr.f32.mxu0 %v35223_v15  ;;  %8023 = vmatmul.mubr.f32.gmra.mxu1 %v30304_v25  ;;  %v30409_v38 = vpop.f32.mrf.mxu0  ;;  %v1064_v52 = vadd.f32 %v30017_v7, %v987_v13  ;;  %v1545_v14 = vadd.f32 %v30096_v10, %v1468_v60  ;;  %v1954_v7 = vadd.f32 %v30189_v45, %v30165_v39  ;;  %v35291_v10 = vand.u32 4294901760, %v30415_v61  ;;  %v29012_v39 = vld [vmem:[%s34863_s1 + $0x88] sm:$0x1] }
 0x23e   : > { %8108 = vmatmul.mubr.f32.gmra.mxu0 %v30320_v57  ;;  %8180 = vmatprep.mubr.f32.mxu1 %v35223_v15  ;;  %v29011_v57 = vld [vmem:[%s34863_s1 + $0x80] sm:$0xff]  ;;  %v2505_v29 = vadd.f32 %v30267_v49, %v2428_v27  ;;  %v2507_v49 = vadd.f32 %v30277_v47, %v2430_v32  ;;  %v2914_v24 = vadd.f32 %v30365_v9, %v30339_v34  ;;  %v35299_v27 = vld [vmem:[#allocation85_spill] sm:$0xff] }
 0x23f   : > { %8269 = vmatprep.mubr.f32.mxu0 %v35223_v15  ;;  %v30420_v33 = vpop.f32.mrf.mxu0  ;;  %v8459_v60 = vsub.f32 %v30415_v61, %v35291_v10  ;;  %v1140_v44 = vadd.f32 %v30025_v48, %v1064_v52  ;;  %v1621_v45 = vadd.f32 %v30120_v31, %v1545_v14  ;;  %v35292_v48 = vld [vmem:[#allocation78_spill] sm:$0xff]  ;;  %v8903_v52 = vsel %vm344_vm0, %v29012_v39, 0  ;;  %v35294_v14 = vld [vmem:[#allocation71_spill] sm:$0xff] }
 0x240   : > { %v2581_v47 = vadd.f32 %v30292_v54, %v2505_v29  ;;  %v2989_v34 = vadd.f32 %v30356_v37, %v2912_v26  ;;  %v35302_v26 = vld [vmem:[#allocation86_spill] sm:$0xff] }
 0x241   : > { %8184 = vmatmul.mubr.f32.vlgmr.msra.gmra.mxu1 %v35288_v58  ;;  %v30427_v46 = vpop.f32.mrf.mxu0  ;;  %v35289_v58 = vld [vmem:[#allocation65_spill] sm:$0xff] }
 0x242   : > { %8271 = vmatmul.mubr.f32.vlgmr.msra.gmra.mxu0 %v30290_v30  ;;  %8317 = vmatpush1.msra.mxu1 %v29701_v50  ;;  %v2031_v50 = vadd.f32 %v30191_v22, %v1954_v7  ;;  %v1699_v22 = vadd.f32 %v30122_v12, %v1621_v45 }
 0x243   : > { %8411 = vmatpush1.msra.mxu0 %v29713_v18  ;;  %8502 = vmatprep.subr.mxu1 %v29796_v55  ;;  %v30441_v53 = vpop.f32.mrf.mxu0  ;;  %v1623_v55 = vadd.f32 %v30134_v19, %v1547_v36  ;;  %v1218_v19 = vadd.f32 %v30054_v8, %v1140_v44  ;;  %v30504_v8 = vand.u32 4294901760, %v8903_v52  ;;  %v35297_v44 = vld [vmem:[#allocation72_spill] sm:$0xff] }
 0x244   : > { %8588 = vmatprep.subr.mxu0 %v35289_v58  ;;  %8189 = vmatprep.mubr.f32.mxu1 %v35223_v15  ;;  %v8900_v58 = vsel %vm344_vm0, %v29011_v57, 0 }
 0x245   : > { %8276 = vmatprep.mubr.f32.mxu0 %v35223_v15  ;;  %v3415_v6 = vpop.f32.mrf.mxu1  ;;  %8193 = vmatmul.mubr.f32.gmra.mxu1 %v35290_v20  ;;  %v2029_v20 = vadd.f32 %v30181_v35, %v1952_v5  ;;  %v8460_v35 = vand.u32 4294901760, %v8459_v60  ;;  %v30495_v7 = vand.u32 4294901760, %v8900_v58  ;;  %v1701_v12 = vadd.f32 %v30136_v4, %v1623_v55 }
 0x246   : > { %8278 = vmatmul.mubr.f32.gmra.mxu0 %v30304_v25  ;;  %8350 = vmatprep.mubr.f32.mxu1 %v35223_v15  ;;  %v30457_v63 = vpop.f32.mrf.mxu0  ;;  %v3416_v43 = vadd.f32 %v3415_v6, %v30409_v38  ;;  %v1773_v4 = vadd.f32 %v30150_v2, %v1699_v22  ;;  %v30527_v6 = vsub.f32 %v8903_v52, %v30504_v8 }
 0x247   : > { %v3417_v13 = vpop.f32.mrf.mxu1  ;;  %8444 = vmatprep.mubr.f32.mxu0 %v35223_v15  ;;  %v2105_v36 = vadd.f32 %v30206_v23, %v2029_v20  ;;  %v2107_v23 = vadd.f32 %v30220_v59, %v2031_v50  ;;  %v30520_v50 = vsub.f32 %v8900_v58, %v30495_v7  ;;  %v1775_v2 = vadd.f32 %v30163_v40, %v1701_v12  ;;  %v35296_v58 = vld [vmem:[#allocation88_spill] sm:$0xff]  ;;  %v35298_v40 = vld [vmem:[#allocation83_spill] sm:$0xff] }
 0x248   : > { %v30472_v56 = vpop.f32.mrf.mxu0  ;;  %v3418_v9 = vadd.f32 %v3417_v13, %v30420_v33  ;;  %v2583_v37 = vadd.f32 %v35296_v58, %v2507_v49  ;;  %v2991_v33 = vadd.f32 %v30367_v28, %v2914_v24  ;;  %v3493_v13 = vadd.f32 %v30427_v46, %v3416_v43  ;;  %v35303_v24 = vld [vmem:[#allocation89_spill] sm:$0xff] }
 0x249   : > { %v30476_v10 = vpop.f32.mrf.mxu1  ;;  %8352 = vmatmul.mubr.f32.vlgmr.msra.gmra.mxu1 %v30290_v30  ;;  %v2183_v59 = vadd.f32 %v30208_v62, %v2105_v36  ;;  %v1777_v20 = vadd.f32 %v1773_v4, %v35298_v40  ;;  %v3065_v28 = vadd.f32 %v30383_v16, %v2989_v34  ;;  %v8974_v49 = vand.u32 4294901760, %v30520_v50  ;;  %v35310_v40 = vld [vmem:[#allocation81_spill] sm:$0xff] }
 0x24a   : > { %8450 = vmatmul.mubr.f32.vlgmr.msra.gmra.mxu0 %v8449_v3  ;;  %8508 = vmatpush1.msra.mxu1 %v35292_v48  ;;  %v3811_v31 = vpop.f32.mrf.mxu0  ;;  %v3495_v46 = vadd.f32 %v30441_v53, %v3418_v9  ;;  %v2661_v16 = vadd.f32 %v35303_v24, %v2583_v37  ;;  %v3067_v53 = vadd.f32 %v30398_v42, %v2991_v33  ;;  %v35305_v9 = vld [vmem:[#allocation56_spill] sm:$0xff]  ;;  %v8985_v58 = vand.u32 4294901760, %v30527_v6  ;;  %v35307_v37 = vld [vmem:[#allocation55_spill] sm:$0xff] }
 0x24b   : > { %8591 = vmatpush1.msra.mxu0 %v35293_v0  ;;  %8672 = vmatprep.subr.mxu1 %v29695_v1  ;;  %v30488_v30 = vpop.f32.mrf.mxu1  ;;  %v3569_v43 = vadd.f32 %v30476_v10, %v3493_v13 }
 0x24c   : > { %8759 = vmatprep.subr.mxu0 %v35294_v14  ;;  %8357 = vmatprep.mubr.f32.mxu1 %v35223_v15  ;;  %v3813_v5 = vpop.f32.mrf.mxu0  ;;  %v2735_v33 = vadd.f32 %v35307_v37, %v2661_v16  ;;  %v8986_v24 = vsub.f32 %v30527_v6, %v8985_v58 }
 0x24d   : > { %8455 = vmatprep.mubr.f32.mxu0 %v35223_v15  ;;  %v30501_v3 = vpop.f32.mrf.mxu1  ;;  %8359 = vmatmul.mubr.f32.gmra.mxu1 %v30304_v25  ;;  %v1292_v25 = vadd.f32 %v30079_v11, %v1218_v19  ;;  %v35295_v11 = vld [vmem:[#allocation84_spill] sm:$0xff]  ;;  %v35301_v19 = vld [vmem:[#allocation87_spill] sm:$0xff] }
 0x24e   : > { %8461 = vmatmul.mubr.f32.gmra.mxu0 %v8460_v35  ;;  %8541 = vmatprep.mubr.f32.mxu1 %v35223_v15  ;;  %v3970_v60 = vpop.f32.mrf.mxu0  ;;  %v2185_v62 = vadd.f32 %v35295_v11, %v2107_v23  ;;  %v35300_v35 = vld [vmem:[#allocation73_spill] sm:$0xff]  ;;  %v2659_v22 = vadd.f32 %v35301_v19, %v2581_v47 }
 0x24f   : > { %v30513_v57 = vpop.f32.mrf.mxu1  ;;  %8624 = vmatprep.mubr.f32.mxu0 %v35223_v15  ;;  %v1778_v29 = vadd.f32 %v1775_v2, %v1292_v25  ;;  %v3571_v2 = vadd.f32 %v30488_v30, %v3495_v46  ;;  %v35308_v30 = vld [vmem:[#allocation57_spill] sm:$0xff] }
 0x250   : > { %v3972_v55 = vpop.f32.mrf.mxu0  ;;  %v2259_v12 = vadd.f32 %v35302_v26, %v2185_v62  ;;  %v35306_v62 = vand.u32 4294901760, %v30394_v21  ;;  %v3145_v13 = vadd.f32 %v35308_v30, %v3067_v53 }
 0x251   : > { %v3893_v38 = vpop.f32.mrf.mxu1  ;;  %8543 = vmatmul.mubr.f32.vlgmr.msra.gmra.mxu1 %v30381_v51  ;;  %v3649_v46 = vadd.f32 %v30472_v56, %v3571_v2 }
 0x252   : > { %v3894_v39 = vadd.f32 %v3893_v38, %v3811_v31  ;;  %8627 = vmatmul.mubr.f32.vlgmr.msra.gmra.mxu0 %v30394_v21  ;;  %8674 = vmatpush1.msra.mxu1 %v29713_v18  ;;  %v4124_v54 = vpop.f32.mrf.mxu0  ;;  %v2257_v31 = vadd.f32 %v35299_v27, %v2183_v59  ;;  %v3143_v38 = vadd.f32 %v35305_v9, %v3065_v28 }
 0x253   : > { %8763 = vmatpush1.msra.mxu0 %v35297_v44  ;;  %8842 = vmatprep.subr.mxu1 %v29695_v1  ;;  %v3895_v45 = vpop.f32.mrf.mxu1  ;;  %v3647_v21 = vadd.f32 %v30457_v63, %v3569_v43  ;;  %v35313_v63 = vand.u32 4294901760, %v30415_v61  ;;  %v3219_v56 = vadd.f32 %v30437_v17, %v3145_v13  ;;  %v35314_v17 = vld [vmem:[#allocation82_spill] sm:$0xff] }
 0x254   : > { %8936 = vmatprep.subr.mxu0 %v35300_v35  ;;  %v3896_v52 = vadd.f32 %v3895_v45, %v3813_v5  ;;  %8548 = vmatprep.mubr.f32.mxu1 %v35223_v15  ;;  %v4126_v32 = vpop.f32.mrf.mxu0  ;;  %v3971_v23 = vadd.f32 %v3970_v60, %v3894_v39  ;;  %v2261_v47 = vadd.f32 %v2257_v31, %v1777_v20  ;;  %v35304_v60 = vld [vmem:[#allocation90_spill] sm:$0xff]  ;;  %v35311_v31 = vld [vmem:[#allocation75_spill] sm:$0xff] }
 0x255   : > { %8632 = vmatprep.mubr.f32.mxu0 %v35223_v15  ;;  %v4046_v36 = vpop.f32.mrf.mxu1  ;;  %8550 = vmatmul.mubr.f32.gmra.mxu1 %v30396_v41  ;;  %v2733_v34 = vadd.f32 %v35304_v60, %v2659_v22  ;;  %v2262_v39 = vadd.f32 %v2259_v12, %v1778_v29  ;;  %v35309_v45 = vld [vmem:[#allocation74_spill] sm:$0xff]  ;;  %v3721_v53 = vadd.f32 %v30501_v3, %v3647_v21  ;;  %v8987_v3 = vand.u32 4294901760, %v8986_v24 }
 0x256   : > { %8635 = vmatmul.mubr.f32.gmra.mxu0 %v30415_v61  ;;  %8707 = vmatprep.mubr.f32.mxu1 %v35223_v15  ;;  %v4295_v5 = vpop.f32.mrf.mxu0  ;;  %v3973_v25 = vadd.f32 %v3972_v55, %v3896_v52  ;;  %v4047_v42 = vadd.f32 %v4046_v36, %v3971_v23  ;;  %v8975_v55 = vsub.f32 %v30520_v50, %v8974_v49  ;;  %v35312_v22 = vld [vmem:[#allocation58_spill] sm:$0xff] }
 0x257   : > { %v4048_v4 = vpop.f32.mrf.mxu1  ;;  %8796 = vmatprep.mubr.f32.mxu0 %v35223_v15  ;;  %v2737_v19 = vadd.f32 %v2733_v34, %v2261_v47  ;;  %v3217_v28 = vadd.f32 %v35312_v22, %v3143_v38  ;;  %v2738_v16 = vadd.f32 %v2735_v33, %v2262_v39  ;;  %v3723_v47 = vadd.f32 %v30513_v57, %v3649_v46 }
 0x258   : > { %v4297_v59 = vpop.f32.mrf.mxu0  ;;  %v4049_v27 = vadd.f32 %v4048_v4, %v3973_v25  ;;  %v4125_v29 = vadd.f32 %v4124_v54, %v4047_v42  ;;  %v8976_v23 = vand.u32 4294901760, %v8975_v55 }
 0x259   : > { %v4198_v11 = vpop.f32.mrf.mxu1  ;;  %8711 = vmatmul.mubr.f32.vlgmr.msra.gmra.mxu1 %v35306_v62  ;;  %v3221_v25 = vadd.f32 %v3217_v28, %v2737_v19  ;;  %v3222_v62 = vadd.f32 %v3219_v56, %v2738_v16 }
 0x25a   : > { %8798 = vmatmul.mubr.f32.vlgmr.msra.gmra.mxu0 %v30381_v51  ;;  %8844 = vmatpush1.msra.mxu1 %v29713_v18  ;;  %v4454_v10 = vpop.f32.mrf.mxu0  ;;  %v4127_v61 = vadd.f32 %v4126_v32, %v4049_v27  ;;  %v4199_v34 = vadd.f32 %v4198_v11, %v4125_v29  ;;  %v35315_v32 = vld [vmem:[#allocation77_spill] sm:$0xff] }
 0x25b   : > { %8938 = vmatpush1.msra.mxu0 %v35309_v45  ;;  %9029 = vmatprep.subr.mxu1 %v35310_v40  ;;  %v4200_v20 = vpop.f32.mrf.mxu1  ;;  %v3725_v39 = vadd.f32 %v3721_v53, %v3221_v25  ;;  %v3726_v55 = vadd.f32 %v3723_v47, %v3222_v62 }
 0x25c   : > { %9115 = vmatprep.subr.mxu0 %v35311_v31  ;;  %8716 = vmatprep.mubr.f32.mxu1 %v35223_v15  ;;  %v4456_v52 = vpop.f32.mrf.mxu0  ;;  %v4201_v42 = vadd.f32 %v4200_v20, %v4127_v61 }
 0x25d   : > { %8803 = vmatprep.mubr.f32.mxu0 %v35223_v15  ;;  %v4377_v36 = vpop.f32.mrf.mxu1  ;;  %8720 = vmatmul.mubr.f32.gmra.mxu1 %v35313_v63  ;;  %v4203_v33 = vadd.f32 %v4199_v34, %v3725_v39  ;;  %v35317_v63 = vld [vmem:[#allocation80_spill] sm:$0xff] }
 0x25e   : > { %v4378_v26 = vadd.f32 %v4377_v36, %v4295_v5  ;;  %8805 = vmatmul.mubr.f32.gmra.mxu0 %v30396_v41  ;;  %8877 = vmatprep.mubr.f32.mxu1 %v35223_v15  ;;  %v4608_v12 = vpop.f32.mrf.mxu0  ;;  %v4204_v27 = vadd.f32 %v4201_v42, %v3726_v55 }
 0x25f   : > { %v4379_v43 = vpop.f32.mrf.mxu1  ;;  %8971 = vmatprep.mubr.f32.mxu0 %v35223_v15 }
 0x260   : > { %v4455_v54 = vadd.f32 %v4454_v10, %v4378_v26  ;;  %v4380_v5 = vadd.f32 %v4379_v43, %v4297_v59  ;;  %v4610_v4 = vpop.f32.mrf.mxu0  ;;  %v35316_v10 = vld [vmem:[#allocation79_spill] sm:$0xff] }
 0x261   : > { %v4530_v60 = vpop.f32.mrf.mxu1  ;;  %8879 = vmatmul.mubr.f32.vlgmr.msra.gmra.mxu1 %v30381_v51 }
 0x262   : > { %v4457_v9 = vadd.f32 %v4456_v52, %v4380_v5  ;;  %v4531_v38 = vadd.f32 %v4530_v60, %v4455_v54  ;;  %8977 = vmatmul.mubr.f32.vlgmr.msra.gmra.mxu0 %v8976_v23  ;;  %9035 = vmatpush1.msra.mxu1 %v35314_v17  ;;  %v4773_v2 = vpop.f32.mrf.mxu0 }
 0x263   : > { %9118 = vmatpush1.msra.mxu0 %v35315_v32  ;;  %9199 = vmatprep.subr.mxu1 %v35300_v35  ;;  %v4532_v59 = vpop.f32.mrf.mxu1 }
 0x264   : > { %v4609_v57 = vadd.f32 %v4608_v12, %v4531_v38  ;;  %9286 = vmatprep.subr.mxu0 %v35316_v10  ;;  %v4533_v51 = vadd.f32 %v4532_v59, %v4457_v9  ;;  %8884 = vmatprep.mubr.f32.mxu1 %v35223_v15  ;;  %v30593_v11 = vpop.f32.mrf.mxu0 }
 0x265   : > { %8982 = vmatprep.mubr.f32.mxu0 %v35223_v15  ;;  %v4682_v37 = vpop.f32.mrf.mxu1  ;;  %8886 = vmatmul.mubr.f32.gmra.mxu1 %v30396_v41 }
 0x266   : > { %v4611_v30 = vadd.f32 %v4610_v4, %v4533_v51  ;;  %v4683_v13 = vadd.f32 %v4682_v37, %v4609_v57  ;;  %8988 = vmatmul.mubr.f32.gmra.mxu0 %v8987_v3  ;;  %9068 = vmatprep.mubr.f32.mxu1 %v35223_v15  ;;  %v4784_v21 = vpop.f32.mrf.mxu0 }
 0x267   : > { %v4684_v20 = vpop.f32.mrf.mxu1  ;;  %9151 = vmatprep.mubr.f32.mxu0 %v35223_v15 }
 0x268   : > { %v30599_v52 = vadd.f32 %v4683_v13, %v4203_v33  ;;  %v4685_v19 = vadd.f32 %v4684_v20, %v4611_v30  ;;  %v30601_v22 = vpop.f32.mrf.mxu0 }
 0x269   : > { %9070 = vmatmul.mubr.f32.vlgmr.msra.gmra.mxu1 %v30495_v7  ;;  %v4866_v28 = vpop.f32.mrf.mxu1 }
 0x26a   : > { %v30604_v41 = vadd.f32 %v4685_v19, %v4204_v27  ;;  %9154 = vmatmul.mubr.f32.vlgmr.msra.gmra.mxu0 %v30520_v50  ;;  %9201 = vmatpush1.msra.mxu1 %v35309_v45  ;;  %v4867_v46 = vadd.f32 %v4866_v28, %v4773_v2  ;;  %v4950_v36 = vpop.f32.mrf.mxu0 }
 0x26b   : > { %9290 = vmatpush1.msra.mxu0 %v35317_v63  ;;  %9369 = vmatprep.subr.mxu1 %v35300_v35  ;;  %v30610_v29 = vpop.f32.mrf.mxu1 }
 0x26c   : > { %9423 = vrot.lane.b32.xlu0 %v30599_v52, %s29107_s8  ;;  %9075 = vmatprep.mubr.f32.mxu1 %v35223_v15  ;;  %v4951_v26 = vadd.f32 %v4950_v36, %v4867_v46  ;;  %v30615_v12 = vpop.f32.mrf.mxu0 }
 0x26d   : > { %9425 = vrot.lane.b32.xlu1 %v30604_v41, %s29107_s8  ;;  %9077 = vmatmul.mubr.f32.gmra.mxu1 %v30504_v8  ;;  %v4873_v23 = vpop.f32.mrf.mxu1 }
 0x26e   : > { %9234 = vmatprep.mubr.f32.mxu1 %v35223_v15  ;;  %v4874_v24 = vadd.f32 %v4873_v23, %v4784_v21  ;;  %9159 = vmatprep.mubr.f32.mxu0 %v35223_v15  ;;  %v4958_v16 = vpop.f32.mrf.mxu0 }
 0x26f   : > { %v30622_v56 = vpop.f32.mrf.mxu1  ;;  %9162 = vmatmul.mubr.f32.gmra.mxu0 %v30527_v6 }
 0x270   : > { %9429 = vrot.lane.b32.xlu0 %v30599_v52, %s29106_s30  ;;  %v4959_v53 = vadd.f32 %v4958_v16, %v4874_v24  ;;  %v30627_v43 = vpop.f32.mrf.mxu0  ;;  %9323 = vmatprep.mubr.f32.mxu0 %v35223_v15 }
 0x271   : > { %9431 = vrot.lane.b32.xlu1 %v30604_v41, %s29106_s30  ;;  %9238 = vmatmul.mubr.f32.vlgmr.msra.gmra.mxu1 %v8974_v49  ;;  %v5034_v61 = vpop.f32.mrf.mxu1 }
 0x272   : > { %9371 = vmatpush1.msra.mxu1 %v35309_v45  ;;  %v5035_v54 = vadd.f32 %v5034_v61, %v4951_v26  ;;  %9243 = vmatprep.mubr.f32.mxu1 %v35223_v15  ;;  %v5121_v5 = vpop.f32.mrf.mxu0 }
 0x273   : > { %v30636_v4 = vpop.f32.mrf.mxu1  ;;  %9325 = vmatmul.mubr.f32.vlgmr.msra.gmra.mxu0 %v30495_v7 }
 0x274   : > { %v5122_v25 = vadd.f32 %v5121_v5, %v5035_v54  ;;  %v30639_v47 = vpop.f32.mrf.mxu0  ;;  %9330 = vmatprep.mubr.f32.mxu0 %v35223_v15 }
 0x275   : > { %v5043_v60 = vpop.f32.mrf.mxu1  ;;  %9247 = vmatmul.mubr.f32.gmra.mxu1 %v8985_v58 }
 0x276   : > { %v5044_v50 = vadd.f32 %v5043_v60, %v4959_v53  ;;  %9404 = vmatprep.mubr.f32.mxu1 %v35223_v15  ;;  %v5128_v49 = vpop.f32.mrf.mxu0 }
 0x277   : > { %v30645_v34 = vpop.f32.mrf.mxu1  ;;  %9332 = vmatmul.mubr.f32.gmra.mxu0 %v30504_v8 }
 0x278   : > { %v5129_v9 = vadd.f32 %v5128_v49, %v5044_v50  ;;  %v30648_v38 = vpop.f32.mrf.mxu0  ;;  %9525 = vmatprep.mubr.f32.mxu0 %v35223_v15 }
 0x279   : > { %v5202_v3 = vpop.f32.mrf.mxu1  ;;  %9406 = vmatmul.mubr.f32.vlgmr.msra.gmra.mxu1 %v30495_v7 }
 0x27a   : > { %v5203_v2 = vadd.f32 %v5202_v3, %v5122_v25  ;;  %9411 = vmatprep.mubr.f32.mxu1 %v35223_v15  ;;  %v5293_v6 = vpop.f32.mrf.mxu0 }
 0x27b   : > { %v30653_v58 = vpop.f32.mrf.mxu1 }
 0x27c   : > { %v5294_v62 = vadd.f32 %v5293_v6, %v5203_v2  ;;  %v30655_v39 = vpop.f32.mrf.mxu0 }
 0x27d   : > { %v5209_v59 = vpop.f32.mrf.mxu1  ;;  %9413 = vmatmul.mubr.f32.gmra.mxu1 %v30504_v8 }
 0x27e   : > { %v5210_v42 = vadd.f32 %v5209_v59, %v5129_v9  ;;  %v5304_v57 = vpop.f32.mrf.mxu0  ;;  %9622 = vmatprep.mubr.f32.mxu1 %v35223_v15 }
 0x27f   : > { %v30659_v51 = vpop.f32.mrf.mxu1 }
 0x280   : > { %v5305_v55 = vadd.f32 %v5304_v57, %v5210_v42  ;;  %v30661_v7 = vpop.f32.mrf.mxu0 }
 0x281   : > { %v5386_v37 = vpop.f32.mrf.mxu1 }
 0x282   : > { %v5387_v33 = vadd.f32 %v5386_v37, %v5294_v62  ;;  %v5470_v30 = vpop.f32.mrf.mxu0 }
 0x283   : > { %v30663_v13 = vpop.f32.mrf.mxu1 }
 0x284   : > { %v5471_v21 = vadd.f32 %v5470_v30, %v5387_v33  ;;  %v30665_v20 = vpop.f32.mrf.mxu0 }
 0x285   : > { %v5393_v27 = vpop.f32.mrf.mxu1 }
 0x286   : > { %v5394_v19 = vadd.f32 %v5393_v27, %v5305_v55  ;;  %v5478_v8 = vpop.f32.mrf.mxu0 }
 0x287   : > { %v30667_v28 = vpop.f32.mrf.mxu1 }
 0x288   : > { %v5479_v46 = vadd.f32 %v5478_v8, %v5394_v19  ;;  %v30669_v36 = vpop.f32.mrf.mxu0 }
 0x289   : > { %v5554_v26 = vpop.f32.mrf.mxu1 }
 0x28a   : > { %v5555_v23 = vadd.f32 %v5554_v26, %v5471_v21  ;;  %v5641_v24 = vpop.f32.mrf.mxu0 }
 0x28b   : > { %v30671_v16 = vpop.f32.mrf.mxu1 }
 0x28c   : > { %v5642_v53 = vadd.f32 %v5641_v24, %v5555_v23  ;;  %v30673_v61 = vpop.f32.mrf.mxu0 }
 0x28d   : > { %35318 = vst [vmem:[#allocation84_spill] sm:$0xff] %v30673_v61  ;;  %v5563_v54 = vpop.f32.mrf.mxu1 }
 0x28e   : > { %v5564_v5 = vadd.f32 %v5563_v54, %v5479_v46  ;;  %v5648_v25 = vpop.f32.mrf.mxu0 }
 0x28f   : > { %v30675_v60 = vpop.f32.mrf.mxu1 }
 0x290   : > { %35319 = vst [vmem:[#allocation88_spill] sm:$0xff] %v30675_v60  ;;  %v5649_v50 = vadd.f32 %v5648_v25, %v5564_v5  ;;  %v30677_v49 = vpop.f32.mrf.mxu0 }
 0x291   : > { %35320 = vst [vmem:[#allocation83_spill] sm:$0xff] %v30677_v49  ;;  %v5722_v9 = vpop.f32.mrf.mxu1 }
 0x292   : > { %v5723_v3 = vadd.f32 %v5722_v9, %v5642_v53  ;;  %v5816_v2 = vpop.f32.mrf.mxu0 }
 0x293   : > { %v30679_v6 = vpop.f32.mrf.mxu1 }
 0x294   : > { %35321 = vst [vmem:[#allocation85_spill] sm:$0xff] %v30679_v6  ;;  %v30681_v62 = vpop.f32.mrf.mxu0 }
 0x295   : > { %v5729_v59 = vpop.f32.mrf.mxu1 }
 0x296   : > { %v5730_v42 = vadd.f32 %v5729_v59, %v5649_v50  ;;  %v5827_v57 = vpop.f32.mrf.mxu0 }
 0x297   : > { %v30683_v55 = vpop.f32.mrf.mxu1 }
 0x298   : > { %35322 = vst [vmem:[#allocation87_spill] sm:$0xff] %v30683_v55  ;;  %v30685_v37 = vpop.f32.mrf.mxu0 }
 0x299   : > { %v5909_v33 = vpop.f32.mrf.mxu1 }
 0x29a   : > { %v5910_v30 = vadd.f32 %v5909_v33, %v5816_v2  ;;  %v5993_v21 = vpop.f32.mrf.mxu0 }
 0x29b   : > { %v30687_v27 = vpop.f32.mrf.mxu1 }
 0x29c   : > { %v5994_v19 = vadd.f32 %v5993_v21, %v5910_v30  ;;  %v30689_v8 = vpop.f32.mrf.mxu0 }
 0x29d   : > { %v5916_v46 = vpop.f32.mrf.mxu1 }
 0x29e   : > { %v5917_v26 = vadd.f32 %v5916_v46, %v5827_v57  ;;  %v6001_v23 = vpop.f32.mrf.mxu0 }
 0x29f   : > { %v30691_v24 = vpop.f32.mrf.mxu1 }
 0x2a0   : > { %v6002_v53 = vadd.f32 %v6001_v23, %v5917_v26  ;;  %v30693_v54 = vpop.f32.mrf.mxu0 }
 0x2a1   : > { %v6077_v5 = vpop.f32.mrf.mxu1 }
 0x2a2   : > { %v6078_v25 = vadd.f32 %v6077_v5, %v5994_v19  ;;  %v6164_v50 = vpop.f32.mrf.mxu0 }
 0x2a3   : > { %v30695_v9 = vpop.f32.mrf.mxu1 }
 0x2a4   : > { %v6165_v2 = vadd.f32 %v6164_v50, %v6078_v25  ;;  %v30697_v59 = vpop.f32.mrf.mxu0 }
 0x2a5   : > { %35323 = vst [vmem:[#allocation86_spill] sm:$0xff] %v30697_v59  ;;  %v6086_v33 = vpop.f32.mrf.mxu1 }
 0x2a6   : > { %v6087_v30 = vadd.f32 %v6086_v33, %v6002_v53  ;;  %v6171_v21 = vpop.f32.mrf.mxu0 }
 0x2a7   : > { %v30699_v63 = vpop.f32.mrf.mxu1 }
 0x2a8   : > { %35324 = vst [vmem:[#allocation89_spill] sm:$0xff] %v30699_v63  ;;  %v6172_v57 = vadd.f32 %v6171_v21, %v6087_v30  ;;  %v30701_v46 = vpop.f32.mrf.mxu0 }
 0x2a9   : > { %35325 = vst [vmem:[#allocation90_spill] sm:$0xff] %v30701_v46  ;;  %v6245_v10 = vpop.f32.mrf.mxu1 }
 0x2aa   : > { %v6246_v26 = vadd.f32 %v6245_v10, %v6165_v2  ;;  %v6343_v23 = vpop.f32.mrf.mxu0 }
 0x2ab   : > { %v30703_v32 = vpop.f32.mrf.mxu1 }
 0x2ac   : > { %35326 = vst [vmem:[#allocation56_spill] sm:$0xff] %v30703_v32  ;;  %v6257_v19 = vadd.f32 %v6246_v26, %v5723_v3  ;;  %v30705_v5 = vpop.f32.mrf.mxu0 }
 0x2ad   : > { %v6252_v17 = vpop.f32.mrf.mxu1 }
 0x2ae   : > { %v6253_v25 = vadd.f32 %v6252_v17, %v6172_v57  ;;  %v6354_v50 = vpop.f32.mrf.mxu0 }
 0x2af   : > { %v30707_v31 = vpop.f32.mrf.mxu1 }
 0x2b0   : > { %35327 = vst [vmem:[#allocation55_spill] sm:$0xff] %v30707_v31  ;;  %v6259_v53 = vadd.f32 %v6253_v25, %v5730_v42  ;;  %v30709_v33 = vpop.f32.mrf.mxu0 }
 0x2b1   : > { %v6436_v40 = vpop.f32.mrf.mxu1 }
 0x2b2   : > { %v6437_v30 = vadd.f32 %v6436_v40, %v6343_v23  ;;  %v6520_v21 = vpop.f32.mrf.mxu0 }
 0x2b3   : > { %v30711_v45 = vpop.f32.mrf.mxu1 }
 0x2b4   : > { %v6521_v10 = vadd.f32 %v6520_v21, %v6437_v30  ;;  %v30713_v2 = vpop.f32.mrf.mxu0 }
 0x2b5   : > { %35328 = vst [vmem:[#allocation57_spill] sm:$0xff] %v30713_v2  ;;  %v6443_v35 = vpop.f32.mrf.mxu1 }
 0x2b6   : > { %v6444_v3 = vadd.f32 %v6443_v35, %v6354_v50  ;;  %v6528_v26 = vpop.f32.mrf.mxu0 }
 0x2b7   : > { %v30715_v44 = vpop.f32.mrf.mxu1 }
 0x2b8   : > { %v6529_v17 = vadd.f32 %v6528_v26, %v6444_v3  ;;  %v30717_v57 = vpop.f32.mrf.mxu0 }
 0x2b9   : > { %35329 = vst [vmem:[#allocation58_spill] sm:$0xff] %v30717_v57  ;;  %v6604_v14 = vpop.f32.mrf.mxu1 }
 0x2ba   : > { %v6605_v42 = vadd.f32 %v6604_v14, %v6521_v10  ;;  %v6691_v25 = vpop.f32.mrf.mxu0 }
 0x2bb   : > { %v30719_v0 = vpop.f32.mrf.mxu1 }
 0x2bc   : > { %35330 = vst [vmem:[#allocation91_spill] sm:$0xff] %v30719_v0  ;;  %v6692_v40 = vadd.f32 %v6691_v25, %v6605_v42  ;;  %v30721_v23 = vpop.f32.mrf.mxu0 }
 0x2bd   : > { %35331 = vst [vmem:[#allocation92_spill] sm:$0xff] %v30721_v23  ;;  %v6613_v48 = vpop.f32.mrf.mxu1 }
 0x2be   : > { %v6614_v30 = vadd.f32 %v6613_v48, %v6529_v17  ;;  %v6698_v21 = vpop.f32.mrf.mxu0 }
 0x2bf   : > { %v30723_v18 = vpop.f32.mrf.mxu1 }
 0x2c0   : > { %35332 = vst [vmem:[#allocation93_spill] sm:$0xff] %v30723_v18  ;;  %v6699_v35 = vadd.f32 %v6698_v21, %v6614_v30  ;;  %v30725_v50 = vpop.f32.mrf.mxu0 }
 0x2c1   : > { %35333 = vst [vmem:[#allocation94_spill] sm:$0xff] %v30725_v50  ;;  %v6772_v1 = vpop.f32.mrf.mxu1 }
 0x2c2   : > { %v6773_v3 = vadd.f32 %v6772_v1, %v6692_v40  ;;  %v6870_v26 = vpop.f32.mrf.mxu0 }
 0x2c3   : > { %v30727_v31 = vpop.f32.mrf.mxu1 }
 0x2c4   : > { %35334 = vst [vmem:[#allocation95_spill] sm:$0xff] %v30727_v31  ;;  %v6784_v14 = vadd.f32 %v6773_v3, %v6257_v19  ;;  %v30729_v10 = vpop.f32.mrf.mxu0 }
 0x2c5   : > { %35335 = vst [vmem:[#allocation96_spill] sm:$0xff] %v30729_v10  ;;  %v6779_v55 = vpop.f32.mrf.mxu1 }
 0x2c6   : > { %v6780_v42 = vadd.f32 %v6779_v55, %v6699_v35  ;;  %v6881_v25 = vpop.f32.mrf.mxu0 }
 0x2c7   : > { %v30731_v23 = vpop.f32.mrf.mxu1 }
 0x2c8   : > { %35336 = vst [vmem:[#allocation97_spill] sm:$0xff] %v30731_v23  ;;  %v6786_v48 = vadd.f32 %v6780_v42, %v6259_v53  ;;  %v30733_v17 = vpop.f32.mrf.mxu0 }
 0x2c9   : > { %35337 = vst [vmem:[#allocation98_spill] sm:$0xff] %v30733_v17  ;;  %v6963_v18 = vpop.f32.mrf.mxu1 }
 0x2ca   : > { %v6964_v30 = vadd.f32 %v6963_v18, %v6870_v26  ;;  %v7047_v21 = vpop.f32.mrf.mxu0 }
 0x2cb   : > { %v30735_v50 = vpop.f32.mrf.mxu1 }
 0x2cc   : > { %35338 = vst [vmem:[#allocation99_spill] sm:$0xff] %v30735_v50  ;;  %v7048_v1 = vadd.f32 %v7047_v21, %v6964_v30  ;;  %v30737_v40 = vpop.f32.mrf.mxu0 }
 0x2cd   : > { %35339 = vst [vmem:[#allocation100_spill] sm:$0xff] %v30737_v40  ;;  %v6970_v31 = vpop.f32.mrf.mxu1 }
 0x2ce   : > { %v6971_v19 = vadd.f32 %v6970_v31, %v6881_v25  ;;  %v7055_v3 = vpop.f32.mrf.mxu0 }
 0x2cf   : > { %v30739_v0 = vpop.f32.mrf.mxu1 }
 0x2d0   : > { %35340 = vst [vmem:[#allocation101_spill] sm:$0xff] %v30739_v0  ;;  %v7056_v55 = vadd.f32 %v7055_v3, %v6971_v19  ;;  %v30741_v35 = vpop.f32.mrf.mxu0 }
 0x2d1   : > { %35341 = vst [vmem:[#allocation102_spill] sm:$0xff] %v30741_v35  ;;  %v7131_v23 = vpop.f32.mrf.mxu1 }
 0x2d2   : > { %v7132_v53 = vadd.f32 %v7131_v23, %v7048_v1  ;;  %v7218_v42 = vpop.f32.mrf.mxu0 }
 0x2d3   : > { %v30743_v46 = vpop.f32.mrf.mxu1 }
 0x2d4   : > { %35342 = vst [vmem:[#allocation103_spill] sm:$0xff] %v30743_v46  ;;  %v7219_v18 = vadd.f32 %v7218_v42, %v7132_v53  ;;  %v30745_v26 = vpop.f32.mrf.mxu0 }
 0x2d5   : > { %35343 = vst [vmem:[#allocation104_spill] sm:$0xff] %v30745_v26  ;;  %v7140_v32 = vpop.f32.mrf.mxu1 }
 0x2d6   : > { %v7141_v30 = vadd.f32 %v7140_v32, %v7056_v55  ;;  %v7225_v21 = vpop.f32.mrf.mxu0 }
 0x2d7   : > { %v30747_v40 = vpop.f32.mrf.mxu1 }
 0x2d8   : > { %35344 = vst [vmem:[#allocation105_spill] sm:$0xff] %v30747_v40  ;;  %v7226_v31 = vadd.f32 %v7225_v21, %v7141_v30  ;;  %v30749_v25 = vpop.f32.mrf.mxu0 }
 0x2d9   : > { %35345 = vst [vmem:[#allocation106_spill] sm:$0xff] %v30749_v25  ;;  %v7299_v6 = vpop.f32.mrf.mxu1 }
 0x2da   : > { %v7300_v19 = vadd.f32 %v7299_v6, %v7219_v18  ;;  %v7397_v3 = vpop.f32.mrf.mxu0 }
 0x2db   : > { %v30751_v35 = vpop.f32.mrf.mxu1 }
 0x2dc   : > { %35346 = vst [vmem:[#allocation107_spill] sm:$0xff] %v30751_v35  ;;  %v7311_v23 = vadd.f32 %v7300_v19, %v6784_v14  ;;  %v30753_v1 = vpop.f32.mrf.mxu0 }
 0x2dd   : > { %35347 = vst [vmem:[#allocation108_spill] sm:$0xff] %v30753_v1  ;;  %v7306_v46 = vpop.f32.mrf.mxu1 }
 0x2de   : > { %v9424_v53 = vpop.permute.xlu0 %9423  ;;  %v7307_v42 = vadd.f32 %v7306_v46, %v7226_v31  ;;  %v7408_v26 = vpop.f32.mrf.mxu0 }
 0x2df   : > { %v9426_v49 = vpop.permute.xlu1 %9425  ;;  %v30755_v32 = vpop.f32.mrf.mxu1 }
 0x2e0   : > { %35348 = vst [vmem:[#allocation109_spill] sm:$0xff] %v30755_v32  ;;  %v7313_v55 = vadd.f32 %v7307_v42, %v6786_v48  ;;  %v30757_v40 = vpop.f32.mrf.mxu0  ;;  %v9427_v35 = vsel %vm318_vm2, %v9424_v53, %v9426_v49  ;;  %v9428_v46 = vsel %vm318_vm2, %v9426_v49, %v9424_v53 }
 0x2e1   : > { %35349 = vst [vmem:[#allocation110_spill] sm:$0xff] %v30757_v40  ;;  %v7490_v30 = vpop.f32.mrf.mxu1 }
 0x2e2   : > { %v9430_v21 = vpop.permute.xlu0 %9429  ;;  %v7491_v25 = vadd.f32 %v7490_v30, %v7397_v3  ;;  %v7574_v6 = vpop.f32.mrf.mxu0 }
 0x2e3   : > { %v9432_v14 = vpop.permute.xlu1 %9431  ;;  %v30761_v19 = vpop.f32.mrf.mxu1 }
 0x2e4   : > { %35351 = vst [vmem:[#allocation111_spill] sm:$0xff] %v30761_v19  ;;  %v9433_v31 = vsel %vm325_vm1, %v9430_v21, %v9432_v14  ;;  %v9434_v48 = vsel %vm325_vm1, %v9432_v14, %v9430_v21  ;;  %v7575_v42 = vadd.f32 %v7574_v6, %v7491_v25  ;;  %v30769_v32 = vpop.f32.mrf.mxu0 }
 0x2e5   : > { %35352 = vst [vmem:[#allocation112_spill] sm:$0xff] %v30769_v32  ;;  %v30773_v30 = vsel %vm29210_vm4, %v9427_v35, %v9434_v48  ;;  %v30777_v1 = vsel %vm29204_vm3, %v9428_v46, %v9433_v31  ;;  %v7497_v19 = vpop.f32.mrf.mxu1 }
 0x2e6   : > { %9437 = vrot.lane.b32.xlu0 %v30773_v30, %s29109_s12  ;;  %9439 = vrot.lane.b32.xlu1 %v30777_v1, %s29109_s12  ;;  %v7498_v49 = vadd.f32 %v7497_v19, %v7408_v26  ;;  %v7582_v53 = vpop.f32.mrf.mxu0 }
 0x2e7   : > { %v30783_v25 = vpop.f32.mrf.mxu1 }
 0x2e8   : > { %35355 = vst [vmem:[#allocation113_spill] sm:$0xff] %v30783_v25  ;;  %v7583_v21 = vadd.f32 %v7582_v53, %v7498_v49  ;;  %v30785_v6 = vpop.f32.mrf.mxu0 }
 0x2e9   : > { %35356 = vst [vmem:[#allocation114_spill] sm:$0xff] %v30785_v6  ;;  %v7658_v35 = vpop.f32.mrf.mxu1 }
 0x2ea   : > { %10510 = vrot.lane.b32.xlu0 %v30773_v30, %s29111_s14  ;;  %10512 = vrot.lane.b32.xlu1 %v30777_v1, %s29111_s14  ;;  %v7659_v14 = vadd.f32 %v7658_v35, %v7575_v42  ;;  %v7745_v46 = vpop.f32.mrf.mxu0 }
 0x2eb   : > { %v30791_v31 = vpop.f32.mrf.mxu1 }
 0x2ec   : > { %35357 = vst [vmem:[#allocation115_spill] sm:$0xff] %v30791_v31  ;;  %v7746_v48 = vadd.f32 %v7745_v46, %v7659_v14  ;;  %v30793_v40 = vpop.f32.mrf.mxu0 }
 0x2ed   : > { %35358 = vst [vmem:[#allocation116_spill] sm:$0xff] %v30793_v40  ;;  %v7667_v26 = vpop.f32.mrf.mxu1 }
 0x2ee   : > { %11049 = vrot.lane.b32.xlu0 %v30599_v52, %s29109_s12  ;;  %11051 = vrot.lane.b32.xlu1 %v30604_v41, %s29109_s12  ;;  %v7668_v19 = vadd.f32 %v7667_v26, %v7583_v21  ;;  %v7752_v49 = vpop.f32.mrf.mxu0 }
 0x2ef   : > { %v30799_v53 = vpop.f32.mrf.mxu1 }
 0x2f0   : > { %35359 = vst [vmem:[#allocation117_spill] sm:$0xff] %v30799_v53  ;;  %v7753_v3 = vadd.f32 %v7752_v49, %v7668_v19  ;;  %v30801_v6 = vpop.f32.mrf.mxu0 }
 0x2f1   : > { %35360 = vst [vmem:[#allocation118_spill] sm:$0xff] %v30801_v6  ;;  %v7826_v42 = vpop.f32.mrf.mxu1 }
 0x2f2   : > { %12660 = vrot.lane.b32.xlu0 %v30599_v52, %s29108_s9  ;;  %12662 = vrot.lane.b32.xlu1 %v30604_v41, %s29108_s9  ;;  %v7827_v35 = vadd.f32 %v7826_v42, %v7746_v48  ;;  %v7924_v14 = vpop.f32.mrf.mxu0 }
 0x2f3   : > { %v30807_v46 = vpop.f32.mrf.mxu1 }
 0x2f4   : > { %35361 = vst [vmem:[#allocation119_spill] sm:$0xff] %v30807_v46  ;;  %v7838_v40 = vadd.f32 %v7827_v35, %v7311_v23  ;;  %v30809_v31 = vpop.f32.mrf.mxu0 }
 0x2f5   : > { %35362 = vst [vmem:[#allocation120_spill] sm:$0xff] %v30809_v31  ;;  %v7833_v21 = vpop.f32.mrf.mxu1 }
 0x2f6   : > { %12666 = vrot.lane.b32.xlu0 %v30599_v52, %s29110_s13  ;;  %12668 = vrot.lane.b32.xlu1 %v30604_v41, %s29110_s13  ;;  %v7834_v26 = vadd.f32 %v7833_v21, %v7753_v3  ;;  %v7935_v19 = vpop.f32.mrf.mxu0 }
 0x2f7   : > { %v30815_v49 = vpop.f32.mrf.mxu1 }
 0x2f8   : > { %35363 = vst [vmem:[#allocation121_spill] sm:$0xff] %v30815_v49  ;;  %v7840_v6 = vadd.f32 %v7834_v26, %v7313_v55  ;;  %v30817_v53 = vpop.f32.mrf.mxu0 }
 0x2f9   : > { %35364 = vst [vmem:[#allocation122_spill] sm:$0xff] %v30817_v53  ;;  %v8017_v48 = vpop.f32.mrf.mxu1 }
 0x2fa   : > { %12121 = vrot.lane.b32.xlu0 %v30599_v52, %s29111_s14  ;;  %12123 = vrot.lane.b32.xlu1 %v30604_v41, %s29111_s14  ;;  %v8018_v23 = vadd.f32 %v8017_v48, %v7924_v14  ;;  %v8101_v42 = vpop.f32.mrf.mxu0 }
 0x2fb   : > { %v30823_v35 = vpop.f32.mrf.mxu1 }
 0x2fc   : > { %35365 = vst [vmem:[#allocation123_spill] sm:$0xff] %v30823_v35  ;;  %v8102_v46 = vadd.f32 %v8101_v42, %v8018_v23  ;;  %v30825_v31 = vpop.f32.mrf.mxu0 }
 0x2fd   : > { %35366 = vst [vmem:[#allocation124_spill] sm:$0xff] %v30825_v31  ;;  %v8024_v3 = vpop.f32.mrf.mxu1 }
 0x2fe   : > { %v8025_v21 = vadd.f32 %v8024_v3, %v7935_v19  ;;  %v8109_v49 = vpop.f32.mrf.mxu0 }
 0x2ff   : > { %v30827_v55 = vpop.f32.mrf.mxu1 }
 0x300   : > { %35367 = vst [vmem:[#allocation125_spill] sm:$0xff] %v30827_v55  ;;  %v8110_v26 = vadd.f32 %v8109_v49, %v8025_v21  ;;  %v30829_v53 = vpop.f32.mrf.mxu0 }
 0x301   : > { %35368 = vst [vmem:[#allocation126_spill] sm:$0xff] %v30829_v53  ;;  %v8185_v32 = vpop.f32.mrf.mxu1 }
 0x302   : > { %v8186_v25 = vadd.f32 %v8185_v32, %v8102_v46  ;;  %v8272_v0 = vpop.f32.mrf.mxu0 }
 0x303   : > { %v30831_v17 = vpop.f32.mrf.mxu1 }
 0x304   : > { %35369 = vst [vmem:[#allocation127_spill] sm:$0xff] %v30831_v17  ;;  %v8273_v14 = vadd.f32 %v8272_v0, %v8186_v25  ;;  %v30833_v48 = vpop.f32.mrf.mxu0 }
 0x305   : > { %35370 = vst [vmem:[#allocation128_spill] sm:$0xff] %v30833_v48  ;;  %v8194_v35 = vpop.f32.mrf.mxu1 }
 0x306   : > { %v8195_v23 = vadd.f32 %v8194_v35, %v8110_v26  ;;  %v8279_v42 = vpop.f32.mrf.mxu0 }
 0x307   : > { %v30835_v31 = vpop.f32.mrf.mxu1 }
 0x308   : > { %35371 = vst [vmem:[#allocation129_spill] sm:$0xff] %v30835_v31  ;;  %v8280_v19 = vadd.f32 %v8279_v42, %v8195_v23  ;;  %v30837_v3 = vpop.f32.mrf.mxu0 }
 0x309   : > { %35372 = vst [vmem:[#allocation130_spill] sm:$0xff] %v30837_v3  ;;  %v8353_v55 = vpop.f32.mrf.mxu1 }
 0x30a   : > { %v8354_v49 = vadd.f32 %v8353_v55, %v8273_v14  ;;  %v8451_v21 = vpop.f32.mrf.mxu0 }
 0x30b   : > { %v30839_v53 = vpop.f32.mrf.mxu1 }
 0x30c   : > { %35373 = vst [vmem:[#allocation131_spill] sm:$0xff] %v30839_v53  ;;  %v8365_v32 = vadd.f32 %v8354_v49, %v7838_v40  ;;  %v30841_v46 = vpop.f32.mrf.mxu0 }
 0x30d   : > { %35374 = vst [vmem:[#allocation132_spill] sm:$0xff] %v30841_v46  ;;  %v8360_v17 = vpop.f32.mrf.mxu1 }
 0x30e   : > { %v8361_v0 = vadd.f32 %v8360_v17, %v8280_v19  ;;  %v8462_v25 = vpop.f32.mrf.mxu0 }
 0x30f   : > { %v30843_v48 = vpop.f32.mrf.mxu1 }
 0x310   : > { %35375 = vst [vmem:[#allocation133_spill] sm:$0xff] %v30843_v48  ;;  %v8367_v35 = vadd.f32 %v8361_v0, %v7840_v6  ;;  %v30845_v26 = vpop.f32.mrf.mxu0 }
 0x311   : > { %35376 = vst [vmem:[#allocation134_spill] sm:$0xff] %v30845_v26  ;;  %v8544_v31 = vpop.f32.mrf.mxu1 }
 0x312   : > { %v8545_v23 = vadd.f32 %v8544_v31, %v8451_v21  ;;  %v8628_v42 = vpop.f32.mrf.mxu0 }
 0x313   : > { %v30847_v3 = vpop.f32.mrf.mxu1 }
 0x314   : > { %35377 = vst [vmem:[#allocation135_spill] sm:$0xff] %v30847_v3  ;;  %v8629_v55 = vadd.f32 %v8628_v42, %v8545_v23  ;;  %v30849_v14 = vpop.f32.mrf.mxu0 }
 0x315   : > { %35378 = vst [vmem:[#allocation136_spill] sm:$0xff] %v30849_v14  ;;  %v8551_v53 = vpop.f32.mrf.mxu1 }
 0x316   : > { %v8552_v40 = vadd.f32 %v8551_v53, %v8462_v25  ;;  %v8636_v49 = vpop.f32.mrf.mxu0 }
 0x317   : > { %v30851_v46 = vpop.f32.mrf.mxu1 }
 0x318   : > { %35379 = vst [vmem:[#allocation137_spill] sm:$0xff] %v30851_v46  ;;  %v8637_v17 = vadd.f32 %v8636_v49, %v8552_v40  ;;  %v30853_v19 = vpop.f32.mrf.mxu0 }
 0x319   : > { %35380 = vst [vmem:[#allocation138_spill] sm:$0xff] %v30853_v19  ;;  %v8712_v48 = vpop.f32.mrf.mxu1 }
 0x31a   : > { %v8713_v6 = vadd.f32 %v8712_v48, %v8629_v55  ;;  %v8799_v0 = vpop.f32.mrf.mxu0 }
 0x31b   : > { %v30855_v26 = vpop.f32.mrf.mxu1 }
 0x31c   : > { %35381 = vst [vmem:[#allocation139_spill] sm:$0xff] %v30855_v26  ;;  %v8800_v31 = vadd.f32 %v8799_v0, %v8713_v6  ;;  %v30857_v21 = vpop.f32.mrf.mxu0 }
 0x31d   : > { %35382 = vst [vmem:[#allocation140_spill] sm:$0xff] %v30857_v21  ;;  %v8721_v3 = vpop.f32.mrf.mxu1 }
 0x31e   : > { %v8722_v23 = vadd.f32 %v8721_v3, %v8637_v17  ;;  %v8806_v42 = vpop.f32.mrf.mxu0 }
 0x31f   : > { %v30859_v14 = vpop.f32.mrf.mxu1 }
 0x320   : > { %35383 = vst [vmem:[#allocation141_spill] sm:$0xff] %v30859_v14  ;;  %v8807_v53 = vadd.f32 %v8806_v42, %v8722_v23  ;;  %v30861_v25 = vpop.f32.mrf.mxu0 }
 0x321   : > { %35384 = vst [vmem:[#allocation142_spill] sm:$0xff] %v30861_v25  ;;  %v8880_v46 = vpop.f32.mrf.mxu1 }
 0x322   : > { %v8881_v40 = vadd.f32 %v8880_v46, %v8800_v31  ;;  %v8978_v49 = vpop.f32.mrf.mxu0 }
 0x323   : > { %v30863_v19 = vpop.f32.mrf.mxu1 }
 0x324   : > { %35385 = vst [vmem:[#allocation143_spill] sm:$0xff] %v30863_v19  ;;  %v8892_v48 = vadd.f32 %v8881_v40, %v8365_v32  ;;  %v30865_v55 = vpop.f32.mrf.mxu0 }
 0x325   : > { %35386 = vst [vmem:[#allocation144_spill] sm:$0xff] %v30865_v55  ;;  %v8887_v26 = vpop.f32.mrf.mxu1 }
 0x326   : > { %v8888_v6 = vadd.f32 %v8887_v26, %v8807_v53  ;;  %v8989_v0 = vpop.f32.mrf.mxu0 }
 0x327   : > { %v30867_v21 = vpop.f32.mrf.mxu1 }
 0x328   : > { %35387 = vst [vmem:[#allocation145_spill] sm:$0xff] %v30867_v21  ;;  %v8894_v3 = vadd.f32 %v8888_v6, %v8367_v35  ;;  %v30869_v17 = vpop.f32.mrf.mxu0 }
 0x329   : > { %35388 = vst [vmem:[#allocation146_spill] sm:$0xff] %v30869_v17  ;;  %v9071_v14 = vpop.f32.mrf.mxu1 }
 0x32a   : > { %v9072_v23 = vadd.f32 %v9071_v14, %v8978_v49  ;;  %v9155_v42 = vpop.f32.mrf.mxu0 }
 0x32b   : > { %v30871_v25 = vpop.f32.mrf.mxu1 }
 0x32c   : > { %35389 = vst [vmem:[#allocation147_spill] sm:$0xff] %v30871_v25  ;;  %v9156_v46 = vadd.f32 %v9155_v42, %v9072_v23  ;;  %v30873_v31 = vpop.f32.mrf.mxu0 }
 0x32d   : > { %35390 = vst [vmem:[#allocation148_spill] sm:$0xff] %v30873_v31  ;;  %v9078_v19 = vpop.f32.mrf.mxu1 }
 0x32e   : > { %v9079_v32 = vadd.f32 %v9078_v19, %v8989_v0 }
 0x32f   : > { %v30875_v40 = vpop.f32.mrf.mxu1  ;;  %v9163_v55 = vpop.f32.mrf.mxu0 }
 0x330   : > { %35391 = vst [vmem:[#allocation149_spill] sm:$0xff] %v30875_v40  ;;  %v9164_v26 = vadd.f32 %v9163_v55, %v9079_v32 }
 0x331   : > { %v9239_v53 = vpop.f32.mrf.mxu1  ;;  %v30877_v50 = vpop.f32.mrf.mxu0 }
 0x332   : > { %35392 = vst [vmem:[#allocation150_spill] sm:$0xff] %v30877_v50  ;;  %v9240_v35 = vadd.f32 %v9239_v53, %v9156_v46 }
 0x333   : > { %v30879_v6 = vpop.f32.mrf.mxu1  ;;  %v9326_v21 = vpop.f32.mrf.mxu0 }
 0x334   : > { %35393 = vst [vmem:[#allocation151_spill] sm:$0xff] %v30879_v6  ;;  %v9327_v14 = vadd.f32 %v9326_v21, %v9240_v35  ;;  %v9443_v21 = vld [vmem:[%s34864_s2] sm:$0xff] }
 0x335   : > { %v9248_v49 = vpop.f32.mrf.mxu1  ;;  %v30881_v17 = vpop.f32.mrf.mxu0 }
 0x336   : > { %35394 = vst [vmem:[#allocation152_spill] sm:$0xff] %v30881_v17  ;;  %v9249_v23 = vadd.f32 %v9248_v49, %v9164_v26  ;;  %v9447_v26 = vsel %vm9445_vm12, %v9443_v21, 0 }
 0x337   : > { %v30883_v42 = vpop.f32.mrf.mxu1  ;;  %v9333_v31 = vpop.f32.mrf.mxu0  ;;  %v30898_v35 = vand.u32 4294901760, %v9447_v26 }
 0x338   : > { %35395 = vst [vmem:[#allocation153_spill] sm:$0xff] %v30883_v42  ;;  %v9334_v19 = vadd.f32 %v9333_v31, %v9249_v23  ;;  %v9444_v31 = vld [vmem:[%s34864_s2 + $0x8] sm:$0x1] }
 0x339   : > { %v9407_v0 = vpop.f32.mrf.mxu1 }
 0x33a   : > { %v9408_v40 = vadd.f32 %v9407_v0, %v9327_v14 }
 0x33b   : > { %v30885_v25 = vpop.f32.mrf.mxu1 }
 0x33c   : > { %35396 = vst [vmem:[#allocation154_spill] sm:$0xff] %v30885_v25  ;;  %v30887_v55 = vadd.f32 %v9408_v40, %v8892_v48  ;;  %v9450_v48 = vsel %vm9445_vm12, %v9444_v31, 0  ;;  %v30902_v40 = vsub.f32 %v9447_v26, %v30898_v35 }
 0x33d   : > { %v9414_v32 = vpop.f32.mrf.mxu1 }
 0x33e   : > { %35397 = vst [vmem:[#allocation155_spill] sm:$0xff] %v30887_v55  ;;  %v9415_v46 = vadd.f32 %v9414_v32, %v9334_v19  ;;  %v35018_v14 = vand.u32 4294901760, %v30902_v40  ;;  %v29014_v55 = vld [vmem:[%s34864_s2 + $0x38] sm:$0x1] }
 0x340   : > { %v30889_v53 = vadd.f32 %v9415_v46, %v8894_v3  ;;  %v30904_v3 = vand.u32 4294901760, %v9450_v48  ;;  %v9529_v23 = vsub.f32 %v30902_v40, %v35018_v14 }
 0x342   : > { %35398 = vst [vmem:[#allocation156_spill] sm:$0xff] %v30889_v53  ;;  %v30908_v49 = vsub.f32 %v9450_v48, %v30904_v3  ;;  %v9530_v14 = vand.u32 4294901760, %v9529_v23  ;;  %v29013_v23 = vld [vmem:[%s34864_s2 + $0x30] sm:$0xff] }
 0x344   : > { %v35019_v19 = vand.u32 4294901760, %v30908_v49 }
 0x346   : > { %v9540_v42 = vsub.f32 %v30908_v49, %v35019_v19 }
 0x358   : > { %v9438_v0 = vpop.permute.xlu0 %9437  ;;  %v9440_v32 = vpop.permute.xlu1 %9439 }
 0x359   : > { %v9441_v46 = vsel %vm338_vm6, %v9438_v0, %v9440_v32  ;;  %v9442_v21 = vsel %vm338_vm6, %v9440_v32, %v9438_v0  ;;  %v9990_v0 = vsel %vm9452_vm13, %v30777_v1, 0 }
 0x35a   : > { %v9454_v26 = vsel %vm9452_vm13, %v9442_v21, 0  ;;  %v9457_v31 = vsel %vm9452_vm13, %v9441_v46, 0 }
 0x35b   : > { %v30920_v48 = vand.u32 4294901760, %v9457_v31  ;;  %v30922_v25 = vand.u32 4294901760, %v9454_v26 }
 0x35c   : > { %v30927_v17 = vpop.permute.xlu0 %10510  ;;  %v30929_v50 = vpop.permute.xlu1 %10512 }
 0x35d   : > { %35399 = vst [vmem:[#allocation157_spill] sm:$0xff] %v30920_v48  ;;  %35400 = vst [vmem:[#allocation158_spill] sm:$0xff] %v30922_v25  ;;  %v30934_v32 = vsub.f32 %v9457_v31, %v30920_v48  ;;  %v30937_v46 = vsub.f32 %v9454_v26, %v30922_v25  ;;  %9490 = vmatprep.subr.mxu0 %v30920_v48  ;;  %v9541_v31 = vand.u32 4294901760, %v9540_v42  ;;  %v30951_v26 = vand.u32 4294901760, %v9990_v0 }
 0x35e   : > { %9492 = vmatpush1.msra.mxu0 %v30922_v25 }
 0x35f   : > { %35401 = vst [vmem:[#allocation159_spill] sm:$0xff] %v30934_v32  ;;  %35402 = vst [vmem:[#allocation160_spill] sm:$0xff] %v30937_v46  ;;  %v30945_v21 = vand.u32 4294901760, %v30937_v46  ;;  %9531 = vmatmul.mubr.f32.vlgmr.msra.gmra.mxu0 %v9530_v14  ;;  %9669 = vmatprep.subr.mxu0 %v30934_v32  ;;  %v30949_v1 = vand.u32 4294901760, %v30934_v32  ;;  %v9981_v14 = vsel %vm9445_vm12, %v29013_v23, 0  ;;  %v30969_v10 = vsub.f32 %v9990_v0, %v30951_v26 }
 0x360   : > { %35405 = vst [vmem:[#allocation163_spill] sm:$0xff] %v30951_v26  ;;  %v30953_v19 = vpop.permute.xlu0 %11049  ;;  %9672 = vmatpush1.msra.mxu0 %v30937_v46  ;;  %v30956_v6 = vpop.permute.xlu1 %11051  ;;  %9536 = vmatprep.mubr.f32.mxu0 %v35223_v15  ;;  %v30976_v23 = vand.u32 4294901760, %v9981_v14 }
 0x361   : > { %35403 = vst [vmem:[#allocation161_spill] sm:$0xff] %v30945_v21  ;;  %35404 = vst [vmem:[#allocation162_spill] sm:$0xff] %v30949_v1  ;;  %9840 = vmatprep.subr.mxu0 %v30949_v1  ;;  %v9581_v53 = vsub.f32 %v30934_v32, %v30949_v1  ;;  %v9587_v42 = vsub.f32 %v30937_v46, %v30945_v21  ;;  %v9984_v1 = vsel %vm9445_vm12, %v29014_v55, 0 }
 0x362   : > { %35406 = vst [vmem:[#allocation164_spill] sm:$0xff] %v30969_v10  ;;  %v30994_v55 = vsub.f32 %v9981_v14, %v30976_v23  ;;  %v31004_v61 = vand.u32 4294901760, %v9984_v1 }
 0x363   : > { %9542 = vmatmul.mubr.f32.gmra.mxu0 %v9541_v31  ;;  %v30971_v59 = vand.u32 4294901760, %v9581_v53  ;;  %v30973_v63 = vand.u32 4294901760, %v9587_v42  ;;  %v9987_v31 = vsel %vm9452_vm13, %v30773_v30, 0  ;;  %v30991_v30 = vand.u32 4294901760, %v30969_v10 }
 0x364   : > { %v12661_v57 = vpop.permute.xlu0 %12660  ;;  %v12663_v2 = vpop.permute.xlu1 %12662  ;;  %9705 = vmatprep.mubr.f32.mxu0 %v35223_v15  ;;  %v30984_v0 = vand.u32 4294901760, %v9987_v31 }
 0x365   : > { %35407 = vst [vmem:[#allocation165_spill] sm:$0xff] %v30971_v59  ;;  %35408 = vst [vmem:[#allocation166_spill] sm:$0xff] %v30973_v63  ;;  %9583 = vmatprep.subr.mxu1 %v30971_v59  ;;  %v12664_v53 = vsel %vm3227_vm7, %v12661_v57, %v12663_v2 }
 0x366   : > { %9589 = vmatpush1.msra.mxu1 %v30973_v63  ;;  %35409 = vst [vmem:[#allocation167_spill] sm:$0xff] %v30984_v0  ;;  %35410 = vst [vmem:[#allocation168_spill] sm:$0xff] %v30991_v30  ;;  %v12665_v63 = vsel %vm3227_vm7, %v12663_v2, %v12661_v57 }
 0x367   : > { %9708 = vmatmul.mubr.f32.vlgmr.msra.gmra.mxu0 %v30902_v40  ;;  %9624 = vmatmul.mubr.f32.vlgmr.msra.gmra.mxu1 %v30898_v35 }
 0x368   : > { %9753 = vmatprep.subr.mxu1 %v30920_v48  ;;  %v12667_v42 = vpop.permute.xlu0 %12666  ;;  %v12669_v46 = vpop.permute.xlu1 %12668  ;;  %9844 = vmatpush1.msra.mxu0 %v30945_v21 }
 0x369   : > { %9755 = vmatpush1.msra.mxu1 %v30922_v25  ;;  %v12670_v32 = vsel %vm3234_vm8, %v12667_v42, %v12669_v46  ;;  %v12671_v59 = vsel %vm3234_vm8, %v12669_v46, %v12667_v42  ;;  %10023 = vmatprep.subr.mxu0 %v30951_v26  ;;  %v31019_v46 = vsub.f32 %v9987_v31, %v30984_v0  ;;  %v35414_v31 = vand.u32 4294901760, %v30902_v40 }
 0x36a   : > { %9923 = vmatprep.subr.mxu1 %v30920_v48  ;;  %v31010_v60 = vsel %vm29326_vm9, %v12664_v53, %v12671_v59  ;;  %v31014_v57 = vsel %vm29332_vm10, %v12665_v63, %v12670_v32  ;;  %9629 = vmatprep.mubr.f32.mxu1 %v35223_v15  ;;  %v10114_v63 = vsub.f32 %v30969_v10, %v30991_v30  ;;  %v35025_v59 = vand.u32 4294901760, %v30994_v55 }
 0x36b   : > { %9713 = vmatprep.mubr.f32.mxu0 %v35223_v15  ;;  %35413 = vst [vmem:[#allocation169_spill] sm:$0xff] %v31019_v46  ;;  %9631 = vmatmul.mubr.f32.gmra.mxu1 %v30904_v3  ;;  %v31031_v32 = vsub.f32 %v9984_v1, %v31004_v61  ;;  %v31039_v53 = vand.u32 4294901760, %v31019_v46  ;;  %v10515_v40 = vsel %vm1298_vm11, %v30929_v50, %v30927_v17 }
 0x36c   : > { %9716 = vmatmul.mubr.f32.gmra.mxu0 %v30908_v49  ;;  %12676 = vrot.lane.b32.xlu1 %v31010_v60, %s29109_s12  ;;  %v31044_v42 = vand.u32 4294901760, %v10114_v63  ;;  %v10062_v1 = vsub.f32 %v30994_v55, %v35025_v59 }
 0x36d   : > { %12674 = vrot.lane.b32.xlu0 %v31014_v57, %s29109_s12  ;;  %9788 = vmatprep.mubr.f32.mxu1 %v35223_v15  ;;  %35415 = vst [vmem:[#allocation170_spill] sm:$0xff] %v31039_v53  ;;  %v35029_v2 = vand.u32 4294901760, %v31031_v32  ;;  %v10120_v63 = vsub.f32 %v31019_v46, %v31039_v53 }
 0x36e   : > { %9877 = vmatprep.mubr.f32.mxu0 %v35223_v15  ;;  %35416 = vst [vmem:[#allocation171_spill] sm:$0xff] %v31044_v42  ;;  %v10063_v59 = vand.u32 4294901760, %v10062_v1 }
 0x36f   : > { %9792 = vmatmul.mubr.f32.vlgmr.msra.gmra.mxu1 %v35414_v31  ;;  %v35417_v31 = vand.u32 4294901760, %v30908_v49  ;;  %v10073_v14 = vsub.f32 %v31031_v32, %v35029_v2  ;;  %v31075_v21 = vand.u32 4294901760, %v10120_v63  ;;  %v35425_v2 = vand.u32 4294901760, %v30994_v55 }
 0x370   : > { %9879 = vmatmul.mubr.f32.vlgmr.msra.gmra.mxu0 %v30898_v35  ;;  %9925 = vmatpush1.msra.mxu1 %v30922_v25 }
 0x371   : > { %13748 = vrot.lane.b32.xlu1 %v31010_v60, %s29111_s14  ;;  %13746 = vrot.lane.b32.xlu0 %v31014_v57, %s29111_s14  ;;  %35418 = vst [vmem:[#allocation172_spill] sm:$0xff] %v31075_v21  ;;  %v10074_v1 = vand.u32 4294901760, %v10073_v14 }
 0x372   : > { %10025 = vmatpush1.msra.mxu0 %v30984_v0  ;;  %10116 = vmatprep.subr.mxu1 %v31044_v42  ;;  %v10529_v42 = vsel %vm9452_vm13, %v10515_v40, 0  ;;  %v10514_v40 = vsel %vm1298_vm11, %v30927_v17, %v30929_v50 }
 0x373   : > { %10202 = vmatprep.subr.mxu0 %v30969_v10  ;;  %9797 = vmatprep.mubr.f32.mxu1 %v35223_v15  ;;  %v29015_v10 = vld [vmem:[%s34864_s2 + $0x60] sm:$0xff]  ;;  %v31077_v49 = vand.u32 4294901760, %v10529_v42  ;;  %v10526_v50 = vsel %vm9452_vm13, %v10514_v40, 0 }
 0x374   : > { %9884 = vmatprep.mubr.f32.mxu0 %v35223_v15  ;;  %9801 = vmatmul.mubr.f32.gmra.mxu1 %v35417_v31  ;;  %v10520_v31 = vsel %vm9445_vm12, %v29015_v10, 0 }
 0x375   : > { %9886 = vmatmul.mubr.f32.gmra.mxu0 %v30904_v3  ;;  %9958 = vmatprep.mubr.f32.mxu1 %v35223_v15  ;;  %35419 = vst [vmem:[#allocation173_spill] sm:$0xff] %v31077_v49  ;;  %v31096_v17 = vsub.f32 %v10529_v42, %v31077_v49  ;;  %v31099_v10 = vand.u32 4294901760, %v10520_v31 }
 0x376   : > { %10058 = vmatprep.mubr.f32.mxu0 %v35223_v15 }
 0x377   : > { %35420 = vst [vmem:[#allocation174_spill] sm:$0xff] %v31096_v17  ;;  %v31109_v42 = vand.u32 4294901760, %v31096_v17 }
 0x378   : > { %9960 = vmatmul.mubr.f32.vlgmr.msra.gmra.mxu1 %v30898_v35  ;;  %v29016_v35 = vld [vmem:[%s34864_s2 + $0x68] sm:$0x1] }
 0x379   : > { %10064 = vmatmul.mubr.f32.vlgmr.msra.gmra.mxu0 %v10063_v59  ;;  %10122 = vmatpush1.msra.mxu1 %v31075_v21  ;;  %v10523_v14 = vsel %vm9445_vm12, %v29016_v35, 0  ;;  %v31104_v59 = vand.u32 4294901760, %v10526_v50  ;;  %35422 = vst [vmem:[#allocation176_spill] sm:$0xff] %v31109_v42  ;;  %v10653_v40 = vsub.f32 %v31096_v17, %v31109_v42 }
 0x37a   : > { %10205 = vmatpush1.msra.mxu0 %v31019_v46  ;;  %10286 = vmatprep.subr.mxu1 %v30951_v26  ;;  %v31114_v63 = vand.u32 4294901760, %v10523_v14 }
 0x37b   : > { %10373 = vmatprep.subr.mxu0 %v30991_v30  ;;  %9965 = vmatprep.mubr.f32.mxu1 %v35223_v15  ;;  %35421 = vst [vmem:[#allocation175_spill] sm:$0xff] %v31104_v59 }
 0x37c   : > { %10069 = vmatprep.mubr.f32.mxu0 %v35223_v15  ;;  %9967 = vmatmul.mubr.f32.gmra.mxu1 %v30904_v3  ;;  %v31112_v3 = vsub.f32 %v10520_v31, %v31099_v10  ;;  %v31131_v35 = vsub.f32 %v10523_v14, %v31114_v63 }
 0x37d   : > { %10075 = vmatmul.mubr.f32.gmra.mxu0 %v10074_v1  ;;  %10155 = vmatprep.mubr.f32.mxu1 %v35223_v15  ;;  %v31121_v1 = vsub.f32 %v10526_v50, %v31104_v59 }
 0x37e   : > { %10238 = vmatprep.mubr.f32.mxu0 %v35223_v15  ;;  %v35032_v31 = vand.u32 4294901760, %v31112_v3  ;;  %v35037_v14 = vand.u32 4294901760, %v31131_v35 }
 0x37f   : > { %35423 = vst [vmem:[#allocation177_spill] sm:$0xff] %v31121_v1  ;;  %v31136_v50 = vand.u32 4294901760, %v31121_v1 }
 0x380   : > { %10157 = vmatmul.mubr.f32.vlgmr.msra.gmra.mxu1 %v30976_v23  ;;  %v10601_v30 = vsub.f32 %v31112_v3, %v35032_v31  ;;  %v10612_v46 = vsub.f32 %v31131_v35, %v35037_v14  ;;  %v35435_v14 = vand.u32 4294901760, %v31112_v3 }
 0x381   : > { %10241 = vmatmul.mubr.f32.vlgmr.msra.gmra.mxu0 %v30994_v55  ;;  %10288 = vmatpush1.msra.mxu1 %v30984_v0  ;;  %35424 = vst [vmem:[#allocation178_spill] sm:$0xff] %v31136_v50  ;;  %v11053_v55 = vsel %vm338_vm6, %v30953_v19, %v30956_v6 }
 0x382   : > { %10377 = vmatpush1.msra.mxu0 %v31039_v53  ;;  %10456 = vmatprep.subr.mxu1 %v30951_v26  ;;  %v31141_v53 = vand.u32 4294901760, %v10653_v40  ;;  %v35427_v40 = vand.u32 4294901760, %v31031_v32  ;;  %v10602_v31 = vand.u32 4294901760, %v10601_v30  ;;  %v10613_v30 = vand.u32 4294901760, %v10612_v46 }
 0x383   : > { %10562 = vmatprep.subr.mxu0 %v31077_v49  ;;  %10162 = vmatprep.mubr.f32.mxu1 %v35223_v15 }
 0x384   : > { %10246 = vmatprep.mubr.f32.mxu0 %v35223_v15  ;;  %10164 = vmatmul.mubr.f32.gmra.mxu1 %v31004_v61  ;;  %35426 = vst [vmem:[#allocation179_spill] sm:$0xff] %v31141_v53 }
 0x385   : > { %10249 = vmatmul.mubr.f32.gmra.mxu0 %v31031_v32  ;;  %10321 = vmatprep.mubr.f32.mxu1 %v35223_v15 }
 0x386   : > { %10410 = vmatprep.mubr.f32.mxu0 %v35223_v15 }
 0x388   : > { %10325 = vmatmul.mubr.f32.vlgmr.msra.gmra.mxu1 %v35425_v2  ;;  %v10659_v2 = vsub.f32 %v31121_v1, %v31136_v50 }
 0x389   : > { %10412 = vmatmul.mubr.f32.vlgmr.msra.gmra.mxu0 %v30976_v23  ;;  %10458 = vmatpush1.msra.mxu1 %v30984_v0  ;;  %v29043_v0 = vld [vmem:[%s34865_s3 + $0x80] sm:$0xff] }
 0x38a   : > { %10564 = vmatpush1.msra.mxu0 %v31104_v59  ;;  %10655 = vmatprep.subr.mxu1 %v31141_v53  ;;  %v11068_v53 = vsel %vm9452_vm13, %v11053_v55, 0  ;;  %v31171_v21 = vand.u32 4294901760, %v10659_v2  ;;  %v11054_v55 = vsel %vm338_vm6, %v30956_v6, %v30953_v19  ;;  %v18496_v48 = vsel %vm344_vm0, %v29043_v0, 0  ;;  %v35645_v0 = vld [vmem:[#allocation68_spill] sm:$0xff] }
 0x38b   : > { %10741 = vmatprep.subr.mxu0 %v31096_v17  ;;  %10330 = vmatprep.mubr.f32.mxu1 %v35223_v15  ;;  %v29017_v17 = vld [vmem:[%s34864_s2 + $0x10] sm:$0xff]  ;;  %v31173_v32 = vand.u32 4294901760, %v11068_v53  ;;  %v11065_v6 = vsel %vm9452_vm13, %v11054_v55, 0 }
 0x38c   : > { %10417 = vmatprep.mubr.f32.mxu0 %v35223_v15  ;;  %10334 = vmatmul.mubr.f32.gmra.mxu1 %v35427_v40  ;;  %35428 = vst [vmem:[#allocation180_spill] sm:$0xff] %v31171_v21  ;;  %v11059_v40 = vsel %vm9445_vm12, %v29017_v17, 0 }
 0x38d   : > { %10419 = vmatmul.mubr.f32.gmra.mxu0 %v31004_v61  ;;  %10491 = vmatprep.mubr.f32.mxu1 %v35223_v15  ;;  %35429 = vst [vmem:[#allocation181_spill] sm:$0xff] %v31173_v32  ;;  %v31192_v19 = vsub.f32 %v11068_v53, %v31173_v32  ;;  %v31195_v46 = vand.u32 4294901760, %v11059_v40 }
 0x38e   : > { %10597 = vmatprep.mubr.f32.mxu0 %v35223_v15 }
 0x38f   : > { %35430 = vst [vmem:[#allocation182_spill] sm:$0xff] %v31192_v19  ;;  %v31205_v53 = vand.u32 4294901760, %v31192_v19 }
 0x390   : > { %10493 = vmatmul.mubr.f32.vlgmr.msra.gmra.mxu1 %v30976_v23  ;;  %v29018_v23 = vld [vmem:[%s34864_s2 + $0x18] sm:$0x1] }
 0x391   : > { %10603 = vmatmul.mubr.f32.vlgmr.msra.gmra.mxu0 %v10602_v31  ;;  %10661 = vmatpush1.msra.mxu1 %v31171_v21  ;;  %v11062_v17 = vsel %vm9445_vm12, %v29018_v23, 0  ;;  %v31200_v31 = vand.u32 4294901760, %v11065_v6  ;;  %35432 = vst [vmem:[#allocation184_spill] sm:$0xff] %v31205_v53  ;;  %v11192_v55 = vsub.f32 %v31192_v19, %v31205_v53 }
 0x392   : > { %10744 = vmatpush1.msra.mxu0 %v31121_v1  ;;  %10825 = vmatprep.subr.mxu1 %v31077_v49  ;;  %v31210_v2 = vand.u32 4294901760, %v11062_v17 }
 0x393   : > { %10912 = vmatprep.subr.mxu0 %v31109_v42  ;;  %10498 = vmatprep.mubr.f32.mxu1 %v35223_v15  ;;  %35431 = vst [vmem:[#allocation183_spill] sm:$0xff] %v31200_v31 }
 0x394   : > { %10608 = vmatprep.mubr.f32.mxu0 %v35223_v15  ;;  %10500 = vmatmul.mubr.f32.gmra.mxu1 %v31004_v61  ;;  %v31208_v61 = vsub.f32 %v11059_v40, %v31195_v46  ;;  %v31227_v23 = vsub.f32 %v11062_v17, %v31210_v2 }
 0x395   : > { %10614 = vmatmul.mubr.f32.gmra.mxu0 %v10613_v30  ;;  %10694 = vmatprep.mubr.f32.mxu1 %v35223_v15  ;;  %v31217_v30 = vsub.f32 %v11065_v6, %v31200_v31 }
 0x396   : > { %10777 = vmatprep.mubr.f32.mxu0 %v35223_v15  ;;  %v35040_v40 = vand.u32 4294901760, %v31208_v61  ;;  %v35043_v17 = vand.u32 4294901760, %v31227_v23 }
 0x397   : > { %35433 = vst [vmem:[#allocation185_spill] sm:$0xff] %v31217_v30  ;;  %v31232_v6 = vand.u32 4294901760, %v31217_v30 }
 0x398   : > { %10696 = vmatmul.mubr.f32.vlgmr.msra.gmra.mxu1 %v31099_v10  ;;  %v11140_v42 = vsub.f32 %v31208_v61, %v35040_v40  ;;  %v11151_v40 = vsub.f32 %v31227_v23, %v35043_v17 }
 0x399   : > { %10780 = vmatmul.mubr.f32.vlgmr.msra.gmra.mxu0 %v31112_v3  ;;  %10827 = vmatpush1.msra.mxu1 %v31104_v59  ;;  %35434 = vst [vmem:[#allocation186_spill] sm:$0xff] %v31232_v6  ;;  %v11198_v3 = vsub.f32 %v31217_v30, %v31232_v6 }
 0x39a   : > { %10916 = vmatpush1.msra.mxu0 %v31136_v50  ;;  %10995 = vmatprep.subr.mxu1 %v31077_v49  ;;  %v31237_v50 = vand.u32 4294901760, %v11192_v55  ;;  %v11141_v55 = vand.u32 4294901760, %v11140_v42  ;;  %v11152_v42 = vand.u32 4294901760, %v11151_v40  ;;  %v35639_v49 = vld [vmem:[#allocation65_spill] sm:$0xff] }
 0x39b   : > { %11101 = vmatprep.subr.mxu0 %v31173_v32  ;;  %10701 = vmatprep.mubr.f32.mxu1 %v35223_v15 }
 0x39c   : > { %10785 = vmatprep.mubr.f32.mxu0 %v35223_v15  ;;  %10703 = vmatmul.mubr.f32.gmra.mxu1 %v31114_v63  ;;  %35436 = vst [vmem:[#allocation187_spill] sm:$0xff] %v31237_v50 }
 0x39d   : > { %10788 = vmatmul.mubr.f32.gmra.mxu0 %v31131_v35  ;;  %10860 = vmatprep.mubr.f32.mxu1 %v35223_v15 }
 0x39e   : > { %10949 = vmatprep.mubr.f32.mxu0 %v35223_v15 }
 0x3a0   : > { %10864 = vmatmul.mubr.f32.vlgmr.msra.gmra.mxu1 %v35435_v14  ;;  %v35437_v14 = vand.u32 4294901760, %v31131_v35  ;;  %v31264_v35 = vand.u32 4294901760, %v11198_v3 }
 0x3a1   : > { %10951 = vmatmul.mubr.f32.vlgmr.msra.gmra.mxu0 %v31099_v10  ;;  %10997 = vmatpush1.msra.mxu1 %v31104_v59  ;;  %v35638_v59 = vld [vmem:[#allocation76_spill] sm:$0xff] }
 0x3a2   : > { %11103 = vmatpush1.msra.mxu0 %v31200_v31  ;;  %11194 = vmatprep.subr.mxu1 %v31237_v50  ;;  %v29019_v50 = vld [vmem:[%s34864_s2 + $0x40] sm:$0xff]  ;;  %35438 = vst [vmem:[#allocation188_spill] sm:$0xff] %v31264_v35 }
 0x3a3   : > { %11280 = vmatprep.subr.mxu0 %v31192_v19  ;;  %10869 = vmatprep.mubr.f32.mxu1 %v35223_v15  ;;  %v11601_v19 = vsel %vm9452_vm13, %v30604_v41, 0  ;;  %v11592_v17 = vsel %vm9445_vm12, %v29019_v50, 0  ;;  %v29020_v41 = vld [vmem:[%s34864_s2 + $0x48] sm:$0x1] }
 0x3a4   : > { %10956 = vmatprep.mubr.f32.mxu0 %v35223_v15  ;;  %10873 = vmatmul.mubr.f32.gmra.mxu1 %v35437_v14  ;;  %v31267_v14 = vand.u32 4294901760, %v11601_v19  ;;  %v31285_v40 = vand.u32 4294901760, %v11592_v17  ;;  %v11595_v3 = vsel %vm9445_vm12, %v29020_v41, 0 }
 0x3a5   : > { %10958 = vmatmul.mubr.f32.gmra.mxu0 %v31114_v63  ;;  %11030 = vmatprep.mubr.f32.mxu1 %v35223_v15 }
 0x3a6   : > { %11136 = vmatprep.mubr.f32.mxu0 %v35223_v15  ;;  %35439 = vst [vmem:[#allocation189_spill] sm:$0xff] %v31267_v14  ;;  %v31283_v50 = vsub.f32 %v11601_v19, %v31267_v14  ;;  %v31300_v19 = vand.u32 4294901760, %v11595_v3 }
 0x3a8   : > { %11032 = vmatmul.mubr.f32.vlgmr.msra.gmra.mxu1 %v31099_v10  ;;  %v11598_v10 = vsel %vm9452_vm13, %v30599_v52, 0  ;;  %35440 = vst [vmem:[#allocation190_spill] sm:$0xff] %v31283_v50  ;;  %v31298_v52 = vsub.f32 %v11592_v17, %v31285_v40 }
 0x3a9   : > { %11142 = vmatmul.mubr.f32.vlgmr.msra.gmra.mxu0 %v11141_v55  ;;  %11200 = vmatpush1.msra.mxu1 %v31264_v35  ;;  %v31290_v55 = vand.u32 4294901760, %v11598_v10  ;;  %v35445_v35 = vand.u32 4294901760, %v31208_v61 }
 0x3aa   : > { %11283 = vmatpush1.msra.mxu0 %v31217_v30  ;;  %11364 = vmatprep.subr.mxu1 %v31173_v32  ;;  %v35052_v41 = vand.u32 4294901760, %v31298_v52  ;;  %v12124_v30 = vpop.permute.xlu1 %12123 }
 0x3ab   : > { %11451 = vmatprep.subr.mxu0 %v31205_v53  ;;  %11037 = vmatprep.mubr.f32.mxu1 %v35223_v15  ;;  %35441 = vst [vmem:[#allocation191_spill] sm:$0xff] %v31290_v55  ;;  %v12122_v53 = vpop.permute.xlu0 %12121 }
 0x3ac   : > { %11147 = vmatprep.mubr.f32.mxu0 %v35223_v15  ;;  %11039 = vmatmul.mubr.f32.gmra.mxu1 %v31114_v63  ;;  %v31295_v63 = vand.u32 4294901760, %v31283_v50  ;;  %v12126_v21 = vsel %vm1298_vm11, %v12124_v30, %v12122_v53 }
 0x3ad   : > { %11153 = vmatmul.mubr.f32.gmra.mxu0 %v11152_v42  ;;  %11233 = vmatprep.mubr.f32.mxu1 %v35223_v15  ;;  %v31309_v42 = vsub.f32 %v11598_v10, %v31290_v55 }
 0x3ae   : > { %11316 = vmatprep.mubr.f32.mxu0 %v35223_v15  ;;  %35442 = vst [vmem:[#allocation192_spill] sm:$0xff] %v31295_v63  ;;  %v11725_v17 = vsub.f32 %v31283_v50, %v31295_v63 }
 0x3af   : > { %35443 = vst [vmem:[#allocation193_spill] sm:$0xff] %v31309_v42  ;;  %v31322_v10 = vand.u32 4294901760, %v31309_v42 }
 0x3b0   : > { %11235 = vmatmul.mubr.f32.vlgmr.msra.gmra.mxu1 %v31195_v46 }
 0x3b1   : > { %11319 = vmatmul.mubr.f32.vlgmr.msra.gmra.mxu0 %v31208_v61  ;;  %11366 = vmatpush1.msra.mxu1 %v31200_v31  ;;  %35444 = vst [vmem:[#allocation194_spill] sm:$0xff] %v31322_v10  ;;  %v11731_v61 = vsub.f32 %v31309_v42, %v31322_v10 }
 0x3b2   : > { %11455 = vmatpush1.msra.mxu0 %v31232_v6  ;;  %11534 = vmatprep.subr.mxu1 %v31173_v32  ;;  %v31317_v6 = vsub.f32 %v11595_v3, %v31300_v19  ;;  %v31327_v32 = vand.u32 4294901760, %v11725_v17  ;;  %v11673_v3 = vsub.f32 %v31298_v52, %v35052_v41 }
 0x3b3   : > { %11634 = vmatprep.subr.mxu0 %v31267_v14  ;;  %11240 = vmatprep.mubr.f32.mxu1 %v35223_v15 }
 0x3b4   : > { %11324 = vmatprep.mubr.f32.mxu0 %v35223_v15  ;;  %11242 = vmatmul.mubr.f32.gmra.mxu1 %v31210_v2  ;;  %35446 = vst [vmem:[#allocation195_spill] sm:$0xff] %v31327_v32  ;;  %v35057_v1 = vand.u32 4294901760, %v31317_v6  ;;  %v11674_v17 = vand.u32 4294901760, %v11673_v3 }
 0x3b5   : > { %11327 = vmatmul.mubr.f32.gmra.mxu0 %v31227_v23  ;;  %11399 = vmatprep.mubr.f32.mxu1 %v35223_v15 }
 0x3b6   : > { %11488 = vmatprep.mubr.f32.mxu0 %v35223_v15  ;;  %v11684_v41 = vsub.f32 %v31317_v6, %v35057_v1  ;;  %v35455_v1 = vand.u32 4294901760, %v31298_v52 }
 0x3b8   : > { %11403 = vmatmul.mubr.f32.vlgmr.msra.gmra.mxu1 %v35445_v35  ;;  %v35447_v35 = vand.u32 4294901760, %v31227_v23  ;;  %v11685_v3 = vand.u32 4294901760, %v11684_v41 }
 0x3b9   : > { %11490 = vmatmul.mubr.f32.vlgmr.msra.gmra.mxu0 %v31195_v46  ;;  %11536 = vmatpush1.msra.mxu1 %v31200_v31  ;;  %v31355_v31 = vand.u32 4294901760, %v11731_v61  ;;  %v29022_v61 = vld [vmem:[%s34864_s2 + $0x78] sm:$0x1] }
 0x3ba   : > { %11636 = vmatpush1.msra.mxu0 %v31290_v55  ;;  %11727 = vmatprep.subr.mxu1 %v31327_v32  ;;  %v12140_v32 = vsel %vm9452_vm13, %v12126_v21, 0 }
 0x3bb   : > { %11813 = vmatprep.subr.mxu0 %v31283_v50  ;;  %11408 = vmatprep.mubr.f32.mxu1 %v35223_v15  ;;  %v29021_v50 = vld [vmem:[%s34864_s2 + $0x70] sm:$0xff]  ;;  %35448 = vst [vmem:[#allocation196_spill] sm:$0xff] %v31355_v31  ;;  %v31357_v23 = vand.u32 4294901760, %v12140_v32 }
 0x3bc   : > { %11495 = vmatprep.mubr.f32.mxu0 %v35223_v15  ;;  %11412 = vmatmul.mubr.f32.gmra.mxu1 %v35447_v35  ;;  %v12125_v35 = vsel %vm1298_vm11, %v12122_v53, %v12124_v30  ;;  %v12131_v21 = vsel %vm9445_vm12, %v29021_v50, 0  ;;  %v12134_v50 = vsel %vm9445_vm12, %v29022_v61, 0 }
 0x3bd   : > { %11497 = vmatmul.mubr.f32.gmra.mxu0 %v31210_v2  ;;  %11569 = vmatprep.mubr.f32.mxu1 %v35223_v15  ;;  %35449 = vst [vmem:[#allocation197_spill] sm:$0xff] %v31357_v23  ;;  %v31374_v53 = vsub.f32 %v12140_v32, %v31357_v23  ;;  %v31377_v30 = vand.u32 4294901760, %v12131_v21 }
 0x3be   : > { %11669 = vmatprep.mubr.f32.mxu0 %v35223_v15 }
 0x3bf   : > { %35450 = vst [vmem:[#allocation198_spill] sm:$0xff] %v31374_v53  ;;  %v31387_v32 = vand.u32 4294901760, %v31374_v53 }
 0x3c0   : > { %11571 = vmatmul.mubr.f32.vlgmr.msra.gmra.mxu1 %v31195_v46  ;;  %v12137_v46 = vsel %vm9452_vm13, %v12125_v35, 0 }
 0x3c1   : > { %11675 = vmatmul.mubr.f32.vlgmr.msra.gmra.mxu0 %v11674_v17  ;;  %11733 = vmatpush1.msra.mxu1 %v31355_v31  ;;  %v31382_v41 = vand.u32 4294901760, %v12137_v46  ;;  %35452 = vst [vmem:[#allocation200_spill] sm:$0xff] %v31387_v32  ;;  %v31392_v17 = vand.u32 4294901760, %v12134_v50  ;;  %v12264_v35 = vsub.f32 %v31374_v53, %v31387_v32  ;;  %v4869_v31 = vadd.f32 %v30610_v29, %v30593_v11 }
 0x3c2   : > { %11816 = vmatpush1.msra.mxu0 %v31309_v42  ;;  %11897 = vmatprep.subr.mxu1 %v31267_v14  ;;  %v4876_v11 = vadd.f32 %v30622_v56, %v30601_v22  ;;  %v29027_v22 = vld [vmem:[%s34864_s2 + $0x80] sm:$0xff] }
 0x3c3   : > { %11984 = vmatprep.subr.mxu0 %v31295_v63  ;;  %11576 = vmatprep.mubr.f32.mxu1 %v35223_v15  ;;  %35451 = vst [vmem:[#allocation199_spill] sm:$0xff] %v31382_v41  ;;  %v31409_v61 = vsub.f32 %v12134_v50, %v31392_v17 }
 0x3c4   : > { %11680 = vmatprep.mubr.f32.mxu0 %v35223_v15  ;;  %11578 = vmatmul.mubr.f32.gmra.mxu1 %v31210_v2  ;;  %v31390_v2 = vsub.f32 %v12131_v21, %v31377_v30 }
 0x3c5   : > { %11686 = vmatmul.mubr.f32.gmra.mxu0 %v11685_v3  ;;  %11766 = vmatprep.mubr.f32.mxu1 %v35223_v15  ;;  %v31399_v3 = vsub.f32 %v12137_v46, %v31382_v41  ;;  %v35063_v50 = vand.u32 4294901760, %v31409_v61 }
 0x3c6   : > { %11849 = vmatprep.mubr.f32.mxu0 %v35223_v15  ;;  %v35060_v21 = vand.u32 4294901760, %v31390_v2 }
 0x3c7   : > { %35453 = vst [vmem:[#allocation201_spill] sm:$0xff] %v31399_v3  ;;  %v31414_v46 = vand.u32 4294901760, %v31399_v3 }
 0x3c8   : > { %11768 = vmatmul.mubr.f32.vlgmr.msra.gmra.mxu1 %v31285_v40  ;;  %v12212_v63 = vsub.f32 %v31390_v2, %v35060_v21  ;;  %v12223_v21 = vsub.f32 %v31409_v61, %v35063_v50 }
 0x3c9   : > { %11852 = vmatmul.mubr.f32.vlgmr.msra.gmra.mxu0 %v31298_v52  ;;  %11899 = vmatpush1.msra.mxu1 %v31290_v55  ;;  %35454 = vst [vmem:[#allocation202_spill] sm:$0xff] %v31414_v46  ;;  %v35457_v52 = vand.u32 4294901760, %v31317_v6 }
 0x3ca   : > { %11988 = vmatpush1.msra.mxu0 %v31322_v10  ;;  %12067 = vmatprep.subr.mxu1 %v31267_v14  ;;  %v31419_v10 = vand.u32 4294901760, %v12264_v35  ;;  %v12213_v35 = vand.u32 4294901760, %v12212_v63  ;;  %v35637_v14 = vld [vmem:[#allocation64_spill] sm:$0xff] }
 0x3cb   : > { %12173 = vmatprep.subr.mxu0 %v31357_v23  ;;  %11773 = vmatprep.mubr.f32.mxu1 %v35223_v15 }
 0x3cc   : > { %11857 = vmatprep.mubr.f32.mxu0 %v35223_v15  ;;  %11775 = vmatmul.mubr.f32.gmra.mxu1 %v31300_v19  ;;  %35456 = vst [vmem:[#allocation203_spill] sm:$0xff] %v31419_v10 }
 0x3cd   : > { %11860 = vmatmul.mubr.f32.gmra.mxu0 %v31317_v6  ;;  %11932 = vmatprep.mubr.f32.mxu1 %v35223_v15  ;;  %v12224_v6 = vand.u32 4294901760, %v12223_v21 }
 0x3ce   : > { %12021 = vmatprep.mubr.f32.mxu0 %v35223_v15 }
 0x3d0   : > { %11936 = vmatmul.mubr.f32.vlgmr.msra.gmra.mxu1 %v35455_v1  ;;  %v12270_v1 = vsub.f32 %v31399_v3, %v31414_v46 }
 0x3d1   : > { %12023 = vmatmul.mubr.f32.vlgmr.msra.gmra.mxu0 %v31285_v40  ;;  %12069 = vmatpush1.msra.mxu1 %v31290_v55 }
 0x3d2   : > { %12175 = vmatpush1.msra.mxu0 %v31382_v41  ;;  %12266 = vmatprep.subr.mxu1 %v31419_v10  ;;  %v31444_v10 = vand.u32 4294901760, %v12270_v1 }
 0x3d3   : > { %12352 = vmatprep.subr.mxu0 %v31374_v53  ;;  %11941 = vmatprep.mubr.f32.mxu1 %v35223_v15  ;;  %v29023_v53 = vld [vmem:[%s34864_s2 + $0x20] sm:$0xff] }
 0x3d4   : > { %12028 = vmatprep.mubr.f32.mxu0 %v35223_v15  ;;  %11945 = vmatmul.mubr.f32.gmra.mxu1 %v35457_v52  ;;  %35458 = vst [vmem:[#allocation204_spill] sm:$0xff] %v31444_v10  ;;  %v12684_v63 = vsel %vm9445_vm12, %v29023_v53, 0  ;;  %v29024_v52 = vld [vmem:[%s34864_s2 + $0x28] sm:$0x1] }
 0x3d5   : > { %12030 = vmatmul.mubr.f32.gmra.mxu0 %v31300_v19  ;;  %12102 = vmatprep.mubr.f32.mxu1 %v35223_v15  ;;  %v12687_v53 = vsel %vm9445_vm12, %v29024_v52, 0 }
 0x3d6   : > { %12208 = vmatprep.mubr.f32.mxu0 %v35223_v15  ;;  %v31474_v52 = vand.u32 4294901760, %v12687_v53 }
 0x3d8   : > { %12104 = vmatmul.mubr.f32.vlgmr.msra.gmra.mxu1 %v31285_v40  ;;  %v31458_v40 = vand.u32 4294901760, %v12684_v63 }
 0x3d9   : > { %12214 = vmatmul.mubr.f32.vlgmr.msra.gmra.mxu0 %v12213_v35  ;;  %12272 = vmatpush1.msra.mxu1 %v31444_v10 }
 0x3da   : > { %12355 = vmatpush1.msra.mxu0 %v31399_v3  ;;  %12436 = vmatprep.subr.mxu1 %v31357_v23 }
 0x3db   : > { %12523 = vmatprep.subr.mxu0 %v31387_v32  ;;  %12109 = vmatprep.mubr.f32.mxu1 %v35223_v15 }
 0x3dc   : > { %12219 = vmatprep.mubr.f32.mxu0 %v35223_v15  ;;  %12111 = vmatmul.mubr.f32.gmra.mxu1 %v31300_v19 }
 0x3dd   : > { %12225 = vmatmul.mubr.f32.gmra.mxu0 %v12224_v6  ;;  %12305 = vmatprep.mubr.f32.mxu1 %v35223_v15  ;;  %v31472_v6 = vsub.f32 %v12684_v63, %v31458_v40 }
 0x3de   : > { %12388 = vmatprep.mubr.f32.mxu0 %v35223_v15  ;;  %v12677_v1 = vpop.permute.xlu1 %12676 }
 0x3df   : > { %v12675_v21 = vpop.permute.xlu0 %12674 }
 0x3e0   : > { %v12678_v35 = vsel %vm338_vm6, %v12675_v21, %v12677_v1  ;;  %v12679_v50 = vsel %vm338_vm6, %v12677_v1, %v12675_v21  ;;  %12307 = vmatmul.mubr.f32.vlgmr.msra.gmra.mxu1 %v31377_v30  ;;  %v35071_v21 = vand.u32 4294901760, %v31472_v6  ;;  %v31496_v1 = vsub.f32 %v12687_v53, %v31474_v52 }
 0x3e1   : > { %v12690_v32 = vsel %vm9452_vm13, %v12679_v50, 0  ;;  %v12693_v19 = vsel %vm9452_vm13, %v12678_v35, 0  ;;  %12391 = vmatmul.mubr.f32.vlgmr.msra.gmra.mxu0 %v31390_v2  ;;  %12438 = vmatpush1.msra.mxu1 %v31382_v41 }
 0x3e2   : > { %v31476_v3 = vand.u32 4294901760, %v12693_v19  ;;  %v31478_v10 = vand.u32 4294901760, %v12690_v32  ;;  %12527 = vmatpush1.msra.mxu0 %v31414_v46  ;;  %12606 = vmatprep.subr.mxu1 %v31357_v23  ;;  %v35465_v46 = vand.u32 4294901760, %v31390_v2  ;;  %v12765_v53 = vsub.f32 %v31472_v6, %v35071_v21 }
 0x3e3   : > { %12312 = vmatprep.mubr.f32.mxu1 %v35223_v15  ;;  %12396 = vmatprep.mubr.f32.mxu0 %v35223_v15  ;;  %v35074_v23 = vand.u32 4294901760, %v31496_v1  ;;  %v35477_v29 = vand.u32 4294901760, %v31496_v1 }
 0x3e4   : > { %35459 = vst [vmem:[#allocation205_spill] sm:$0xff] %v31476_v3  ;;  %35460 = vst [vmem:[#allocation206_spill] sm:$0xff] %v31478_v10  ;;  %v31485_v50 = vsub.f32 %v12693_v19, %v31476_v3  ;;  %v31488_v63 = vsub.f32 %v12690_v32, %v31478_v10  ;;  %12726 = vmatprep.subr.mxu0 %v31476_v3  ;;  %12314 = vmatmul.mubr.f32.gmra.mxu1 %v31392_v17  ;;  %v12766_v21 = vand.u32 4294901760, %v12765_v53 }
 0x3e5   : > { %12399 = vmatmul.mubr.f32.gmra.mxu0 %v31409_v61  ;;  %12471 = vmatprep.mubr.f32.mxu1 %v35223_v15 }
 0x3e6   : > { %35461 = vst [vmem:[#allocation207_spill] sm:$0xff] %v31485_v50  ;;  %35462 = vst [vmem:[#allocation208_spill] sm:$0xff] %v31488_v63  ;;  %12560 = vmatprep.mubr.f32.mxu0 %v35223_v15  ;;  %v31501_v32 = vand.u32 4294901760, %v31485_v50  ;;  %v31504_v35 = vand.u32 4294901760, %v31488_v63 }
 0x3e8   : > { %35463 = vst [vmem:[#allocation209_spill] sm:$0xff] %v31501_v32  ;;  %35464 = vst [vmem:[#allocation210_spill] sm:$0xff] %v31504_v35  ;;  %v12817_v19 = vsub.f32 %v31485_v50, %v31501_v32  ;;  %12475 = vmatmul.mubr.f32.vlgmr.msra.gmra.mxu1 %v35465_v46  ;;  %v12823_v2 = vsub.f32 %v31488_v63, %v31504_v35  ;;  %v35467_v46 = vand.u32 4294901760, %v31409_v61 }
 0x3e9   : > { %12562 = vmatmul.mubr.f32.vlgmr.msra.gmra.mxu0 %v31377_v30  ;;  %12608 = vmatpush1.msra.mxu1 %v31382_v41 }
 0x3ea   : > { %12728 = vmatpush1.msra.mxu0 %v31478_v10  ;;  %v31517_v42 = vand.u32 4294901760, %v12817_v19  ;;  %12480 = vmatprep.mubr.f32.mxu1 %v35223_v15  ;;  %v12776_v19 = vsub.f32 %v31496_v1, %v35074_v23  ;;  %v31538_v61 = vand.u32 4294901760, %v12823_v2  ;;  %v29026_v2 = vld [vmem:[%s34864_s2 + $0x58] sm:$0x1] }
 0x3eb   : > { %12905 = vmatprep.subr.mxu0 %v31485_v50  ;;  %12567 = vmatprep.mubr.f32.mxu0 %v35223_v15  ;;  %v13226_v50 = vsel %vm9452_vm13, %v31010_v60, 0 }
 0x3ec   : > { %35466 = vst [vmem:[#allocation211_spill] sm:$0xff] %v31517_v42  ;;  %12819 = vmatprep.subr.mxu1 %v31517_v42  ;;  %12484 = vmatmul.mubr.f32.gmra.mxu1 %v35467_v46  ;;  %v29025_v42 = vld [vmem:[%s34864_s2 + $0x50] sm:$0xff]  ;;  %35468 = vst [vmem:[#allocation212_spill] sm:$0xff] %v31538_v61  ;;  %v31540_v46 = vand.u32 4294901760, %v13226_v50  ;;  %v12777_v53 = vand.u32 4294901760, %v12776_v19  ;;  %v13220_v19 = vsel %vm9445_vm12, %v29026_v2, 0 }
 0x3ed   : > { %12569 = vmatmul.mubr.f32.gmra.mxu0 %v31392_v17  ;;  %12641 = vmatprep.mubr.f32.mxu1 %v35223_v15  ;;  %v13217_v60 = vsel %vm9445_vm12, %v29025_v42, 0 }
 0x3ee   : > { %12761 = vmatprep.mubr.f32.mxu0 %v35223_v15  ;;  %35469 = vst [vmem:[#allocation213_spill] sm:$0xff] %v31540_v46  ;;  %v31559_v42 = vand.u32 4294901760, %v13217_v60 }
 0x3f0   : > { %12643 = vmatmul.mubr.f32.vlgmr.msra.gmra.mxu1 %v31377_v30  ;;  %v31554_v30 = vsub.f32 %v13226_v50, %v31540_v46 }
 0x3f1   : > { %12767 = vmatmul.mubr.f32.vlgmr.msra.gmra.mxu0 %v12766_v21  ;;  %12825 = vmatpush1.msra.mxu1 %v31538_v61  ;;  %v13223_v21 = vsel %vm9452_vm13, %v31014_v57, 0  ;;  %v31572_v57 = vsub.f32 %v13217_v60, %v31559_v42  ;;  %v35475_v61 = vand.u32 4294901760, %v31472_v6 }
 0x3f2   : > { %12908 = vmatpush1.msra.mxu0 %v31488_v63  ;;  %12989 = vmatprep.subr.mxu1 %v31476_v3  ;;  %35470 = vst [vmem:[#allocation214_spill] sm:$0xff] %v31554_v30  ;;  %v31564_v23 = vand.u32 4294901760, %v13223_v21  ;;  %v31569_v50 = vand.u32 4294901760, %v31554_v30 }
 0x3f3   : > { %13076 = vmatprep.subr.mxu0 %v31501_v32  ;;  %12648 = vmatprep.mubr.f32.mxu1 %v35223_v15  ;;  %v35084_v2 = vand.u32 4294901760, %v31572_v57  ;;  %v13749_v32 = vpop.permute.xlu1 %13748 }
 0x3f4   : > { %12772 = vmatprep.mubr.f32.mxu0 %v35223_v15  ;;  %12650 = vmatmul.mubr.f32.gmra.mxu1 %v31392_v17  ;;  %35471 = vst [vmem:[#allocation215_spill] sm:$0xff] %v31564_v23  ;;  %35472 = vst [vmem:[#allocation216_spill] sm:$0xff] %v31569_v50  ;;  %v31574_v17 = vand.u32 4294901760, %v13220_v19  ;;  %v13350_v60 = vsub.f32 %v31554_v30, %v31569_v50 }
 0x3f5   : > { %12778 = vmatmul.mubr.f32.gmra.mxu0 %v12777_v53  ;;  %12858 = vmatprep.mubr.f32.mxu1 %v35223_v15  ;;  %v31581_v53 = vsub.f32 %v13223_v21, %v31564_v23  ;;  %v13747_v21 = vpop.permute.xlu0 %13746 }
 0x3f6   : > { %12941 = vmatprep.mubr.f32.mxu0 %v35223_v15 }
 0x3f7   : > { %35473 = vst [vmem:[#allocation217_spill] sm:$0xff] %v31581_v53  ;;  %v31596_v63 = vand.u32 4294901760, %v31581_v53 }
 0x3f8   : > { %12860 = vmatmul.mubr.f32.vlgmr.msra.gmra.mxu1 %v31458_v40 }
 0x3f9   : > { %12944 = vmatmul.mubr.f32.vlgmr.msra.gmra.mxu0 %v31472_v6  ;;  %12991 = vmatpush1.msra.mxu1 %v31478_v10  ;;  %35474 = vst [vmem:[#allocation218_spill] sm:$0xff] %v31596_v63  ;;  %v13751_v6 = vsel %vm1298_vm11, %v13749_v32, %v13747_v21 }
 0x3fa   : > { %13080 = vmatpush1.msra.mxu0 %v31504_v35  ;;  %13159 = vmatprep.subr.mxu1 %v31476_v3  ;;  %v31591_v35 = vsub.f32 %v13220_v19, %v31574_v17  ;;  %v31601_v3 = vand.u32 4294901760, %v13350_v60  ;;  %v13298_v19 = vsub.f32 %v31572_v57, %v35084_v2 }
 0x3fb   : > { %13259 = vmatprep.subr.mxu0 %v31540_v46  ;;  %12865 = vmatprep.mubr.f32.mxu1 %v35223_v15 }
 0x3fc   : > { %12949 = vmatprep.mubr.f32.mxu0 %v35223_v15  ;;  %12867 = vmatmul.mubr.f32.gmra.mxu1 %v31474_v52  ;;  %35476 = vst [vmem:[#allocation219_spill] sm:$0xff] %v31601_v3  ;;  %v13308_v41 = vand.u32 4294901760, %v31591_v35  ;;  %v13299_v60 = vand.u32 4294901760, %v13298_v19 }
 0x3fd   : > { %12952 = vmatmul.mubr.f32.gmra.mxu0 %v31496_v1  ;;  %13024 = vmatprep.mubr.f32.mxu1 %v35223_v15  ;;  %v4961_v1 = vadd.f32 %v30627_v43, %v4876_v11  ;;  %v29028_v43 = vld [vmem:[%s34864_s2 + $0x88] sm:$0x1] }
 0x3fe   : > { %13113 = vmatprep.mubr.f32.mxu0 %v35223_v15  ;;  %v13309_v2 = vsub.f32 %v31591_v35, %v13308_v41 }
 0x400   : > { %13028 = vmatmul.mubr.f32.vlgmr.msra.gmra.mxu1 %v35475_v61  ;;  %v13356_v61 = vsub.f32 %v31581_v53, %v31596_v63 }
 0x401   : > { %13115 = vmatmul.mubr.f32.vlgmr.msra.gmra.mxu0 %v31458_v40  ;;  %13161 = vmatpush1.msra.mxu1 %v31478_v10 }
 0x402   : > { %13261 = vmatpush1.msra.mxu0 %v31564_v23  ;;  %13352 = vmatprep.subr.mxu1 %v31601_v3  ;;  %v13765_v3 = vsel %vm9452_vm13, %v13751_v6, 0  ;;  %v31634_v56 = vand.u32 4294901760, %v13356_v61  ;;  %v13750_v6 = vsel %vm1298_vm11, %v13747_v21, %v13749_v32  ;;  %v13756_v61 = vsel %vm9445_vm12, %v29027_v22, 0 }
 0x403   : > { %13438 = vmatprep.subr.mxu0 %v31554_v30  ;;  %13033 = vmatprep.mubr.f32.mxu1 %v35223_v15  ;;  %v4953_v30 = vadd.f32 %v30615_v12, %v4869_v31  ;;  %v31637_v19 = vand.u32 4294901760, %v13765_v3  ;;  %v13310_v12 = vand.u32 4294901760, %v13309_v2  ;;  %v13759_v21 = vsel %vm9445_vm12, %v29028_v43, 0 }
 0x404   : > { %13120 = vmatprep.mubr.f32.mxu0 %v35223_v15  ;;  %13037 = vmatmul.mubr.f32.gmra.mxu1 %v35477_v29  ;;  %35478 = vst [vmem:[#allocation220_spill] sm:$0xff] %v31634_v56 }
 0x405   : > { %13122 = vmatmul.mubr.f32.gmra.mxu0 %v31474_v52  ;;  %13194 = vmatprep.mubr.f32.mxu1 %v35223_v15  ;;  %35479 = vst [vmem:[#allocation221_spill] sm:$0xff] %v31637_v19  ;;  %v5037_v31 = vadd.f32 %v30636_v4, %v4953_v30  ;;  %v5046_v4 = vadd.f32 %v30645_v34, %v4961_v1  ;;  %v31659_v30 = vand.u32 4294901760, %v13756_v61 }
 0x406   : > { %13294 = vmatprep.mubr.f32.mxu0 %v35223_v15  ;;  %v31656_v32 = vsub.f32 %v13765_v3, %v31637_v19 }
 0x407   : > { %v5124_v2 = vadd.f32 %v30639_v47, %v5037_v31  ;;  %v5131_v34 = vadd.f32 %v30648_v38, %v5046_v4  ;;  %v31676_v47 = vand.u32 4294901760, %v13759_v21 }
 0x408   : > { %13196 = vmatmul.mubr.f32.vlgmr.msra.gmra.mxu1 %v31458_v40  ;;  %v13762_v40 = vsel %vm9452_vm13, %v13750_v6, 0  ;;  %35480 = vst [vmem:[#allocation222_spill] sm:$0xff] %v31656_v32  ;;  %v31671_v3 = vand.u32 4294901760, %v31656_v32  ;;  %v35485_v6 = vand.u32 4294901760, %v31572_v57 }
 0x409   : > { %13300 = vmatmul.mubr.f32.vlgmr.msra.gmra.mxu0 %v13299_v60  ;;  %13358 = vmatpush1.msra.mxu1 %v31634_v56  ;;  %v31665_v11 = vand.u32 4294901760, %v13762_v40  ;;  %v5205_v29 = vadd.f32 %v30653_v58, %v5124_v2  ;;  %v5212_v60 = vadd.f32 %v30659_v51, %v5131_v34  ;;  %v31695_v1 = vsub.f32 %v13759_v21, %v31676_v47 }
 0x40a   : > { %13441 = vmatpush1.msra.mxu0 %v31581_v53  ;;  %13522 = vmatprep.subr.mxu1 %v31540_v46  ;;  %35482 = vst [vmem:[#allocation224_spill] sm:$0xff] %v31671_v3  ;;  %v13889_v58 = vsub.f32 %v31656_v32, %v31671_v3  ;;  %v5919_v21 = vadd.f32 %v30691_v24, %v30685_v37 }
 0x40b   : > { %13609 = vmatprep.subr.mxu0 %v31569_v50  ;;  %13201 = vmatprep.mubr.f32.mxu1 %v35223_v15  ;;  %35481 = vst [vmem:[#allocation223_spill] sm:$0xff] %v31665_v11  ;;  %v31684_v38 = vsub.f32 %v13762_v40, %v31665_v11  ;;  %v5307_v31 = vadd.f32 %v30661_v7, %v5212_v60  ;;  %v35087_v43 = vand.u32 4294901760, %v31695_v1  ;;  %v35575_v50 = vld [vmem:[#allocation152_spill] sm:$0xff] }
 0x40c   : > { %13305 = vmatprep.mubr.f32.mxu0 %v35223_v15  ;;  %13203 = vmatmul.mubr.f32.gmra.mxu1 %v31474_v52  ;;  %v31674_v52 = vsub.f32 %v13756_v61, %v31659_v30  ;;  %v31707_v61 = vand.u32 4294901760, %v13889_v58  ;;  %v5912_v40 = vadd.f32 %v30687_v27, %v30681_v62  ;;  %v6004_v60 = vadd.f32 %v30693_v54, %v5919_v21  ;;  %v35494_v21 = vld [vmem:[#allocation96_spill] sm:$0xff] }
 0x40d   : > { %13311 = vmatmul.mubr.f32.gmra.mxu0 %v13310_v12  ;;  %13391 = vmatprep.mubr.f32.mxu1 %v35223_v15  ;;  %35483 = vst [vmem:[#allocation225_spill] sm:$0xff] %v31684_v38  ;;  %v5296_v12 = vadd.f32 %v30655_v39, %v5205_v29  ;;  %v31701_v51 = vand.u32 4294901760, %v31684_v38  ;;  %v13848_v27 = vsub.f32 %v31695_v1, %v35087_v43 }
 0x40e   : > { %13474 = vmatprep.mubr.f32.mxu0 %v35223_v15  ;;  %v35088_v22 = vand.u32 4294901760, %v31674_v52  ;;  %35486 = vst [vmem:[#allocation227_spill] sm:$0xff] %v31707_v61  ;;  %v5996_v34 = vadd.f32 %v30689_v8, %v5912_v40  ;;  %v6446_v54 = vadd.f32 %v30715_v44, %v30709_v33  ;;  %v35491_v40 = vld [vmem:[#allocation86_spill] sm:$0xff]  ;;  %v35492_v33 = vld [vmem:[#allocation57_spill] sm:$0xff] }
 0x40f   : > { %35484 = vst [vmem:[#allocation226_spill] sm:$0xff] %v31701_v51  ;;  %v5389_v4 = vadd.f32 %v30663_v13, %v5296_v12  ;;  %v13895_v7 = vsub.f32 %v31684_v38, %v31701_v51  ;;  %v5396_v13 = vadd.f32 %v30667_v28, %v5307_v31  ;;  %v13849_v37 = vand.u32 4294901760, %v13848_v27  ;;  %v35489_v31 = vld [vmem:[#allocation84_spill] sm:$0xff]  ;;  %v35493_v27 = vld [vmem:[#allocation58_spill] sm:$0xff] }
 0x410   : > { %13393 = vmatmul.mubr.f32.vlgmr.msra.gmra.mxu1 %v31559_v42  ;;  %v13837_v39 = vsub.f32 %v31674_v52, %v35088_v22  ;;  %v6080_v24 = vadd.f32 %v30695_v9, %v5996_v34  ;;  %v35488_v9 = vld [vmem:[#allocation88_spill] sm:$0xff]  ;;  %v35495_v34 = vld [vmem:[#allocation99_spill] sm:$0xff] }
 0x411   : > { %13477 = vmatmul.mubr.f32.vlgmr.msra.gmra.mxu0 %v31572_v57  ;;  %13524 = vmatpush1.msra.mxu1 %v31564_v23  ;;  %v31725_v57 = vpop.f32.mrf.mxu0  ;;  %v5473_v2 = vadd.f32 %v30665_v20, %v5389_v4  ;;  %v5481_v29 = vadd.f32 %v30669_v36, %v5396_v13  ;;  %v6439_v36 = vadd.f32 %v30711_v45, %v30705_v5  ;;  %v31770_v13 = vpop.f32.mrf.mxu1 }
 0x412   : > { %13613 = vmatpush1.msra.mxu0 %v31596_v63  ;;  %13692 = vmatprep.subr.mxu1 %v31540_v46  ;;  %v13838_v62 = vand.u32 4294901760, %v13837_v39  ;;  %v35490_v39 = vld [vmem:[#allocation89_spill] sm:$0xff] }
 0x413   : > { %13798 = vmatprep.subr.mxu0 %v31637_v19  ;;  %13398 = vmatprep.mubr.f32.mxu1 %v35223_v15  ;;  %v5557_v8 = vadd.f32 %v30671_v16, %v5473_v2  ;;  %v29030_v16 = vld [vmem:[%s34865_s3 + $0x38] sm:$0xf]  ;;  %v5566_v12 = vadd.f32 %v35488_v9, %v5481_v29  ;;  %v6089_v4 = vadd.f32 %v35490_v39, %v6004_v60  ;;  %v35496_v29 = vld [vmem:[#allocation98_spill] sm:$0xff]  ;;  %v35498_v60 = vld [vmem:[#allocation83_spill] sm:$0xff] }
 0x414   : > { %13482 = vmatprep.mubr.f32.mxu0 %v35223_v15  ;;  %13400 = vmatmul.mubr.f32.gmra.mxu1 %v31574_v17  ;;  %v14294_v44 = vsel %vm344_vm0, %v29030_v16, 0  ;;  %v6531_v2 = vadd.f32 %v35493_v27, %v6446_v54  ;;  %v35499_v54 = vld [vmem:[#allocation85_spill] sm:$0xff] }
 0x415   : > { %13485 = vmatmul.mubr.f32.gmra.mxu0 %v31591_v35  ;;  %13557 = vmatprep.mubr.f32.mxu1 %v35223_v15  ;;  %v31742_v35 = vand.u32 4294901760, %v13895_v7  ;;  %v6167_v7 = vadd.f32 %v35491_v40, %v6080_v24  ;;  %v5651_v9 = vadd.f32 %v35498_v60, %v5566_v12  ;;  %v31787_v39 = vand.u32 4294901760, %v14294_v44  ;;  %v35502_v12 = vld [vmem:[#allocation91_spill] sm:$0xff]  ;;  %v35504_v60 = vld [vmem:[#allocation93_spill] sm:$0xff] }
 0x416   : > { %13646 = vmatprep.mubr.f32.mxu0 %v35223_v15  ;;  %v6616_v43 = vadd.f32 %v35504_v60, %v6531_v2  ;;  %v35507_v2 = vld [vmem:[#allocation87_spill] sm:$0xff] }
 0x417   : > { %35487 = vst [vmem:[#allocation228_spill] sm:$0xff] %v31742_v35 }
 0x418   : > { %13561 = vmatmul.mubr.f32.vlgmr.msra.gmra.mxu1 %v35485_v6  ;;  %v5644_v6 = vadd.f32 %v35489_v31, %v5557_v8 }
 0x419   : > { %13648 = vmatmul.mubr.f32.vlgmr.msra.gmra.mxu0 %v31559_v42  ;;  %13694 = vmatpush1.msra.mxu1 %v31564_v23 }
 0x41a   : > { %13800 = vmatpush1.msra.mxu0 %v31665_v11  ;;  %13891 = vmatprep.subr.mxu1 %v31707_v61  ;;  %v5725_v40 = vadd.f32 %v35499_v54, %v5644_v6  ;;  %v35505_v6 = vld [vmem:[#allocation100_spill] sm:$0xff] }
 0x41b   : > { %13977 = vmatprep.subr.mxu0 %v31656_v32  ;;  %13566 = vmatprep.mubr.f32.mxu1 %v35223_v15  ;;  %v35538_v32 = vld [vmem:[#allocation107_spill] sm:$0xff] }
 0x41c   : > { %13653 = vmatprep.mubr.f32.mxu0 %v35223_v15  ;;  %13570 = vmatmul.mubr.f32.gmra.mxu1 %v13308_v41  ;;  %v29029_v41 = vld [vmem:[%s34865_s3 + $0x30] sm:$0xff] }
 0x41d   : > { %13655 = vmatmul.mubr.f32.gmra.mxu0 %v31574_v17  ;;  %13727 = vmatprep.mubr.f32.mxu1 %v35223_v15  ;;  %v14291_v58 = vsel %vm344_vm0, %v29029_v41, 0  ;;  %v6966_v41 = vadd.f32 %v35495_v34, %v35494_v21  ;;  %v35501_v21 = vld [vmem:[#allocation90_spill] sm:$0xff] }
 0x41e   : > { %13833 = vmatprep.mubr.f32.mxu0 %v35223_v15  ;;  %v31765_v5 = vand.u32 4294901760, %v14291_v58  ;;  %v6174_v34 = vadd.f32 %v35501_v21, %v6089_v4 }
 0x41f   : > { %v9532_v28 = vpop.f32.mrf.mxu0  ;;  %v7050_v54 = vadd.f32 %v35505_v6, %v6966_v41  ;;  %v5732_v41 = vadd.f32 %v35507_v2, %v5651_v9  ;;  %v35514_v2 = vld [vmem:[#allocation105_spill] sm:$0xff] }
 0x420   : > { %13729 = vmatmul.mubr.f32.vlgmr.msra.gmra.mxu1 %v31559_v42 }
 0x421   : > { %13839 = vmatmul.mubr.f32.vlgmr.msra.gmra.mxu0 %v13838_v62  ;;  %v9534_v20 = vpop.f32.mrf.mxu0  ;;  %13897 = vmatpush1.msra.mxu1 %v31742_v35  ;;  %v35515_v35 = vand.u32 4294901760, %v31674_v52 }
 0x422   : > { %13980 = vmatpush1.msra.mxu0 %v31684_v38  ;;  %14061 = vmatprep.subr.mxu1 %v31637_v19 }
 0x423   : > { %14148 = vmatprep.subr.mxu0 %v31671_v3  ;;  %v9543_v42 = vpop.f32.mrf.mxu0  ;;  %13734 = vmatprep.mubr.f32.mxu1 %v35223_v15  ;;  %v35513_v3 = vld [vmem:[#allocation103_spill] sm:$0xff] }
 0x424   : > { %13844 = vmatprep.mubr.f32.mxu0 %v35223_v15  ;;  %13736 = vmatmul.mubr.f32.gmra.mxu1 %v31574_v17  ;;  %v6523_v17 = vadd.f32 %v35492_v33, %v6439_v36  ;;  %v31785_v36 = vsub.f32 %v14291_v58, %v31765_v5  ;;  %v35500_v33 = vld [vmem:[#allocation56_spill] sm:$0xff]  ;;  %v7134_v9 = vadd.f32 %v35513_v3, %v7050_v54  ;;  %v35518_v3 = vld [vmem:[#allocation113_spill] sm:$0xff] }
 0x425   : > { %13850 = vmatmul.mubr.f32.gmra.mxu0 %v13849_v37  ;;  %v9545_v45 = vpop.f32.mrf.mxu0  ;;  %13930 = vmatprep.mubr.f32.mxu1 %v35223_v15  ;;  %v35497_v37 = vld [vmem:[#allocation101_spill] sm:$0xff]  ;;  %v6248_v27 = vadd.f32 %v35500_v33, %v6167_v7  ;;  %v35506_v7 = vld [vmem:[#allocation102_spill] sm:$0xff]  ;;  %v35519_v54 = vld [vmem:[#allocation112_spill] sm:$0xff] }
 0x426   : > { %14013 = vmatprep.mubr.f32.mxu0 %v35223_v15  ;;  %v6973_v8 = vadd.f32 %v35497_v37, %v35496_v29  ;;  %v6607_v29 = vadd.f32 %v35502_v12, %v6523_v17  ;;  %v35503_v37 = vld [vmem:[#allocation5_spill] sm:$0xff]  ;;  %v35510_v12 = vld [vmem:[#allocation111_spill] sm:$0xff] }
 0x427   : > { %v9709_v62 = vpop.f32.mrf.mxu0  ;;  %v9625_v24 = vpop.f32.mrf.mxu1 }
 0x428   : > { %v9626_v31 = vadd.f32 %v9625_v24, %v9532_v28  ;;  %13932 = vmatmul.mubr.f32.vlgmr.msra.gmra.mxu1 %v31659_v30  ;;  %v7058_v33 = vadd.f32 %v35506_v7, %v6973_v8  ;;  %v35508_v8 = vld [vmem:[#allocation55_spill] sm:$0xff] }
 0x429   : > { %14016 = vmatmul.mubr.f32.vlgmr.msra.gmra.mxu0 %v31674_v52  ;;  %v9711_v16 = vpop.f32.mrf.mxu0  ;;  %14063 = vmatpush1.msra.mxu1 %v31665_v11  ;;  %v9627_v28 = vpop.f32.mrf.mxu1 }
 0x42a   : > { %14152 = vmatpush1.msra.mxu0 %v31701_v51  ;;  %14231 = vmatprep.subr.mxu1 %v31637_v19  ;;  %v9628_v58 = vadd.f32 %v9627_v28, %v9534_v20  ;;  %v9710_v24 = vadd.f32 %v9709_v62, %v9626_v31  ;;  %v31806_v62 = vsub.f32 %v14294_v44, %v31787_v39  ;;  %v35509_v28 = vld [vmem:[#allocation108_spill] sm:$0xff]  ;;  %v35512_v44 = vld [vmem:[#allocation94_spill] sm:$0xff] }
 0x42b   : > { %14327 = vmatprep.subr.mxu0 %v35503_v37  ;;  %13937 = vmatprep.mubr.f32.mxu1 %v35223_v15  ;;  %v9632_v4 = vpop.f32.mrf.mxu1  ;;  %v6255_v31 = vadd.f32 %v35508_v8, %v6174_v34  ;;  %v7493_v60 = vadd.f32 %v35510_v12, %v35509_v28  ;;  %v6701_v51 = vadd.f32 %v35512_v44, %v6616_v43 }
 0x42c   : > { %14021 = vmatprep.mubr.f32.mxu0 %v35223_v15  ;;  %v9717_v21 = vpop.f32.mrf.mxu0  ;;  %v9633_v22 = vadd.f32 %v9632_v4, %v9543_v42  ;;  %v9712_v17 = vadd.f32 %v9711_v16, %v9628_v58  ;;  %13939 = vmatmul.mubr.f32.gmra.mxu1 %v31676_v47  ;;  %v6258_v16 = vadd.f32 %v6248_v27, %v5725_v40  ;;  %v35511_v4 = vld [vmem:[#allocation92_spill] sm:$0xff]  ;;  %v35517_v27 = vld [vmem:[#allocation110_spill] sm:$0xff] }
 0x42d   : > { %14024 = vmatmul.mubr.f32.gmra.mxu0 %v31695_v1  ;;  %v9634_v6 = vpop.f32.mrf.mxu1  ;;  %14096 = vmatprep.mubr.f32.mxu1 %v35223_v15  ;;  %v6694_v20 = vadd.f32 %v35511_v4, %v6607_v29  ;;  %v7143_v34 = vadd.f32 %v35514_v2, %v7058_v33  ;;  %v6260_v43 = vadd.f32 %v6255_v31, %v5732_v41  ;;  %v35524_v4 = vld [vmem:[#allocation7_spill] sm:$0xff] }
 0x42e   : > { %14185 = vmatprep.mubr.f32.mxu0 %v35223_v15  ;;  %v9719_v42 = vpop.f32.mrf.mxu0  ;;  %v9635_v58 = vadd.f32 %v9634_v6, %v9545_v45  ;;  %v9718_v7 = vadd.f32 %v9717_v21, %v9633_v22  ;;  %v35516_v45 = vand.u32 4294901760, %v31785_v36  ;;  %v7500_v29 = vadd.f32 %v35518_v3, %v35517_v27  ;;  %v35521_v21 = vld [vmem:[#allocation120_spill] sm:$0xff]  ;;  %v35522_v6 = vld [vmem:[#allocation123_spill] sm:$0xff]  ;;  %v35528_v3 = vld [vmem:[#allocation106_spill] sm:$0xff] }
 0x42f   : > { %v9793_v8 = vpop.f32.mrf.mxu1  ;;  %v7577_v33 = vadd.f32 %v35519_v54, %v7493_v60  ;;  %v35525_v31 = vld [vmem:[#allocation95_spill] sm:$0xff]  ;;  %v35527_v60 = vld [vmem:[#allocation104_spill] sm:$0xff]  ;;  %v7228_v54 = vadd.f32 %v35528_v3, %v7143_v34  ;;  %v35532_v34 = vld [vmem:[#allocation114_spill] sm:$0xff] }
 0x430   : > { %v9880_v38 = vpop.f32.mrf.mxu0  ;;  %v9720_v28 = vadd.f32 %v9719_v42, %v9635_v58  ;;  %v9794_v12 = vadd.f32 %v9793_v8, %v9710_v24  ;;  %14100 = vmatmul.mubr.f32.vlgmr.msra.gmra.mxu1 %v35515_v35  ;;  %v14366_v22 = vsub.f32 %v31785_v36, %v35516_v45  ;;  %v35520_v24 = vld [vmem:[#allocation6_spill] sm:$0xff]  ;;  %v8020_v42 = vadd.f32 %v35522_v6, %v35521_v21  ;;  %v35523_v58 = vld [vmem:[#allocation11_spill] sm:$0xff]  ;;  %v35526_v8 = vld [vmem:[#allocation97_spill] sm:$0xff] }
 0x431   : > { %14187 = vmatmul.mubr.f32.vlgmr.msra.gmra.mxu0 %v31659_v30  ;;  %14233 = vmatpush1.msra.mxu1 %v31665_v11  ;;  %v9795_v52 = vpop.f32.mrf.mxu1  ;;  %v6775_v2 = vadd.f32 %v35525_v31, %v6694_v20  ;;  %v6782_v45 = vadd.f32 %v35526_v8, %v6701_v51  ;;  %v7221_v27 = vadd.f32 %v35527_v60, %v7134_v9  ;;  %v35529_v6 = vand.u32 4294901760, %v31695_v1  ;;  %v35531_v9 = vld [vmem:[#allocation115_spill] sm:$0xff]  ;;  %v35534_v1 = vld [vmem:[#allocation125_spill] sm:$0xff]  ;;  %v14285_v60 = vld [vmem:[%s34865_s3] sm:$0xff] }
 0x432   : > { %14329 = vmatpush1.msra.mxu0 %v35520_v24  ;;  %v9882_v35 = vpop.f32.mrf.mxu0  ;;  %14420 = vmatprep.subr.mxu1 %v35523_v58  ;;  %v9796_v44 = vadd.f32 %v9795_v52, %v9712_v17  ;;  %v9881_v41 = vadd.f32 %v9880_v38, %v9794_v12  ;;  %v14367_v17 = vand.u32 4294901760, %v14366_v22  ;;  %v35530_v20 = vand.u32 4294901760, %v31806_v62  ;;  %v35533_v58 = vld [vmem:[#allocation122_spill] sm:$0xff] }
 0x433   : > { %14506 = vmatprep.subr.mxu0 %v35524_v4  ;;  %14105 = vmatprep.mubr.f32.mxu1 %v35223_v15  ;;  %v7661_v12 = vadd.f32 %v35531_v9, %v7577_v33  ;;  %v8027_v4 = vadd.f32 %v35534_v1, %v35533_v58  ;;  %v6785_v3 = vadd.f32 %v6775_v2, %v6258_v16  ;;  %v35536_v33 = vld [vmem:[#allocation132_spill] sm:$0xff] }
 0x434   : > { %14192 = vmatprep.mubr.f32.mxu0 %v35223_v15  ;;  %v9802_v40 = vpop.f32.mrf.mxu1  ;;  %v9883_v21 = vadd.f32 %v9882_v35, %v9796_v44  ;;  %14109 = vmatmul.mubr.f32.gmra.mxu1 %v35529_v6  ;;  %v14377_v51 = vsub.f32 %v31806_v62, %v35530_v20  ;;  %v7585_v35 = vadd.f32 %v35532_v34, %v7500_v29  ;;  %v35535_v44 = vld [vmem:[#allocation124_spill] sm:$0xff]  ;;  %v35539_v34 = vld [vmem:[#allocation109_spill] sm:$0xff] }
 0x435   : > { %14194 = vmatmul.mubr.f32.gmra.mxu0 %v31676_v47  ;;  %v9887_v38 = vpop.f32.mrf.mxu0  ;;  %v9803_v52 = vadd.f32 %v9802_v40, %v9718_v7  ;;  %14266 = vmatprep.mubr.f32.mxu1 %v35223_v15  ;;  %v8104_v31 = vadd.f32 %v35535_v44, %v8020_v42  ;;  %v35537_v7 = vld [vmem:[#allocation135_spill] sm:$0xff]  ;;  %v6787_v9 = vadd.f32 %v6782_v45, %v6260_v43  ;;  %v35540_v44 = vld [vmem:[#allocation116_spill] sm:$0xff]  ;;  %v35543_v43 = vld [vmem:[#allocation117_spill] sm:$0xff] }
 0x436   : > { %14362 = vmatprep.mubr.f32.mxu0 %v35223_v15  ;;  %v9804_v8 = vpop.f32.mrf.mxu1  ;;  %v8547_v40 = vadd.f32 %v35537_v7, %v35536_v33  ;;  %v7302_v29 = vadd.f32 %v35538_v32, %v7221_v27  ;;  %v7309_v61 = vadd.f32 %v35539_v34, %v7228_v54  ;;  %v14378_v1 = vand.u32 4294901760, %v14377_v51  ;;  %v35541_v2 = vld [vmem:[#allocation12_spill] sm:$0xff]  ;;  %v35544_v45 = vld [vmem:[#allocation127_spill] sm:$0xff]  ;;  %v35545_v54 = vld [vmem:[#allocation126_spill] sm:$0xff] }
 0x437   : > { %v9889_v22 = vpop.f32.mrf.mxu0  ;;  %v9805_v6 = vadd.f32 %v9804_v8, %v9720_v28  ;;  %v9888_v20 = vadd.f32 %v9887_v38, %v9803_v52  ;;  %v7748_v11 = vadd.f32 %v35540_v44, %v7661_v12  ;;  %v35542_v33 = vld [vmem:[#allocation8_spill] sm:$0xff]  ;;  %v14811_v28 = vsel %vm344_vm0, %v14285_v60, 0  ;;  %v35548_v8 = vld [vmem:[#allocation155_spill] sm:$0xff] }
 0x438   : > { %v9961_v58 = vpop.f32.mrf.mxu1  ;;  %14268 = vmatmul.mubr.f32.vlgmr.msra.gmra.mxu1 %v31659_v30  ;;  %v7670_v32 = vadd.f32 %v35543_v43, %v7585_v35  ;;  %v8188_v27 = vadd.f32 %v35544_v45, %v8104_v31  ;;  %v8112_v38 = vadd.f32 %v35545_v54, %v8027_v4  ;;  %v35546_v30 = vld [vmem:[#allocation9_spill] sm:$0xff]  ;;  %v35547_v12 = vld [vmem:[#allocation136_spill] sm:$0xff]  ;;  %v35549_v4 = vld [vmem:[#allocation134_spill] sm:$0xff]  ;;  %v31886_v44 = vand.u32 4294901760, %v14811_v28 }
 0x439   : > { %14368 = vmatmul.mubr.f32.vlgmr.msra.gmra.mxu0 %v14367_v17  ;;  %v10065_v42 = vpop.f32.mrf.mxu0  ;;  %v9890_v19 = vadd.f32 %v9889_v22, %v9805_v6  ;;  %v9962_v16 = vadd.f32 %v9961_v58, %v9881_v41  ;;  %14426 = vmatpush1.msra.mxu1 %v35541_v2  ;;  %v14286_v41 = vld [vmem:[%s34865_s3 + $0x8] sm:$0xf]  ;;  %v8631_v52 = vadd.f32 %v35547_v12, %v8547_v40  ;;  %v35550_v31 = vld [vmem:[#allocation137_spill] sm:$0xff]  ;;  %v35551_v7 = vld [vmem:[#allocation144_spill] sm:$0xff] }
 0x43a   : > { %14509 = vmatpush1.msra.mxu0 %v35542_v33  ;;  %14590 = vmatprep.subr.mxu1 %v35503_v37  ;;  %v9963_v17 = vpop.f32.mrf.mxu1  ;;  %v8554_v60 = vadd.f32 %v35550_v31, %v35549_v4  ;;  %v35552_v6 = vld [vmem:[#allocation147_spill] sm:$0xff]  ;;  %v14814_v43 = vsel %vm344_vm0, %v14286_v41, 0  ;;  %v35554_v45 = vld [vmem:[#allocation118_spill] sm:$0xff]  ;;  %v35556_v12 = vld [vmem:[#allocation128_spill] sm:$0xff]  ;;  %v7314_v4 = vadd.f32 %v7309_v61, %v6787_v9 }
 0x43b   : > { %14677 = vmatprep.subr.mxu0 %v35546_v30  ;;  %v10067_v51 = vpop.f32.mrf.mxu0  ;;  %v31875_v22 = vadd.f32 %v9962_v16, %v35548_v8  ;;  %v31877_v35 = vadd.f32 %v9963_v17, %v9883_v21  ;;  %14273 = vmatprep.mubr.f32.mxu1 %v35223_v15  ;;  %v9074_v34 = vadd.f32 %v35552_v6, %v35551_v7  ;;  %v35553_v21 = vld [vmem:[#allocation119_spill] sm:$0xff]  ;;  %v35555_v30 = vld [vmem:[#allocation129_spill] sm:$0xff]  ;;  %v35559_v7 = vld [vmem:[#allocation138_spill] sm:$0xff]  ;;  %v31908_v61 = vand.u32 4294901760, %v14814_v43 }
 0x43c   : > { %14373 = vmatprep.mubr.f32.mxu0 %v35223_v15  ;;  %v9968_v58 = vpop.f32.mrf.mxu1  ;;  %14275 = vmatmul.mubr.f32.gmra.mxu1 %v31676_v47  ;;  %v7312_v16 = vadd.f32 %v7302_v29, %v6785_v3  ;;  %v7829_v2 = vadd.f32 %v35553_v21, %v7748_v11  ;;  %v7755_v54 = vadd.f32 %v35554_v45, %v7670_v32  ;;  %v35557_v31 = vld [vmem:[#allocation139_spill] sm:$0xff]  ;;  %v35558_v29 = vld [vmem:[#allocation156_spill] sm:$0xff] }
 0x43d   : > { %14379 = vmatmul.mubr.f32.gmra.mxu0 %v14378_v1  ;;  %v10076_v40 = vpop.f32.mrf.mxu0  ;;  %v9969_v33 = vadd.f32 %v9968_v58, %v9888_v20  ;;  %14459 = vmatprep.mubr.f32.mxu1 %v35223_v15  ;;  %v8197_v17 = vadd.f32 %v35555_v30, %v8112_v38  ;;  %v8275_v47 = vadd.f32 %v35556_v12, %v8188_v27  ;;  %v35560_v58 = vld [vmem:[#allocation148_spill] sm:$0xff]  ;;  %v35561_v38 = vld [vmem:[#allocation146_spill] sm:$0xff]  ;;  %v35565_v30 = vld [vmem:[#allocation131_spill] sm:$0xff] }
 0x43e   : > { %14542 = vmatprep.mubr.f32.mxu0 %v35223_v15  ;;  %v9970_v1 = vpop.f32.mrf.mxu1  ;;  %v8715_v3 = vadd.f32 %v35557_v31, %v8631_v52  ;;  %v8639_v6 = vadd.f32 %v35559_v7, %v8554_v60  ;;  %v9158_v41 = vadd.f32 %v35560_v58, %v9074_v34  ;;  %v31906_v27 = vsub.f32 %v14811_v28, %v31886_v44  ;;  %v35562_v52 = vld [vmem:[#allocation149_spill] sm:$0xff]  ;;  %v35563_v60 = vld [vmem:[#allocation10_spill] sm:$0xff] }
 0x43f   : > { %v10078_v8 = vpop.f32.mrf.mxu0  ;;  %v31897_v11 = vadd.f32 %v9969_v33, %v35558_v29  ;;  %v31899_v20 = vadd.f32 %v9970_v1, %v9890_v19  ;;  %v7839_v9 = vadd.f32 %v7829_v2, %v7312_v16  ;;  %v9081_v19 = vadd.f32 %v35562_v52, %v35561_v38  ;;  %v35564_v34 = vld [vmem:[#allocation121_spill] sm:$0xff]  ;;  %v35566_v1 = vld [vmem:[#allocation130_spill] sm:$0xff]  ;;  %v35568_v2 = vld [vmem:[#allocation140_spill] sm:$0xff] }
 0x440   : > { %v10158_v21 = vpop.f32.mrf.mxu1  ;;  %14461 = vmatmul.mubr.f32.vlgmr.msra.gmra.mxu1 %v31765_v5  ;;  %v7836_v45 = vadd.f32 %v35564_v34, %v7755_v54  ;;  %v8356_v12 = vadd.f32 %v35565_v30, %v8275_v47  ;;  %v8282_v31 = vadd.f32 %v35566_v1, %v8197_v17  ;;  %v35567_v28 = vld [vmem:[#allocation13_spill] sm:$0xff]  ;;  %v8802_v7 = vadd.f32 %v35568_v2, %v8715_v3  ;;  %v35570_v38 = vld [vmem:[#allocation151_spill] sm:$0xff] }
 0x441   : > { %14545 = vmatmul.mubr.f32.vlgmr.msra.gmra.mxu0 %v31785_v36  ;;  %v10242_v32 = vpop.f32.mrf.mxu0  ;;  %v10159_v33 = vadd.f32 %v10158_v21, %v10065_v42  ;;  %14592 = vmatpush1.msra.mxu1 %v35520_v24  ;;  %v35569_v21 = vld [vmem:[#allocation141_spill] sm:$0xff]  ;;  %v9242_v47 = vadd.f32 %v35570_v38, %v9158_v41  ;;  %v31928_v3 = vsub.f32 %v14814_v43, %v31908_v61  ;;  %v35573_v2 = vld [vmem:[#allocation143_spill] sm:$0xff]  ;;  %v35574_v43 = vld [vmem:[#allocation142_spill] sm:$0xff] }
 0x442   : > { %14681 = vmatpush1.msra.mxu0 %v35563_v60  ;;  %14760 = vmatprep.subr.mxu1 %v35503_v37  ;;  %v10160_v29 = vpop.f32.mrf.mxu1  ;;  %v8724_v54 = vadd.f32 %v35569_v21, %v8639_v6  ;;  %v7841_v6 = vadd.f32 %v7836_v45, %v7314_v4  ;;  %v35572_v41 = vld [vmem:[#allocation133_spill] sm:$0xff]  ;;  %v8883_v21 = vadd.f32 %v35573_v2, %v8802_v7  ;;  %v35577_v45 = vand.u32 4294901760, %v31906_v27 }
 0x443   : > { %14847 = vmatprep.subr.mxu0 %v35567_v28  ;;  %v10244_v16 = vpop.f32.mrf.mxu0  ;;  %v10161_v58 = vadd.f32 %v10160_v29, %v10067_v51  ;;  %v10243_v42 = vadd.f32 %v10242_v32, %v10159_v33  ;;  %14466 = vmatprep.mubr.f32.mxu1 %v35223_v15  ;;  %v35571_v51 = vld [vmem:[#allocation150_spill] sm:$0xff]  ;;  %v8363_v34 = vadd.f32 %v35572_v41, %v8282_v31 }
 0x444   : > { %14550 = vmatprep.mubr.f32.mxu0 %v35223_v15  ;;  %v10165_v52 = vpop.f32.mrf.mxu1  ;;  %14468 = vmatmul.mubr.f32.gmra.mxu1 %v31787_v39  ;;  %v9166_v32 = vadd.f32 %v35571_v51, %v9081_v19  ;;  %v8366_v29 = vadd.f32 %v8356_v12, %v7839_v9  ;;  %v8809_v63 = vadd.f32 %v35574_v43, %v8724_v54  ;;  %v14896_v9 = vand.u32 4294901760, %v31928_v3  ;;  %v35578_v12 = vld [vmem:[#allocation153_spill] sm:$0xff] }
 0x445   : > { %14553 = vmatmul.mubr.f32.gmra.mxu0 %v31806_v62  ;;  %v10250_v37 = vpop.f32.mrf.mxu0  ;;  %v10166_v33 = vadd.f32 %v10165_v52, %v10076_v40  ;;  %v10245_v60 = vadd.f32 %v10244_v16, %v10161_v58  ;;  %14625 = vmatprep.mubr.f32.mxu1 %v35223_v15  ;;  %v9329_v19 = vadd.f32 %v35575_v50, %v9242_v47  ;;  %v35576_v16 = vand.u32 4294901760, %v31785_v36  ;;  %v35579_v50 = vld [vmem:[#allocation14_spill] sm:$0xff]  ;;  %v35580_v36 = vld [vmem:[#allocation21_spill] sm:$0xff] }
 0x446   : > { %14714 = vmatprep.mubr.f32.mxu0 %v35223_v15  ;;  %v10167_v30 = vpop.f32.mrf.mxu1  ;;  %v14886_v31 = vsub.f32 %v31906_v27, %v35577_v45  ;;  %v8368_v54 = vadd.f32 %v8363_v34, %v7841_v6  ;;  %v35581_v47 = vld [vmem:[#allocation17_spill] sm:$0xff]  ;;  %v8893_v51 = vadd.f32 %v8883_v21, %v8366_v29  ;;  %v35584_v6 = vand.u32 4294901760, %v31806_v62  ;;  %v29031_v62 = vld [vmem:[%s34865_s3 + $0x60] sm:$0xff] }
 0x447   : > { %v10252_v1 = vpop.f32.mrf.mxu0  ;;  %v10168_v38 = vadd.f32 %v10167_v30, %v10078_v8  ;;  %v10251_v17 = vadd.f32 %v10250_v37, %v10166_v33  ;;  %v9251_v8 = vadd.f32 %v35578_v12, %v9166_v32  ;;  %v35582_v32 = vld [vmem:[#allocation145_spill] sm:$0xff]  ;;  %v35583_v30 = vld [vmem:[#allocation154_spill] sm:$0xff] }
 0x448   : > { %v10326_v40 = vpop.f32.mrf.mxu1  ;;  %14629 = vmatmul.mubr.f32.vlgmr.msra.gmra.mxu1 %v35576_v16  ;;  %v14887_v2 = vand.u32 4294901760, %v14886_v31 }
 0x449   : > { %14716 = vmatmul.mubr.f32.vlgmr.msra.gmra.mxu0 %v31765_v5  ;;  %v10413_v4 = vpop.f32.mrf.mxu0  ;;  %v10253_v7 = vadd.f32 %v10252_v1, %v10168_v38  ;;  %v10327_v58 = vadd.f32 %v10326_v40, %v10243_v42  ;;  %14762 = vmatpush1.msra.mxu1 %v35520_v24  ;;  %v8890_v42 = vadd.f32 %v35582_v32, %v8809_v63 }
 0x44a   : > { %14849 = vmatpush1.msra.mxu0 %v35579_v50  ;;  %14940 = vmatprep.subr.mxu1 %v35580_v36  ;;  %v10328_v52 = vpop.f32.mrf.mxu1  ;;  %v9410_v24 = vadd.f32 %v35583_v30, %v9329_v19  ;;  %v9336_v29 = vadd.f32 %v31725_v57, %v9251_v8  ;;  %v35586_v36 = vld [vmem:[#allocation18_spill] sm:$0xff] }
 0x44b   : > { %15026 = vmatprep.subr.mxu0 %v35581_v47  ;;  %v10415_v37 = vpop.f32.mrf.mxu0  ;;  %v10329_v33 = vadd.f32 %v10328_v52, %v10245_v60  ;;  %v10414_v41 = vadd.f32 %v10413_v4, %v10327_v58  ;;  %14634 = vmatprep.mubr.f32.mxu1 %v35223_v15  ;;  %v14897_v60 = vsub.f32 %v31928_v3, %v14896_v9  ;;  %v35585_v58 = vld [vmem:[#allocation22_spill] sm:$0xff]  ;;  %v15334_v47 = vsel %vm344_vm0, %v29031_v62, 0 }
 0x44c   : > { %14721 = vmatprep.mubr.f32.mxu0 %v35223_v15  ;;  %v10335_v1 = vpop.f32.mrf.mxu1  ;;  %14638 = vmatmul.mubr.f32.gmra.mxu1 %v35584_v6  ;;  %v8895_v16 = vadd.f32 %v8890_v42, %v8368_v54  ;;  %v9420_v4 = vadd.f32 %v9410_v24, %v8893_v51  ;;  %v9417_v31 = vadd.f32 %v31770_v13, %v9336_v29  ;;  %v31982_v32 = vand.u32 4294901760, %v15334_v47 }
 0x44d   : > { %14723 = vmatmul.mubr.f32.gmra.mxu0 %v31787_v39  ;;  %v10420_v34 = vpop.f32.mrf.mxu0  ;;  %v10336_v21 = vadd.f32 %v10335_v1, %v10251_v17  ;;  %v10416_v38 = vadd.f32 %v10415_v37, %v10329_v33  ;;  %14795 = vmatprep.mubr.f32.mxu1 %v35223_v15  ;;  %v14898_v17 = vand.u32 4294901760, %v14897_v60 }
 0x44e   : > { %14882 = vmatprep.mubr.f32.mxu0 %v35223_v15  ;;  %v10337_v63 = vpop.f32.mrf.mxu1  ;;  %v9974_v13 = vadd.f32 %v31877_v35, %v9420_v4  ;;  %v9422_v42 = vadd.f32 %v9417_v31, %v8895_v16  ;;  %v31996_v29 = vsub.f32 %v15334_v47, %v31982_v32  ;;  %v35590_v47 = vand.u32 4294901760, %v31906_v27 }
 0x44f   : > { %v10422_v43 = vpop.f32.mrf.mxu0  ;;  %v10338_v19 = vadd.f32 %v10337_v63, %v10253_v7  ;;  %v10421_v40 = vadd.f32 %v10420_v34, %v10336_v21  ;;  %v35587_v7 = vld [vmem:[#allocation19_spill] sm:$0xff] }
 0x450   : > { %v10494_v45 = vpop.f32.mrf.mxu1  ;;  %14797 = vmatmul.mubr.f32.vlgmr.msra.gmra.mxu1 %v31765_v5  ;;  %v29032_v5 = vld [vmem:[%s34865_s3 + $0x68] sm:$0xf]  ;;  %v9976_v6 = vadd.f32 %v31899_v20, %v9422_v42  ;;  %v35588_v20 = vld [vmem:[#allocation20_spill] sm:$0xff] }
 0x451   : > { %14888 = vmatmul.mubr.f32.vlgmr.msra.gmra.mxu0 %v14887_v2  ;;  %v10604_v57 = vpop.f32.mrf.mxu0  ;;  %v10423_v12 = vadd.f32 %v10422_v43, %v10338_v19  ;;  %v10495_v8 = vadd.f32 %v10494_v45, %v10414_v41  ;;  %14946 = vmatpush1.msra.mxu1 %v35585_v58  ;;  %v15408_v45 = vand.u32 4294901760, %v31996_v29 }
 0x452   : > { %15029 = vmatpush1.msra.mxu0 %v35586_v36  ;;  %15110 = vmatprep.subr.mxu1 %v35567_v28  ;;  %v10496_v54 = vpop.f32.mrf.mxu1 }
 0x453   : > { %15197 = vmatprep.subr.mxu0 %v35587_v7  ;;  %v10606_v52 = vpop.f32.mrf.mxu0  ;;  %v31977_v37 = vadd.f32 %v10495_v8, %v31875_v22  ;;  %v10497_v51 = vadd.f32 %v10496_v54, %v10416_v38  ;;  %14802 = vmatprep.mubr.f32.mxu1 %v35223_v15  ;;  %v15337_v22 = vsel %vm344_vm0, %v29032_v5, 0  ;;  %v15409_v54 = vsub.f32 %v31996_v29, %v15408_v45 }
 0x454   : > { %14893 = vmatprep.mubr.f32.mxu0 %v35223_v15  ;;  %v10501_v33 = vpop.f32.mrf.mxu1  ;;  %14804 = vmatmul.mubr.f32.gmra.mxu1 %v31787_v39  ;;  %v31998_v21 = vand.u32 4294901760, %v15337_v22 }
 0x455   : > { %14899 = vmatmul.mubr.f32.gmra.mxu0 %v14898_v17  ;;  %v10615_v41 = vpop.f32.mrf.mxu0  ;;  %v31984_v30 = vadd.f32 %v10497_v51, %v9974_v13  ;;  %v10502_v24 = vadd.f32 %v10501_v33, %v10421_v40  ;;  %14979 = vmatprep.mubr.f32.mxu1 %v35223_v15  ;;  %v35591_v51 = vld [vmem:[#allocation24_spill] sm:$0xff]  ;;  %v35592_v33 = vld [vmem:[#allocation31_spill] sm:$0xff] }
 0x456   : > { %15062 = vmatprep.mubr.f32.mxu0 %v35223_v15  ;;  %v10503_v35 = vpop.f32.mrf.mxu1 }
 0x457   : > { %v10617_v1 = vpop.f32.mrf.mxu0  ;;  %v31991_v39 = vadd.f32 %v10502_v24, %v31897_v11  ;;  %v10504_v34 = vadd.f32 %v10503_v35, %v10423_v12  ;;  %v35589_v11 = vld [vmem:[#allocation23_spill] sm:$0xff] }
 0x458   : > { %v10697_v2 = vpop.f32.mrf.mxu1  ;;  %14981 = vmatmul.mubr.f32.vlgmr.msra.gmra.mxu1 %v31886_v44 }
 0x459   : > { %15065 = vmatmul.mubr.f32.vlgmr.msra.gmra.mxu0 %v31906_v27  ;;  %v10781_v60 = vpop.f32.mrf.mxu0  ;;  %v32000_v38 = vadd.f32 %v10504_v34, %v9976_v6  ;;  %v10698_v63 = vadd.f32 %v10697_v2, %v10604_v57  ;;  %15112 = vmatpush1.msra.mxu1 %v35579_v50 }
 0x45a   : > { %15201 = vmatpush1.msra.mxu0 %v35588_v20  ;;  %15280 = vmatprep.subr.mxu1 %v35567_v28  ;;  %v10699_v43 = vpop.f32.mrf.mxu1  ;;  %v32012_v28 = vsub.f32 %v15337_v22, %v31998_v21 }
 0x45b   : > { %15370 = vmatprep.subr.mxu0 %v35589_v11  ;;  %v10783_v62 = vpop.f32.mrf.mxu0  ;;  %v10700_v19 = vadd.f32 %v10699_v43, %v10606_v52  ;;  %v10782_v40 = vadd.f32 %v10781_v60, %v10698_v63  ;;  %14986 = vmatprep.mubr.f32.mxu1 %v35223_v15 }
 0x45c   : > { %15070 = vmatprep.mubr.f32.mxu0 %v35223_v15  ;;  %v10704_v16 = vpop.f32.mrf.mxu1  ;;  %14988 = vmatmul.mubr.f32.gmra.mxu1 %v31908_v61  ;;  %v15419_v52 = vand.u32 4294901760, %v32012_v28 }
 0x45d   : > { %15073 = vmatmul.mubr.f32.gmra.mxu0 %v31928_v3  ;;  %v10789_v4 = vpop.f32.mrf.mxu0  ;;  %v10705_v57 = vadd.f32 %v10704_v16, %v10615_v41  ;;  %v10784_v17 = vadd.f32 %v10783_v62, %v10700_v19  ;;  %15145 = vmatprep.mubr.f32.mxu1 %v35223_v15  ;;  %v35593_v41 = vld [vmem:[#allocation25_spill] sm:$0xff]  ;;  %v29033_v3 = vld [vmem:[%s34865_s3 + $0x10] sm:$0xff] }
 0x45e   : > { %15234 = vmatprep.mubr.f32.mxu0 %v35223_v15  ;;  %v10706_v31 = vpop.f32.mrf.mxu1  ;;  %v15420_v6 = vsub.f32 %v32012_v28, %v15419_v52 }
 0x45f   : > { %v10791_v12 = vpop.f32.mrf.mxu0  ;;  %v10707_v8 = vadd.f32 %v10706_v31, %v10617_v1  ;;  %v10790_v58 = vadd.f32 %v10789_v4, %v10705_v57  ;;  %v15410_v1 = vand.u32 4294901760, %v15409_v54  ;;  %v35594_v4 = vld [vmem:[#allocation35_spill] sm:$0xff]  ;;  %v35595_v57 = vld [vmem:[#allocation26_spill] sm:$0xff] }
 0x460   : > { %v10865_v36 = vpop.f32.mrf.mxu1  ;;  %15149 = vmatmul.mubr.f32.vlgmr.msra.gmra.mxu1 %v35590_v47  ;;  %v15421_v19 = vand.u32 4294901760, %v15420_v6  ;;  %v35596_v31 = vld [vmem:[#allocation27_spill] sm:$0xff] }
 0x461   : > { %15236 = vmatmul.mubr.f32.vlgmr.msra.gmra.mxu0 %v31886_v44  ;;  %v10952_v7 = vpop.f32.mrf.mxu0  ;;  %v10792_v5 = vadd.f32 %v10791_v12, %v10707_v8  ;;  %v10866_v13 = vadd.f32 %v10865_v36, %v10782_v40  ;;  %15282 = vmatpush1.msra.mxu1 %v35579_v50 }
 0x462   : > { %15372 = vmatpush1.msra.mxu0 %v35591_v51  ;;  %15463 = vmatprep.subr.mxu1 %v35592_v33  ;;  %v10867_v27 = vpop.f32.mrf.mxu1 }
 0x463   : > { %15549 = vmatprep.subr.mxu0 %v35593_v41  ;;  %v10954_v42 = vpop.f32.mrf.mxu0  ;;  %v10868_v24 = vadd.f32 %v10867_v27, %v10784_v17  ;;  %v10953_v22 = vadd.f32 %v10952_v7, %v10866_v13  ;;  %15154 = vmatprep.mubr.f32.mxu1 %v35223_v15  ;;  %v15861_v17 = vsel %vm344_vm0, %v29033_v3, 0 }
 0x464   : > { %15241 = vmatprep.mubr.f32.mxu0 %v35223_v15  ;;  %v10874_v35 = vpop.f32.mrf.mxu1  ;;  %15158 = vmatmul.mubr.f32.gmra.mxu1 %v14896_v9  ;;  %v32055_v54 = vand.u32 4294901760, %v15861_v17 }
 0x465   : > { %15243 = vmatmul.mubr.f32.gmra.mxu0 %v31908_v61  ;;  %v10959_v50 = vpop.f32.mrf.mxu0  ;;  %v10875_v34 = vadd.f32 %v10874_v35, %v10790_v58  ;;  %v10955_v2 = vadd.f32 %v10954_v42, %v10868_v24  ;;  %15315 = vmatprep.mubr.f32.mxu1 %v35223_v15 }
 0x466   : > { %15405 = vmatprep.mubr.f32.mxu0 %v35223_v15  ;;  %v10876_v60 = vpop.f32.mrf.mxu1  ;;  %v32069_v24 = vsub.f32 %v15861_v17, %v32055_v54 }
 0x467   : > { %v10961_v63 = vpop.f32.mrf.mxu0  ;;  %v10877_v9 = vadd.f32 %v10876_v60, %v10792_v5  ;;  %v10960_v20 = vadd.f32 %v10959_v50, %v10875_v34 }
 0x468   : > { %v11033_v43 = vpop.f32.mrf.mxu1  ;;  %15317 = vmatmul.mubr.f32.vlgmr.msra.gmra.mxu1 %v31886_v44  ;;  %v29034_v44 = vld [vmem:[%s34865_s3 + $0x18] sm:$0xf]  ;;  %v15935_v3 = vand.u32 4294901760, %v32069_v24 }
 0x469   : > { %15411 = vmatmul.mubr.f32.vlgmr.msra.gmra.mxu0 %v15410_v1  ;;  %v11143_v62 = vpop.f32.mrf.mxu0  ;;  %v10962_v40 = vadd.f32 %v10961_v63, %v10877_v9  ;;  %v11034_v16 = vadd.f32 %v11033_v43, %v10953_v22  ;;  %15469 = vmatpush1.msra.mxu1 %v35594_v4  ;;  %v35598_v1 = vld [vmem:[#allocation29_spill] sm:$0xff] }
 0x46a   : > { %15552 = vmatpush1.msra.mxu0 %v35595_v57  ;;  %15633 = vmatprep.subr.mxu1 %v35589_v11  ;;  %v11035_v12 = vpop.f32.mrf.mxu1  ;;  %v15936_v57 = vsub.f32 %v32069_v24, %v15935_v3 }
 0x46b   : > { %15720 = vmatprep.subr.mxu0 %v35596_v31  ;;  %v11145_v8 = vpop.f32.mrf.mxu0  ;;  %v32050_v58 = vadd.f32 %v11034_v16, %v31977_v37  ;;  %v11036_v36 = vadd.f32 %v11035_v12, %v10955_v2  ;;  %15322 = vmatprep.mubr.f32.mxu1 %v35223_v15  ;;  %v15864_v37 = vsel %vm344_vm0, %v29034_v44, 0  ;;  %v35600_v44 = vld [vmem:[#allocation39_spill] sm:$0xff] }
 0x46c   : > { %15416 = vmatprep.mubr.f32.mxu0 %v35223_v15  ;;  %v11040_v47 = vpop.f32.mrf.mxu1  ;;  %15324 = vmatmul.mubr.f32.gmra.mxu1 %v31908_v61  ;;  %v32071_v22 = vand.u32 4294901760, %v15864_v37 }
 0x46d   : > { %15422 = vmatmul.mubr.f32.gmra.mxu0 %v15421_v19  ;;  %v11154_v7 = vpop.f32.mrf.mxu0  ;;  %v32058_v5 = vadd.f32 %v11036_v36, %v31984_v30  ;;  %v11041_v13 = vadd.f32 %v11040_v47, %v10960_v20  ;;  %15502 = vmatprep.mubr.f32.mxu1 %v35223_v15  ;;  %v35601_v36 = vld [vmem:[#allocation32_spill] sm:$0xff] }
 0x46e   : > { %15585 = vmatprep.mubr.f32.mxu0 %v35223_v15  ;;  %v11042_v33 = vpop.f32.mrf.mxu1 }
 0x46f   : > { %v11156_v41 = vpop.f32.mrf.mxu0  ;;  %v32064_v27 = vadd.f32 %v11041_v13, %v31991_v39  ;;  %v11043_v61 = vadd.f32 %v11042_v33, %v10962_v40  ;;  %v35597_v39 = vld [vmem:[#allocation28_spill] sm:$0xff] }
 0x470   : > { %v11236_v42 = vpop.f32.mrf.mxu1  ;;  %15504 = vmatmul.mubr.f32.vlgmr.msra.gmra.mxu1 %v31982_v32 }
 0x471   : > { %15588 = vmatmul.mubr.f32.vlgmr.msra.gmra.mxu0 %v31996_v29  ;;  %v11320_v30 = vpop.f32.mrf.mxu0  ;;  %v32074_v35 = vadd.f32 %v11043_v61, %v32000_v38  ;;  %v11237_v50 = vadd.f32 %v11236_v42, %v11143_v62  ;;  %15635 = vmatpush1.msra.mxu1 %v35591_v51 }
 0x472   : > { %15724 = vmatpush1.msra.mxu0 %v35597_v39  ;;  %15803 = vmatprep.subr.mxu1 %v35589_v11  ;;  %v11238_v6 = vpop.f32.mrf.mxu1  ;;  %v32086_v11 = vsub.f32 %v15864_v37, %v32071_v22  ;;  %v15937_v37 = vand.u32 4294901760, %v15936_v57 }
 0x473   : > { %15897 = vmatprep.subr.mxu0 %v35598_v1  ;;  %v11322_v34 = vpop.f32.mrf.mxu0  ;;  %v11239_v2 = vadd.f32 %v11238_v6, %v11145_v8  ;;  %v11321_v60 = vadd.f32 %v11320_v30, %v11237_v50  ;;  %15509 = vmatprep.mubr.f32.mxu1 %v35223_v15  ;;  %v35599_v8 = vld [vmem:[#allocation30_spill] sm:$0xff] }
 0x474   : > { %15593 = vmatprep.mubr.f32.mxu0 %v35223_v15  ;;  %v11243_v63 = vpop.f32.mrf.mxu1  ;;  %15511 = vmatmul.mubr.f32.gmra.mxu1 %v31998_v21  ;;  %v15946_v17 = vand.u32 4294901760, %v32086_v11 }
 0x475   : > { %15596 = vmatmul.mubr.f32.gmra.mxu0 %v32012_v28  ;;  %v11328_v38 = vpop.f32.mrf.mxu0  ;;  %v11244_v9 = vadd.f32 %v11243_v63, %v11154_v7  ;;  %v11323_v20 = vadd.f32 %v11322_v34, %v11239_v2  ;;  %15668 = vmatprep.mubr.f32.mxu1 %v35223_v15  ;;  %v29035_v28 = vld [vmem:[%s34865_s3 + $0x40] sm:$0xff]  ;;  %v35602_v63 = vld [vmem:[#allocation41_spill] sm:$0xff] }
 0x476   : > { %15757 = vmatprep.mubr.f32.mxu0 %v35223_v15  ;;  %v11245_v43 = vpop.f32.mrf.mxu1  ;;  %v15947_v33 = vsub.f32 %v32086_v11, %v15946_v17 }
 0x477   : > { %v11330_v62 = vpop.f32.mrf.mxu0  ;;  %v11246_v19 = vadd.f32 %v11245_v43, %v11156_v41  ;;  %v11329_v40 = vadd.f32 %v11328_v38, %v11244_v9  ;;  %v35603_v38 = vld [vmem:[#allocation33_spill] sm:$0xff]  ;;  %v16388_v9 = vsel %vm344_vm0, %v29035_v28, 0 }
 0x478   : > { %v11404_v16 = vpop.f32.mrf.mxu1  ;;  %15672 = vmatmul.mubr.f32.vlgmr.msra.gmra.mxu1 %v15408_v45  ;;  %v15948_v34 = vand.u32 4294901760, %v15947_v33  ;;  %v32129_v57 = vand.u32 4294901760, %v16388_v9 }
 0x479   : > { %15759 = vmatmul.mubr.f32.vlgmr.msra.gmra.mxu0 %v31982_v32  ;;  %v11491_v4 = vpop.f32.mrf.mxu0  ;;  %v11331_v31 = vadd.f32 %v11330_v62, %v11246_v19  ;;  %v11405_v12 = vadd.f32 %v11404_v16, %v11321_v60  ;;  %15805 = vmatpush1.msra.mxu1 %v35591_v51 }
 0x47a   : > { %15899 = vmatpush1.msra.mxu0 %v35599_v8  ;;  %15990 = vmatprep.subr.mxu1 %v35600_v44  ;;  %v11406_v29 = vpop.f32.mrf.mxu1 }
 0x47b   : > { %16076 = vmatprep.subr.mxu0 %v35601_v36  ;;  %v11493_v45 = vpop.f32.mrf.mxu0  ;;  %v11407_v47 = vadd.f32 %v11406_v29, %v11323_v20  ;;  %v11492_v7 = vadd.f32 %v11491_v4, %v11405_v12  ;;  %15677 = vmatprep.mubr.f32.mxu1 %v35223_v15  ;;  %v35604_v20 = vld [vmem:[#allocation34_spill] sm:$0xff] }
 0x47c   : > { %15764 = vmatprep.mubr.f32.mxu0 %v35223_v15  ;;  %v11413_v13 = vpop.f32.mrf.mxu1  ;;  %15681 = vmatmul.mubr.f32.gmra.mxu1 %v15419_v52 }
 0x47d   : > { %15766 = vmatmul.mubr.f32.gmra.mxu0 %v31998_v21  ;;  %v11498_v51 = vpop.f32.mrf.mxu0  ;;  %v11414_v41 = vadd.f32 %v11413_v13, %v11329_v40  ;;  %v11494_v61 = vadd.f32 %v11493_v45, %v11407_v47  ;;  %15838 = vmatprep.mubr.f32.mxu1 %v35223_v15  ;;  %v32143_v47 = vsub.f32 %v16388_v9, %v32129_v57 }
 0x47e   : > { %15932 = vmatprep.mubr.f32.mxu0 %v35223_v15  ;;  %v11415_v42 = vpop.f32.mrf.mxu1 }
 0x47f   : > { %v11500_v30 = vpop.f32.mrf.mxu0  ;;  %v11416_v52 = vadd.f32 %v11415_v42, %v11331_v31  ;;  %v11499_v50 = vadd.f32 %v11498_v51, %v11414_v41  ;;  %v35606_v42 = vld [vmem:[#allocation37_spill] sm:$0xff]  ;;  %v16462_v28 = vand.u32 4294901760, %v32143_v47 }
 0x480   : > { %v11572_v39 = vpop.f32.mrf.mxu1  ;;  %15840 = vmatmul.mubr.f32.vlgmr.msra.gmra.mxu1 %v31982_v32  ;;  %v29036_v32 = vld [vmem:[%s34865_s3 + $0x48] sm:$0xf] }
 0x481   : > { %15938 = vmatmul.mubr.f32.vlgmr.msra.gmra.mxu0 %v15937_v37  ;;  %v11676_v6 = vpop.f32.mrf.mxu0  ;;  %v11501_v2 = vadd.f32 %v11500_v30, %v11416_v52  ;;  %v11573_v60 = vadd.f32 %v11572_v39, %v11492_v7  ;;  %15996 = vmatpush1.msra.mxu1 %v35602_v63 }
 0x482   : > { %16079 = vmatpush1.msra.mxu0 %v35603_v38  ;;  %16160 = vmatprep.subr.mxu1 %v35598_v1  ;;  %v11574_v43 = vpop.f32.mrf.mxu1  ;;  %v16463_v38 = vsub.f32 %v32143_v47, %v16462_v28 }
 0x483   : > { %16247 = vmatprep.subr.mxu0 %v35604_v20  ;;  %v11678_v62 = vpop.f32.mrf.mxu0  ;;  %v32124_v19 = vadd.f32 %v11573_v60, %v32050_v58  ;;  %v11575_v40 = vadd.f32 %v11574_v43, %v11494_v61  ;;  %15845 = vmatprep.mubr.f32.mxu1 %v35223_v15  ;;  %v16391_v58 = vsel %vm344_vm0, %v29036_v32, 0 }
 0x484   : > { %15943 = vmatprep.mubr.f32.mxu0 %v35223_v15  ;;  %v11579_v16 = vpop.f32.mrf.mxu1  ;;  %15847 = vmatmul.mubr.f32.gmra.mxu1 %v31998_v21  ;;  %v32145_v7 = vand.u32 4294901760, %v16391_v58 }
 0x485   : > { %15949 = vmatmul.mubr.f32.gmra.mxu0 %v15948_v34  ;;  %v11687_v4 = vpop.f32.mrf.mxu0  ;;  %v32132_v31 = vadd.f32 %v11575_v40, %v32058_v5  ;;  %v11580_v12 = vadd.f32 %v11579_v16, %v11499_v50  ;;  %16029 = vmatprep.mubr.f32.mxu1 %v35223_v15  ;;  %v35608_v16 = vld [vmem:[#allocation40_spill] sm:$0xff] }
 0x486   : > { %16112 = vmatprep.mubr.f32.mxu0 %v35223_v15  ;;  %v11581_v44 = vpop.f32.mrf.mxu1 }
 0x487   : > { %v11689_v36 = vpop.f32.mrf.mxu0  ;;  %v32138_v29 = vadd.f32 %v11580_v12, %v32064_v27  ;;  %v11582_v21 = vadd.f32 %v11581_v44, %v11501_v2  ;;  %v35605_v27 = vld [vmem:[#allocation36_spill] sm:$0xff] }
 0x488   : > { %v11769_v45 = vpop.f32.mrf.mxu1  ;;  %16031 = vmatmul.mubr.f32.vlgmr.msra.gmra.mxu1 %v32055_v54 }
 0x489   : > { %16115 = vmatmul.mubr.f32.vlgmr.msra.gmra.mxu0 %v32069_v24  ;;  %v11853_v5 = vpop.f32.mrf.mxu0  ;;  %v32148_v13 = vadd.f32 %v11582_v21, %v32074_v35  ;;  %v11770_v51 = vadd.f32 %v11769_v45, %v11676_v6  ;;  %16162 = vmatpush1.msra.mxu1 %v35599_v8 }
 0x48a   : > { %16251 = vmatpush1.msra.mxu0 %v35605_v27  ;;  %16330 = vmatprep.subr.mxu1 %v35598_v1  ;;  %v11771_v37 = vpop.f32.mrf.mxu1  ;;  %v32160_v1 = vsub.f32 %v16391_v58, %v32145_v7  ;;  %v16464_v58 = vand.u32 4294901760, %v16463_v38 }
 0x48b   : > { %16036 = vmatprep.mubr.f32.mxu1 %v35223_v15  ;;  %v11855_v33 = vpop.f32.mrf.mxu0  ;;  %v11772_v41 = vadd.f32 %v11771_v37, %v11678_v62  ;;  %v11854_v61 = vadd.f32 %v11853_v5, %v11770_v51  ;;  %16120 = vmatprep.mubr.f32.mxu0 %v35223_v15 }
 0x48c   : > { %16424 = vmatprep.subr.mxu0 %v35606_v42  ;;  %v11776_v30 = vpop.f32.mrf.mxu1  ;;  %16038 = vmatmul.mubr.f32.gmra.mxu1 %v32071_v22  ;;  %v16473_v9 = vand.u32 4294901760, %v32160_v1 }
 0x48d   : > { %16123 = vmatmul.mubr.f32.gmra.mxu0 %v32086_v11  ;;  %v11861_v35 = vpop.f32.mrf.mxu0  ;;  %v11777_v52 = vadd.f32 %v11776_v30, %v11687_v4  ;;  %v11856_v50 = vadd.f32 %v11855_v33, %v11772_v41  ;;  %16195 = vmatprep.mubr.f32.mxu1 %v35223_v15  ;;  %v35609_v4 = vld [vmem:[#allocation48_spill] sm:$0xff] }
 0x48e   : > { %16284 = vmatprep.mubr.f32.mxu0 %v35223_v15  ;;  %v11778_v39 = vpop.f32.mrf.mxu1  ;;  %v16474_v44 = vsub.f32 %v32160_v1, %v16473_v9  ;;  %v29037_v11 = vld [vmem:[%s34865_s3 + $0x70] sm:$0xff] }
 0x48f   : > { %v11863_v6 = vpop.f32.mrf.mxu0  ;;  %v11779_v34 = vadd.f32 %v11778_v39, %v11689_v36  ;;  %v11862_v2 = vadd.f32 %v11861_v35, %v11777_v52  ;;  %v16915_v30 = vsel %vm344_vm0, %v29037_v11, 0  ;;  %v35611_v39 = vld [vmem:[#allocation50_spill] sm:$0xff] }
 0x490   : > { %v11937_v60 = vpop.f32.mrf.mxu1  ;;  %16199 = vmatmul.mubr.f32.vlgmr.msra.gmra.mxu1 %v15935_v3  ;;  %v35607_v3 = vld [vmem:[#allocation38_spill] sm:$0xff]  ;;  %v16475_v33 = vand.u32 4294901760, %v16474_v44  ;;  %v32203_v38 = vand.u32 4294901760, %v16915_v30 }
 0x491   : > { %16286 = vmatmul.mubr.f32.vlgmr.msra.gmra.mxu0 %v32055_v54  ;;  %v12024_v63 = vpop.f32.mrf.mxu0  ;;  %v11864_v20 = vadd.f32 %v11863_v6, %v11779_v34  ;;  %v11938_v43 = vadd.f32 %v11937_v60, %v11854_v61  ;;  %16332 = vmatpush1.msra.mxu1 %v35599_v8 }
 0x492   : > { %16204 = vmatprep.mubr.f32.mxu1 %v35223_v15  ;;  %v11939_v62 = vpop.f32.mrf.mxu1  ;;  %16291 = vmatprep.mubr.f32.mxu0 %v35223_v15 }
 0x493   : > { %v12026_v24 = vpop.f32.mrf.mxu0  ;;  %16426 = vmatpush1.msra.mxu0 %v35607_v3  ;;  %v11940_v32 = vadd.f32 %v11939_v62, %v11856_v50  ;;  %v12025_v40 = vadd.f32 %v12024_v63, %v11938_v43  ;;  %16517 = vmatprep.subr.mxu1 %v35609_v4  ;;  %v35610_v50 = vld [vmem:[#allocation42_spill] sm:$0xff] }
 0x494   : > { %16603 = vmatprep.subr.mxu0 %v35608_v16  ;;  %v11946_v12 = vpop.f32.mrf.mxu1  ;;  %16208 = vmatmul.mubr.f32.gmra.mxu1 %v15946_v17  ;;  %v32217_v16 = vsub.f32 %v16915_v30, %v32203_v38 }
 0x495   : > { %16293 = vmatmul.mubr.f32.gmra.mxu0 %v32071_v22  ;;  %v12031_v8 = vpop.f32.mrf.mxu0  ;;  %v11947_v36 = vadd.f32 %v11946_v12, %v11862_v2  ;;  %v12027_v21 = vadd.f32 %v12026_v24, %v11940_v32  ;;  %16365 = vmatprep.mubr.f32.mxu1 %v35223_v15  ;;  %v35612_v2 = vld [vmem:[#allocation43_spill] sm:$0xff] }
 0x496   : > { %16459 = vmatprep.mubr.f32.mxu0 %v35223_v15  ;;  %v11948_v45 = vpop.f32.mrf.mxu1  ;;  %v16989_v11 = vand.u32 4294901760, %v32217_v16 }
 0x497   : > { %v12033_v5 = vpop.f32.mrf.mxu0  ;;  %v11949_v17 = vadd.f32 %v11948_v45, %v11864_v20  ;;  %v12032_v51 = vadd.f32 %v12031_v8, %v11947_v36 }
 0x498   : > { %v12105_v27 = vpop.f32.mrf.mxu1  ;;  %16367 = vmatmul.mubr.f32.vlgmr.msra.gmra.mxu1 %v32055_v54  ;;  %v29038_v54 = vld [vmem:[%s34865_s3 + $0x78] sm:$0xf] }
 0x499   : > { %16465 = vmatmul.mubr.f32.vlgmr.msra.gmra.mxu0 %v16464_v58  ;;  %v12215_v37 = vpop.f32.mrf.mxu0  ;;  %v12034_v41 = vadd.f32 %v12033_v5, %v11949_v17  ;;  %v12106_v61 = vadd.f32 %v12105_v27, %v12025_v40  ;;  %16372 = vmatprep.mubr.f32.mxu1 %v35223_v15  ;;  %v35613_v58 = vld [vmem:[#allocation44_spill] sm:$0xff] }
 0x49a   : > { %16470 = vmatprep.mubr.f32.mxu0 %v35223_v15  ;;  %v12107_v35 = vpop.f32.mrf.mxu1  ;;  %16606 = vmatpush1.msra.mxu0 %v35610_v50 }
 0x49b   : > { %v12217_v52 = vpop.f32.mrf.mxu0  ;;  %16523 = vmatpush1.msra.mxu1 %v35611_v39  ;;  %v32198_v6 = vadd.f32 %v12106_v61, %v32124_v19  ;;  %v12108_v34 = vadd.f32 %v12107_v35, %v12027_v21  ;;  %16774 = vmatprep.subr.mxu0 %v35612_v2  ;;  %v16918_v19 = vsel %vm344_vm0, %v29038_v54, 0  ;;  %v35617_v2 = vld [vmem:[#allocation47_spill] sm:$0xff] }
 0x49c   : > { %16687 = vmatprep.subr.mxu1 %v35606_v42  ;;  %v12112_v60 = vpop.f32.mrf.mxu1  ;;  %16374 = vmatmul.mubr.f32.gmra.mxu1 %v32071_v22  ;;  %v32219_v4 = vand.u32 4294901760, %v16918_v19 }
 0x49d   : > { %16476 = vmatmul.mubr.f32.gmra.mxu0 %v16475_v33  ;;  %v12226_v63 = vpop.f32.mrf.mxu0  ;;  %v32206_v20 = vadd.f32 %v12108_v34, %v32132_v31  ;;  %v12113_v43 = vadd.f32 %v12112_v60, %v12032_v51  ;;  %16556 = vmatprep.mubr.f32.mxu1 %v35223_v15  ;;  %v35616_v34 = vld [vmem:[#allocation53_spill] sm:$0xff] }
 0x49e   : > { %16639 = vmatprep.mubr.f32.mxu0 %v35223_v15  ;;  %v12114_v62 = vpop.f32.mrf.mxu1  ;;  %v32233_v17 = vsub.f32 %v16918_v19, %v32219_v4 }
 0x49f   : > { %v12228_v24 = vpop.f32.mrf.mxu0  ;;  %v32212_v32 = vadd.f32 %v12113_v43, %v32138_v29  ;;  %v12115_v22 = vadd.f32 %v12114_v62, %v12034_v41  ;;  %v35614_v29 = vld [vmem:[#allocation45_spill] sm:$0xff] }
 0x4a0   : > { %v12308_v40 = vpop.f32.mrf.mxu1  ;;  %16558 = vmatmul.mubr.f32.vlgmr.msra.gmra.mxu1 %v32129_v57  ;;  %v17000_v50 = vand.u32 4294901760, %v32233_v17 }
 0x4a1   : > { %16642 = vmatmul.mubr.f32.vlgmr.msra.gmra.mxu0 %v32143_v47  ;;  %v12392_v31 = vpop.f32.mrf.mxu0  ;;  %v32222_v12 = vadd.f32 %v12115_v22, %v32148_v13  ;;  %v12309_v8 = vadd.f32 %v12308_v40, %v12215_v37  ;;  %16563 = vmatprep.mubr.f32.mxu1 %v35223_v15 }
 0x4a2   : > { %16778 = vmatpush1.msra.mxu0 %v35613_v58  ;;  %v12310_v44 = vpop.f32.mrf.mxu1  ;;  %16647 = vmatprep.mubr.f32.mxu0 %v35223_v15  ;;  %v17001_v62 = vsub.f32 %v32233_v17, %v17000_v50 }
 0x4a3   : > { %16951 = vmatprep.subr.mxu0 %v35614_v29  ;;  %v12394_v36 = vpop.f32.mrf.mxu0  ;;  %v12311_v21 = vadd.f32 %v12310_v44, %v12217_v52  ;;  %v12393_v45 = vadd.f32 %v12392_v31, %v12309_v8  ;;  %16689 = vmatpush1.msra.mxu1 %v35607_v3  ;;  %v16990_v52 = vsub.f32 %v32217_v16, %v16989_v11 }
 0x4a4   : > { %v12315_v5 = vpop.f32.mrf.mxu1  ;;  %16565 = vmatmul.mubr.f32.gmra.mxu1 %v32145_v7  ;;  %16857 = vmatprep.subr.mxu1 %v35606_v42  ;;  %v35615_v42 = vld [vmem:[#allocation46_spill] sm:$0xff] }
 0x4a5   : > { %16650 = vmatmul.mubr.f32.gmra.mxu0 %v32160_v1  ;;  %v12400_v13 = vpop.f32.mrf.mxu0  ;;  %v12316_v51 = vadd.f32 %v12315_v5, %v12226_v63  ;;  %v12395_v27 = vadd.f32 %v12394_v36, %v12311_v21  ;;  %16722 = vmatprep.mubr.f32.mxu1 %v35223_v15  ;;  %v16991_v19 = vand.u32 4294901760, %v16990_v52  ;;  %v29039_v1 = vld [vmem:[%s34865_s3 + $0x20] sm:$0xff]  ;;  %v17002_v36 = vand.u32 4294901760, %v17001_v62 }
 0x4a6   : > { %16811 = vmatprep.mubr.f32.mxu0 %v35223_v15  ;;  %v12317_v37 = vpop.f32.mrf.mxu1  ;;  %v35618_v5 = vld [vmem:[#allocation54_spill] sm:$0xff] }
 0x4a7   : > { %v12402_v33 = vpop.f32.mrf.mxu0  ;;  %v12318_v41 = vadd.f32 %v12317_v37, %v12228_v24  ;;  %v12401_v61 = vadd.f32 %v12400_v13, %v12316_v51  ;;  %v35619_v13 = vld [vmem:[#allocation49_spill] sm:$0xff]  ;;  %v17442_v51 = vsel %vm344_vm0, %v29039_v1, 0 }
 0x4a8   : > { %v12476_v30 = vpop.f32.mrf.mxu1  ;;  %16726 = vmatmul.mubr.f32.vlgmr.msra.gmra.mxu1 %v16462_v28  ;;  %v32283_v52 = vand.u32 4294901760, %v17442_v51 }
 0x4a9   : > { %16813 = vmatmul.mubr.f32.vlgmr.msra.gmra.mxu0 %v32129_v57  ;;  %v12563_v35 = vpop.f32.mrf.mxu0  ;;  %v12403_v39 = vadd.f32 %v12402_v33, %v12318_v41  ;;  %v12477_v54 = vadd.f32 %v12476_v30, %v12393_v45  ;;  %16859 = vmatpush1.msra.mxu1 %v35607_v3 }
 0x4aa   : > { %16953 = vmatpush1.msra.mxu0 %v35615_v42  ;;  %17044 = vmatprep.subr.mxu1 %v35616_v34  ;;  %v12478_v47 = vpop.f32.mrf.mxu1 }
 0x4ab   : > { %17130 = vmatprep.subr.mxu0 %v35617_v2  ;;  %v12565_v28 = vpop.f32.mrf.mxu0  ;;  %v12479_v60 = vadd.f32 %v12478_v47, %v12395_v27  ;;  %v12564_v63 = vadd.f32 %v12563_v35, %v12477_v54  ;;  %16731 = vmatprep.mubr.f32.mxu1 %v35223_v15  ;;  %v35620_v27 = vld [vmem:[#allocation51_spill] sm:$0xff] }
 0x4ac   : > { %16818 = vmatprep.mubr.f32.mxu0 %v35223_v15  ;;  %v12485_v43 = vpop.f32.mrf.mxu1  ;;  %16735 = vmatmul.mubr.f32.gmra.mxu1 %v16473_v9 }
 0x4ad   : > { %16820 = vmatmul.mubr.f32.gmra.mxu0 %v32145_v7  ;;  %v12570_v3 = vpop.f32.mrf.mxu0  ;;  %v12486_v24 = vadd.f32 %v12485_v43, %v12401_v61  ;;  %v12566_v22 = vadd.f32 %v12565_v28, %v12479_v60  ;;  %16892 = vmatprep.mubr.f32.mxu1 %v35223_v15  ;;  %v32303_v60 = vsub.f32 %v17442_v51, %v32283_v52 }
 0x4ae   : > { %16986 = vmatprep.mubr.f32.mxu0 %v35223_v15  ;;  %v12487_v40 = vpop.f32.mrf.mxu1 }
 0x4af   : > { %v12572_v31 = vpop.f32.mrf.mxu0  ;;  %v12488_v9 = vadd.f32 %v12487_v40, %v12403_v39  ;;  %v12571_v8 = vadd.f32 %v12570_v3, %v12486_v24  ;;  %v35625_v3 = vld [vmem:[#allocation60_spill] sm:$0xff]  ;;  %v35636_v10 = vand.u32 4294901760, %v32303_v60 }
 0x4b0   : > { %v12644_v58 = vpop.f32.mrf.mxu1  ;;  %16894 = vmatmul.mubr.f32.vlgmr.msra.gmra.mxu1 %v32129_v57  ;;  %v29040_v57 = vld [vmem:[%s34865_s3 + $0x28] sm:$0xf] }
 0x4b1   : > { %16992 = vmatmul.mubr.f32.vlgmr.msra.gmra.mxu0 %v16991_v19  ;;  %v32263_v44 = vpop.f32.mrf.mxu0  ;;  %v12573_v21 = vadd.f32 %v12572_v31, %v12488_v9  ;;  %v12645_v45 = vadd.f32 %v12644_v58, %v12564_v63  ;;  %17050 = vmatpush1.msra.mxu1 %v35618_v5 }
 0x4b2   : > { %17133 = vmatpush1.msra.mxu0 %v35619_v13  ;;  %17214 = vmatprep.subr.mxu1 %v35614_v29  ;;  %v12646_v37 = vpop.f32.mrf.mxu1 }
 0x4b3   : > { %17301 = vmatprep.subr.mxu0 %v35620_v27  ;;  %v32270_v33 = vpop.f32.mrf.mxu0  ;;  %v32276_v41 = vadd.f32 %v12645_v45, %v32198_v6  ;;  %v12647_v61 = vadd.f32 %v12646_v37, %v12566_v22  ;;  %16899 = vmatprep.mubr.f32.mxu1 %v35223_v15  ;;  %v17445_v6 = vsel %vm344_vm0, %v29040_v57, 0  ;;  %v35628_v45 = vld [vmem:[#allocation62_spill] sm:$0xff] }
 0x4b4   : > { %16997 = vmatprep.mubr.f32.mxu0 %v35223_v15  ;;  %v12651_v30 = vpop.f32.mrf.mxu1  ;;  %16901 = vmatmul.mubr.f32.gmra.mxu1 %v32145_v7  ;;  %v32305_v63 = vand.u32 4294901760, %v17445_v6 }
 0x4b5   : > { %17003 = vmatmul.mubr.f32.gmra.mxu0 %v17002_v36  ;;  %v32281_v35 = vpop.f32.mrf.mxu0  ;;  %v32286_v39 = vadd.f32 %v12647_v61, %v32206_v20  ;;  %v12652_v54 = vadd.f32 %v12651_v30, %v12571_v8  ;;  %17083 = vmatprep.mubr.f32.mxu1 %v35223_v15  ;;  %v35626_v36 = vld [vmem:[#allocation61_spill] sm:$0xff]  ;;  %v35629_v30 = vld [vmem:[#allocation70_spill] sm:$0xff] }
 0x4b6   : > { %17166 = vmatprep.mubr.f32.mxu0 %v35223_v15  ;;  %v12653_v34 = vpop.f32.mrf.mxu1  ;;  %v32328_v22 = vsub.f32 %v17445_v6, %v32305_v63 }
 0x4b7   : > { %35621 = vst [vmem:[#allocation88_spill] sm:$0xff] %v32286_v39  ;;  %v32291_v2 = vpop.f32.mrf.mxu0  ;;  %v32294_v7 = vadd.f32 %v12652_v54, %v32212_v32  ;;  %v12654_v47 = vadd.f32 %v12653_v34, %v12573_v21  ;;  %v35624_v32 = vld [vmem:[#allocation52_spill] sm:$0xff]  ;;  %v35627_v21 = vld [vmem:[#allocation69_spill] sm:$0xff]  ;;  %v35630_v54 = vld [vmem:[#allocation63_spill] sm:$0xff] }
 0x4b8   : > { %v32296_v28 = vpop.f32.mrf.mxu1  ;;  %17085 = vmatmul.mubr.f32.vlgmr.msra.gmra.mxu1 %v32203_v38  ;;  %v35101_v58 = vand.u32 4294901760, %v32328_v22  ;;  %v35631_v34 = vld [vmem:[#allocation66_spill] sm:$0xff] }
 0x4b9   : > { %35622 = vst [vmem:[#allocation84_spill] sm:$0xff] %v32294_v7  ;;  %17169 = vmatmul.mubr.f32.vlgmr.msra.gmra.mxu0 %v32217_v16  ;;  %v32300_v20 = vpop.f32.mrf.mxu0  ;;  %v32308_v43 = vadd.f32 %v12654_v47, %v32222_v12  ;;  %17216 = vmatpush1.msra.mxu1 %v35615_v42 }
 0x4ba   : > { %17305 = vmatpush1.msra.mxu0 %v35624_v32  ;;  %17384 = vmatprep.subr.mxu1 %v35614_v29  ;;  %v32314_v19 = vpop.f32.mrf.mxu1  ;;  %v35102_v29 = vand.u32 4294901760, %v32303_v60  ;;  %v17528_v51 = vsub.f32 %v32328_v22, %v35101_v58 }
 0x4bb   : > { %35623 = vst [vmem:[#allocation89_spill] sm:$0xff] %v32308_v43  ;;  %17478 = vmatprep.subr.mxu0 %v35625_v3  ;;  %v32316_v62 = vpop.f32.mrf.mxu0  ;;  %17090 = vmatprep.mubr.f32.mxu1 %v35223_v15 }
 0x4bc   : > { %17174 = vmatprep.mubr.f32.mxu0 %v35223_v15  ;;  %v32320_v24 = vpop.f32.mrf.mxu1  ;;  %17092 = vmatmul.mubr.f32.gmra.mxu1 %v32219_v4  ;;  %v17517_v8 = vsub.f32 %v32303_v60, %v35102_v29  ;;  %v17529_v61 = vand.u32 4294901760, %v17528_v51 }
 0x4bd   : > { %17177 = vmatmul.mubr.f32.gmra.mxu0 %v32233_v17  ;;  %v32324_v12 = vpop.f32.mrf.mxu0  ;;  %17249 = vmatprep.mubr.f32.mxu1 %v35223_v15  ;;  %v29041_v17 = vld [vmem:[%s34865_s3 + $0x50] sm:$0xff] }
 0x4be   : > { %17338 = vmatprep.mubr.f32.mxu0 %v35223_v15  ;;  %v32332_v40 = vpop.f32.mrf.mxu1  ;;  %v17518_v13 = vand.u32 4294901760, %v17517_v8  ;;  %v17969_v6 = vsel %vm344_vm0, %v29041_v17, 0 }
 0x4bf   : > { %v32334_v31 = vpop.f32.mrf.mxu0 }
 0x4c0   : > { %v32336_v1 = vpop.f32.mrf.mxu1  ;;  %17253 = vmatmul.mubr.f32.vlgmr.msra.gmra.mxu1 %v16989_v11 }
 0x4c1   : > { %17340 = vmatmul.mubr.f32.vlgmr.msra.gmra.mxu0 %v32203_v38  ;;  %v32341_v9 = vpop.f32.mrf.mxu0  ;;  %17386 = vmatpush1.msra.mxu1 %v35615_v42 }
 0x4c2   : > { %17480 = vmatpush1.msra.mxu0 %v35626_v36  ;;  %17571 = vmatprep.subr.mxu1 %v35627_v21  ;;  %v32351_v16 = vpop.f32.mrf.mxu1 }
 0x4c3   : > { %17657 = vmatprep.subr.mxu0 %v35628_v45  ;;  %v32353_v11 = vpop.f32.mrf.mxu0  ;;  %17258 = vmatprep.mubr.f32.mxu1 %v35223_v15  ;;  %v32400_v45 = vand.u32 4294901760, %v17969_v6 }
 0x4c4   : > { %17345 = vmatprep.mubr.f32.mxu0 %v35223_v15  ;;  %v32357_v5 = vpop.f32.mrf.mxu1  ;;  %17262 = vmatmul.mubr.f32.gmra.mxu1 %v17000_v50 }
 0x4c5   : > { %17347 = vmatmul.mubr.f32.gmra.mxu0 %v32219_v4  ;;  %v32362_v42 = vpop.f32.mrf.mxu0  ;;  %17419 = vmatprep.mubr.f32.mxu1 %v35223_v15 }
 0x4c6   : > { %17513 = vmatprep.mubr.f32.mxu0 %v35223_v15  ;;  %v32369_v27 = vpop.f32.mrf.mxu1 }
 0x4c7   : > { %v32371_v37 = vpop.f32.mrf.mxu0 }
 0x4c8   : > { %v32376_v50 = vpop.f32.mrf.mxu1  ;;  %17421 = vmatmul.mubr.f32.vlgmr.msra.gmra.mxu1 %v32203_v38  ;;  %v29042_v38 = vld [vmem:[%s34865_s3 + $0x58] sm:$0xf] }
 0x4c9   : > { %17519 = vmatmul.mubr.f32.vlgmr.msra.gmra.mxu0 %v17518_v13  ;;  %v32379_v57 = vpop.f32.mrf.mxu0  ;;  %17577 = vmatpush1.msra.mxu1 %v35629_v30  ;;  %v17972_v13 = vsel %vm344_vm0, %v29042_v38, 0  ;;  %v35635_v38 = vld [vmem:[#allocation59_spill] sm:$0xff] }
 0x4ca   : > { %17660 = vmatpush1.msra.mxu0 %v35630_v54  ;;  %17741 = vmatprep.subr.mxu1 %v35625_v3  ;;  %v32386_v47 = vpop.f32.mrf.mxu1  ;;  %v32418_v54 = vand.u32 4294901760, %v17972_v13 }
 0x4cb   : > { %17828 = vmatprep.subr.mxu0 %v35631_v34  ;;  %v32388_v32 = vpop.f32.mrf.mxu0  ;;  %17426 = vmatprep.mubr.f32.mxu1 %v35223_v15  ;;  %v35634_v34 = vld [vmem:[#allocation67_spill] sm:$0xff] }
 0x4cc   : > { %17524 = vmatprep.mubr.f32.mxu0 %v35223_v15  ;;  %v32395_v8 = vpop.f32.mrf.mxu1  ;;  %17428 = vmatmul.mubr.f32.gmra.mxu1 %v32219_v4 }
 0x4cd   : > { %35632 = vst [vmem:[#allocation86_spill] sm:$0xff] %v32395_v8  ;;  %17530 = vmatmul.mubr.f32.gmra.mxu0 %v17529_v61  ;;  %v32398_v21 = vpop.f32.mrf.mxu0  ;;  %17610 = vmatprep.mubr.f32.mxu1 %v35223_v15  ;;  %v32416_v61 = vsub.f32 %v17969_v6, %v32400_v45  ;;  %v35644_v8 = vld [vmem:[#allocation78_spill] sm:$0xff] }
 0x4ce   : > { %17693 = vmatprep.mubr.f32.mxu0 %v35223_v15  ;;  %v32405_v51 = vpop.f32.mrf.mxu1 }
 0x4cf   : > { %35633 = vst [vmem:[#allocation57_spill] sm:$0xff] %v32405_v51  ;;  %v32407_v17 = vpop.f32.mrf.mxu0 }
 0x4d0   : > { %v32409_v30 = vpop.f32.mrf.mxu1  ;;  %17612 = vmatmul.mubr.f32.vlgmr.msra.gmra.mxu1 %v32283_v52 }
 0x4d1   : > { %17696 = vmatmul.mubr.f32.vlgmr.msra.gmra.mxu0 %v32303_v60  ;;  %v32413_v4 = vpop.f32.mrf.mxu0  ;;  %17743 = vmatpush1.msra.mxu1 %v35626_v36 }
 0x4d2   : > { %17832 = vmatpush1.msra.mxu0 %v35634_v34  ;;  %17911 = vmatprep.subr.mxu1 %v35625_v3  ;;  %v32424_v58 = vpop.f32.mrf.mxu1  ;;  %v35122_v3 = vand.u32 4294901760, %v32416_v61  ;;  %v32438_v34 = vsub.f32 %v17972_v13, %v32418_v54 }
 0x4d3   : > { %18005 = vmatprep.subr.mxu0 %v35635_v38  ;;  %v32426_v29 = vpop.f32.mrf.mxu0  ;;  %17617 = vmatprep.mubr.f32.mxu1 %v35223_v15 }
 0x4d4   : > { %17701 = vmatprep.mubr.f32.mxu0 %v35223_v15  ;;  %v32430_v6 = vpop.f32.mrf.mxu1  ;;  %17619 = vmatmul.mubr.f32.gmra.mxu1 %v32305_v63  ;;  %v18044_v13 = vsub.f32 %v32416_v61, %v35122_v3  ;;  %v29044_v3 = vld [vmem:[%s34865_s3 + $0x88] sm:$0xf]  ;;  %v35642_v26 = vand.u32 4294901760, %v32438_v34 }
 0x4d5   : > { %17704 = vmatmul.mubr.f32.gmra.mxu0 %v32328_v22  ;;  %v32434_v53 = vpop.f32.mrf.mxu0  ;;  %17776 = vmatprep.mubr.f32.mxu1 %v35223_v15  ;;  %v18499_v43 = vsel %vm344_vm0, %v29044_v3, 0  ;;  %v35646_v3 = vld [vmem:[#allocation71_spill] sm:$0xff] }
 0x4d6   : > { %17865 = vmatprep.mubr.f32.mxu0 %v35223_v15  ;;  %v32442_v56 = vpop.f32.mrf.mxu1  ;;  %v18045_v55 = vand.u32 4294901760, %v18044_v13  ;;  %v18055_v25 = vsub.f32 %v32438_v34, %v35642_v26  ;;  %v32494_v26 = vand.u32 4294901760, %v18496_v48 }
 0x4d7   : > { %v32444_v23 = vpop.f32.mrf.mxu0 }
 0x4d8   : > { %v32446_v46 = vpop.f32.mrf.mxu1  ;;  %17780 = vmatmul.mubr.f32.vlgmr.msra.gmra.mxu1 %v35636_v10  ;;  %v18056_v51 = vand.u32 4294901760, %v18055_v25  ;;  %v12862_v25 = vadd.f32 %v32296_v28, %v32263_v44  ;;  %v12871_v44 = vadd.f32 %v32332_v40, %v32291_v2 }
 0x4d9   : > { %17867 = vmatmul.mubr.f32.vlgmr.msra.gmra.mxu0 %v32283_v52  ;;  %v32451_v18 = vpop.f32.mrf.mxu0  ;;  %17913 = vmatpush1.msra.mxu1 %v35626_v36 }
 0x4da   : > { %18007 = vmatpush1.msra.mxu0 %v35637_v14  ;;  %18098 = vmatprep.subr.mxu1 %v35638_v59  ;;  %v32461_v60 = vpop.f32.mrf.mxu1  ;;  %v12956_v40 = vadd.f32 %v32334_v31, %v12871_v44 }
 0x4db   : > { %18184 = vmatprep.subr.mxu0 %v35639_v49  ;;  %v32463_v10 = vpop.f32.mrf.mxu0  ;;  %17785 = vmatprep.mubr.f32.mxu1 %v35223_v15  ;;  %v35640_v49 = vand.u32 4294901760, %v32328_v22 }
 0x4dc   : > { %17872 = vmatprep.mubr.f32.mxu0 %v35223_v15  ;;  %v32473_v36 = vpop.f32.mrf.mxu1 }
 0x4dd   : > { %17789 = vmatmul.mubr.f32.gmra.mxu1 %v35640_v49  ;;  %17874 = vmatmul.mubr.f32.gmra.mxu0 %v32305_v63  ;;  %v32478_v59 = vpop.f32.mrf.mxu0 }
 0x4de   : > { %35641 = vst [vmem:[#allocation58_spill] sm:$0xff] %v32478_v59  ;;  %17946 = vmatprep.mubr.f32.mxu1 %v35223_v15  ;;  %18040 = vmatprep.mubr.f32.mxu0 %v35223_v15  ;;  %v32487_v7 = vpop.f32.mrf.mxu1  ;;  %v32496_v59 = vand.u32 4294901760, %v18499_v43 }
 0x4df   : > { %v32489_v22 = vpop.f32.mrf.mxu0 }
 0x4e0   : > { %35643 = vst [vmem:[#allocation96_spill] sm:$0xff] %v32489_v22  ;;  %v32491_v49 = vpop.f32.mrf.mxu1 }
 0x4e1   : > { %17948 = vmatmul.mubr.f32.vlgmr.msra.gmra.mxu1 %v32283_v52  ;;  %18046 = vmatmul.mubr.f32.vlgmr.msra.gmra.mxu0 %v18045_v55  ;;  %v13840_v13 = vpop.f32.mrf.mxu0 }
 0x4e2   : > { %18104 = vmatpush1.msra.mxu1 %v35644_v8  ;;  %18187 = vmatpush1.msra.mxu0 %v35645_v0  ;;  %v32502_v22 = vpop.f32.mrf.mxu1  ;;  %v32514_v8 = vsub.f32 %v18496_v48, %v32494_v26  ;;  %v32517_v0 = vsub.f32 %v18499_v43, %v32496_v59  ;;  %v13395_v43 = vadd.f32 %v32409_v30, %v32379_v57 }
 0x4e3   : > { %18268 = vmatprep.subr.mxu1 %v35635_v38  ;;  %18355 = vmatprep.subr.mxu0 %v35646_v3  ;;  %35647 = vst [vmem:[#allocation99_spill] sm:$0xff] %v32502_v22  ;;  %v13842_v39 = vpop.f32.mrf.mxu0  ;;  %v12864_v3 = vadd.f32 %v32314_v19, %v32270_v33  ;;  %v12869_v22 = vadd.f32 %v32320_v24, %v32281_v35 }
 0x4e4   : > { %17953 = vmatprep.mubr.f32.mxu1 %v35223_v15  ;;  %18051 = vmatprep.mubr.f32.mxu0 %v35223_v15  ;;  %v32508_v55 = vpop.f32.mrf.mxu1  ;;  %v18570_v2 = vand.u32 4294901760, %v32514_v8  ;;  %v18581_v57 = vand.u32 4294901760, %v32517_v0  ;;  %v13397_v30 = vadd.f32 %v32424_v58, %v32388_v32  ;;  %v13402_v58 = vadd.f32 %v32430_v6, %v32398_v21 }
 0x4e5   : > { %17955 = vmatmul.mubr.f32.gmra.mxu1 %v32305_v63  ;;  %18057 = vmatmul.mubr.f32.gmra.mxu0 %v18056_v51  ;;  %v32511_v52 = vpop.f32.mrf.mxu0  ;;  %v12946_v63 = vadd.f32 %v32300_v20, %v12862_v25  ;;  %v12948_v19 = vadd.f32 %v32316_v62, %v12864_v3  ;;  %v12954_v24 = vadd.f32 %v32324_v12, %v12869_v22  ;;  %v35648_v20 = vld [vmem:[#allocation72_spill] sm:$0xff]  ;;  %v35649_v25 = vld [vmem:[#allocation73_spill] sm:$0xff] }
 0x4e6   : > { %18137 = vmatprep.mubr.f32.mxu1 %v35223_v15  ;;  %18220 = vmatprep.mubr.f32.mxu0 %v35223_v15  ;;  %v32527_v28 = vpop.f32.mrf.mxu1  ;;  %v13041_v22 = vadd.f32 %v32369_v27, %v12956_v40  ;;  %v32568_v27 = vsub.f32 %v32517_v0, %v18581_v57  ;;  %v13404_v6 = vadd.f32 %v32442_v56, %v32407_v17  ;;  %v35650_v56 = vand.u32 4294901760, %v32416_v61 }
 0x4e7   : > { %v32529_v48 = vpop.f32.mrf.mxu0  ;;  %v13030_v51 = vadd.f32 %v32336_v1, %v12946_v63  ;;  %v13032_v12 = vadd.f32 %v32351_v16, %v12948_v19  ;;  %v13039_v31 = vadd.f32 %v32357_v5, %v12954_v24  ;;  %v13479_v1 = vadd.f32 %v32413_v4, %v13395_v43 }
 0x4e8   : > { %v13933_v33 = vpop.f32.mrf.mxu1  ;;  %v32563_v5 = vsub.f32 %v32514_v8, %v18570_v2  ;;  %v13481_v4 = vadd.f32 %v32426_v29, %v13397_v30  ;;  %v13126_v19 = vadd.f32 %v32371_v37, %v13041_v22 }
 0x4e9   : > { %18139 = vmatmul.mubr.f32.vlgmr.msra.gmra.mxu1 %v32400_v45  ;;  %18223 = vmatmul.mubr.f32.vlgmr.msra.gmra.mxu0 %v32416_v61  ;;  %v14017_v35 = vpop.f32.mrf.mxu0  ;;  %v13934_v16 = vadd.f32 %v13933_v33, %v13840_v13  ;;  %v13117_v21 = vadd.f32 %v32341_v9, %v13030_v51  ;;  %v13563_v13 = vadd.f32 %v32446_v46, %v13479_v1  ;;  %v35652_v61 = vld [vmem:[#allocation81_spill] sm:$0xff] }
 0x4ea   : > { %18270 = vmatpush1.msra.mxu1 %v35637_v14  ;;  %18359 = vmatpush1.msra.mxu0 %v35648_v20  ;;  %v13935_v62 = vpop.f32.mrf.mxu1  ;;  %v13119_v43 = vadd.f32 %v32353_v11, %v13032_v12  ;;  %v13124_v33 = vadd.f32 %v32362_v42, %v13039_v31  ;;  %v13487_v9 = vadd.f32 %v32434_v53, %v13402_v58  ;;  %v35657_v58 = vld [vmem:[#allocation58_spill] sm:$0xff] }
 0x4eb   : > { %18438 = vmatprep.subr.mxu1 %v35635_v38  ;;  %18532 = vmatprep.subr.mxu0 %v35649_v25  ;;  %v14019_v3 = vpop.f32.mrf.mxu0  ;;  %v13936_v24 = vadd.f32 %v13935_v62, %v13842_v39  ;;  %v13198_v40 = vadd.f32 %v32376_v50, %v13117_v21  ;;  %v13565_v29 = vadd.f32 %v32461_v60, %v13481_v4  ;;  %v35651_v39 = vld [vmem:[#allocation74_spill] sm:$0xff]  ;;  %v35653_v60 = vld [vmem:[#allocation75_spill] sm:$0xff]  ;;  %v35654_v62 = vand.u32 4294901760, %v32438_v34 }
 0x4ec   : > { %18144 = vmatprep.mubr.f32.mxu1 %v35223_v15  ;;  %18228 = vmatprep.mubr.f32.mxu0 %v35223_v15  ;;  %v13940_v32 = vpop.f32.mrf.mxu1  ;;  %v13200_v11 = vadd.f32 %v32386_v47, %v13119_v43  ;;  %v14018_v17 = vadd.f32 %v14017_v35, %v13934_v16  ;;  %v13489_v53 = vadd.f32 %v32444_v23, %v13404_v6  ;;  %v35659_v6 = vld [vmem:[#allocation57_spill] sm:$0xff] }
 0x4ed   : > { %18146 = vmatmul.mubr.f32.gmra.mxu1 %v32418_v54  ;;  %18231 = vmatmul.mubr.f32.gmra.mxu0 %v32438_v34  ;;  %v14025_v38 = vpop.f32.mrf.mxu0  ;;  %v13941_v42 = vadd.f32 %v13940_v32, %v32511_v52  ;;  %v13650_v37 = vadd.f32 %v32451_v18, %v13563_v13  ;;  %v13572_v50 = vadd.f32 %v32473_v36, %v13487_v9  ;;  %v35658_v32 = vld [vmem:[#allocation99_spill] sm:$0xff] }
 0x4ee   : > { %18303 = vmatprep.mubr.f32.mxu1 %v35223_v15  ;;  %18392 = vmatprep.mubr.f32.mxu0 %v35223_v15  ;;  %v13942_v44 = vpop.f32.mrf.mxu1  ;;  %v14020_v47 = vadd.f32 %v14019_v3, %v13936_v24  ;;  %v13574_v18 = vadd.f32 %v32487_v7, %v13489_v53  ;;  %v13209_v12 = vadd.f32 %v13198_v40, %v32276_v41  ;;  %v35655_v7 = vld [vmem:[#allocation88_spill] sm:$0xff] }
 0x4ef   : > { %v14027_v63 = vpop.f32.mrf.mxu0  ;;  %v13943_v35 = vadd.f32 %v13942_v44, %v32529_v48  ;;  %v13731_v23 = vadd.f32 %v32491_v49, %v13650_v37  ;;  %v18572_v48 = vand.u32 4294901760, %v32563_v5  ;;  %v14026_v31 = vadd.f32 %v14025_v38, %v13941_v42  ;;  %v35656_v49 = vld [vmem:[#allocation86_spill] sm:$0xff]  ;;  %v35660_v44 = vld [vmem:[#allocation96_spill] sm:$0xff] }
 0x4f0   : > { %v14101_v20 = vpop.f32.mrf.mxu1  ;;  %v13205_v1 = vadd.f32 %v35656_v49, %v13124_v33  ;;  %v13657_v34 = vadd.f32 %v35657_v58, %v13572_v50  ;;  %v13207_v5 = vadd.f32 %v35659_v6, %v13126_v19  ;;  %v13659_v43 = vadd.f32 %v35660_v44, %v13574_v18  ;;  %v35666_v58 = vld [vmem:[#allocation80_spill] sm:$0xff] }
 0x4f1   : > { %18307 = vmatmul.mubr.f32.vlgmr.msra.gmra.mxu1 %v35650_v56  ;;  %18394 = vmatmul.mubr.f32.vlgmr.msra.gmra.mxu0 %v32400_v45  ;;  %v14188_v46 = vpop.f32.mrf.mxu0  ;;  %v14102_v52 = vadd.f32 %v14101_v20, %v14018_v17  ;;  %v14028_v13 = vadd.f32 %v14027_v63, %v13943_v35  ;;  %v13742_v24 = vadd.f32 %v13731_v23, %v13209_v12  ;;  %v18583_v33 = vand.u32 4294901760, %v32568_v27  ;;  %v19019_v20 = vld [vmem:[%s34866_s4] sm:$0xff]  ;;  %v35663_v17 = vld [vmem:[#allocation84_spill] sm:$0xff]  ;;  %v35664_v27 = vld [vmem:[#allocation79_spill] sm:$0xff] }
 0x4f2   : > { %18440 = vmatpush1.msra.mxu1 %v35637_v14  ;;  %18534 = vmatpush1.msra.mxu0 %v35651_v39  ;;  %v14103_v51 = vpop.f32.mrf.mxu1  ;;  %v13652_v14 = vadd.f32 %v32463_v10, %v13565_v29  ;;  %v13210_v10 = vadd.f32 %v13200_v11, %v35655_v7  ;;  %v13738_v40 = vadd.f32 %v32508_v55, %v13657_v34  ;;  %v35662_v11 = vld [vmem:[#allocation77_spill] sm:$0xff] }
 0x4f3   : > { %18625 = vmatprep.subr.mxu1 %v35652_v61  ;;  %18711 = vmatprep.subr.mxu0 %v35653_v60  ;;  %v14190_v30 = vpop.f32.mrf.mxu0  ;;  %v14104_v22 = vadd.f32 %v14103_v51, %v14020_v47  ;;  %v14189_v41 = vadd.f32 %v14188_v46, %v14102_v52  ;;  %v35661_v46 = vld [vmem:[#allocation82_spill] sm:$0xff]  ;;  %v13211_v55 = vadd.f32 %v13205_v1, %v35663_v17  ;;  %v19022_v51 = vsel %vm9445_vm12, %v19019_v20, 0  ;;  %v35667_v34 = vld [vmem:[#allocation157_spill] sm:$0xff] }
 0x4f4   : > { %18312 = vmatprep.mubr.f32.mxu1 %v35223_v15  ;;  %18399 = vmatprep.mubr.f32.mxu0 %v35223_v15  ;;  %v14110_v36 = vpop.f32.mrf.mxu1  ;;  %v13733_v16 = vadd.f32 %v35658_v32, %v13652_v14  ;;  %v19020_v14 = vld [vmem:[%s34866_s4 + $0x8] sm:$0xf] }
 0x4f5   : > { %18316 = vmatmul.mubr.f32.gmra.mxu1 %v35654_v62  ;;  %18401 = vmatmul.mubr.f32.gmra.mxu0 %v32418_v54  ;;  %v14195_v3 = vpop.f32.mrf.mxu0  ;;  %v14111_v38 = vadd.f32 %v14110_v36, %v14026_v31  ;;  %v14191_v19 = vadd.f32 %v14190_v30, %v14104_v22  ;;  %v35665_v30 = vld [vmem:[#allocation89_spill] sm:$0xff]  ;;  %v13744_v35 = vadd.f32 %v13738_v40, %v13211_v55  ;;  %v19025_v22 = vsel %vm9445_vm12, %v19020_v14, 0 }
 0x4f6   : > { %18473 = vmatprep.mubr.f32.mxu1 %v35223_v15  ;;  %18567 = vmatprep.mubr.f32.mxu0 %v35223_v15  ;;  %v14112_v21 = vpop.f32.mrf.mxu1  ;;  %v13743_v42 = vadd.f32 %v13733_v16, %v13210_v10  ;;  %v13212_v47 = vadd.f32 %v13207_v5, %v35665_v30 }
 0x4f7   : > { %v14197_v4 = vpop.f32.mrf.mxu0  ;;  %v14113_v63 = vadd.f32 %v14112_v21, %v14028_v13  ;;  %v14196_v50 = vadd.f32 %v14195_v3, %v14111_v38 }
 0x4f8   : > { %v14269_v9 = vpop.f32.mrf.mxu1 }
 0x4f9   : > { %18475 = vmatmul.mubr.f32.vlgmr.msra.gmra.mxu1 %v32400_v45  ;;  %18573 = vmatmul.mubr.f32.vlgmr.msra.gmra.mxu0 %v18572_v48  ;;  %v14369_v29 = vpop.f32.mrf.mxu0  ;;  %v14270_v56 = vadd.f32 %v14269_v9, %v14189_v41  ;;  %v13740_v45 = vadd.f32 %v32527_v28, %v13659_v43  ;;  %v14198_v18 = vadd.f32 %v14197_v4, %v14113_v63  ;;  %v32658_v4 = vand.u32 4294901760, %v19025_v22 }
 0x4fa   : > { %18631 = vmatpush1.msra.mxu1 %v35661_v46  ;;  %18714 = vmatpush1.msra.mxu0 %v35662_v11  ;;  %v14271_v53 = vpop.f32.mrf.mxu1 }
 0x4fb   : > { %18795 = vmatprep.subr.mxu1 %v35649_v25  ;;  %18882 = vmatprep.subr.mxu0 %v35664_v27  ;;  %v14371_v37 = vpop.f32.mrf.mxu0  ;;  %v32624_v61 = vadd.f32 %v14270_v56, %v13742_v24  ;;  %v14272_v60 = vadd.f32 %v14271_v53, %v14191_v19  ;;  %v13745_v48 = vadd.f32 %v13740_v45, %v13212_v47  ;;  %v35668_v56 = vld [vmem:[#allocation158_spill] sm:$0xff]  ;;  %v35670_v45 = vld [vmem:[#allocation159_spill] sm:$0xff] }
 0x4fc   : > { %18480 = vmatprep.mubr.f32.mxu1 %v35223_v15  ;;  %18578 = vmatprep.mubr.f32.mxu0 %v35223_v15  ;;  %v14276_v28 = vpop.f32.mrf.mxu1  ;;  %v32672_v40 = vsub.f32 %v19025_v22, %v32658_v4 }
 0x4fd   : > { %18482 = vmatmul.mubr.f32.gmra.mxu1 %v32418_v54  ;;  %18584 = vmatmul.mubr.f32.gmra.mxu0 %v18583_v33  ;;  %v14380_v52 = vpop.f32.mrf.mxu0  ;;  %v32634_v23 = vadd.f32 %v14272_v60, %v13743_v42  ;;  %v14277_v36 = vadd.f32 %v14276_v28, %v14196_v50  ;;  %v32640_v54 = vand.u32 4294901760, %v19022_v51  ;;  %v35669_v42 = vld [vmem:[#allocation165_spill] sm:$0xff] }
 0x4fe   : > { %23761 = vrot.lane.b32.xlu0 %v32624_v61, %s29107_s8  ;;  %18664 = vmatprep.mubr.f32.mxu1 %v35223_v15  ;;  %v14278_v62 = vpop.f32.mrf.mxu1  ;;  %v19107_v55 = vand.u32 4294901760, %v32672_v40 }
 0x4ff   : > { %18747 = vmatprep.mubr.f32.mxu0 %v35223_v15  ;;  %v14382_v3 = vpop.f32.mrf.mxu0  ;;  %v32642_v12 = vadd.f32 %v14277_v36, %v13744_v35  ;;  %v14279_v31 = vadd.f32 %v14278_v62, %v14198_v18  ;;  %23765 = vrot.lane.b32.xlu1 %v32634_v23, %s29107_s8  ;;  %v32656_v21 = vsub.f32 %v19022_v51, %v32640_v54 }
 0x500   : > { %v14462_v7 = vpop.f32.mrf.mxu1  ;;  %v19108_v30 = vsub.f32 %v32672_v40, %v19107_v55 }
 0x501   : > { %18666 = vmatmul.mubr.f32.vlgmr.msra.gmra.mxu1 %v32494_v26  ;;  %18750 = vmatmul.mubr.f32.vlgmr.msra.gmra.mxu0 %v32514_v8  ;;  %v14546_v10 = vpop.f32.mrf.mxu0  ;;  %v32649_v49 = vadd.f32 %v14279_v31, %v13745_v48  ;;  %v14463_v1 = vadd.f32 %v14462_v7, %v14369_v29  ;;  %v19096_v24 = vand.u32 4294901760, %v32656_v21  ;;  %v35672_v48 = vld [vmem:[#allocation160_spill] sm:$0xff] }
 0x502   : > { %18797 = vmatpush1.msra.mxu1 %v35651_v39  ;;  %18886 = vmatpush1.msra.mxu0 %v35666_v58  ;;  %v14464_v32 = vpop.f32.mrf.mxu1  ;;  %v19109_v36 = vand.u32 4294901760, %v19108_v30 }
 0x503   : > { %18965 = vmatprep.subr.mxu1 %v35649_v25  ;;  %19058 = vmatprep.subr.mxu0 %v35667_v34  ;;  %v14548_v16 = vpop.f32.mrf.mxu0  ;;  %v14465_v6 = vadd.f32 %v14464_v32, %v14371_v37  ;;  %v14547_v5 = vadd.f32 %v14546_v10, %v14463_v1  ;;  %v19097_v17 = vsub.f32 %v32656_v21, %v19096_v24  ;;  %v35673_v10 = vld [vmem:[#allocation162_spill] sm:$0xff] }
 0x504   : > { %23763 = vrot.lane.b32.xlu0 %v32642_v12, %s29107_s8  ;;  %18671 = vmatprep.mubr.f32.mxu1 %v35223_v15  ;;  %v14469_v25 = vpop.f32.mrf.mxu1 }
 0x505   : > { %18755 = vmatprep.mubr.f32.mxu0 %v35223_v15  ;;  %23767 = vrot.lane.b32.xlu1 %v32649_v49, %s29107_s8  ;;  %v14554_v13 = vpop.f32.mrf.mxu0  ;;  %v14470_v41 = vadd.f32 %v14469_v25, %v14380_v52  ;;  %v14549_v38 = vadd.f32 %v14548_v16, %v14465_v6  ;;  %v19098_v60 = vand.u32 4294901760, %v19097_v17  ;;  %v35675_v17 = vld [vmem:[#allocation163_spill] sm:$0xff] }
 0x506   : > { %18673 = vmatmul.mubr.f32.gmra.mxu1 %v32496_v59  ;;  %18758 = vmatmul.mubr.f32.gmra.mxu0 %v32517_v0  ;;  %v14471_v44 = vpop.f32.mrf.mxu1  ;;  %v29045_v0 = vld [vmem:[%s34866_s4 + $0x30] sm:$0xff] }
 0x507   : > { %18830 = vmatprep.mubr.f32.mxu1 %v35223_v15  ;;  %18919 = vmatprep.mubr.f32.mxu0 %v35223_v15  ;;  %v14556_v43 = vpop.f32.mrf.mxu0  ;;  %v14472_v9 = vadd.f32 %v14471_v44, %v14382_v3  ;;  %v14555_v33 = vadd.f32 %v14554_v13, %v14470_v41  ;;  %v35671_v3 = vld [vmem:[#allocation166_spill] sm:$0xff]  ;;  %v19549_v7 = vsel %vm9445_vm12, %v29045_v0, 0 }
 0x508   : > { %23775 = vrot.lane.b32.xlu0 %v32642_v12, %s29106_s30  ;;  %v14630_v29 = vpop.f32.mrf.mxu1  ;;  %v32718_v25 = vand.u32 4294901760, %v19549_v7 }
 0x509   : > { %23779 = vrot.lane.b32.xlu1 %v32649_v49, %s29106_s30  ;;  %v14717_v20 = vpop.f32.mrf.mxu0  ;;  %v14631_v19 = vadd.f32 %v14630_v29, %v14547_v5  ;;  %v14557_v63 = vadd.f32 %v14556_v43, %v14472_v9 }
 0x50a   : > { %18834 = vmatmul.mubr.f32.vlgmr.msra.gmra.mxu1 %v18570_v2  ;;  %18921 = vmatmul.mubr.f32.vlgmr.msra.gmra.mxu0 %v32494_v26  ;;  %v14632_v46 = vpop.f32.mrf.mxu1 }
 0x50b   : > { %18967 = vmatpush1.msra.mxu1 %v35651_v39  ;;  %19060 = vmatpush1.msra.mxu0 %v35668_v56  ;;  %v14719_v11 = vpop.f32.mrf.mxu0  ;;  %v14633_v8 = vadd.f32 %v14632_v46, %v14549_v38  ;;  %v14718_v2 = vadd.f32 %v14717_v20, %v14631_v19  ;;  %v32726_v20 = vsub.f32 %v19549_v7, %v32718_v25 }
 0x50c   : > { %19151 = vmatprep.subr.mxu1 %v35669_v42  ;;  %19237 = vmatprep.subr.mxu0 %v35670_v45  ;;  %v14639_v39 = vpop.f32.mrf.mxu1 }
 0x50d   : > { %23773 = vrot.lane.b32.xlu0 %v32624_v61, %s29106_s30  ;;  %18839 = vmatprep.mubr.f32.mxu1 %v35223_v15  ;;  %v14724_v27 = vpop.f32.mrf.mxu0  ;;  %v14640_v53 = vadd.f32 %v14639_v39, %v14555_v33  ;;  %v14720_v37 = vadd.f32 %v14719_v11, %v14633_v8 }
 0x50e   : > { %18926 = vmatprep.mubr.f32.mxu0 %v35223_v15  ;;  %23777 = vrot.lane.b32.xlu1 %v32634_v23, %s29106_s30  ;;  %v14641_v50 = vpop.f32.mrf.mxu1 }
 0x50f   : > { %18843 = vmatmul.mubr.f32.gmra.mxu1 %v18581_v57  ;;  %18928 = vmatmul.mubr.f32.gmra.mxu0 %v32496_v59  ;;  %v14726_v51 = vpop.f32.mrf.mxu0  ;;  %v14642_v47 = vadd.f32 %v14641_v50, %v14557_v63  ;;  %v14725_v35 = vadd.f32 %v14724_v27, %v14640_v53  ;;  %v35674_v63 = vld [vmem:[#allocation161_spill] sm:$0xff]  ;;  %v19623_v53 = vand.u32 4294901760, %v32726_v20 }
 0x510   : > { %19000 = vmatprep.mubr.f32.mxu1 %v35223_v15  ;;  %19093 = vmatprep.mubr.f32.mxu0 %v35223_v15  ;;  %v14798_v28 = vpop.f32.mrf.mxu1 }
 0x511   : > { %v14889_v52 = vpop.f32.mrf.mxu0  ;;  %v14799_v57 = vadd.f32 %v14798_v28, %v14718_v2  ;;  %v14727_v14 = vadd.f32 %v14726_v51, %v14642_v47 }
 0x512   : > { %v14800_v18 = vpop.f32.mrf.mxu1 }
 0x513   : > { %19002 = vmatmul.mubr.f32.vlgmr.msra.gmra.mxu1 %v32494_v26  ;;  %19099 = vmatmul.mubr.f32.vlgmr.msra.gmra.mxu0 %v19098_v60  ;;  %v14891_v62 = vpop.f32.mrf.mxu0  ;;  %v14801_v31 = vadd.f32 %v14800_v18, %v14720_v37  ;;  %v14890_v22 = vadd.f32 %v14889_v52, %v14799_v57  ;;  %v29046_v26 = vld [vmem:[%s34866_s4 + $0x38] sm:$0xf]  ;;  %v19624_v52 = vsub.f32 %v32726_v20, %v19623_v53  ;;  %v35676_v57 = vld [vmem:[#allocation167_spill] sm:$0xff] }
 0x514   : > { %19157 = vmatpush1.msra.mxu1 %v35671_v3  ;;  %19240 = vmatpush1.msra.mxu0 %v35672_v48  ;;  %v14805_v1 = vpop.f32.mrf.mxu1  ;;  %v19552_v38 = vsel %vm9445_vm12, %v29046_v26, 0 }
 0x515   : > { %19321 = vmatprep.subr.mxu1 %v35667_v34  ;;  %19408 = vmatprep.subr.mxu0 %v35673_v10  ;;  %v14900_v58 = vpop.f32.mrf.mxu0  ;;  %v14806_v32 = vadd.f32 %v14805_v1, %v14725_v35  ;;  %v14892_v16 = vadd.f32 %v14891_v62, %v14801_v31  ;;  %v32728_v19 = vand.u32 4294901760, %v19552_v38  ;;  %v19625_v31 = vand.u32 4294901760, %v19624_v52 }
 0x516   : > { %19007 = vmatprep.mubr.f32.mxu1 %v35223_v15  ;;  %19104 = vmatprep.mubr.f32.mxu0 %v35223_v15  ;;  %v14807_v6 = vpop.f32.mrf.mxu1 }
 0x517   : > { %19009 = vmatmul.mubr.f32.gmra.mxu1 %v32496_v59  ;;  %19110 = vmatmul.mubr.f32.gmra.mxu0 %v19109_v36  ;;  %v14902_v5 = vpop.f32.mrf.mxu0  ;;  %v14808_v13 = vadd.f32 %v14807_v6, %v14727_v14  ;;  %v14901_v41 = vadd.f32 %v14900_v58, %v14806_v32  ;;  %v35677_v36 = vld [vmem:[#allocation171_spill] sm:$0xff] }
 0x518   : > { %19190 = vmatprep.mubr.f32.mxu1 %v35223_v15  ;;  %19273 = vmatprep.mubr.f32.mxu0 %v35223_v15  ;;  %v14982_v44 = vpop.f32.mrf.mxu1 }
 0x519   : > { %v15066_v43 = vpop.f32.mrf.mxu0  ;;  %v14983_v9 = vadd.f32 %v14982_v44, %v14890_v22  ;;  %v14903_v33 = vadd.f32 %v14902_v5, %v14808_v13  ;;  %v35679_v13 = vld [vmem:[#allocation172_spill] sm:$0xff] }
 0x51a   : > { %v14984_v59 = vpop.f32.mrf.mxu1 }
 0x51b   : > { %19192 = vmatmul.mubr.f32.vlgmr.msra.gmra.mxu1 %v32640_v54  ;;  %19276 = vmatmul.mubr.f32.vlgmr.msra.gmra.mxu0 %v32656_v21  ;;  %v15068_v29 = vpop.f32.mrf.mxu0  ;;  %v14985_v46 = vadd.f32 %v14984_v59, %v14892_v16  ;;  %v15067_v11 = vadd.f32 %v15066_v43, %v14983_v9  ;;  %v35678_v21 = vld [vmem:[#allocation164_spill] sm:$0xff] }
 0x51c   : > { %19323 = vmatpush1.msra.mxu1 %v35668_v56  ;;  %19412 = vmatpush1.msra.mxu0 %v35674_v63  ;;  %v14989_v42 = vpop.f32.mrf.mxu1  ;;  %v35681_v43 = vld [vmem:[#allocation168_spill] sm:$0xff] }
 0x51d   : > { %19491 = vmatprep.subr.mxu1 %v35667_v34  ;;  %19585 = vmatprep.subr.mxu0 %v35675_v17  ;;  %v15074_v45 = vpop.f32.mrf.mxu0  ;;  %v14990_v8 = vadd.f32 %v14989_v42, %v14901_v41  ;;  %v15069_v2 = vadd.f32 %v15068_v29, %v14985_v46  ;;  %v32740_v34 = vsub.f32 %v19552_v38, %v32728_v19  ;;  %v35680_v41 = vld [vmem:[#allocation169_spill] sm:$0xff] }
 0x51e   : > { %19197 = vmatprep.mubr.f32.mxu1 %v35223_v15  ;;  %19281 = vmatprep.mubr.f32.mxu0 %v35223_v15  ;;  %v14991_v39 = vpop.f32.mrf.mxu1 }
 0x51f   : > { %19199 = vmatmul.mubr.f32.gmra.mxu1 %v32658_v4  ;;  %19284 = vmatmul.mubr.f32.gmra.mxu0 %v32672_v40  ;;  %v15076_v27 = vpop.f32.mrf.mxu0  ;;  %v14992_v37 = vadd.f32 %v14991_v39, %v14903_v33  ;;  %v15075_v50 = vadd.f32 %v15074_v45, %v14990_v8  ;;  %v19634_v0 = vand.u32 4294901760, %v32740_v34  ;;  %v29047_v40 = vld [vmem:[%s34866_s4 + $0x60] sm:$0xff] }
 0x520   : > { %19356 = vmatprep.mubr.f32.mxu1 %v35223_v15  ;;  %19445 = vmatprep.mubr.f32.mxu0 %v35223_v15  ;;  %v15150_v60 = vpop.f32.mrf.mxu1  ;;  %v20076_v44 = vsel %vm9445_vm12, %v29047_v40, 0  ;;  %v35685_v40 = vld [vmem:[#allocation179_spill] sm:$0xff] }
 0x521   : > { %v15237_v51 = vpop.f32.mrf.mxu0  ;;  %v15151_v30 = vadd.f32 %v15150_v60, %v15067_v11  ;;  %v15077_v47 = vadd.f32 %v15076_v27, %v14992_v37  ;;  %v19635_v7 = vsub.f32 %v32740_v34, %v19634_v0  ;;  %v32786_v46 = vand.u32 4294901760, %v20076_v44 }
 0x522   : > { %v15152_v35 = vpop.f32.mrf.mxu1 }
 0x523   : > { %19360 = vmatmul.mubr.f32.vlgmr.msra.gmra.mxu1 %v19096_v24  ;;  %19447 = vmatmul.mubr.f32.vlgmr.msra.gmra.mxu0 %v32640_v54  ;;  %v15239_v28 = vpop.f32.mrf.mxu0  ;;  %v15153_v14 = vadd.f32 %v15152_v35, %v15069_v2  ;;  %v15238_v18 = vadd.f32 %v15237_v51, %v15151_v30  ;;  %v19636_v6 = vand.u32 4294901760, %v19635_v7  ;;  %v32796_v27 = vsub.f32 %v20076_v44, %v32786_v46  ;;  %v35683_v30 = vld [vmem:[#allocation173_spill] sm:$0xff] }
 0x524   : > { %19493 = vmatpush1.msra.mxu1 %v35668_v56  ;;  %19587 = vmatpush1.msra.mxu0 %v35676_v57  ;;  %v15159_v24 = vpop.f32.mrf.mxu1 }
 0x525   : > { %19678 = vmatprep.subr.mxu1 %v35677_v36  ;;  %19764 = vmatprep.subr.mxu0 %v35678_v21  ;;  %v15244_v62 = vpop.f32.mrf.mxu0  ;;  %v15160_v3 = vadd.f32 %v15159_v24, %v15075_v50  ;;  %v15240_v48 = vadd.f32 %v15239_v28, %v15153_v14  ;;  %v35682_v50 = vld [vmem:[#allocation170_spill] sm:$0xff]  ;;  %v20150_v36 = vand.u32 4294901760, %v32796_v27 }
 0x526   : > { %19365 = vmatprep.mubr.f32.mxu1 %v35223_v15  ;;  %19452 = vmatprep.mubr.f32.mxu0 %v35223_v15  ;;  %v15161_v56 = vpop.f32.mrf.mxu1 }
 0x527   : > { %19369 = vmatmul.mubr.f32.gmra.mxu1 %v19107_v55  ;;  %19454 = vmatmul.mubr.f32.gmra.mxu0 %v32658_v4  ;;  %v15246_v22 = vpop.f32.mrf.mxu0  ;;  %v15162_v10 = vadd.f32 %v15161_v56, %v15077_v47  ;;  %v15245_v1 = vadd.f32 %v15244_v62, %v15160_v3  ;;  %v20151_v7 = vsub.f32 %v32796_v27, %v20150_v36 }
 0x528   : > { %19526 = vmatprep.mubr.f32.mxu1 %v35223_v15  ;;  %19620 = vmatprep.mubr.f32.mxu0 %v35223_v15  ;;  %v15318_v58 = vpop.f32.mrf.mxu1 }
 0x529   : > { %v15412_v26 = vpop.f32.mrf.mxu0  ;;  %v32768_v55 = vadd.f32 %v15318_v58, %v15238_v18  ;;  %v15247_v32 = vadd.f32 %v15246_v22, %v15162_v10 }
 0x52a   : > { %v15320_v16 = vpop.f32.mrf.mxu1 }
 0x52b   : > { %19528 = vmatmul.mubr.f32.vlgmr.msra.gmra.mxu1 %v32640_v54  ;;  %19626 = vmatmul.mubr.f32.vlgmr.msra.gmra.mxu0 %v19625_v31  ;;  %v15414_v5 = vpop.f32.mrf.mxu0  ;;  %v32773_v38 = vadd.f32 %v15320_v16, %v15240_v48  ;;  %v29048_v54 = vld [vmem:[%s34866_s4 + $0x68] sm:$0xf] }
 0x52c   : > { %19684 = vmatpush1.msra.mxu1 %v35679_v13  ;;  %19767 = vmatpush1.msra.mxu0 %v35680_v41  ;;  %v15325_v9 = vpop.f32.mrf.mxu1  ;;  %v20079_v42 = vsel %vm9445_vm12, %v29048_v54, 0 }
 0x52d   : > { %19848 = vmatprep.subr.mxu1 %v35675_v17  ;;  %19935 = vmatprep.subr.mxu0 %v35681_v43  ;;  %v15423_v33 = vpop.f32.mrf.mxu0  ;;  %v32783_v59 = vadd.f32 %v15325_v9, %v15245_v1  ;;  %v32798_v37 = vand.u32 4294901760, %v20079_v42  ;;  %v35684_v1 = vld [vmem:[#allocation175_spill] sm:$0xff] }
 0x52e   : > { %19533 = vmatprep.mubr.f32.mxu1 %v35223_v15  ;;  %19631 = vmatprep.mubr.f32.mxu0 %v35223_v15  ;;  %v15327_v29 = vpop.f32.mrf.mxu1 }
 0x52f   : > { %19535 = vmatmul.mubr.f32.gmra.mxu1 %v32658_v4  ;;  %19637 = vmatmul.mubr.f32.gmra.mxu0 %v19636_v6  ;;  %v15425_v63 = vpop.f32.mrf.mxu0  ;;  %v32788_v11 = vadd.f32 %v15327_v29, %v15247_v32 }
 0x530   : > { %19717 = vmatprep.mubr.f32.mxu1 %v35223_v15  ;;  %19800 = vmatprep.mubr.f32.mxu0 %v35223_v15  ;;  %v15505_v45 = vpop.f32.mrf.mxu1 }
 0x531   : > { %v15589_v8 = vpop.f32.mrf.mxu0  ;;  %v15506_v2 = vadd.f32 %v15505_v45, %v15412_v26 }
 0x532   : > { %v15507_v4 = vpop.f32.mrf.mxu1 }
 0x533   : > { %19719 = vmatmul.mubr.f32.vlgmr.msra.gmra.mxu1 %v32718_v25  ;;  %19803 = vmatmul.mubr.f32.vlgmr.msra.gmra.mxu0 %v32726_v20  ;;  %v15591_v39 = vpop.f32.mrf.mxu0  ;;  %v15508_v60 = vadd.f32 %v15507_v4, %v15414_v5  ;;  %v15590_v51 = vadd.f32 %v15589_v8, %v15506_v2  ;;  %v35686_v20 = vld [vmem:[#allocation174_spill] sm:$0xff]  ;;  %v20152_v5 = vand.u32 4294901760, %v20151_v7  ;;  %v35687_v8 = vld [vmem:[#allocation180_spill] sm:$0xff]  ;;  %v35688_v2 = vld [vmem:[#allocation177_spill] sm:$0xff] }
 0x534   : > { %19850 = vmatpush1.msra.mxu1 %v35676_v57  ;;  %19939 = vmatpush1.msra.mxu0 %v35682_v50  ;;  %v15512_v47 = vpop.f32.mrf.mxu1  ;;  %v35689_v50 = vld [vmem:[#allocation176_spill] sm:$0xff] }
 0x535   : > { %20018 = vmatprep.subr.mxu1 %v35675_v17  ;;  %20112 = vmatprep.subr.mxu0 %v35683_v30  ;;  %v15597_v35 = vpop.f32.mrf.mxu0  ;;  %v15513_v28 = vadd.f32 %v15512_v47, %v15423_v33  ;;  %v15592_v52 = vadd.f32 %v15591_v39, %v15508_v60  ;;  %v32810_v17 = vsub.f32 %v20079_v42, %v32798_v37 }
 0x536   : > { %19724 = vmatprep.mubr.f32.mxu1 %v35223_v15  ;;  %19808 = vmatprep.mubr.f32.mxu0 %v35223_v15  ;;  %v15514_v14 = vpop.f32.mrf.mxu1 }
 0x537   : > { %19726 = vmatmul.mubr.f32.gmra.mxu1 %v32728_v19  ;;  %19811 = vmatmul.mubr.f32.gmra.mxu0 %v32740_v34  ;;  %v15599_v18 = vpop.f32.mrf.mxu0  ;;  %v15515_v21 = vadd.f32 %v15514_v14, %v15425_v63  ;;  %v15598_v24 = vadd.f32 %v15597_v35, %v15513_v28  ;;  %v20161_v10 = vand.u32 4294901760, %v32810_v17  ;;  %v29049_v34 = vld [vmem:[%s34866_s4 + $0x10] sm:$0xff] }
 0x538   : > { %19883 = vmatprep.mubr.f32.mxu1 %v35223_v15  ;;  %19972 = vmatprep.mubr.f32.mxu0 %v35223_v15  ;;  %v15673_v62 = vpop.f32.mrf.mxu1  ;;  %v20603_v39 = vsel %vm9445_vm12, %v29049_v34, 0 }
 0x539   : > { %v15760_v3 = vpop.f32.mrf.mxu0  ;;  %v15674_v48 = vadd.f32 %v15673_v62, %v15590_v51  ;;  %v15600_v56 = vadd.f32 %v15599_v18, %v15515_v21  ;;  %v20162_v41 = vsub.f32 %v32810_v17, %v20161_v10  ;;  %v29050_v51 = vld [vmem:[%s34866_s4 + $0x18] sm:$0xf] }
 0x53a   : > { %v15675_v31 = vpop.f32.mrf.mxu1 }
 0x53b   : > { %19887 = vmatmul.mubr.f32.vlgmr.msra.gmra.mxu1 %v19623_v53  ;;  %19974 = vmatmul.mubr.f32.vlgmr.msra.gmra.mxu0 %v32718_v25  ;;  %v15762_v22 = vpop.f32.mrf.mxu0  ;;  %v15676_v58 = vadd.f32 %v15675_v31, %v15592_v52  ;;  %v15761_v26 = vadd.f32 %v15760_v3, %v15674_v48  ;;  %v20163_v63 = vand.u32 4294901760, %v20162_v41  ;;  %v32856_v52 = vand.u32 4294901760, %v20603_v39  ;;  %v35690_v31 = vld [vmem:[#allocation178_spill] sm:$0xff] }
 0x53c   : > { %20020 = vmatpush1.msra.mxu1 %v35676_v57  ;;  %20114 = vmatpush1.msra.mxu0 %v35684_v1  ;;  %v15682_v53 = vpop.f32.mrf.mxu1 }
 0x53d   : > { %20205 = vmatprep.subr.mxu1 %v35685_v40  ;;  %20291 = vmatprep.subr.mxu0 %v35686_v20  ;;  %v15767_v32 = vpop.f32.mrf.mxu0  ;;  %v15683_v16 = vadd.f32 %v15682_v53, %v15598_v24  ;;  %v15763_v6 = vadd.f32 %v15762_v22, %v15676_v58  ;;  %v32870_v48 = vsub.f32 %v20603_v39, %v32856_v52 }
 0x53e   : > { %19892 = vmatprep.mubr.f32.mxu1 %v35223_v15  ;;  %19979 = vmatprep.mubr.f32.mxu0 %v35223_v15  ;;  %v15684_v57 = vpop.f32.mrf.mxu1 }
 0x53f   : > { %19896 = vmatmul.mubr.f32.gmra.mxu1 %v19634_v0  ;;  %19981 = vmatmul.mubr.f32.gmra.mxu0 %v32728_v19  ;;  %v15769_v13 = vpop.f32.mrf.mxu0  ;;  %v15685_v44 = vadd.f32 %v15684_v57, %v15600_v56  ;;  %v15768_v43 = vadd.f32 %v15767_v32, %v15683_v16  ;;  %v20677_v16 = vand.u32 4294901760, %v32870_v48 }
 0x540   : > { %20053 = vmatprep.mubr.f32.mxu1 %v35223_v15  ;;  %20147 = vmatprep.mubr.f32.mxu0 %v35223_v15  ;;  %v15841_v9 = vpop.f32.mrf.mxu1 }
 0x541   : > { %v15939_v33 = vpop.f32.mrf.mxu0  ;;  %v15842_v0 = vadd.f32 %v15841_v9, %v15761_v26  ;;  %v15770_v54 = vadd.f32 %v15769_v13, %v15685_v44 }
 0x542   : > { %v15843_v29 = vpop.f32.mrf.mxu1 }
 0x543   : > { %20055 = vmatmul.mubr.f32.vlgmr.msra.gmra.mxu1 %v32718_v25  ;;  %20153 = vmatmul.mubr.f32.vlgmr.msra.gmra.mxu0 %v20152_v5  ;;  %v15941_v42 = vpop.f32.mrf.mxu0  ;;  %v32840_v45 = vadd.f32 %v15842_v0, %v32768_v55  ;;  %v15844_v4 = vadd.f32 %v15843_v29, %v15763_v6  ;;  %v35692_v0 = vld [vmem:[#allocation183_spill] sm:$0xff] }
 0x544   : > { %20211 = vmatpush1.msra.mxu1 %v35687_v8  ;;  %20294 = vmatpush1.msra.mxu0 %v35688_v2  ;;  %v15848_v60 = vpop.f32.mrf.mxu1 }
 0x545   : > { %20375 = vmatprep.subr.mxu1 %v35683_v30  ;;  %20462 = vmatprep.subr.mxu0 %v35689_v50  ;;  %v15950_v25 = vpop.f32.mrf.mxu0  ;;  %v32851_v55 = vadd.f32 %v15844_v4, %v32773_v38  ;;  %v15849_v47 = vadd.f32 %v15848_v60, %v15768_v43  ;;  %v20606_v38 = vsel %vm9445_vm12, %v29050_v51, 0 }
 0x546   : > { %20060 = vmatprep.mubr.f32.mxu1 %v35223_v15  ;;  %20158 = vmatprep.mubr.f32.mxu0 %v35223_v15  ;;  %v15850_v35 = vpop.f32.mrf.mxu1  ;;  %v32872_v56 = vand.u32 4294901760, %v20606_v38 }
 0x547   : > { %20062 = vmatmul.mubr.f32.gmra.mxu1 %v32728_v19  ;;  %20164 = vmatmul.mubr.f32.gmra.mxu0 %v20163_v63  ;;  %v15952_v28 = vpop.f32.mrf.mxu0  ;;  %v32859_v14 = vadd.f32 %v15849_v47, %v32783_v59  ;;  %v15851_v18 = vadd.f32 %v15850_v35, %v15770_v54  ;;  %v35693_v63 = vld [vmem:[#allocation187_spill] sm:$0xff] }
 0x548   : > { %20244 = vmatprep.mubr.f32.mxu1 %v35223_v15  ;;  %20327 = vmatprep.mubr.f32.mxu0 %v35223_v15  ;;  %v16032_v21 = vpop.f32.mrf.mxu1 }
 0x549   : > { %v16116_v24 = vpop.f32.mrf.mxu0  ;;  %v32865_v62 = vadd.f32 %v15851_v18, %v32788_v11  ;;  %v16033_v19 = vadd.f32 %v16032_v21, %v15939_v33  ;;  %v35691_v11 = vld [vmem:[#allocation181_spill] sm:$0xff]  ;;  %v20678_v33 = vsub.f32 %v32870_v48, %v20677_v16 }
 0x54a   : > { %v16034_v3 = vpop.f32.mrf.mxu1 }
 0x54b   : > { %20246 = vmatmul.mubr.f32.vlgmr.msra.gmra.mxu1 %v32786_v46  ;;  %20330 = vmatmul.mubr.f32.vlgmr.msra.gmra.mxu0 %v32796_v27  ;;  %v16118_v59 = vpop.f32.mrf.mxu0  ;;  %v16035_v22 = vadd.f32 %v16034_v3, %v15941_v42  ;;  %v16117_v7 = vadd.f32 %v16116_v24, %v16033_v19  ;;  %v35694_v27 = vld [vmem:[#allocation182_spill] sm:$0xff]  ;;  %v20679_v4 = vand.u32 4294901760, %v20678_v33  ;;  %v35695_v24 = vld [vmem:[#allocation188_spill] sm:$0xff]  ;;  %v35696_v19 = vld [vmem:[#allocation185_spill] sm:$0xff] }
 0x54c   : > { %20377 = vmatpush1.msra.mxu1 %v35684_v1  ;;  %20466 = vmatpush1.msra.mxu0 %v35690_v31  ;;  %v16039_v58 = vpop.f32.mrf.mxu1  ;;  %v35697_v31 = vld [vmem:[#allocation184_spill] sm:$0xff] }
 0x54d   : > { %20545 = vmatprep.subr.mxu1 %v35683_v30  ;;  %20639 = vmatprep.subr.mxu0 %v35691_v11  ;;  %v16124_v26 = vpop.f32.mrf.mxu0  ;;  %v16040_v40 = vadd.f32 %v16039_v58, %v15950_v25  ;;  %v16119_v20 = vadd.f32 %v16118_v59, %v16035_v22  ;;  %v32884_v30 = vsub.f32 %v20606_v38, %v32872_v56 }
 0x54e   : > { %20251 = vmatprep.mubr.f32.mxu1 %v35223_v15  ;;  %20335 = vmatprep.mubr.f32.mxu0 %v35223_v15  ;;  %v16041_v53 = vpop.f32.mrf.mxu1 }
 0x54f   : > { %20253 = vmatmul.mubr.f32.gmra.mxu1 %v32798_v37  ;;  %20338 = vmatmul.mubr.f32.gmra.mxu0 %v32810_v17  ;;  %v16126_v32 = vpop.f32.mrf.mxu0  ;;  %v16042_v6 = vadd.f32 %v16041_v53, %v15952_v28  ;;  %v16125_v57 = vadd.f32 %v16124_v26, %v16040_v40  ;;  %v20688_v34 = vand.u32 4294901760, %v32884_v30  ;;  %v29051_v17 = vld [vmem:[%s34866_s4 + $0x40] sm:$0xff] }
 0x550   : > { %20410 = vmatprep.mubr.f32.mxu1 %v35223_v15  ;;  %20499 = vmatprep.mubr.f32.mxu0 %v35223_v15  ;;  %v16200_v5 = vpop.f32.mrf.mxu1  ;;  %v21130_v59 = vsel %vm9445_vm12, %v29051_v17, 0 }
 0x551   : > { %v16287_v13 = vpop.f32.mrf.mxu0  ;;  %v16201_v41 = vadd.f32 %v16200_v5, %v16117_v7  ;;  %v16127_v44 = vadd.f32 %v16126_v32, %v16042_v6  ;;  %v20689_v50 = vsub.f32 %v32884_v30, %v20688_v34  ;;  %v29052_v7 = vld [vmem:[%s34866_s4 + $0x48] sm:$0xf] }
 0x552   : > { %v16202_v43 = vpop.f32.mrf.mxu1 }
 0x553   : > { %20414 = vmatmul.mubr.f32.vlgmr.msra.gmra.mxu1 %v20150_v36  ;;  %20501 = vmatmul.mubr.f32.vlgmr.msra.gmra.mxu0 %v32786_v46  ;;  %v16289_v9 = vpop.f32.mrf.mxu0  ;;  %v16203_v54 = vadd.f32 %v16202_v43, %v16119_v20  ;;  %v16288_v29 = vadd.f32 %v16287_v13, %v16201_v41  ;;  %v20690_v18 = vand.u32 4294901760, %v20689_v50  ;;  %v32930_v20 = vand.u32 4294901760, %v21130_v59  ;;  %v35698_v43 = vld [vmem:[#allocation186_spill] sm:$0xff] }
 0x554   : > { %20547 = vmatpush1.msra.mxu1 %v35684_v1  ;;  %20641 = vmatpush1.msra.mxu0 %v35692_v0  ;;  %v16209_v36 = vpop.f32.mrf.mxu1 }
 0x555   : > { %20732 = vmatprep.subr.mxu1 %v35693_v63  ;;  %20818 = vmatprep.subr.mxu0 %v35694_v27  ;;  %v16294_v42 = vpop.f32.mrf.mxu0  ;;  %v16210_v8 = vadd.f32 %v16209_v36, %v16125_v57  ;;  %v16290_v2 = vadd.f32 %v16289_v9, %v16203_v54  ;;  %v32944_v41 = vsub.f32 %v21130_v59, %v32930_v20 }
 0x556   : > { %20419 = vmatprep.mubr.f32.mxu1 %v35223_v15  ;;  %20506 = vmatprep.mubr.f32.mxu0 %v35223_v15  ;;  %v16211_v1 = vpop.f32.mrf.mxu1 }
 0x557   : > { %20423 = vmatmul.mubr.f32.gmra.mxu1 %v20161_v10  ;;  %20508 = vmatmul.mubr.f32.gmra.mxu0 %v32798_v37  ;;  %v16296_v39 = vpop.f32.mrf.mxu0  ;;  %v16212_v60 = vadd.f32 %v16211_v1, %v16127_v44  ;;  %v16295_v25 = vadd.f32 %v16294_v42, %v16210_v8  ;;  %v21204_v8 = vand.u32 4294901760, %v32944_v41 }
 0x558   : > { %20580 = vmatprep.mubr.f32.mxu1 %v35223_v15  ;;  %20674 = vmatprep.mubr.f32.mxu0 %v35223_v15  ;;  %v16368_v51 = vpop.f32.mrf.mxu1 }
 0x559   : > { %v16466_v47 = vpop.f32.mrf.mxu0  ;;  %v16369_v10 = vadd.f32 %v16368_v51, %v16288_v29  ;;  %v16297_v35 = vadd.f32 %v16296_v39, %v16212_v60 }
 0x55a   : > { %v16370_v28 = vpop.f32.mrf.mxu1 }
 0x55b   : > { %20582 = vmatmul.mubr.f32.vlgmr.msra.gmra.mxu1 %v32786_v46  ;;  %20680 = vmatmul.mubr.f32.vlgmr.msra.gmra.mxu0 %v20679_v4  ;;  %v16468_v38 = vpop.f32.mrf.mxu0  ;;  %v32914_v21 = vadd.f32 %v16369_v10, %v32840_v45  ;;  %v16371_v3 = vadd.f32 %v16370_v28, %v16290_v2  ;;  %v35700_v10 = vld [vmem:[#allocation191_spill] sm:$0xff] }
 0x55c   : > { %20738 = vmatpush1.msra.mxu1 %v35695_v24  ;;  %20821 = vmatpush1.msra.mxu0 %v35696_v19  ;;  %v16375_v22 = vpop.f32.mrf.mxu1 }
 0x55d   : > { %20902 = vmatprep.subr.mxu1 %v35691_v11  ;;  %20989 = vmatprep.subr.mxu0 %v35697_v31  ;;  %v16477_v46 = vpop.f32.mrf.mxu0  ;;  %v32925_v45 = vadd.f32 %v16371_v3, %v32851_v55  ;;  %v16376_v58 = vadd.f32 %v16375_v22, %v16295_v25  ;;  %v21133_v55 = vsel %vm9445_vm12, %v29052_v7, 0 }
 0x55e   : > { %20587 = vmatprep.mubr.f32.mxu1 %v35223_v15  ;;  %20685 = vmatprep.mubr.f32.mxu0 %v35223_v15  ;;  %v16377_v26 = vpop.f32.mrf.mxu1  ;;  %v32946_v44 = vand.u32 4294901760, %v21133_v55 }
 0x55f   : > { %20589 = vmatmul.mubr.f32.gmra.mxu1 %v32798_v37  ;;  %20691 = vmatmul.mubr.f32.gmra.mxu0 %v20690_v18  ;;  %v16479_v40 = vpop.f32.mrf.mxu0  ;;  %v32933_v53 = vadd.f32 %v16376_v58, %v32859_v14  ;;  %v16378_v32 = vadd.f32 %v16377_v26, %v16297_v35  ;;  %v35701_v18 = vld [vmem:[#allocation195_spill] sm:$0xff] }
 0x560   : > { %20771 = vmatprep.mubr.f32.mxu1 %v35223_v15  ;;  %20854 = vmatprep.mubr.f32.mxu0 %v35223_v15  ;;  %v16559_v6 = vpop.f32.mrf.mxu1 }
 0x561   : > { %v16643_v57 = vpop.f32.mrf.mxu0  ;;  %v32939_v5 = vadd.f32 %v16378_v32, %v32865_v62  ;;  %v16560_v37 = vadd.f32 %v16559_v6, %v16466_v47  ;;  %v35699_v62 = vld [vmem:[#allocation189_spill] sm:$0xff]  ;;  %v21205_v47 = vsub.f32 %v32944_v41, %v21204_v8 }
 0x562   : > { %v16561_v13 = vpop.f32.mrf.mxu1 }
 0x563   : > { %20773 = vmatmul.mubr.f32.vlgmr.msra.gmra.mxu1 %v32856_v52  ;;  %20857 = vmatmul.mubr.f32.vlgmr.msra.gmra.mxu0 %v32870_v48  ;;  %v16645_v14 = vpop.f32.mrf.mxu0  ;;  %v16562_v9 = vadd.f32 %v16561_v13, %v16468_v38  ;;  %v16644_v33 = vadd.f32 %v16643_v57, %v16560_v37  ;;  %v35702_v48 = vld [vmem:[#allocation190_spill] sm:$0xff]  ;;  %v21206_v3 = vand.u32 4294901760, %v21205_v47  ;;  %v35703_v13 = vld [vmem:[#allocation196_spill] sm:$0xff] }
 0x564   : > { %20904 = vmatpush1.msra.mxu1 %v35692_v0  ;;  %20993 = vmatpush1.msra.mxu0 %v35698_v43  ;;  %v16566_v54 = vpop.f32.mrf.mxu1 }
 0x565   : > { %21072 = vmatprep.subr.mxu1 %v35691_v11  ;;  %21166 = vmatprep.subr.mxu0 %v35699_v62  ;;  %v16651_v29 = vpop.f32.mrf.mxu0  ;;  %v16567_v63 = vadd.f32 %v16566_v54, %v16477_v46  ;;  %v16646_v27 = vadd.f32 %v16645_v14, %v16562_v9  ;;  %v32958_v11 = vsub.f32 %v21133_v55, %v32946_v44  ;;  %v35704_v14 = vld [vmem:[#allocation193_spill] sm:$0xff] }
 0x566   : > { %20778 = vmatprep.mubr.f32.mxu1 %v35223_v15  ;;  %20862 = vmatprep.mubr.f32.mxu0 %v35223_v15  ;;  %v16568_v36 = vpop.f32.mrf.mxu1 }
 0x567   : > { %20780 = vmatmul.mubr.f32.gmra.mxu1 %v32872_v56  ;;  %20865 = vmatmul.mubr.f32.gmra.mxu0 %v32884_v30  ;;  %v16653_v42 = vpop.f32.mrf.mxu0  ;;  %v16569_v2 = vadd.f32 %v16568_v36, %v16479_v40  ;;  %v16652_v1 = vadd.f32 %v16651_v29, %v16567_v63  ;;  %v21215_v17 = vand.u32 4294901760, %v32958_v11 }
 0x568   : > { %20937 = vmatprep.mubr.f32.mxu1 %v35223_v15  ;;  %21026 = vmatprep.mubr.f32.mxu0 %v35223_v15  ;;  %v16727_v4 = vpop.f32.mrf.mxu1 }
 0x569   : > { %v16814_v39 = vpop.f32.mrf.mxu0  ;;  %v16728_v50 = vadd.f32 %v16727_v4, %v16644_v33  ;;  %v16654_v60 = vadd.f32 %v16653_v42, %v16569_v2  ;;  %v21216_v31 = vsub.f32 %v32958_v11, %v21215_v17  ;;  %v35705_v33 = vld [vmem:[#allocation192_spill] sm:$0xff] }
 0x56a   : > { %v16729_v25 = vpop.f32.mrf.mxu1 }
 0x56b   : > { %20941 = vmatmul.mubr.f32.vlgmr.msra.gmra.mxu1 %v20677_v16  ;;  %21028 = vmatmul.mubr.f32.vlgmr.msra.gmra.mxu0 %v32856_v52  ;;  %v16816_v51 = vpop.f32.mrf.mxu0  ;;  %v16730_v35 = vadd.f32 %v16729_v25, %v16646_v27  ;;  %v16815_v28 = vadd.f32 %v16814_v39, %v16728_v50  ;;  %v21217_v6 = vand.u32 4294901760, %v21216_v31  ;;  %v29054_v27 = vld [vmem:[%s34866_s4 + $0x78] sm:$0xf] }
 0x56c   : > { %21074 = vmatpush1.msra.mxu1 %v35692_v0  ;;  %21168 = vmatpush1.msra.mxu0 %v35700_v10  ;;  %v16736_v16 = vpop.f32.mrf.mxu1  ;;  %v21660_v50 = vsel %vm9445_vm12, %v29054_v27, 0 }
 0x56d   : > { %21259 = vmatprep.subr.mxu1 %v35701_v18  ;;  %21345 = vmatprep.subr.mxu0 %v35702_v48  ;;  %v16821_v38 = vpop.f32.mrf.mxu0  ;;  %v16737_v24 = vadd.f32 %v16736_v16, %v16652_v1  ;;  %v16817_v19 = vadd.f32 %v16816_v51, %v16730_v35 }
 0x56e   : > { %20946 = vmatprep.mubr.f32.mxu1 %v35223_v15  ;;  %21033 = vmatprep.mubr.f32.mxu0 %v35223_v15  ;;  %v16738_v0 = vpop.f32.mrf.mxu1 }
 0x56f   : > { %20950 = vmatmul.mubr.f32.gmra.mxu1 %v20688_v34  ;;  %21035 = vmatmul.mubr.f32.gmra.mxu0 %v32872_v56  ;;  %v16823_v59 = vpop.f32.mrf.mxu0  ;;  %v16739_v22 = vadd.f32 %v16738_v0, %v16654_v60  ;;  %v16822_v7 = vadd.f32 %v16821_v38, %v16737_v24  ;;  %v29053_v34 = vld [vmem:[%s34866_s4 + $0x70] sm:$0xff]  ;;  %v33034_v0 = vand.u32 4294901760, %v21660_v50 }
 0x570   : > { %21107 = vmatprep.mubr.f32.mxu1 %v35223_v15  ;;  %21201 = vmatprep.mubr.f32.mxu0 %v35223_v15  ;;  %v32983_v46 = vpop.permute.xlu0 %23761  ;;  %v16895_v58 = vpop.f32.mrf.mxu1  ;;  %v21657_v9 = vsel %vm9445_vm12, %v29053_v34, 0 }
 0x571   : > { %v16993_v30 = vpop.f32.mrf.mxu0  ;;  %v16896_v26 = vadd.f32 %v16895_v58, %v16815_v28  ;;  %v32988_v40 = vpop.permute.xlu1 %23765  ;;  %v16824_v32 = vadd.f32 %v16823_v59, %v16739_v22  ;;  %v33008_v2 = vand.u32 4294901760, %v21657_v9 }
 0x572   : > { %v16897_v55 = vpop.f32.mrf.mxu1 }
 0x573   : > { %21109 = vmatmul.mubr.f32.vlgmr.msra.gmra.mxu1 %v32856_v52  ;;  %21207 = vmatmul.mubr.f32.vlgmr.msra.gmra.mxu0 %v21206_v3  ;;  %v16995_v57 = vpop.f32.mrf.mxu0  ;;  %v32992_v37 = vadd.f32 %v16896_v26, %v32914_v21  ;;  %v16898_v43 = vadd.f32 %v16897_v55, %v16817_v19  ;;  %v33026_v48 = vsub.f32 %v21657_v9, %v33008_v2  ;;  %v35708_v3 = vld [vmem:[#allocation197_spill] sm:$0xff] }
 0x574   : > { %21265 = vmatpush1.msra.mxu1 %v35703_v13  ;;  %21348 = vmatpush1.msra.mxu0 %v35704_v14  ;;  %v16902_v54 = vpop.f32.mrf.mxu1  ;;  %v33056_v9 = vsub.f32 %v21660_v50, %v33034_v0 }
 0x575   : > { %21429 = vmatprep.subr.mxu1 %v35699_v62  ;;  %21516 = vmatprep.subr.mxu0 %v35705_v33  ;;  %v17004_v52 = vpop.f32.mrf.mxu0  ;;  %v33000_v29 = vadd.f32 %v16898_v43, %v32925_v45  ;;  %v16903_v63 = vadd.f32 %v16902_v54, %v16822_v7  ;;  %v21731_v43 = vand.u32 4294901760, %v33026_v48  ;;  %v23769_v33 = vsel %vm318_vm2, %v32983_v46, %v32988_v40 }
 0x576   : > { %21114 = vmatprep.mubr.f32.mxu1 %v35223_v15  ;;  %21212 = vmatprep.mubr.f32.mxu0 %v35223_v15  ;;  %v23764_v21 = vpop.permute.xlu0 %23763  ;;  %v16904_v42 = vpop.f32.mrf.mxu1  ;;  %v23771_v54 = vsel %vm318_vm2, %v32988_v40, %v32983_v46 }
 0x577   : > { %21116 = vmatmul.mubr.f32.gmra.mxu1 %v32872_v56  ;;  %21218 = vmatmul.mubr.f32.gmra.mxu0 %v21217_v6  ;;  %v23768_v36 = vpop.permute.xlu1 %23767  ;;  %v33011_v45 = vadd.f32 %v16903_v63, %v32933_v53  ;;  %v16905_v1 = vadd.f32 %v16904_v42, %v16824_v32  ;;  %v17006_v4 = vpop.f32.mrf.mxu0 }
 0x578   : > { %21298 = vmatprep.mubr.f32.mxu1 %v35223_v15  ;;  %21381 = vmatprep.mubr.f32.mxu0 %v35223_v15  ;;  %v17086_v39 = vpop.f32.mrf.mxu1  ;;  %v23770_v35 = vsel %vm318_vm2, %v23764_v21, %v23768_v36  ;;  %v23772_v53 = vsel %vm318_vm2, %v23768_v36, %v23764_v21 }
 0x579   : > { %v33017_v60 = vadd.f32 %v16905_v1, %v32939_v5  ;;  %v17087_v25 = vadd.f32 %v17086_v39, %v16993_v30  ;;  %v17170_v51 = vpop.f32.mrf.mxu0  ;;  %v35707_v5 = vld [vmem:[#allocation194_spill] sm:$0xff] }
 0x57a   : > { %v23776_v56 = vpop.permute.xlu0 %23775  ;;  %v17088_v18 = vpop.f32.mrf.mxu1 }
 0x57b   : > { %21300 = vmatmul.mubr.f32.vlgmr.msra.gmra.mxu1 %v32930_v20  ;;  %21384 = vmatmul.mubr.f32.vlgmr.msra.gmra.mxu0 %v32944_v41  ;;  %v23780_v28 = vpop.permute.xlu1 %23779  ;;  %v17089_v24 = vadd.f32 %v17088_v18, %v16995_v57  ;;  %v17172_v19 = vpop.f32.mrf.mxu0  ;;  %v17171_v30 = vadd.f32 %v17170_v51, %v17087_v25  ;;  %v21732_v25 = vsub.f32 %v33026_v48, %v21731_v43  ;;  %v35712_v51 = vld [vmem:[#allocation203_spill] sm:$0xff] }
 0x57c   : > { %21431 = vmatpush1.msra.mxu1 %v35700_v10  ;;  %21520 = vmatpush1.msra.mxu0 %v35707_v5  ;;  %v23782_v16 = vsel %vm325_vm1, %v23776_v56, %v23780_v28  ;;  %v23784_v38 = vsel %vm325_vm1, %v23780_v28, %v23776_v56  ;;  %v17093_v59 = vpop.f32.mrf.mxu1 }
 0x57d   : > { %21599 = vmatprep.subr.mxu1 %v35699_v62  ;;  %21693 = vmatprep.subr.mxu0 %v35708_v3  ;;  %v33040_v22 = vsel %vm29210_vm4, %v23770_v35, %v23784_v38  ;;  %v33044_v58 = vsel %vm29204_vm3, %v23772_v53, %v23782_v16  ;;  %v17094_v34 = vadd.f32 %v17093_v59, %v17004_v52  ;;  %v17178_v32 = vpop.f32.mrf.mxu0  ;;  %v21733_v16 = vand.u32 4294901760, %v21732_v25 }
 0x57e   : > { %21305 = vmatprep.mubr.f32.mxu1 %v35223_v15  ;;  %21389 = vmatprep.mubr.f32.mxu0 %v35223_v15  ;;  %v17173_v26 = vadd.f32 %v17172_v19, %v17089_v24  ;;  %v17095_v55 = vpop.f32.mrf.mxu1 }
 0x57f   : > { %v23774_v62 = vpop.permute.xlu0 %23773  ;;  %21307 = vmatmul.mubr.f32.gmra.mxu1 %v32946_v44  ;;  %21392 = vmatmul.mubr.f32.gmra.mxu0 %v32958_v11  ;;  %v17096_v57 = vadd.f32 %v17095_v55, %v17006_v4  ;;  %v17179_v13 = vadd.f32 %v17178_v32, %v17094_v34  ;;  %v17180_v14 = vpop.f32.mrf.mxu0  ;;  %v35711_v4 = vld [vmem:[#allocation199_spill] sm:$0xff]  ;;  %v35714_v32 = vld [vmem:[#allocation204_spill] sm:$0xff] }
 0x580   : > { %23791 = vrot.lane.b32.xlu0 %v33040_v22, %s29109_s12  ;;  %23795 = vrot.lane.b32.xlu1 %v33044_v58, %s29109_s12  ;;  %v23778_v6 = vpop.permute.xlu1 %23777  ;;  %v17254_v63 = vpop.f32.mrf.mxu1 }
 0x581   : > { %v23781_v52 = vsel %vm325_vm1, %v23774_v62, %v23778_v6  ;;  %v23783_v21 = vsel %vm325_vm1, %v23778_v6, %v23774_v62  ;;  %21464 = vmatprep.mubr.f32.mxu1 %v35223_v15  ;;  %21553 = vmatprep.mubr.f32.mxu0 %v35223_v15  ;;  %v17255_v27 = vadd.f32 %v17254_v63, %v17171_v30  ;;  %v17341_v40 = vpop.f32.mrf.mxu0  ;;  %v35715_v62 = vld [vmem:[#allocation201_spill] sm:$0xff] }
 0x582   : > { %v33074_v36 = vsel %vm29210_vm4, %v23769_v33, %v23783_v21  ;;  %v33078_v42 = vsel %vm29204_vm3, %v23771_v54, %v23781_v52  ;;  %v17181_v46 = vadd.f32 %v17180_v14, %v17096_v57  ;;  %v17256_v1 = vpop.f32.mrf.mxu1  ;;  %v29055_v57 = vld [vmem:[%s34866_s4 + $0x20] sm:$0xff]  ;;  %v35716_v14 = vld [vmem:[#allocation200_spill] sm:$0xff] }
 0x583   : > { %21468 = vmatmul.mubr.f32.vlgmr.msra.gmra.mxu1 %v21204_v8  ;;  %21555 = vmatmul.mubr.f32.vlgmr.msra.gmra.mxu0 %v32930_v20  ;;  %v17257_v39 = vadd.f32 %v17256_v1, %v17173_v26  ;;  %v17342_v50 = vadd.f32 %v17341_v40, %v17255_v27  ;;  %v17343_v56 = vpop.f32.mrf.mxu0  ;;  %v21742_v8 = vand.u32 4294901760, %v33056_v9  ;;  %v22184_v63 = vsel %vm9445_vm12, %v29055_v57, 0  ;;  %v29056_v40 = vld [vmem:[%s34866_s4 + $0x28] sm:$0xf] }
 0x584   : > { %21601 = vmatpush1.msra.mxu1 %v35700_v10  ;;  %21695 = vmatpush1.msra.mxu0 %v35711_v4  ;;  %v17263_v41 = vpop.f32.mrf.mxu1  ;;  %v35713_v10 = vld [vmem:[#allocation198_spill] sm:$0xff]  ;;  %v33146_v1 = vand.u32 4294901760, %v22184_v63  ;;  %v22187_v25 = vsel %vm9445_vm12, %v29056_v40, 0 }
 0x585   : > { %23789 = vrot.lane.b32.xlu0 %v33074_v36, %s29109_s12  ;;  %23793 = vrot.lane.b32.xlu1 %v33078_v42, %s29109_s12  ;;  %v17264_v35 = vadd.f32 %v17263_v41, %v17179_v13  ;;  %v17344_v53 = vadd.f32 %v17343_v56, %v17257_v39  ;;  %v17348_v28 = vpop.f32.mrf.mxu0  ;;  %v21743_v59 = vsub.f32 %v33056_v9, %v21742_v8  ;;  %v35717_v41 = vld [vmem:[#allocation202_spill] sm:$0xff] }
 0x586   : > { %21786 = vmatprep.subr.mxu1 %v35712_v51  ;;  %21872 = vmatprep.subr.mxu0 %v35713_v10  ;;  %v17265_v18 = vpop.f32.mrf.mxu1 }
 0x587   : > { %21473 = vmatprep.mubr.f32.mxu1 %v35223_v15  ;;  %21560 = vmatprep.mubr.f32.mxu0 %v35223_v15  ;;  %v17266_v5 = vadd.f32 %v17265_v18, %v17181_v46  ;;  %v17349_v38 = vadd.f32 %v17348_v28, %v17264_v35  ;;  %v17350_v24 = vpop.f32.mrf.mxu0  ;;  %v21744_v6 = vand.u32 4294901760, %v21743_v59  ;;  %v33158_v28 = vsub.f32 %v22184_v63, %v33146_v1  ;;  %v35718_v18 = vld [vmem:[#allocation205_spill] sm:$0xff] }
 0x588   : > { %21477 = vmatmul.mubr.f32.gmra.mxu1 %v21215_v17  ;;  %21562 = vmatmul.mubr.f32.gmra.mxu0 %v32946_v44  ;;  %v17422_v19 = vpop.f32.mrf.mxu1 }
 0x589   : > { %24922 = vrot.lane.b32.xlu0 %v33040_v22, %s29111_s14  ;;  %24926 = vrot.lane.b32.xlu1 %v33044_v58, %s29111_s14  ;;  %v17423_v11 = vadd.f32 %v17422_v19, %v17342_v50  ;;  %v17351_v17 = vadd.f32 %v17350_v24, %v17266_v5  ;;  %v17520_v31 = vpop.f32.mrf.mxu0  ;;  %v33162_v24 = vand.u32 4294901760, %v22187_v25 }
 0x58a   : > { %21634 = vmatprep.mubr.f32.mxu1 %v35223_v15  ;;  %21728 = vmatprep.mubr.f32.mxu0 %v35223_v15  ;;  %v17424_v7 = vpop.f32.mrf.mxu1 }
 0x58b   : > { %v33110_v30 = vadd.f32 %v17423_v11, %v32992_v37  ;;  %v17425_v34 = vadd.f32 %v17424_v7, %v17344_v53  ;;  %v17522_v26 = vpop.f32.mrf.mxu0 }
 0x58c   : > { %21636 = vmatmul.mubr.f32.vlgmr.msra.gmra.mxu1 %v32930_v20  ;;  %21734 = vmatmul.mubr.f32.vlgmr.msra.gmra.mxu0 %v21733_v16  ;;  %v17429_v55 = vpop.f32.mrf.mxu1 }
 0x58d   : > { %21792 = vmatpush1.msra.mxu1 %v35714_v32  ;;  %21875 = vmatpush1.msra.mxu0 %v35715_v62  ;;  %v33123_v20 = vadd.f32 %v17425_v34, %v33000_v29  ;;  %v17430_v37 = vadd.f32 %v17429_v55, %v17349_v38  ;;  %v17531_v13 = vpop.f32.mrf.mxu0  ;;  %v33176_v32 = vsub.f32 %v22187_v25, %v33162_v24 }
 0x58e   : > { %24920 = vrot.lane.b32.xlu0 %v33074_v36, %s29111_s14  ;;  %24924 = vrot.lane.b32.xlu1 %v33078_v42, %s29111_s14  ;;  %v17431_v33 = vpop.f32.mrf.mxu1 }
 0x58f   : > { %21956 = vmatprep.subr.mxu1 %v35708_v3  ;;  %22043 = vmatprep.subr.mxu0 %v35716_v14  ;;  %v33130_v54 = vadd.f32 %v17430_v37, %v33011_v45  ;;  %v17432_v52 = vadd.f32 %v17431_v33, %v17351_v17  ;;  %v17533_v21 = vpop.f32.mrf.mxu0  ;;  %v35719_v37 = vld [vmem:[#allocation206_spill] sm:$0xff] }
 0x590   : > { %21641 = vmatprep.mubr.f32.mxu1 %v35223_v15  ;;  %21739 = vmatprep.mubr.f32.mxu0 %v35223_v15  ;;  %v17613_v29 = vpop.f32.mrf.mxu1 }
 0x591   : > { %21643 = vmatmul.mubr.f32.gmra.mxu1 %v32946_v44  ;;  %21745 = vmatmul.mubr.f32.gmra.mxu0 %v21744_v6  ;;  %v33139_v27 = vadd.f32 %v17432_v52, %v33017_v60  ;;  %v17614_v46 = vadd.f32 %v17613_v29, %v17520_v31  ;;  %v17697_v45 = vpop.f32.mrf.mxu0  ;;  %v22258_v31 = vand.u32 4294901760, %v33158_v28  ;;  %v22269_v52 = vand.u32 4294901760, %v33176_v32 }
 0x592   : > { %25493 = vrot.lane.b32.xlu0 %v32642_v12, %s29109_s12  ;;  %25497 = vrot.lane.b32.xlu1 %v32649_v49, %s29109_s12  ;;  %v17615_v44 = vpop.f32.mrf.mxu1 }
 0x593   : > { %21825 = vmatprep.mubr.f32.mxu1 %v35223_v15  ;;  %21908 = vmatprep.mubr.f32.mxu0 %v35223_v15  ;;  %v17616_v39 = vadd.f32 %v17615_v44, %v17522_v26  ;;  %v17698_v50 = vadd.f32 %v17697_v45, %v17614_v46  ;;  %v17699_v56 = vpop.f32.mrf.mxu0  ;;  %v22259_v14 = vsub.f32 %v33158_v28, %v22258_v31 }
 0x594   : > { %v17620_v60 = vpop.f32.mrf.mxu1 }
 0x595   : > { %21827 = vmatmul.mubr.f32.vlgmr.msra.gmra.mxu1 %v33008_v2  ;;  %21911 = vmatmul.mubr.f32.vlgmr.msra.gmra.mxu0 %v33026_v48  ;;  %v17621_v51 = vadd.f32 %v17620_v60, %v17531_v13  ;;  %v17700_v10 = vadd.f32 %v17699_v56, %v17616_v39  ;;  %v17705_v35 = vpop.f32.mrf.mxu0  ;;  %v22260_v40 = vand.u32 4294901760, %v22259_v14  ;;  %v22270_v56 = vsub.f32 %v33176_v32, %v22269_v52 }
 0x596   : > { %21958 = vmatpush1.msra.mxu1 %v35711_v4  ;;  %22047 = vmatpush1.msra.mxu0 %v35717_v41  ;;  %v17622_v53 = vpop.f32.mrf.mxu1 }
 0x597   : > { %25491 = vrot.lane.b32.xlu0 %v32624_v61, %s29109_s12  ;;  %25495 = vrot.lane.b32.xlu1 %v32634_v23, %s29109_s12  ;;  %v17623_v5 = vadd.f32 %v17622_v53, %v17533_v21  ;;  %v17706_v16 = vadd.f32 %v17705_v35, %v17621_v51  ;;  %v17707_v38 = vpop.f32.mrf.mxu0  ;;  %v35720_v21 = vld [vmem:[#allocation211_spill] sm:$0xff]  ;;  %v29057_v51 = vld [vmem:[%s34866_s4 + $0x50] sm:$0xff] }
 0x598   : > { %22126 = vmatprep.subr.mxu1 %v35708_v3  ;;  %22220 = vmatprep.subr.mxu0 %v35718_v18  ;;  %v17781_v19 = vpop.f32.mrf.mxu1  ;;  %v35723_v35 = vld [vmem:[#allocation208_spill] sm:$0xff] }
 0x599   : > { %21832 = vmatprep.mubr.f32.mxu1 %v35223_v15  ;;  %21916 = vmatprep.mubr.f32.mxu0 %v35223_v15  ;;  %v17782_v59 = vadd.f32 %v17781_v19, %v17698_v50  ;;  %v17708_v11 = vadd.f32 %v17707_v38, %v17623_v5  ;;  %v17868_v17 = vpop.f32.mrf.mxu0  ;;  %v22271_v5 = vand.u32 4294901760, %v22270_v56  ;;  %v35724_v38 = vld [vmem:[#allocation209_spill] sm:$0xff] }
 0x59a   : > { %21834 = vmatmul.mubr.f32.gmra.mxu1 %v33034_v0  ;;  %21919 = vmatmul.mubr.f32.gmra.mxu0 %v33056_v9  ;;  %v17783_v3 = vpop.f32.mrf.mxu1 }
 0x59b   : > { %27194 = vrot.lane.b32.xlu0 %v32642_v12, %s29108_s9  ;;  %27198 = vrot.lane.b32.xlu1 %v32649_v49, %s29108_s9  ;;  %v17784_v7 = vadd.f32 %v17783_v3, %v17700_v10  ;;  %v17869_v34 = vadd.f32 %v17868_v17, %v17782_v59  ;;  %v17870_v26 = vpop.f32.mrf.mxu0  ;;  %v35722_v10 = vld [vmem:[#allocation212_spill] sm:$0xff]  ;;  %v29058_v3 = vld [vmem:[%s34866_s4 + $0x58] sm:$0xf] }
 0x59c   : > { %21991 = vmatprep.mubr.f32.mxu1 %v35223_v15  ;;  %22080 = vmatprep.mubr.f32.mxu0 %v35223_v15 }
 0x59d   : > { %v17790_v62 = vpop.f32.mrf.mxu1  ;;  %v17871_v6 = vadd.f32 %v17870_v26, %v17784_v7  ;;  %v17875_v57 = vpop.f32.mrf.mxu0 }
 0x59e   : > { %21995 = vmatmul.mubr.f32.vlgmr.msra.gmra.mxu1 %v21731_v43  ;;  %22082 = vmatmul.mubr.f32.vlgmr.msra.gmra.mxu0 %v33008_v2  ;;  %v17791_v55 = vadd.f32 %v17790_v62, %v17706_v16 }
 0x59f   : > { %22128 = vmatpush1.msra.mxu1 %v35711_v4  ;;  %22222 = vmatpush1.msra.mxu0 %v35719_v37  ;;  %v17792_v13 = vpop.f32.mrf.mxu1  ;;  %v17877_v33 = vpop.f32.mrf.mxu0  ;;  %v35721_v4 = vld [vmem:[#allocation207_spill] sm:$0xff] }
 0x5a0   : > { %27206 = vrot.lane.b32.xlu0 %v32642_v12, %s29110_s13  ;;  %27210 = vrot.lane.b32.xlu1 %v32649_v49, %s29110_s13  ;;  %v17793_v48 = vadd.f32 %v17792_v13, %v17708_v11  ;;  %v17876_v43 = vadd.f32 %v17875_v57, %v17791_v55  ;;  %v22711_v11 = vsel %vm9445_vm12, %v29057_v51, 0  ;;  %v22714_v57 = vsel %vm9445_vm12, %v29058_v3, 0  ;;  %v35728_v3 = vld [vmem:[#allocation219_spill] sm:$0xff] }
 0x5a1   : > { %22313 = vmatprep.subr.mxu1 %v35720_v21  ;;  %22399 = vmatprep.subr.mxu0 %v35721_v4  ;;  %v17949_v63 = vpop.f32.mrf.mxu1  ;;  %v18047_v45 = vpop.f32.mrf.mxu0  ;;  %v33242_v62 = vand.u32 4294901760, %v22711_v11 }
 0x5a2   : > { %22000 = vmatprep.mubr.f32.mxu1 %v35223_v15  ;;  %22087 = vmatprep.mubr.f32.mxu0 %v35223_v15  ;;  %v17950_v29 = vadd.f32 %v17949_v63, %v17869_v34  ;;  %v17878_v46 = vadd.f32 %v17877_v33, %v17793_v48  ;;  %v35725_v33 = vld [vmem:[#allocation210_spill] sm:$0xff]  ;;  %v33254_v63 = vand.u32 4294901760, %v22714_v57 }
 0x5a3   : > { %22004 = vmatmul.mubr.f32.gmra.mxu1 %v21742_v8  ;;  %22089 = vmatmul.mubr.f32.gmra.mxu0 %v33034_v0  ;;  %v17951_v44 = vpop.f32.mrf.mxu1  ;;  %v18049_v9 = vpop.f32.mrf.mxu0  ;;  %v33252_v4 = vsub.f32 %v22711_v11, %v33242_v62 }
 0x5a4   : > { %27192 = vrot.lane.b32.xlu0 %v32624_v61, %s29108_s9  ;;  %27196 = vrot.lane.b32.xlu1 %v32634_v23, %s29108_s9  ;;  %v33203_v39 = vadd.f32 %v17950_v29, %v33110_v30  ;;  %v17952_v50 = vadd.f32 %v17951_v44, %v17871_v6 }
 0x5a5   : > { %22161 = vmatprep.mubr.f32.mxu1 %v35223_v15  ;;  %22255 = vmatprep.mubr.f32.mxu0 %v35223_v15  ;;  %v17956_v8 = vpop.f32.mrf.mxu1  ;;  %v18058_v41 = vpop.f32.mrf.mxu0 }
 0x5a6   : > { %v33211_v60 = vadd.f32 %v17952_v50, %v33123_v20  ;;  %v17957_v25 = vadd.f32 %v17956_v8, %v17876_v43 }
 0x5a7   : > { %22163 = vmatmul.mubr.f32.vlgmr.msra.gmra.mxu1 %v33008_v2  ;;  %22261 = vmatmul.mubr.f32.vlgmr.msra.gmra.mxu0 %v22260_v40  ;;  %v17958_v30 = vpop.f32.mrf.mxu1  ;;  %v18060_v16 = vpop.f32.mrf.mxu0  ;;  %v35726_v40 = vld [vmem:[#allocation213_spill] sm:$0xff] }
 0x5a8   : > { %22319 = vmatpush1.msra.mxu1 %v35722_v10  ;;  %22402 = vmatpush1.msra.mxu0 %v35723_v35  ;;  %v33220_v53 = vadd.f32 %v17957_v25, %v33130_v54  ;;  %v17959_v20 = vadd.f32 %v17958_v30, %v17878_v46  ;;  %v22785_v25 = vand.u32 4294901760, %v33252_v4 }
 0x5a9   : > { %27204 = vrot.lane.b32.xlu0 %v32624_v61, %s29110_s13  ;;  %27208 = vrot.lane.b32.xlu1 %v32634_v23, %s29110_s13  ;;  %v18140_v2 = vpop.f32.mrf.mxu1  ;;  %v18224_v54 = vpop.f32.mrf.mxu0 }
 0x5aa   : > { %22483 = vmatprep.subr.mxu1 %v35718_v18  ;;  %22570 = vmatprep.subr.mxu0 %v35724_v38  ;;  %v33229_v19 = vadd.f32 %v17959_v20, %v33139_v27  ;;  %v18141_v59 = vadd.f32 %v18140_v2, %v18047_v45  ;;  %v22786_v2 = vsub.f32 %v33252_v4, %v22785_v25 }
 0x5ab   : > { %22168 = vmatprep.mubr.f32.mxu1 %v35223_v15  ;;  %22266 = vmatprep.mubr.f32.mxu0 %v35223_v15  ;;  %v18142_v17 = vpop.f32.mrf.mxu1  ;;  %v18226_v27 = vpop.f32.mrf.mxu0 }
 0x5ac   : > { %22170 = vmatmul.mubr.f32.gmra.mxu1 %v33034_v0  ;;  %22272 = vmatmul.mubr.f32.gmra.mxu0 %v22271_v5  ;;  %v18143_v7 = vadd.f32 %v18142_v17, %v18049_v9  ;;  %v18225_v34 = vadd.f32 %v18224_v54, %v18141_v59  ;;  %v35727_v59 = vld [vmem:[#allocation215_spill] sm:$0xff] }
 0x5ad   : > { %26623 = vrot.lane.b32.xlu0 %v32642_v12, %s29111_s14  ;;  %26627 = vrot.lane.b32.xlu1 %v32649_v49, %s29111_s14  ;;  %v18147_v26 = vpop.f32.mrf.mxu1  ;;  %v18232_v0 = vpop.f32.mrf.mxu0 }
 0x5ae   : > { %22352 = vmatprep.mubr.f32.mxu1 %v35223_v15  ;;  %22435 = vmatprep.mubr.f32.mxu0 %v35223_v15  ;;  %v18148_v55 = vadd.f32 %v18147_v26, %v18058_v41  ;;  %v18227_v6 = vadd.f32 %v18226_v27, %v18143_v7  ;;  %v33268_v41 = vsub.f32 %v22714_v57, %v33254_v63 }
 0x5af   : > { %v18149_v13 = vpop.f32.mrf.mxu1  ;;  %v18234_v43 = vpop.f32.mrf.mxu0 }
 0x5b0   : > { %22354 = vmatmul.mubr.f32.vlgmr.msra.gmra.mxu1 %v33146_v1  ;;  %22438 = vmatmul.mubr.f32.vlgmr.msra.gmra.mxu0 %v33158_v28  ;;  %v18150_v14 = vadd.f32 %v18149_v13, %v18060_v16  ;;  %v18233_v48 = vadd.f32 %v18232_v0, %v18148_v55  ;;  %v22796_v38 = vand.u32 4294901760, %v33268_v41  ;;  %v35729_v28 = vld [vmem:[#allocation214_spill] sm:$0xff] }
 0x5b1   : > { %22485 = vmatpush1.msra.mxu1 %v35719_v37  ;;  %22574 = vmatpush1.msra.mxu0 %v35725_v33  ;;  %v18308_v21 = vpop.f32.mrf.mxu1  ;;  %v18395_v45 = vpop.f32.mrf.mxu0  ;;  %v35730_v33 = vld [vmem:[#allocation220_spill] sm:$0xff] }
 0x5b2   : > { %26621 = vrot.lane.b32.xlu0 %v32624_v61, %s29111_s14  ;;  %26625 = vrot.lane.b32.xlu1 %v32634_v23, %s29111_s14  ;;  %v18309_v29 = vadd.f32 %v18308_v21, %v18225_v34  ;;  %v18235_v46 = vadd.f32 %v18234_v43, %v18150_v14  ;;  %v22797_v55 = vsub.f32 %v33268_v41, %v22796_v38 }
 0x5b3   : > { %22653 = vmatprep.subr.mxu1 %v35718_v18  ;;  %22747 = vmatprep.subr.mxu0 %v35726_v40  ;;  %v18310_v44 = vpop.f32.mrf.mxu1  ;;  %v18397_v9 = vpop.f32.mrf.mxu0 }
 0x5b4   : > { %22359 = vmatprep.mubr.f32.mxu1 %v35223_v15  ;;  %22443 = vmatprep.mubr.f32.mxu0 %v35223_v15  ;;  %v18311_v50 = vadd.f32 %v18310_v44, %v18227_v6  ;;  %v18396_v56 = vadd.f32 %v18395_v45, %v18309_v29 }
 0x5b5   : > { %22361 = vmatmul.mubr.f32.gmra.mxu1 %v33162_v24  ;;  %22446 = vmatmul.mubr.f32.gmra.mxu0 %v33176_v32  ;;  %v18317_v8 = vpop.f32.mrf.mxu1  ;;  %v18402_v51 = vpop.f32.mrf.mxu0  ;;  %v29059_v32 = vld [vmem:[%s34866_s4 + $0x80] sm:$0xff] }
 0x5b6   : > { %22518 = vmatprep.mubr.f32.mxu1 %v35223_v15  ;;  %22607 = vmatprep.mubr.f32.mxu0 %v35223_v15  ;;  %v18318_v18 = vadd.f32 %v18317_v8, %v18233_v48  ;;  %v18398_v30 = vadd.f32 %v18397_v9, %v18311_v50  ;;  %v22798_v48 = vand.u32 4294901760, %v22797_v55  ;;  %v23238_v45 = vsel %vm9445_vm12, %v29059_v32, 0 }
 0x5b7   : > { %v18319_v10 = vpop.f32.mrf.mxu1  ;;  %v18404_v20 = vpop.f32.mrf.mxu0  ;;  %v33320_v9 = vand.u32 4294901760, %v23238_v45 }
 0x5b8   : > { %v18320_v35 = vadd.f32 %v18319_v10, %v18235_v46  ;;  %v18403_v5 = vadd.f32 %v18402_v51, %v18318_v18 }
 0x5b9   : > { %22522 = vmatmul.mubr.f32.vlgmr.msra.gmra.mxu1 %v22258_v31  ;;  %22609 = vmatmul.mubr.f32.vlgmr.msra.gmra.mxu0 %v33146_v1  ;;  %v18476_v16 = vpop.f32.mrf.mxu1  ;;  %v18574_v17 = vpop.f32.mrf.mxu0 }
 0x5ba   : > { %22655 = vmatpush1.msra.mxu1 %v35719_v37  ;;  %22749 = vmatpush1.msra.mxu0 %v35727_v59  ;;  %v18477_v54 = vadd.f32 %v18476_v16, %v18396_v56  ;;  %v18405_v11 = vadd.f32 %v18404_v20, %v18320_v35  ;;  %v22787_v37 = vand.u32 4294901760, %v22786_v2  ;;  %v33328_v16 = vsub.f32 %v23238_v45, %v33320_v9 }
 0x5bb   : > { %22840 = vmatprep.subr.mxu1 %v35728_v3  ;;  %22926 = vmatprep.subr.mxu0 %v35729_v28  ;;  %v18478_v31 = vpop.f32.mrf.mxu1  ;;  %v18576_v27 = vpop.f32.mrf.mxu0  ;;  %v35734_v3 = vld [vmem:[#allocation221_spill] sm:$0xff] }
 0x5bc   : > { %22527 = vmatprep.mubr.f32.mxu1 %v35223_v15  ;;  %22614 = vmatprep.mubr.f32.mxu0 %v35223_v15  ;;  %v33286_v7 = vadd.f32 %v18477_v54, %v33203_v39  ;;  %v18479_v34 = vadd.f32 %v18478_v31, %v18398_v30  ;;  %v35733_v54 = vld [vmem:[#allocation218_spill] sm:$0xff]  ;;  %v23312_v55 = vand.u32 4294901760, %v33328_v16 }
 0x5bd   : > { %22531 = vmatmul.mubr.f32.gmra.mxu1 %v22269_v52  ;;  %22616 = vmatmul.mubr.f32.gmra.mxu0 %v33162_v24  ;;  %v18483_v26 = vpop.f32.mrf.mxu1  ;;  %v18585_v0 = vpop.f32.mrf.mxu0 }
 0x5be   : > { %22688 = vmatprep.mubr.f32.mxu1 %v35223_v15  ;;  %22782 = vmatprep.mubr.f32.mxu0 %v35223_v15  ;;  %v33297_v39 = vadd.f32 %v18479_v34, %v33211_v60  ;;  %v18484_v6 = vadd.f32 %v18483_v26, %v18403_v5  ;;  %v35731_v60 = vld [vmem:[#allocation217_spill] sm:$0xff] }
 0x5bf   : > { %v18485_v57 = vpop.f32.mrf.mxu1  ;;  %v18587_v14 = vpop.f32.mrf.mxu0 }
 0x5c0   : > { %v33303_v52 = vadd.f32 %v18484_v6, %v33220_v53  ;;  %v18486_v13 = vadd.f32 %v18485_v57, %v18405_v11  ;;  %v35732_v53 = vld [vmem:[#allocation216_spill] sm:$0xff] }
 0x5c1   : > { %22690 = vmatmul.mubr.f32.vlgmr.msra.gmra.mxu1 %v33146_v1  ;;  %22788 = vmatmul.mubr.f32.vlgmr.msra.gmra.mxu0 %v22787_v37  ;;  %v18667_v43 = vpop.f32.mrf.mxu1  ;;  %v18751_v46 = vpop.f32.mrf.mxu0  ;;  %v29060_v1 = vld [vmem:[%s34866_s4 + $0x88] sm:$0xf] }
 0x5c2   : > { %22846 = vmatpush1.msra.mxu1 %v35730_v33  ;;  %22929 = vmatpush1.msra.mxu0 %v35731_v60  ;;  %v33309_v21 = vadd.f32 %v18486_v13, %v33229_v19  ;;  %v18668_v29 = vadd.f32 %v18667_v43, %v18574_v17  ;;  %v23241_v51 = vsel %vm9445_vm12, %v29060_v1, 0  ;;  %v35735_v33 = vld [vmem:[#allocation223_spill] sm:$0xff] }
 0x5c3   : > { %23010 = vmatprep.subr.mxu1 %v35726_v40  ;;  %23097 = vmatprep.subr.mxu0 %v35732_v53  ;;  %v18669_v44 = vpop.f32.mrf.mxu1  ;;  %v18753_v56 = vpop.f32.mrf.mxu0  ;;  %v33330_v2 = vand.u32 4294901760, %v23241_v51 }
 0x5c4   : > { %22695 = vmatprep.mubr.f32.mxu1 %v35223_v15  ;;  %22793 = vmatprep.mubr.f32.mxu0 %v35223_v15  ;;  %v18670_v50 = vadd.f32 %v18669_v44, %v18576_v27  ;;  %v18752_v19 = vadd.f32 %v18751_v46, %v18668_v29  ;;  %v35736_v46 = vld [vmem:[#allocation227_spill] sm:$0xff] }
 0x5c5   : > { %22697 = vmatmul.mubr.f32.gmra.mxu1 %v33162_v24  ;;  %22799 = vmatmul.mubr.f32.gmra.mxu0 %v22798_v48 }
 0x5c6   : > { %22879 = vmatprep.mubr.f32.mxu1 %v35223_v15  ;;  %22962 = vmatprep.mubr.f32.mxu0 %v35223_v15  ;;  %v18674_v8 = vpop.f32.mrf.mxu1  ;;  %v18754_v18 = vadd.f32 %v18753_v56, %v18670_v50  ;;  %v18759_v30 = vpop.f32.mrf.mxu0 }
 0x5c7   : > { %v18675_v10 = vadd.f32 %v18674_v8, %v18585_v0 }
 0x5c8   : > { %v18676_v35 = vpop.f32.mrf.mxu1  ;;  %v18761_v5 = vpop.f32.mrf.mxu0 }
 0x5c9   : > { %22881 = vmatmul.mubr.f32.vlgmr.msra.gmra.mxu1 %v33242_v62  ;;  %22965 = vmatmul.mubr.f32.vlgmr.msra.gmra.mxu0 %v33252_v4  ;;  %v18677_v24 = vadd.f32 %v18676_v35, %v18587_v14  ;;  %v18760_v20 = vadd.f32 %v18759_v30, %v18675_v10  ;;  %v23313_v14 = vsub.f32 %v33328_v16, %v23312_v55  ;;  %v35737_v4 = vld [vmem:[#allocation222_spill] sm:$0xff] }
 0x5ca   : > { %23012 = vmatpush1.msra.mxu1 %v35727_v59  ;;  %23101 = vmatpush1.msra.mxu0 %v35733_v54  ;;  %v18835_v11 = vpop.f32.mrf.mxu1  ;;  %v18922_v17 = vpop.f32.mrf.mxu0  ;;  %v35740_v54 = vld [vmem:[#allocation224_spill] sm:$0xff] }
 0x5cb   : > { %23180 = vmatprep.subr.mxu1 %v35726_v40  ;;  %23274 = vmatprep.subr.mxu0 %v35734_v3  ;;  %v18836_v28 = vadd.f32 %v18835_v11, %v18752_v19  ;;  %v18762_v31 = vadd.f32 %v18761_v5, %v18677_v24  ;;  %v33342_v40 = vsub.f32 %v23241_v51, %v33330_v2  ;;  %v35738_v5 = vld [vmem:[#allocation228_spill] sm:$0xff]  ;;  %v35739_v24 = vld [vmem:[#allocation225_spill] sm:$0xff] }
 0x5cc   : > { %22886 = vmatprep.mubr.f32.mxu1 %v35223_v15  ;;  %22970 = vmatprep.mubr.f32.mxu0 %v35223_v15  ;;  %v18837_v34 = vpop.f32.mrf.mxu1  ;;  %v18924_v27 = vpop.f32.mrf.mxu0 }
 0x5cd   : > { %22888 = vmatmul.mubr.f32.gmra.mxu1 %v33254_v63  ;;  %22973 = vmatmul.mubr.f32.gmra.mxu0 %v33268_v41  ;;  %v18838_v37 = vadd.f32 %v18837_v34, %v18754_v18  ;;  %v18923_v26 = vadd.f32 %v18922_v17, %v18836_v28  ;;  %v23323_v43 = vand.u32 4294901760, %v33342_v40 }
 0x5ce   : > { %23045 = vmatprep.mubr.f32.mxu1 %v35223_v15  ;;  %23134 = vmatprep.mubr.f32.mxu0 %v35223_v15 }
 0x5cf   : > { %v18844_v6 = vpop.f32.mrf.mxu1  ;;  %v18925_v0 = vadd.f32 %v18924_v27, %v18838_v37  ;;  %v18929_v57 = vpop.f32.mrf.mxu0  ;;  %v23324_v50 = vsub.f32 %v33342_v40, %v23323_v43 }
 0x5d0   : > { %v18845_v32 = vadd.f32 %v18844_v6, %v18760_v20 }
 0x5d1   : > { %23049 = vmatmul.mubr.f32.vlgmr.msra.gmra.mxu1 %v22785_v25  ;;  %23136 = vmatmul.mubr.f32.vlgmr.msra.gmra.mxu0 %v33242_v62  ;;  %v18846_v13 = vpop.f32.mrf.mxu1  ;;  %v18931_v48 = vpop.f32.mrf.mxu0  ;;  %v23325_v51 = vand.u32 4294901760, %v23324_v50 }
 0x5d2   : > { %23182 = vmatpush1.msra.mxu1 %v35727_v59  ;;  %23276 = vmatpush1.msra.mxu0 %v35735_v33  ;;  %v18847_v60 = vadd.f32 %v18846_v13, %v18762_v31  ;;  %v18930_v29 = vadd.f32 %v18929_v57, %v18845_v32  ;;  %v23314_v59 = vand.u32 4294901760, %v23313_v14  ;;  %v35741_v57 = vld [vmem:[#allocation226_spill] sm:$0xff] }
 0x5d3   : > { %23367 = vmatprep.subr.mxu1 %v35736_v46  ;;  %23453 = vmatprep.subr.mxu0 %v35737_v4  ;;  %v19003_v25 = vpop.f32.mrf.mxu1  ;;  %v19100_v45 = vpop.f32.mrf.mxu0 }
 0x5d4   : > { %23054 = vmatprep.mubr.f32.mxu1 %v35223_v15  ;;  %23141 = vmatprep.mubr.f32.mxu0 %v35223_v15  ;;  %v19004_v53 = vadd.f32 %v19003_v25, %v18923_v26  ;;  %v18932_v44 = vadd.f32 %v18931_v48, %v18847_v60 }
 0x5d5   : > { %23058 = vmatmul.mubr.f32.gmra.mxu1 %v22796_v38  ;;  %23143 = vmatmul.mubr.f32.gmra.mxu0 %v33254_v63  ;;  %v19005_v1 = vpop.f32.mrf.mxu1  ;;  %v19102_v19 = vpop.f32.mrf.mxu0 }
 0x5d6   : > { %23215 = vmatprep.mubr.f32.mxu1 %v35223_v15  ;;  %23309 = vmatprep.mubr.f32.mxu0 %v35223_v15  ;;  %v33368_v56 = vadd.f32 %v19004_v53, %v33286_v7  ;;  %v19006_v8 = vadd.f32 %v19005_v1, %v18925_v0 }
 0x5d7   : > { %v19010_v18 = vpop.f32.mrf.mxu1  ;;  %v19111_v41 = vpop.f32.mrf.mxu0 }
 0x5d8   : > { %v33371_v38 = vadd.f32 %v19006_v8, %v33297_v39  ;;  %v19011_v30 = vadd.f32 %v19010_v18, %v18930_v29 }
 0x5d9   : > { %23217 = vmatmul.mubr.f32.vlgmr.msra.gmra.mxu1 %v33242_v62  ;;  %23315 = vmatmul.mubr.f32.vlgmr.msra.gmra.mxu0 %v23314_v59  ;;  %v19012_v10 = vpop.f32.mrf.mxu1  ;;  %v19113_v35 = vpop.f32.mrf.mxu0 }
 0x5da   : > { %23373 = vmatpush1.msra.mxu1 %v35738_v5  ;;  %23456 = vmatpush1.msra.mxu0 %v35739_v24  ;;  %v33377_v7 = vadd.f32 %v19011_v30, %v33303_v52  ;;  %v19013_v20 = vadd.f32 %v19012_v10, %v18932_v44 }
 0x5db   : > { %23537 = vmatprep.subr.mxu1 %v35734_v3  ;;  %23624 = vmatprep.subr.mxu0 %v35740_v54  ;;  %v19193_v39 = vpop.f32.mrf.mxu1  ;;  %v19277_v11 = vpop.f32.mrf.mxu0 }
 0x5dc   : > { %23222 = vmatprep.mubr.f32.mxu1 %v35223_v15  ;;  %23320 = vmatprep.mubr.f32.mxu0 %v35223_v15  ;;  %v33384_v62 = vadd.f32 %v19013_v20, %v33309_v21  ;;  %v19194_v17 = vadd.f32 %v19193_v39, %v19100_v45 }
 0x5dd   : > { %23224 = vmatmul.mubr.f32.gmra.mxu1 %v33254_v63  ;;  %23326 = vmatmul.mubr.f32.gmra.mxu0 %v23325_v51  ;;  %v19195_v52 = vpop.f32.mrf.mxu1  ;;  %v19279_v28 = vpop.f32.mrf.mxu0  ;;  %v23801_v63 = vld [vmem:[%s34867_s5] sm:$0xff] }
 0x5de   : > { %23406 = vmatprep.mubr.f32.mxu1 %v35223_v15  ;;  %23489 = vmatprep.mubr.f32.mxu0 %v35223_v15  ;;  %v19196_v31 = vadd.f32 %v19195_v52, %v19102_v19  ;;  %v19278_v34 = vadd.f32 %v19277_v11, %v19194_v17  ;;  %v23805_v46 = vsel %vm23803_vm14, %v23801_v63, 0 }
 0x5df   : > { %v19200_v27 = vpop.f32.mrf.mxu1  ;;  %v19285_v37 = vpop.f32.mrf.mxu0  ;;  %v33407_v1 = vand.u32 4294901760, %v23805_v46 }
 0x5e0   : > { %v19201_v26 = vadd.f32 %v19200_v27, %v19111_v41  ;;  %v19280_v6 = vadd.f32 %v19279_v28, %v19196_v31 }
 0x5e1   : > { %23408 = vmatmul.mubr.f32.vlgmr.msra.gmra.mxu1 %v33320_v9  ;;  %23492 = vmatmul.mubr.f32.vlgmr.msra.gmra.mxu0 %v33328_v16  ;;  %v19202_v21 = vpop.f32.mrf.mxu1  ;;  %v19287_v0 = vpop.f32.mrf.mxu0  ;;  %v33417_v5 = vsub.f32 %v23805_v46, %v33407_v1 }
 0x5e2   : > { %23539 = vmatpush1.msra.mxu1 %v35735_v33  ;;  %23628 = vmatpush1.msra.mxu0 %v35741_v57  ;;  %v19203_v32 = vadd.f32 %v19202_v21, %v19113_v35  ;;  %v19286_v13 = vadd.f32 %v19285_v37, %v19201_v26 }
 0x5e3   : > { %23707 = vmatprep.subr.mxu1 %v35734_v3  ;;  %23413 = vmatprep.mubr.f32.mxu1 %v35223_v15  ;;  %v19361_v14 = vpop.f32.mrf.mxu1  ;;  %v19448_v48 = vpop.f32.mrf.mxu0  ;;  %v23802_v3 = vld [vmem:[%s34867_s5 + $0x8] sm:$0xf]  ;;  %v23888_v52 = vand.u32 4294901760, %v33417_v5 }
 0x5e4   : > { %v19362_v60 = vadd.f32 %v19361_v14, %v19278_v34  ;;  %23497 = vmatprep.mubr.f32.mxu0 %v35223_v15  ;;  %v19288_v29 = vadd.f32 %v19287_v0, %v19203_v32  ;;  %v23808_v8 = vsel %vm23803_vm14, %v23802_v3, 0 }
 0x5e5   : > { %23415 = vmatmul.mubr.f32.gmra.mxu1 %v33330_v2  ;;  %v19363_v4 = vpop.f32.mrf.mxu1  ;;  %23500 = vmatmul.mubr.f32.gmra.mxu0 %v33342_v40  ;;  %v19450_v25 = vpop.f32.mrf.mxu0  ;;  %v33419_v24 = vand.u32 4294901760, %v23808_v8 }
 0x5e6   : > { %23572 = vmatprep.mubr.f32.mxu1 %v35223_v15  ;;  %v19364_v45 = vadd.f32 %v19363_v4, %v19280_v6  ;;  %23661 = vmatprep.mubr.f32.mxu0 %v35223_v15  ;;  %v19449_v53 = vadd.f32 %v19448_v48, %v19362_v60 }
 0x5e7   : > { %v19370_v44 = vpop.f32.mrf.mxu1  ;;  %v19455_v59 = vpop.f32.mrf.mxu0  ;;  %v33431_v28 = vsub.f32 %v23808_v8, %v33419_v24 }
 0x5e8   : > { %v19371_v50 = vadd.f32 %v19370_v44, %v19286_v13  ;;  %v19451_v19 = vadd.f32 %v19450_v25, %v19364_v45 }
 0x5e9   : > { %23576 = vmatmul.mubr.f32.vlgmr.msra.gmra.mxu1 %v23312_v55  ;;  %v19372_v18 = vpop.f32.mrf.mxu1  ;;  %23663 = vmatmul.mubr.f32.vlgmr.msra.gmra.mxu0 %v33320_v9  ;;  %v19457_v41 = vpop.f32.mrf.mxu0  ;;  %v23899_v63 = vand.u32 4294901760, %v33431_v28 }
 0x5ea   : > { %23709 = vmatpush1.msra.mxu1 %v35735_v33  ;;  %23581 = vmatprep.mubr.f32.mxu1 %v35223_v15  ;;  %v19373_v30 = vadd.f32 %v19372_v18, %v19288_v29  ;;  %v19456_v51 = vadd.f32 %v19455_v59, %v19371_v50 }
 0x5eb   : > { %v19529_v10 = vpop.f32.mrf.mxu1  ;;  %23668 = vmatprep.mubr.f32.mxu0 %v35223_v15  ;;  %v19627_v35 = vpop.f32.mrf.mxu0  ;;  %v23900_v8 = vsub.f32 %v33431_v28, %v23899_v63 }
 0x5ec   : > { %v19530_v16 = vadd.f32 %v19529_v10, %v19449_v53  ;;  %v19458_v55 = vadd.f32 %v19457_v41, %v19373_v30 }
 0x5ed   : > { %23585 = vmatmul.mubr.f32.gmra.mxu1 %v23323_v43  ;;  %v19531_v20 = vpop.f32.mrf.mxu1  ;;  %23670 = vmatmul.mubr.f32.gmra.mxu0 %v33330_v2  ;;  %v19629_v33 = vpop.f32.mrf.mxu0 }
 0x5ee   : > { %23742 = vmatprep.mubr.f32.mxu1 %v35223_v15  ;;  %v33426_v54 = vadd.f32 %v19530_v16, %v33368_v56  ;;  %v19532_v39 = vadd.f32 %v19531_v20, %v19451_v19  ;;  %23885 = vmatprep.mubr.f32.mxu0 %v35223_v15 }
 0x5ef   : > { %v19536_v11 = vpop.f32.mrf.mxu1  ;;  %v19638_v17 = vpop.f32.mrf.mxu0 }
 0x5f0   : > { %v33434_v40 = vadd.f32 %v19532_v39, %v33371_v38  ;;  %v19537_v43 = vadd.f32 %v19536_v11, %v19456_v51 }
 0x5f1   : > { %23744 = vmatmul.mubr.f32.vlgmr.msra.gmra.mxu1 %v33320_v9  ;;  %v19538_v31 = vpop.f32.mrf.mxu1  ;;  %v19640_v34 = vpop.f32.mrf.mxu0  ;;  %v23889_v9 = vsub.f32 %v33417_v5, %v23888_v52 }
 0x5f2   : > { %23749 = vmatprep.mubr.f32.mxu1 %v35223_v15  ;;  %v33439_v56 = vadd.f32 %v19537_v43, %v33377_v7  ;;  %v19539_v27 = vadd.f32 %v19538_v31, %v19458_v55  ;;  %v23792_v37 = vpop.permute.xlu0 %23791  ;;  %v23796_v26 = vpop.permute.xlu1 %23795 }
 0x5f3   : > { %v23798_v6 = vsel %vm338_vm6, %v23792_v37, %v23796_v26  ;;  %v23800_v38 = vsel %vm338_vm6, %v23796_v26, %v23792_v37  ;;  %v19720_v21 = vpop.f32.mrf.mxu1  ;;  %v19804_v0 = vpop.f32.mrf.mxu0 }
 0x5f4   : > { %v33450_v7 = vadd.f32 %v19539_v27, %v33384_v62  ;;  %v23812_v57 = vsel %vm23810_vm15, %v23800_v38, 0  ;;  %v23815_v32 = vsel %vm23810_vm15, %v23798_v6, 0  ;;  %v19721_v13 = vadd.f32 %v19720_v21, %v19627_v35 }
 0x5f5   : > { %23751 = vmatmul.mubr.f32.gmra.mxu1 %v33330_v2  ;;  %v33455_v14 = vand.u32 4294901760, %v23815_v32  ;;  %v33457_v48 = vand.u32 4294901760, %v23812_v57  ;;  %v19722_v60 = vpop.f32.mrf.mxu1  ;;  %v19806_v29 = vpop.f32.mrf.mxu0  ;;  %v23890_v2 = vand.u32 4294901760, %v23889_v9  ;;  %v23901_v6 = vand.u32 4294901760, %v23900_v8 }
 0x5f6   : > { %v19723_v46 = vadd.f32 %v19722_v60, %v19629_v33  ;;  %v19805_v4 = vadd.f32 %v19804_v0, %v19721_v13  ;;  %23992 = vmatprep.mubr.f32.mxu1 %v35223_v15  ;;  %v29061_v60 = vld [vmem:[%s34867_s5 + $0x30] sm:$0xff] }
 0x5f7   : > { %v23937_v62 = vsub.f32 %v23815_v32, %v33455_v14  ;;  %v33462_v25 = vsub.f32 %v23812_v57, %v33457_v48  ;;  %v23790_v3 = vpop.permute.xlu0 %23789  ;;  %v23794_v45 = vpop.permute.xlu1 %23793  ;;  %23846 = vmatprep.subr.mxu0 %v33455_v14 }
 0x5f8   : > { %v23797_v53 = vsel %vm338_vm6, %v23790_v3, %v23794_v45  ;;  %v23799_v44 = vsel %vm338_vm6, %v23794_v45, %v23790_v3  ;;  %v19727_v59 = vpop.f32.mrf.mxu1  ;;  %23848 = vmatpush1.msra.mxu0 %v33457_v48  ;;  %v19807_v50 = vadd.f32 %v19806_v29, %v19723_v46  ;;  %v19812_v19 = vpop.f32.mrf.mxu0  ;;  %v24374_v29 = vsel %vm23810_vm15, %v33044_v58, 0 }
 0x5f9   : > { %v23944_v18 = vand.u32 4294901760, %v33462_v25  ;;  %v33474_v41 = vand.u32 4294901760, %v23797_v53  ;;  %v33476_v30 = vand.u32 4294901760, %v23799_v44  ;;  %v19728_v51 = vadd.f32 %v19727_v59, %v19638_v17 }
 0x5fa   : > { %v19729_v10 = vpop.f32.mrf.mxu1  ;;  %v23938_v35 = vand.u32 4294901760, %v23937_v62  ;;  %v19814_v16 = vpop.f32.mrf.mxu0  ;;  %v24365_v58 = vsel %vm23803_vm14, %v29061_v60, 0  ;;  %v33507_v59 = vand.u32 4294901760, %v24374_v29 }
 0x5fb   : > { %v33479_v55 = vsub.f32 %v23799_v44, %v33476_v30  ;;  %v19730_v20 = vadd.f32 %v19729_v10, %v19640_v34  ;;  %v33481_v33 = vpop.permute.xlu0 %24922  ;;  %23850 = vmatprep.subr.mxu0 %v33474_v41  ;;  %v33484_v39 = vpop.permute.xlu1 %24926  ;;  %v19813_v11 = vadd.f32 %v19812_v19, %v19728_v51  ;;  %v23949_v43 = vsub.f32 %v23797_v53, %v33474_v41 }
 0x5fc   : > { %23852 = vmatpush1.msra.mxu0 %v33476_v30  ;;  %v19888_v31 = vpop.f32.mrf.mxu1  ;;  %v23939_v17 = vsub.f32 %v23937_v62, %v23938_v35  ;;  %v23945_v27 = vsub.f32 %v33462_v25, %v23944_v18  ;;  %v19975_v37 = vpop.f32.mrf.mxu0 }
 0x5fd   : > { %v23956_v34 = vand.u32 4294901760, %v33479_v55  ;;  %v19889_v26 = vadd.f32 %v19888_v31, %v19805_v4  ;;  %23891 = vmatmul.mubr.f32.vlgmr.msra.gmra.mxu0 %v23890_v2  ;;  %24037 = vmatprep.subr.mxu0 %v23937_v62  ;;  %v19815_v0 = vadd.f32 %v19814_v16, %v19730_v20  ;;  %v23950_v3 = vand.u32 4294901760, %v23949_v43 }
 0x5fe   : > { %24040 = vmatpush1.msra.mxu0 %v33462_v25  ;;  %v19890_v38 = vpop.f32.mrf.mxu1  ;;  %23896 = vmatprep.mubr.f32.mxu0 %v35223_v15  ;;  %v23940_v21 = vand.u32 4294901760, %v23939_v17  ;;  %v19977_v9 = vpop.f32.mrf.mxu0  ;;  %v23946_v32 = vand.u32 4294901760, %v23945_v27  ;;  %v24371_v27 = vsel %vm23810_vm15, %v33040_v22, 0 }
 0x5ff   : > { %v19891_v57 = vadd.f32 %v19890_v38, %v19807_v50  ;;  %24043 = vmatprep.subr.mxu0 %v23949_v43  ;;  %v19976_v13 = vadd.f32 %v19975_v37, %v19889_v26  ;;  %v23957_v46 = vsub.f32 %v33479_v55, %v23956_v34  ;;  %v23951_v19 = vsub.f32 %v23949_v43, %v23950_v3 }
 0x600   : > { %v33500_v4 = vpop.permute.xlu0 %24920  ;;  %v33502_v62 = vpop.permute.xlu1 %24924  ;;  %23941 = vmatprep.subr.mxu1 %v23940_v21  ;;  %24046 = vmatpush1.msra.mxu0 %v33479_v55  ;;  %v33520_v43 = vand.u32 4294901760, %v24365_v58  ;;  %v33528_v26 = vsub.f32 %v24374_v29, %v33507_v59 }
 0x601   : > { %v19897_v45 = vpop.f32.mrf.mxu1  ;;  %23902 = vmatmul.mubr.f32.gmra.mxu0 %v23901_v6  ;;  %23947 = vmatpush1.msra.mxu1 %v23946_v32  ;;  %v19978_v2 = vadd.f32 %v19977_v9, %v19891_v57  ;;  %v19982_v53 = vpop.f32.mrf.mxu0  ;;  %v23958_v55 = vand.u32 4294901760, %v23957_v46  ;;  %v23952_v31 = vand.u32 4294901760, %v23951_v19  ;;  %v33539_v9 = vand.u32 4294901760, %v33074_v36 }
 0x602   : > { %v19898_v44 = vadd.f32 %v19897_v45, %v19813_v11  ;;  %24214 = vmatprep.subr.mxu0 %v23938_v35  ;;  %24079 = vmatprep.mubr.f32.mxu0 %v35223_v15  ;;  %v33542_v57 = vand.u32 4294901760, %v33078_v42  ;;  %v33547_v60 = vsub.f32 %v24365_v58, %v33520_v43 }
 0x603   : > { %v19899_v50 = vpop.f32.mrf.mxu1  ;;  %v19984_v8 = vpop.f32.mrf.mxu0  ;;  %23953 = vmatprep.subr.mxu1 %v23952_v31 }
 0x604   : > { %v19900_v51 = vadd.f32 %v19899_v50, %v19815_v0  ;;  %v33509_v10 = vpop.permute.xlu0 %25493  ;;  %v33511_v16 = vpop.permute.xlu1 %25497  ;;  %v19983_v20 = vadd.f32 %v19982_v53, %v19898_v44  ;;  %v29062_v0 = vld [vmem:[%s34867_s5 + $0x38] sm:$0xf]  ;;  %23959 = vmatpush1.msra.mxu1 %v23958_v55  ;;  %v33580_v55 = vsub.f32 %v33074_v36, %v33539_v9 }
 0x605   : > { %v33517_v35 = vsel %vm338_vm6, %v33511_v16, %v33509_v10  ;;  %v20056_v11 = vpop.f32.mrf.mxu1  ;;  %24082 = vmatmul.mubr.f32.vlgmr.msra.gmra.mxu0 %v33417_v5  ;;  %v20154_v17 = vpop.f32.mrf.mxu0  ;;  %23994 = vmatmul.mubr.f32.vlgmr.msra.gmra.mxu1 %v33407_v1  ;;  %v24368_v45 = vsel %vm23803_vm14, %v29062_v0, 0 }
 0x606   : > { %v20057_v37 = vadd.f32 %v20056_v11, %v19976_v13  ;;  %24218 = vmatpush1.msra.mxu0 %v23944_v18  ;;  %24087 = vmatprep.mubr.f32.mxu0 %v35223_v15  ;;  %v19985_v38 = vadd.f32 %v19984_v8, %v19900_v51  ;;  %v33536_v18 = vand.u32 4294901760, %v24371_v27  ;;  %v33576_v51 = vand.u32 4294901760, %v24368_v45 }
 0x607   : > { %24222 = vmatprep.subr.mxu0 %v23950_v3  ;;  %v20058_v6 = vpop.f32.mrf.mxu1  ;;  %v20156_v21 = vpop.f32.mrf.mxu0  ;;  %24125 = vmatprep.subr.mxu1 %v33455_v14 }
 0x608   : > { %v33534_v22 = vadd.f32 %v20057_v37, %v33426_v54  ;;  %v20059_v25 = vadd.f32 %v20058_v6, %v19978_v2  ;;  %24226 = vmatpush1.msra.mxu0 %v23956_v34  ;;  %24127 = vmatpush1.msra.mxu1 %v33457_v48  ;;  %v24497_v2 = vand.u32 4294901760, %v33528_v26  ;;  %v33569_v58 = vsub.f32 %v24371_v27, %v33536_v18 }
 0x609   : > { %v25492_v32 = vpop.permute.xlu0 %25491  ;;  %v25496_v13 = vpop.permute.xlu1 %25495  ;;  %23999 = vmatprep.mubr.f32.mxu1 %v35223_v15  ;;  %24129 = vmatprep.subr.mxu1 %v33474_v41 }
 0x60a   : > { %v33551_v54 = vadd.f32 %v20059_v25, %v33434_v40  ;;  %v33555_v34 = vsel %vm338_vm6, %v25492_v32, %v25496_v13  ;;  %v33559_v29 = vsel %vm338_vm6, %v25496_v13, %v25492_v32  ;;  %v20063_v46 = vpop.f32.mrf.mxu1  ;;  %v20165_v3 = vpop.f32.mrf.mxu0  ;;  %24405 = vmatprep.subr.mxu0 %v33507_v59  ;;  %24131 = vmatpush1.msra.mxu1 %v33476_v30 }
 0x60b   : > { %v20064_v40 = vadd.f32 %v20063_v46, %v19983_v20  ;;  %24090 = vmatmul.mubr.f32.gmra.mxu0 %v33431_v28  ;;  %24001 = vmatmul.mubr.f32.gmra.mxu1 %v33419_v24  ;;  %v33584_v20 = vsub.f32 %v33078_v42, %v33542_v57  ;;  %v24498_v37 = vsub.f32 %v33528_v26, %v24497_v2 }
 0x60c   : > { %v20065_v53 = vpop.f32.mrf.mxu1  ;;  %v20167_v44 = vpop.f32.mrf.mxu0  ;;  %24303 = vmatprep.subr.mxu1 %v33455_v14  ;;  %24164 = vmatprep.mubr.f32.mxu1 %v35223_v15  ;;  %v35129_v14 = vand.u32 4294901760, %v33547_v60  ;;  %v33601_v25 = vsub.f32 %v24368_v45, %v33576_v51 }
 0x60d   : > { %v33572_v50 = vadd.f32 %v20064_v40, %v33439_v56  ;;  %v27195_v19 = vpop.permute.xlu0 %27194  ;;  %v27199_v8 = vpop.permute.xlu1 %27198  ;;  %v20066_v31 = vadd.f32 %v20065_v53, %v19985_v38  ;;  %24259 = vmatprep.mubr.f32.mxu0 %v35223_v15  ;;  %v24503_v38 = vand.u32 4294901760, %v33569_v58  ;;  %v24499_v45 = vand.u32 4294901760, %v24498_v37 }
 0x60e   : > { %v20247_v56 = vpop.f32.mrf.mxu1  ;;  %v20331_v11 = vpop.f32.mrf.mxu0  ;;  %v24448_v5 = vsub.f32 %v33547_v60, %v35129_v14 }
 0x60f   : > { %v20248_v27 = vadd.f32 %v20247_v56, %v20154_v17  ;;  %v33593_v36 = vadd.f32 %v20066_v31, %v33450_v7  ;;  %24261 = vmatmul.mubr.f32.vlgmr.msra.gmra.mxu0 %v33407_v1  ;;  %24168 = vmatmul.mubr.f32.vlgmr.msra.gmra.mxu1 %v23888_v52  ;;  %v27201_v7 = vsel %vm3227_vm7, %v27195_v19, %v27199_v8  ;;  %v24509_v52 = vand.u32 4294901760, %v33584_v20 }
 0x610   : > { %v20249_v42 = vpop.f32.mrf.mxu1  ;;  %v20333_v6 = vpop.f32.mrf.mxu0  ;;  %24407 = vmatpush1.msra.mxu0 %v33536_v18  ;;  %24305 = vmatpush1.msra.mxu1 %v33457_v48  ;;  %v27203_v56 = vsel %vm3227_vm7, %v27199_v8, %v27195_v19  ;;  %v24504_v19 = vsub.f32 %v33569_v58, %v24503_v38  ;;  %v24458_v8 = vand.u32 4294901760, %v33601_v25 }
 0x611   : > { %v20250_v0 = vadd.f32 %v20249_v42, %v20156_v21  ;;  %v20332_v17 = vadd.f32 %v20331_v11, %v20248_v27  ;;  %24409 = vmatprep.subr.mxu0 %v33542_v57  ;;  %v24515_v21 = vand.u32 4294901760, %v33580_v55  ;;  %24307 = vmatprep.subr.mxu1 %v33474_v41  ;;  %v29063_v11 = vld [vmem:[%s34867_s5 + $0x60] sm:$0xff]  ;;  %v24929_v42 = vsel %vm1298_vm11, %v33481_v33, %v33484_v39 }
 0x612   : > { %v27207_v32 = vpop.permute.xlu0 %27206  ;;  %v27211_v13 = vpop.permute.xlu1 %27210  ;;  %24411 = vmatpush1.msra.mxu0 %v33539_v9  ;;  %24309 = vmatpush1.msra.mxu1 %v33476_v30 }
 0x613   : > { %v27213_v46 = vsel %vm3234_vm8, %v27207_v32, %v27211_v13  ;;  %v27215_v48 = vsel %vm3234_vm8, %v27211_v13, %v27207_v32  ;;  %v20254_v40 = vpop.f32.mrf.mxu1  ;;  %v20334_v53 = vadd.f32 %v20333_v6, %v20250_v0  ;;  %v20339_v31 = vpop.f32.mrf.mxu0  ;;  %24173 = vmatprep.mubr.f32.mxu1 %v35223_v15  ;;  %24266 = vmatprep.mubr.f32.mxu0 %v35223_v15 }
 0x614   : > { %v20255_v41 = vadd.f32 %v20254_v40, %v20165_v3  ;;  %v33624_v27 = vsel %vm29326_vm9, %v27201_v7, %v27215_v48  ;;  %24500 = vmatprep.subr.mxu1 %v24499_v45  ;;  %v33629_v37 = vsel %vm29332_vm10, %v27203_v56, %v27213_v46  ;;  %24596 = vmatprep.subr.mxu0 %v33528_v26  ;;  %v24449_v48 = vand.u32 4294901760, %v24448_v5 }
 0x615   : > { %35743 = vst [vmem:[#allocation98_spill] sm:$0xff] %v33624_v27  ;;  %35745 = vst [vmem:[#allocation101_spill] sm:$0xff] %v33629_v37  ;;  %v20256_v6 = vpop.f32.mrf.mxu1  ;;  %v20341_v30 = vpop.f32.mrf.mxu0  ;;  %24177 = vmatmul.mubr.f32.gmra.mxu1 %v23899_v63  ;;  %v24510_v32 = vsub.f32 %v33584_v20, %v24509_v52  ;;  %24268 = vmatmul.mubr.f32.gmra.mxu0 %v33419_v24  ;;  %v24516_v28 = vsub.f32 %v33580_v55, %v24515_v21  ;;  %v24505_v45 = vand.u32 4294901760, %v24504_v19 }
 0x616   : > { %v20257_v3 = vadd.f32 %v20256_v6, %v20167_v44  ;;  %v27193_v0 = vpop.permute.xlu0 %27192  ;;  %v27197_v7 = vpop.permute.xlu1 %27196  ;;  %v20340_v13 = vadd.f32 %v20339_v31, %v20255_v41  ;;  %27226 = vrot.lane.b32.xlu1 %v33624_v27, %s29109_s12  ;;  %27222 = vrot.lane.b32.xlu0 %v33629_v37, %s29109_s12  ;;  %v24459_v5 = vsub.f32 %v33601_v25, %v24458_v8 }
 0x617   : > { %v20415_v46 = vpop.f32.mrf.mxu1  ;;  %v20502_v63 = vpop.f32.mrf.mxu0  ;;  %24342 = vmatprep.mubr.f32.mxu1 %v35223_v15  ;;  %24444 = vmatprep.mubr.f32.mxu0 %v35223_v15  ;;  %v24511_v41 = vand.u32 4294901760, %v24510_v32 }
 0x618   : > { %v20416_v44 = vadd.f32 %v20415_v46, %v20332_v17  ;;  %v20342_v31 = vadd.f32 %v20341_v30, %v20257_v3  ;;  %v24931_v17 = vsel %vm1298_vm11, %v33484_v39, %v33481_v33  ;;  %v24517_v46 = vand.u32 4294901760, %v24516_v28 }
 0x619   : > { %v20417_v40 = vpop.f32.mrf.mxu1  ;;  %v20504_v56 = vpop.f32.mrf.mxu0  ;;  %24344 = vmatmul.mubr.f32.vlgmr.msra.gmra.mxu1 %v33407_v1  ;;  %24450 = vmatmul.mubr.f32.vlgmr.msra.gmra.mxu0 %v24449_v48  ;;  %v24460_v28 = vand.u32 4294901760, %v24459_v5 }
 0x61a   : > { %v20418_v6 = vadd.f32 %v20417_v40, %v20334_v53  ;;  %v20503_v14 = vadd.f32 %v20502_v63, %v20416_v44  ;;  %24506 = vmatpush1.msra.mxu1 %v24505_v45  ;;  %24599 = vmatpush1.msra.mxu0 %v33569_v58  ;;  %v27200_v44 = vsel %vm3227_vm7, %v27193_v0, %v27197_v7 }
 0x61b   : > { %v27205_v19 = vpop.permute.xlu0 %27204  ;;  %v27209_v30 = vpop.permute.xlu1 %27208  ;;  %24512 = vmatprep.subr.mxu1 %v24511_v41  ;;  %24602 = vmatprep.subr.mxu0 %v33584_v20  ;;  %v27202_v45 = vsel %vm3227_vm7, %v27197_v7, %v27193_v0 }
 0x61c   : > { %v27212_v3 = vsel %vm3234_vm8, %v27205_v19, %v27209_v30  ;;  %v27214_v1 = vsel %vm3234_vm8, %v27209_v30, %v27205_v19  ;;  %v20424_v53 = vpop.f32.mrf.mxu1  ;;  %v20505_v32 = vadd.f32 %v20504_v56, %v20418_v6  ;;  %v20509_v63 = vpop.f32.mrf.mxu0  ;;  %24518 = vmatpush1.msra.mxu1 %v24517_v46  ;;  %24605 = vmatpush1.msra.mxu0 %v33580_v55  ;;  %v24945_v6 = vsel %vm23810_vm15, %v24931_v17, 0 }
 0x61d   : > { %v20425_v48 = vadd.f32 %v20424_v53, %v20340_v13  ;;  %24349 = vmatprep.mubr.f32.mxu1 %v35223_v15  ;;  %v33673_v40 = vsel %vm29326_vm9, %v27200_v44, %v27214_v1  ;;  %24455 = vmatprep.mubr.f32.mxu0 %v35223_v15  ;;  %v33680_v13 = vsel %vm29332_vm10, %v27202_v45, %v27212_v3  ;;  %v33694_v46 = vand.u32 4294901760, %v24945_v6 }
 0x61e   : > { %35746 = vst [vmem:[#allocation83_spill] sm:$0xff] %v33673_v40  ;;  %v20426_v56 = vpop.f32.mrf.mxu1  ;;  %v20511_v41 = vpop.f32.mrf.mxu0  ;;  %24684 = vmatprep.subr.mxu1 %v33507_v59  ;;  %35747 = vst [vmem:[#allocation85_spill] sm:$0xff] %v33680_v13  ;;  %24773 = vmatprep.subr.mxu0 %v24497_v2  ;;  %v24936_v2 = vsel %vm23803_vm14, %v29063_v11, 0 }
 0x61f   : > { %v20427_v0 = vadd.f32 %v20426_v56, %v20342_v31  ;;  %v20510_v7 = vadd.f32 %v20509_v63, %v20425_v48  ;;  %24351 = vmatmul.mubr.f32.gmra.mxu1 %v33419_v24  ;;  %24461 = vmatmul.mubr.f32.gmra.mxu0 %v24460_v28  ;;  %v33711_v53 = vand.u32 4294901760, %v24936_v2  ;;  %v24930_v63 = vsel %vm1298_vm11, %v33502_v62, %v33500_v4 }
 0x620   : > { %v20583_v5 = vpop.f32.mrf.mxu1  ;;  %v20681_v17 = vpop.f32.mrf.mxu0  ;;  %27224 = vrot.lane.b32.xlu1 %v33673_v40, %s29109_s12  ;;  %27220 = vrot.lane.b32.xlu0 %v33680_v13, %s29109_s12  ;;  %v24928_v48 = vsel %vm1298_vm11, %v33500_v4, %v33502_v62  ;;  %v33743_v4 = vand.u32 4294901760, %v24930_v63 }
 0x621   : > { %v20584_v31 = vadd.f32 %v20583_v5, %v20503_v14  ;;  %v20512_v19 = vadd.f32 %v20511_v41, %v20427_v0  ;;  %24551 = vmatprep.mubr.f32.mxu1 %v35223_v15  ;;  %24638 = vmatprep.mubr.f32.mxu0 %v35223_v15  ;;  %v24942_v14 = vsel %vm23810_vm15, %v24929_v42, 0  ;;  %v33751_v41 = vand.u32 4294901760, %v24928_v48 }
 0x622   : > { %v20585_v24 = vpop.f32.mrf.mxu1  ;;  %v20683_v26 = vpop.f32.mrf.mxu0  ;;  %v33726_v44 = vand.u32 4294901760, %v24942_v14  ;;  %v33770_v5 = vsub.f32 %v24930_v63, %v33743_v4 }
 0x623   : > { %v33702_v33 = vadd.f32 %v20584_v31, %v33534_v22  ;;  %v20586_v39 = vadd.f32 %v20585_v24, %v20505_v32  ;;  %24553 = vmatmul.mubr.f32.vlgmr.msra.gmra.mxu1 %v33520_v43  ;;  %24641 = vmatmul.mubr.f32.vlgmr.msra.gmra.mxu0 %v33547_v60  ;;  %v29064_v22 = vld [vmem:[%s34867_s5 + $0x68] sm:$0xf]  ;;  %v33717_v32 = vsub.f32 %v24945_v6, %v33694_v46 }
 0x624   : > { %24686 = vmatpush1.msra.mxu1 %v33536_v18  ;;  %v20590_v3 = vpop.f32.mrf.mxu1  ;;  %v20692_v1 = vpop.f32.mrf.mxu0  ;;  %24777 = vmatpush1.msra.mxu0 %v24503_v38  ;;  %v24939_v56 = vsel %vm23803_vm14, %v29064_v22, 0 }
 0x625   : > { %v33709_v30 = vadd.f32 %v20586_v39, %v33551_v54  ;;  %24688 = vmatprep.subr.mxu1 %v33542_v57  ;;  %v20591_v54 = vadd.f32 %v20590_v3, %v20510_v7  ;;  %24781 = vmatprep.subr.mxu0 %v24509_v52  ;;  %v33749_v52 = vsub.f32 %v24936_v2, %v33711_v53  ;;  %v25068_v55 = vand.u32 4294901760, %v33717_v32 }
 0x626   : > { %28356 = vrot.lane.b32.xlu1 %v33624_v27, %s29111_s14  ;;  %v20592_v28 = vpop.f32.mrf.mxu1  ;;  %v20694_v45 = vpop.f32.mrf.mxu0  ;;  %28352 = vrot.lane.b32.xlu0 %v33629_v37, %s29111_s14  ;;  %v33764_v11 = vand.u32 4294901760, %v24939_v56 }
 0x627   : > { %24690 = vmatpush1.msra.mxu1 %v33539_v9  ;;  %v33740_v58 = vadd.f32 %v20591_v54, %v33572_v50  ;;  %v20593_v38 = vadd.f32 %v20592_v28, %v20512_v19  ;;  %24785 = vmatpush1.msra.mxu0 %v24515_v21  ;;  %v33760_v21 = vsub.f32 %v24942_v14, %v33726_v44  ;;  %v25018_v42 = vand.u32 4294901760, %v33749_v52 }
 0x628   : > { %24558 = vmatprep.mubr.f32.mxu1 %v35223_v15  ;;  %v20774_v62 = vpop.f32.mrf.mxu1  ;;  %v20858_v20 = vpop.f32.mrf.mxu0  ;;  %24646 = vmatprep.mubr.f32.mxu0 %v35223_v15  ;;  %v33777_v19 = vsub.f32 %v24928_v48, %v33751_v41  ;;  %v25069_v24 = vsub.f32 %v33717_v32, %v25068_v55  ;;  %v35748_v14 = vand.u32 4294901760, %v33547_v60  ;;  %v33787_v63 = vsub.f32 %v24939_v56, %v33764_v11 }
 0x629   : > { %24862 = vmatprep.subr.mxu1 %v33507_v59  ;;  %v33756_v50 = vadd.f32 %v20593_v38, %v33593_v36  ;;  %v20775_v6 = vadd.f32 %v20774_v62, %v20681_v17  ;;  %24976 = vmatprep.subr.mxu0 %v33694_v46  ;;  %v25074_v39 = vand.u32 4294901760, %v33760_v21  ;;  %v25080_v28 = vand.u32 4294901760, %v33770_v5 }
 0x62a   : > { %24560 = vmatmul.mubr.f32.gmra.mxu1 %v33576_v51  ;;  %v20776_v0 = vpop.f32.mrf.mxu1  ;;  %v20860_v7 = vpop.f32.mrf.mxu0  ;;  %24649 = vmatmul.mubr.f32.gmra.mxu0 %v33601_v25  ;;  %v25086_v38 = vand.u32 4294901760, %v33777_v19  ;;  %v25070_v56 = vand.u32 4294901760, %v25069_v24 }
 0x62b   : > { %28354 = vrot.lane.b32.xlu1 %v33673_v40, %s29111_s14  ;;  %v20777_v59 = vadd.f32 %v20776_v0, %v20683_v26  ;;  %v20859_v36 = vadd.f32 %v20858_v20, %v20775_v6  ;;  %28350 = vrot.lane.b32.xlu0 %v33680_v13, %s29111_s14  ;;  %v25029_v20 = vand.u32 4294901760, %v33787_v63  ;;  %v26624_v13 = vpop.permute.xlu0 %26623  ;;  %v26628_v40 = vpop.permute.xlu1 %26627 }
 0x62c   : > { %24723 = vmatprep.mubr.f32.mxu1 %v35223_v15  ;;  %v20781_v17 = vpop.f32.mrf.mxu1  ;;  %v20866_v31 = vpop.f32.mrf.mxu0  ;;  %24818 = vmatprep.mubr.f32.mxu0 %v35223_v15 }
 0x62d   : > { %v20782_v26 = vadd.f32 %v20781_v17, %v20692_v1  ;;  %v20861_v2 = vadd.f32 %v20860_v7, %v20777_v59  ;;  %v25081_v59 = vsub.f32 %v33770_v5, %v25080_v28  ;;  %v25030_v25 = vsub.f32 %v33787_v63, %v25029_v20 }
 0x62e   : > { %24727 = vmatmul.mubr.f32.vlgmr.msra.gmra.mxu1 %v35748_v14  ;;  %v20783_v3 = vpop.f32.mrf.mxu1  ;;  %v20868_v22 = vpop.f32.mrf.mxu0  ;;  %24820 = vmatmul.mubr.f32.vlgmr.msra.gmra.mxu0 %v33520_v43 }
 0x62f   : > { %24864 = vmatpush1.msra.mxu1 %v33536_v18  ;;  %v20784_v54 = vadd.f32 %v20783_v3, %v20694_v45  ;;  %v20867_v48 = vadd.f32 %v20866_v31, %v20782_v26  ;;  %24978 = vmatpush1.msra.mxu0 %v33726_v44  ;;  %v25019_v18 = vsub.f32 %v33749_v52, %v25018_v42 }
 0x630   : > { %24866 = vmatprep.subr.mxu1 %v33542_v57  ;;  %v20942_v1 = vpop.f32.mrf.mxu1  ;;  %v21029_v60 = vpop.f32.mrf.mxu0  ;;  %24980 = vmatprep.subr.mxu0 %v33743_v4  ;;  %v25075_v57 = vsub.f32 %v33760_v21, %v25074_v39  ;;  %v25087_v31 = vsub.f32 %v33777_v19, %v25086_v38 }
 0x631   : > { %24868 = vmatpush1.msra.mxu1 %v33539_v9  ;;  %v20943_v62 = vadd.f32 %v20942_v1, %v20859_v36  ;;  %24982 = vmatpush1.msra.mxu0 %v33751_v41  ;;  %v20869_v0 = vadd.f32 %v20868_v22, %v20784_v54  ;;  %v25020_v24 = vand.u32 4294901760, %v25019_v18  ;;  %v25082_v1 = vand.u32 4294901760, %v25081_v59 }
 0x632   : > { %24732 = vmatprep.mubr.f32.mxu1 %v35223_v15  ;;  %v20944_v45 = vpop.f32.mrf.mxu1  ;;  %v21031_v6 = vpop.f32.mrf.mxu0  ;;  %24825 = vmatprep.mubr.f32.mxu0 %v35223_v15  ;;  %v25076_v14 = vand.u32 4294901760, %v25075_v57 }
 0x633   : > { %25071 = vmatprep.subr.mxu1 %v25070_v56  ;;  %v20945_v9 = vadd.f32 %v20944_v45, %v20861_v2  ;;  %v21030_v7 = vadd.f32 %v21029_v60, %v20943_v62  ;;  %25167 = vmatprep.subr.mxu0 %v33717_v32  ;;  %v25088_v62 = vand.u32 4294901760, %v25087_v31 }
 0x634   : > { %24736 = vmatmul.mubr.f32.gmra.mxu1 %v24458_v8  ;;  %v20951_v36 = vpop.f32.mrf.mxu1  ;;  %v21036_v17 = vpop.f32.mrf.mxu0  ;;  %24827 = vmatmul.mubr.f32.gmra.mxu0 %v33576_v51 }
 0x635   : > { %24901 = vmatprep.mubr.f32.mxu1 %v35223_v15  ;;  %v20952_v26 = vadd.f32 %v20951_v36, %v20867_v48  ;;  %25015 = vmatprep.mubr.f32.mxu0 %v35223_v15  ;;  %v21032_v22 = vadd.f32 %v21031_v6, %v20945_v9  ;;  %v25500_v48 = vsel %vm338_vm6, %v33509_v10, %v33511_v16 }
 0x636   : > { %v20953_v8 = vpop.f32.mrf.mxu1  ;;  %v21038_v2 = vpop.f32.mrf.mxu0  ;;  %v25516_v10 = vsel %vm23810_vm15, %v25500_v48, 0  ;;  %v33887_v48 = vand.u32 4294901760, %v33555_v34 }
 0x637   : > { %v20954_v3 = vadd.f32 %v20953_v8, %v20869_v0  ;;  %v21037_v54 = vadd.f32 %v21036_v17, %v20952_v26 }
 0x638   : > { %24903 = vmatmul.mubr.f32.vlgmr.msra.gmra.mxu1 %v33520_v43  ;;  %v21110_v60 = vpop.f32.mrf.mxu1  ;;  %v21208_v56 = vpop.f32.mrf.mxu0  ;;  %25021 = vmatmul.mubr.f32.vlgmr.msra.gmra.mxu0 %v25020_v24  ;;  %v25031_v43 = vand.u32 4294901760, %v25030_v25  ;;  %v33850_v24 = vand.u32 4294901760, %v25516_v10 }
 0x639   : > { %25077 = vmatpush1.msra.mxu1 %v25076_v14  ;;  %v21111_v18 = vadd.f32 %v21110_v60, %v21030_v7  ;;  %25170 = vmatpush1.msra.mxu0 %v33760_v21  ;;  %v21039_v0 = vadd.f32 %v21038_v2, %v20954_v3  ;;  %v25513_v2 = vsel %vm23810_vm15, %v33517_v35, 0  ;;  %v29066_v35 = vld [vmem:[%s34867_s5 + $0x18] sm:$0xf] }
 0x63a   : > { %25083 = vmatprep.subr.mxu1 %v25082_v1  ;;  %v21112_v57 = vpop.f32.mrf.mxu1  ;;  %v33828_v45 = vpop.f32.mrf.mxu0  ;;  %25173 = vmatprep.subr.mxu0 %v33770_v5  ;;  %v33869_v3 = vsub.f32 %v25516_v10, %v33850_v24  ;;  %v33881_v60 = vand.u32 4294901760, %v25513_v2  ;;  %v33898_v5 = vand.u32 4294901760, %v33559_v29 }
 0x63b   : > { %25089 = vmatpush1.msra.mxu1 %v25088_v62  ;;  %v33832_v6 = vadd.f32 %v21111_v18, %v33702_v33  ;;  %v21113_v9 = vadd.f32 %v21112_v57, %v21032_v22  ;;  %25176 = vmatpush1.msra.mxu0 %v33777_v19  ;;  %v29065_v33 = vld [vmem:[%s34867_s5 + $0x10] sm:$0xff]  ;;  %v25510_v62 = vsel %vm23803_vm14, %v29066_v35, 0 }
 0x63c   : > { %24908 = vmatprep.mubr.f32.mxu1 %v35223_v15  ;;  %v21117_v16 = vpop.f32.mrf.mxu1  ;;  %v21219_v7 = vpop.f32.mrf.mxu0  ;;  %25026 = vmatprep.mubr.f32.mxu0 %v35223_v15  ;;  %v25507_v32 = vsel %vm23803_vm14, %v29065_v33, 0 }
 0x63d   : > { %25255 = vmatprep.subr.mxu1 %v33694_v46  ;;  %v33840_v59 = vadd.f32 %v21113_v9, %v33709_v30  ;;  %v21118_v36 = vadd.f32 %v21117_v16, %v21037_v54  ;;  %25344 = vmatprep.subr.mxu0 %v25068_v55  ;;  %v33913_v9 = vand.u32 4294901760, %v25510_v62 }
 0x63e   : > { %24910 = vmatmul.mubr.f32.gmra.mxu1 %v33576_v51  ;;  %v21119_v17 = vpop.f32.mrf.mxu1  ;;  %v33848_v31 = vpop.f32.mrf.mxu0  ;;  %25032 = vmatmul.mubr.f32.gmra.mxu0 %v25031_v43  ;;  %v33909_v43 = vsub.f32 %v25513_v2, %v33881_v60 }
 0x63f   : > { %35749 = vst [vmem:[#allocation56_spill] sm:$0xff] %v33840_v59  ;;  %25122 = vmatprep.mubr.f32.mxu1 %v35223_v15  ;;  %v33854_v30 = vadd.f32 %v21118_v36, %v33740_v58  ;;  %v21120_v26 = vadd.f32 %v21119_v17, %v21039_v0  ;;  %25209 = vmatprep.mubr.f32.mxu0 %v35223_v15 }
 0x640   : > { %v21301_v25 = vpop.f32.mrf.mxu1  ;;  %v21385_v8 = vpop.f32.mrf.mxu0  ;;  %v33917_v0 = vsub.f32 %v33555_v34, %v33887_v48 }
 0x641   : > { %v33859_v51 = vadd.f32 %v21120_v26, %v33756_v50  ;;  %v21302_v55 = vadd.f32 %v21301_v25, %v21208_v56  ;;  %v33873_v50 = vand.u32 4294901760, %v25507_v32  ;;  %v25645_v25 = vand.u32 4294901760, %v33909_v43 }
 0x642   : > { %25124 = vmatmul.mubr.f32.vlgmr.msra.gmra.mxu1 %v33711_v53  ;;  %v33864_v14 = vpop.f32.mrf.mxu1  ;;  %v33866_v58 = vpop.f32.mrf.mxu0  ;;  %25212 = vmatmul.mubr.f32.vlgmr.msra.gmra.mxu0 %v33749_v52 }
 0x643   : > { %35750 = vst [vmem:[#allocation90_spill] sm:$0xff] %v33859_v51  ;;  %25257 = vmatpush1.msra.mxu1 %v33726_v44  ;;  %v21386_v22 = vadd.f32 %v21385_v8, %v21302_v55  ;;  %25348 = vmatpush1.msra.mxu0 %v25074_v39  ;;  %v33904_v19 = vsub.f32 %v25507_v32, %v33873_v50  ;;  %v25651_v32 = vand.u32 4294901760, %v33917_v0 }
 0x644   : > { %25259 = vmatprep.subr.mxu1 %v33743_v4  ;;  %v21308_v54 = vpop.f32.mrf.mxu1  ;;  %v21393_v1 = vpop.f32.mrf.mxu0  ;;  %25352 = vmatprep.subr.mxu0 %v25080_v28  ;;  %v25639_v28 = vand.u32 4294901760, %v33869_v3  ;;  %v33938_v8 = vsub.f32 %v25510_v62, %v33913_v9 }
 0x645   : > { %25261 = vmatpush1.msra.mxu1 %v33751_v41  ;;  %v21309_v56 = vadd.f32 %v21308_v54, %v21219_v7  ;;  %25356 = vmatpush1.msra.mxu0 %v25086_v38  ;;  %v33926_v7 = vsub.f32 %v33559_v29, %v33898_v5  ;;  %v25589_v33 = vand.u32 4294901760, %v33904_v19  ;;  %v25646_v54 = vsub.f32 %v33909_v43, %v25645_v25 }
 0x646   : > { %25129 = vmatprep.mubr.f32.mxu1 %v35223_v15  ;;  %v33892_v21 = vpop.f32.mrf.mxu1  ;;  %v33894_v39 = vpop.f32.mrf.mxu0  ;;  %25217 = vmatprep.mubr.f32.mxu0 %v35223_v15  ;;  %v25640_v36 = vsub.f32 %v33869_v3, %v25639_v28 }
 0x647   : > { %25433 = vmatprep.subr.mxu1 %v33694_v46  ;;  %v21394_v38 = vadd.f32 %v21393_v1, %v21309_v56  ;;  %25547 = vmatprep.subr.mxu0 %v33850_v24  ;;  %v25657_v55 = vand.u32 4294901760, %v33926_v7  ;;  %v25590_v2 = vsub.f32 %v33904_v19, %v25589_v33  ;;  %v25652_v56 = vsub.f32 %v33917_v0, %v25651_v32 }
 0x648   : > { %25131 = vmatmul.mubr.f32.gmra.mxu1 %v33764_v11  ;;  %v21469_v18 = vpop.f32.mrf.mxu1  ;;  %v21556_v57 = vpop.f32.mrf.mxu0  ;;  %25220 = vmatmul.mubr.f32.gmra.mxu0 %v33787_v63 }
 0x649   : > { %25294 = vmatprep.mubr.f32.mxu1 %v35223_v15  ;;  %v21470_v46 = vadd.f32 %v21469_v18, %v21386_v22  ;;  %25389 = vmatprep.mubr.f32.mxu0 %v35223_v15  ;;  %v25658_v18 = vsub.f32 %v33926_v7, %v25657_v55 }
 0x64a   : > { %v33920_v10 = vpop.f32.mrf.mxu1  ;;  %v33922_v16 = vpop.f32.mrf.mxu0 }
 0x64b   : > { %v21557_v17 = vadd.f32 %v21556_v57, %v21470_v46  ;;  %v25591_v57 = vand.u32 4294901760, %v25590_v2 }
 0x64c   : > { %25298 = vmatmul.mubr.f32.vlgmr.msra.gmra.mxu1 %v25018_v42  ;;  %v21478_v34 = vpop.f32.mrf.mxu1  ;;  %v21563_v26 = vpop.f32.mrf.mxu0  ;;  %25391 = vmatmul.mubr.f32.vlgmr.msra.gmra.mxu0 %v33711_v53 }
 0x64d   : > { %25435 = vmatpush1.msra.mxu1 %v33726_v44  ;;  %v21479_v29 = vadd.f32 %v21478_v34, %v21394_v38  ;;  %25549 = vmatpush1.msra.mxu0 %v33881_v60  ;;  %v25641_v44 = vand.u32 4294901760, %v25640_v36  ;;  %v25647_v36 = vand.u32 4294901760, %v25646_v54 }
 0x64e   : > { %25437 = vmatprep.subr.mxu1 %v33743_v4  ;;  %v33943_v52 = vpop.f32.mrf.mxu1  ;;  %v33945_v42 = vpop.f32.mrf.mxu0  ;;  %25551 = vmatprep.subr.mxu0 %v33887_v48 }
 0x64f   : > { %35751 = vst [vmem:[#allocation91_spill] sm:$0xff] %v33945_v42  ;;  %25439 = vmatpush1.msra.mxu1 %v33751_v41  ;;  %v21564_v22 = vadd.f32 %v21563_v26, %v21479_v29  ;;  %25553 = vmatpush1.msra.mxu0 %v33898_v5  ;;  %v35130_v41 = vand.u32 4294901760, %v33938_v8  ;;  %v25653_v26 = vand.u32 4294901760, %v25652_v56 }
 0x650   : > { %25303 = vmatprep.mubr.f32.mxu1 %v35223_v15  ;;  %v21637_v4 = vpop.f32.mrf.mxu1  ;;  %v21735_v35 = vpop.f32.mrf.mxu0  ;;  %25396 = vmatprep.mubr.f32.mxu0 %v35223_v15 }
 0x651   : > { %25642 = vmatprep.subr.mxu1 %v25641_v44  ;;  %v21638_v1 = vadd.f32 %v21637_v4, %v21557_v17  ;;  %25738 = vmatprep.subr.mxu0 %v33869_v3  ;;  %v25601_v17 = vsub.f32 %v33938_v8, %v35130_v41 }
 0x652   : > { %25307 = vmatmul.mubr.f32.gmra.mxu1 %v25029_v20  ;;  %v33966_v62 = vpop.f32.mrf.mxu1  ;;  %v33968_v38 = vpop.f32.mrf.mxu0  ;;  %25398 = vmatmul.mubr.f32.gmra.mxu0 %v33764_v11 }
 0x653   : > { %35752 = vst [vmem:[#allocation5_spill] sm:$0xff] %v33966_v62  ;;  %25472 = vmatprep.mubr.f32.mxu1 %v35223_v15  ;;  %v33976_v63 = vadd.f32 %v21638_v1, %v33832_v6  ;;  %25586 = vmatprep.mubr.f32.mxu0 %v35223_v15  ;;  %v25659_v6 = vand.u32 4294901760, %v25658_v18  ;;  %v26075_v1 = vsel %vm23810_vm15, %v32649_v49, 0 }
 0x654   : > { %v21644_v20 = vpop.f32.mrf.mxu1  ;;  %v21746_v46 = vpop.f32.mrf.mxu0 }
 0x655   : > { %v21645_v34 = vadd.f32 %v21644_v20, %v21564_v22  ;;  %v34009_v20 = vand.u32 4294901760, %v26075_v1 }
 0x656   : > { %25474 = vmatmul.mubr.f32.vlgmr.msra.gmra.mxu1 %v33711_v53  ;;  %v33983_v29 = vpop.f32.mrf.mxu1  ;;  %v33985_v44 = vpop.f32.mrf.mxu0  ;;  %25592 = vmatmul.mubr.f32.vlgmr.msra.gmra.mxu0 %v25591_v57  ;;  %v25602_v53 = vand.u32 4294901760, %v25601_v17 }
 0x657   : > { %35753 = vst [vmem:[#allocation93_spill] sm:$0xff] %v33983_v29  ;;  %25648 = vmatpush1.msra.mxu1 %v25647_v36  ;;  %v33988_v2 = vadd.f32 %v21645_v34, %v33854_v30  ;;  %25741 = vmatpush1.msra.mxu0 %v33909_v43  ;;  %v34046_v43 = vand.u32 4294901760, %v32634_v23 }
 0x658   : > { %25654 = vmatprep.subr.mxu1 %v25653_v26  ;;  %v21828_v4 = vpop.f32.mrf.mxu1  ;;  %v21912_v54 = vpop.f32.mrf.mxu0  ;;  %25744 = vmatprep.subr.mxu0 %v33917_v0  ;;  %v34052_v0 = vand.u32 4294901760, %v32624_v61 }
 0x659   : > { %25660 = vmatpush1.msra.mxu1 %v25659_v6  ;;  %v21829_v22 = vadd.f32 %v21828_v4, %v21735_v35  ;;  %25747 = vmatpush1.msra.mxu0 %v33926_v7  ;;  %v29067_v35 = vld [vmem:[%s34867_s5 + $0x40] sm:$0xff] }
 0x65a   : > { %25479 = vmatprep.mubr.f32.mxu1 %v35223_v15  ;;  %v33996_v56 = vpop.f32.mrf.mxu1  ;;  %v33998_v30 = vpop.f32.mrf.mxu0  ;;  %25597 = vmatprep.mubr.f32.mxu0 %v35223_v15  ;;  %v26066_v34 = vsel %vm23803_vm14, %v29067_v35, 0 }
 0x65b   : > { %25826 = vmatprep.subr.mxu1 %v33850_v24  ;;  %v21913_v18 = vadd.f32 %v21912_v54, %v21829_v22  ;;  %25915 = vmatprep.subr.mxu0 %v25639_v28  ;;  %v34025_v54 = vand.u32 4294901760, %v26066_v34 }
 0x65c   : > { %25481 = vmatmul.mubr.f32.gmra.mxu1 %v33764_v11  ;;  %v21835_v57 = vpop.f32.mrf.mxu1  ;;  %v21920_v49 = vpop.f32.mrf.mxu0  ;;  %25603 = vmatmul.mubr.f32.gmra.mxu0 %v25602_v53  ;;  %v26072_v11 = vsel %vm23810_vm15, %v32642_v12, 0  ;;  %v29068_v53 = vld [vmem:[%s34867_s5 + $0x48] sm:$0xf] }
 0x65d   : > { %25693 = vmatprep.mubr.f32.mxu1 %v35223_v15  ;;  %v21836_v36 = vadd.f32 %v21835_v57, %v21746_v46  ;;  %25780 = vmatprep.mubr.f32.mxu0 %v35223_v15  ;;  %v34023_v46 = vsub.f32 %v26075_v1, %v34009_v20  ;;  %v34040_v1 = vand.u32 4294901760, %v26072_v11  ;;  %v26069_v35 = vsel %vm23803_vm14, %v29068_v53, 0 }
 0x65e   : > { %v34012_v17 = vpop.f32.mrf.mxu1  ;;  %v34015_v26 = vpop.f32.mrf.mxu0  ;;  %v34056_v7 = vsub.f32 %v26066_v34, %v34025_v54 }
 0x65f   : > { %v21921_v3 = vadd.f32 %v21920_v49, %v21836_v36 }
 0x660   : > { %25695 = vmatmul.mubr.f32.vlgmr.msra.gmra.mxu1 %v33873_v50  ;;  %v21996_v28 = vpop.f32.mrf.mxu1  ;;  %v22083_v6 = vpop.f32.mrf.mxu0  ;;  %25783 = vmatmul.mubr.f32.vlgmr.msra.gmra.mxu0 %v33904_v19 }
 0x661   : > { %25828 = vmatpush1.msra.mxu1 %v33881_v60  ;;  %v21997_v4 = vadd.f32 %v21996_v28, %v21913_v18  ;;  %25919 = vmatpush1.msra.mxu0 %v25645_v25  ;;  %v34069_v28 = vand.u32 4294901760, %v26069_v35 }
 0x662   : > { %25830 = vmatprep.subr.mxu1 %v33887_v48  ;;  %v34033_v12 = vpop.f32.mrf.mxu1  ;;  %v34035_v22 = vpop.f32.mrf.mxu0  ;;  %25923 = vmatprep.subr.mxu0 %v25651_v32  ;;  %v35131_v32 = vand.u32 4294901760, %v34023_v46 }
 0x663   : > { %35754 = vst [vmem:[#allocation100_spill] sm:$0xff] %v34035_v22  ;;  %25832 = vmatpush1.msra.mxu1 %v33898_v5  ;;  %v22084_v18 = vadd.f32 %v22083_v6, %v21997_v4  ;;  %25927 = vmatpush1.msra.mxu0 %v25657_v55 }
 0x664   : > { %25700 = vmatprep.mubr.f32.mxu1 %v35223_v15  ;;  %v22005_v25 = vpop.f32.mrf.mxu1  ;;  %v22090_v57 = vpop.f32.mrf.mxu0  ;;  %25788 = vmatprep.mubr.f32.mxu0 %v35223_v15  ;;  %v26199_v53 = vsub.f32 %v34023_v46, %v35131_v32  ;;  %v34094_v32 = vsub.f32 %v26069_v35, %v34069_v28 }
 0x665   : > { %26004 = vmatprep.subr.mxu1 %v33850_v24  ;;  %v22006_v55 = vadd.f32 %v22005_v25, %v21921_v3  ;;  %26106 = vmatprep.subr.mxu0 %v34009_v20  ;;  %v34067_v24 = vsub.f32 %v26072_v11, %v34040_v1  ;;  %v34074_v3 = vsub.f32 %v32634_v23, %v34046_v43  ;;  %v35132_v25 = vand.u32 4294901760, %v34056_v7 }
 0x666   : > { %25702 = vmatmul.mubr.f32.gmra.mxu1 %v33913_v9  ;;  %v34060_v49 = vpop.f32.mrf.mxu1  ;;  %v34062_v36 = vpop.f32.mrf.mxu0  ;;  %25791 = vmatmul.mubr.f32.gmra.mxu0 %v33938_v8  ;;  %v34082_v11 = vsub.f32 %v32624_v61, %v34052_v0  ;;  %v35761_v37 = vand.u32 4294901760, %v34094_v32 }
 0x667   : > { %35755 = vst [vmem:[#allocation102_spill] sm:$0xff] %v34060_v49  ;;  %35756 = vst [vmem:[#allocation87_spill] sm:$0xff] %v34062_v36  ;;  %25865 = vmatprep.mubr.f32.mxu1 %v35223_v15  ;;  %v22091_v34 = vadd.f32 %v22090_v57, %v22006_v55  ;;  %25960 = vmatprep.mubr.f32.mxu0 %v35223_v15  ;;  %v35137_v55 = vand.u32 4294901760, %v34067_v24  ;;  %v35138_v19 = vand.u32 4294901760, %v34074_v3 }
 0x668   : > { %v22164_v6 = vpop.f32.mrf.mxu1  ;;  %v22262_v4 = vpop.f32.mrf.mxu0  ;;  %v26149_v35 = vsub.f32 %v34056_v7, %v35132_v25  ;;  %v26160_v51 = vsub.f32 %v34094_v32, %v35761_v37 }
 0x669   : > { %v22165_v41 = vadd.f32 %v22164_v6, %v22084_v18 }
 0x66a   : > { %25869 = vmatmul.mubr.f32.vlgmr.msra.gmra.mxu1 %v25589_v33  ;;  %v34086_v57 = vpop.f32.mrf.mxu1  ;;  %v34088_v23 = vpop.f32.mrf.mxu0  ;;  %25962 = vmatmul.mubr.f32.vlgmr.msra.gmra.mxu0 %v33873_v50  ;;  %v26161_v37 = vand.u32 4294901760, %v26160_v51  ;;  %v35763_v51 = vand.u32 4294901760, %v34023_v46 }
 0x66b   : > { %35757 = vst [vmem:[#allocation55_spill] sm:$0xff] %v34086_v57  ;;  %26006 = vmatpush1.msra.mxu1 %v33881_v60  ;;  %v34097_v61 = vadd.f32 %v22165_v41, %v33976_v63  ;;  %26108 = vmatpush1.msra.mxu0 %v34040_v1  ;;  %v26200_v60 = vand.u32 4294901760, %v26199_v53 }
 0x66c   : > { %26008 = vmatprep.subr.mxu1 %v33887_v48  ;;  %v22171_v33 = vpop.f32.mrf.mxu1  ;;  %v22273_v18 = vpop.f32.mrf.mxu0  ;;  %26110 = vmatprep.subr.mxu0 %v34046_v43 }
 0x66d   : > { %26010 = vmatpush1.msra.mxu1 %v33898_v5  ;;  %v22172_v63 = vadd.f32 %v22171_v33, %v22091_v34  ;;  %26112 = vmatpush1.msra.mxu0 %v34052_v0  ;;  %v26205_v5 = vsub.f32 %v34067_v24, %v35137_v55  ;;  %v35759_v34 = vand.u32 4294901760, %v33938_v8  ;;  %v26211_v33 = vsub.f32 %v34074_v3, %v35138_v19 }
 0x66e   : > { %25874 = vmatprep.mubr.f32.mxu1 %v35223_v15  ;;  %v34110_v48 = vpop.f32.mrf.mxu1  ;;  %v34112_v6 = vpop.f32.mrf.mxu0  ;;  %25967 = vmatprep.mubr.f32.mxu0 %v35223_v15  ;;  %v26150_v55 = vand.u32 4294901760, %v26149_v35 }
 0x66f   : > { %35758 = vst [vmem:[#allocation108_spill] sm:$0xff] %v34110_v48  ;;  %26201 = vmatprep.subr.mxu1 %v26200_v60  ;;  %v34120_v25 = vadd.f32 %v22172_v63, %v33988_v2  ;;  %26297 = vmatprep.subr.mxu0 %v34023_v46  ;;  %v35760_v2 = vand.u32 4294901760, %v34082_v11  ;;  %v26206_v19 = vand.u32 4294901760, %v26205_v5  ;;  %v26212_v35 = vand.u32 4294901760, %v26211_v33 }
 0x670   : > { %25878 = vmatmul.mubr.f32.gmra.mxu1 %v35759_v34  ;;  %v22355_v41 = vpop.f32.mrf.mxu1  ;;  %v22439_v60 = vpop.f32.mrf.mxu0  ;;  %25969 = vmatmul.mubr.f32.gmra.mxu0 %v33913_v9 }
 0x671   : > { %26043 = vmatprep.mubr.f32.mxu1 %v35223_v15  ;;  %v26217_v63 = vsub.f32 %v34082_v11, %v35760_v2  ;;  %v22356_v53 = vadd.f32 %v22355_v41, %v22262_v4  ;;  %26145 = vmatprep.mubr.f32.mxu0 %v35223_v15  ;;  %v26632_v4 = vsel %vm1298_vm11, %v26628_v40, %v26624_v13 }
 0x672   : > { %v34134_v8 = vpop.f32.mrf.mxu1  ;;  %v34136_v34 = vpop.f32.mrf.mxu0 }
 0x673   : > { %v22440_v48 = vadd.f32 %v22439_v60, %v22356_v53  ;;  %v26218_v41 = vand.u32 4294901760, %v26217_v63  ;;  %v26646_v53 = vsel %vm23810_vm15, %v26632_v4, 0  ;;  %v26630_v60 = vsel %vm1298_vm11, %v26624_v13, %v26628_v40  ;;  %v29070_v40 = vld [vmem:[%s34867_s5 + $0x78] sm:$0xf] }
 0x674   : > { %26045 = vmatmul.mubr.f32.vlgmr.msra.gmra.mxu1 %v33873_v50  ;;  %26151 = vmatmul.mubr.f32.vlgmr.msra.gmra.mxu0 %v26150_v55  ;;  %v34167_v63 = vand.u32 4294901760, %v26646_v53 }
 0x675   : > { %v22362_v27 = vpop.f32.mrf.mxu1  ;;  %v22447_v29 = vpop.f32.mrf.mxu0  ;;  %26207 = vmatpush1.msra.mxu1 %v26206_v19  ;;  %26300 = vmatpush1.msra.mxu0 %v34067_v24 }
 0x676   : > { %v22363_v2 = vadd.f32 %v22362_v27, %v22273_v18  ;;  %26213 = vmatprep.subr.mxu1 %v26212_v35  ;;  %26303 = vmatprep.subr.mxu0 %v34074_v3  ;;  %v29069_v18 = vld [vmem:[%s34867_s5 + $0x70] sm:$0xff]  ;;  %v26622_v35 = vpop.permute.xlu0 %26621 }
 0x677   : > { %v34145_v5 = vpop.f32.mrf.mxu1  ;;  %v34147_v57 = vpop.f32.mrf.mxu0  ;;  %26219 = vmatpush1.msra.mxu1 %v26218_v41  ;;  %26306 = vmatpush1.msra.mxu0 %v34082_v11  ;;  %v26637_v46 = vsel %vm23803_vm14, %v29069_v18, 0 }
 0x678   : > { %35762 = vst [vmem:[#allocation111_spill] sm:$0xff] %v34147_v57  ;;  %v22448_v50 = vadd.f32 %v22447_v29, %v22363_v2  ;;  %26050 = vmatprep.mubr.f32.mxu1 %v35223_v15  ;;  %26156 = vmatprep.mubr.f32.mxu0 %v35223_v15  ;;  %v35778_v57 = vand.u32 4294901760, %v34094_v32 }
 0x679   : > { %v22523_v55 = vpop.f32.mrf.mxu1  ;;  %v22610_v27 = vpop.f32.mrf.mxu0  ;;  %26385 = vmatprep.subr.mxu1 %v34009_v20  ;;  %26474 = vmatprep.subr.mxu0 %v35763_v51 }
 0x67a   : > { %v22524_v19 = vadd.f32 %v22523_v55, %v22440_v48  ;;  %26052 = vmatmul.mubr.f32.gmra.mxu1 %v33913_v9  ;;  %v26626_v48 = vpop.permute.xlu1 %26625  ;;  %26162 = vmatmul.mubr.f32.gmra.mxu0 %v26161_v37  ;;  %v26643_v55 = vsel %vm23810_vm15, %v26630_v60, 0  ;;  %v35768_v60 = vand.u32 4294901760, %v34067_v24 }
 0x67b   : > { %v34161_v29 = vpop.f32.mrf.mxu1  ;;  %v34163_v33 = vpop.f32.mrf.mxu0  ;;  %26252 = vmatprep.mubr.f32.mxu1 %v35223_v15  ;;  %26339 = vmatprep.mubr.f32.mxu0 %v35223_v15  ;;  %v26629_v51 = vsel %vm1298_vm11, %v26622_v35, %v26626_v48 }
 0x67c   : > { %35764 = vst [vmem:[#allocation92_spill] sm:$0xff] %v34161_v29  ;;  %35765 = vst [vmem:[#allocation94_spill] sm:$0xff] %v34163_v33  ;;  %v22611_v4 = vadd.f32 %v22610_v27, %v22524_v19  ;;  %v34182_v27 = vsub.f32 %v26646_v53, %v34167_v63  ;;  %v26631_v19 = vsel %vm1298_vm11, %v26626_v48, %v26622_v35  ;;  %v26640_v33 = vsel %vm23803_vm14, %v29070_v40, 0 }
 0x67d   : > { %v22532_v9 = vpop.f32.mrf.mxu1  ;;  %v22617_v41 = vpop.f32.mrf.mxu0  ;;  %v35770_v35 = vand.u32 4294901760, %v34082_v11  ;;  %v34223_v40 = vand.u32 4294901760, %v26640_v33 }
 0x67e   : > { %v22533_v2 = vadd.f32 %v22532_v9, %v22448_v50  ;;  %26254 = vmatmul.mubr.f32.vlgmr.msra.gmra.mxu1 %v34025_v54  ;;  %26342 = vmatmul.mubr.f32.vlgmr.msra.gmra.mxu0 %v34056_v7  ;;  %v34188_v50 = vand.u32 4294901760, %v26637_v46 }
 0x67f   : > { %v34177_v13 = vpop.f32.mrf.mxu1  ;;  %v34179_v37 = vpop.f32.mrf.mxu0  ;;  %26387 = vmatpush1.msra.mxu1 %v34040_v1  ;;  %26478 = vmatpush1.msra.mxu0 %v35768_v60  ;;  %v34210_v60 = vand.u32 4294901760, %v26629_v51 }
 0x680   : > { %35766 = vst [vmem:[#allocation103_spill] sm:$0xff] %v34177_v13  ;;  %35767 = vst [vmem:[#allocation105_spill] sm:$0xff] %v34179_v37  ;;  %v22618_v18 = vadd.f32 %v22617_v41, %v22533_v2  ;;  %26389 = vmatprep.subr.mxu1 %v34046_v43  ;;  %v34195_v37 = vand.u32 4294901760, %v26643_v55  ;;  %v35769_v13 = vand.u32 4294901760, %v34074_v3  ;;  %v34201_v2 = vand.u32 4294901760, %v26631_v19  ;;  %26259 = vmatprep.mubr.f32.mxu1 %v35223_v15 }
 0x681   : > { %v22691_v53 = vpop.f32.mrf.mxu1  ;;  %v22789_v9 = vpop.f32.mrf.mxu0  ;;  %26391 = vmatpush1.msra.mxu1 %v34052_v0  ;;  %26347 = vmatprep.mubr.f32.mxu0 %v35223_v15  ;;  %v34239_v3 = vsub.f32 %v26629_v51, %v34210_v60 }
 0x682   : > { %26482 = vmatprep.subr.mxu0 %v35769_v13  ;;  %v22692_v41 = vadd.f32 %v22691_v53, %v22611_v4  ;;  %26563 = vmatprep.subr.mxu1 %v34009_v20  ;;  %v34216_v4 = vsub.f32 %v26637_v46, %v34188_v50  ;;  %v34231_v46 = vsub.f32 %v26631_v19, %v34201_v2  ;;  %v35775_v19 = vand.u32 4294901760, %v34056_v7 }
 0x683   : > { %26486 = vmatpush1.msra.mxu0 %v35770_v35  ;;  %v34206_v24 = vpop.f32.mrf.mxu1  ;;  %v34208_v48 = vpop.f32.mrf.mxu0  ;;  %26261 = vmatmul.mubr.f32.gmra.mxu1 %v34069_v28  ;;  %v34226_v35 = vsub.f32 %v26643_v55, %v34195_v37  ;;  %v35774_v55 = vand.u32 4294901760, %v34182_v27 }
 0x684   : > { %35771 = vst [vmem:[#allocation110_spill] sm:$0xff] %v34206_v24  ;;  %v34219_v11 = vadd.f32 %v22692_v41, %v34097_v61  ;;  %26677 = vmatprep.subr.mxu0 %v34167_v63  ;;  %26350 = vmatmul.mubr.f32.gmra.mxu0 %v34094_v32  ;;  %v35141_v36 = vand.u32 4294901760, %v34216_v4 }
 0x685   : > { %v22698_v13 = vpop.f32.mrf.mxu1  ;;  %v22800_v53 = vpop.f32.mrf.mxu0  ;;  %26424 = vmatprep.mubr.f32.mxu1 %v35223_v15  ;;  %26519 = vmatprep.mubr.f32.mxu0 %v35223_v15  ;;  %v26770_v24 = vsub.f32 %v34182_v27, %v35774_v55  ;;  %v35142_v59 = vand.u32 4294901760, %v34226_v35 }
 0x686   : > { %v22699_v20 = vadd.f32 %v22698_v13, %v22618_v18  ;;  %v34251_v13 = vsub.f32 %v26640_v33, %v34223_v40  ;;  %v29071_v33 = vld [vmem:[%s34867_s5 + $0x20] sm:$0xff] }
 0x687   : > { %v34234_v61 = vpop.f32.mrf.mxu1  ;;  %v34236_v41 = vpop.f32.mrf.mxu0  ;;  %26428 = vmatmul.mubr.f32.vlgmr.msra.gmra.mxu1 %v35775_v19  ;;  %v29072_v19 = vld [vmem:[%s34867_s5 + $0x28] sm:$0xf] }
 0x688   : > { %35772 = vst [vmem:[#allocation113_spill] sm:$0xff] %v34234_v61  ;;  %35773 = vst [vmem:[#allocation112_spill] sm:$0xff] %v34236_v41  ;;  %v34246_v18 = vadd.f32 %v22699_v20, %v34120_v25  ;;  %26521 = vmatmul.mubr.f32.vlgmr.msra.gmra.mxu0 %v34025_v54  ;;  %26565 = vmatpush1.msra.mxu1 %v34040_v1  ;;  %v26771_v1 = vand.u32 4294901760, %v26770_v24  ;;  %v27227_v24 = vpop.permute.xlu1 %27226  ;;  %v35779_v20 = vand.u32 4294901760, %v34231_v46  ;;  %v27223_v29 = vpop.permute.xlu0 %27222  ;;  %v27239_v49 = vsel %vm23803_vm14, %v29072_v19, 0 }
 0x689   : > { %35776 = vst [vmem:[#allocation6_spill] sm:$0xff] %v34251_v13  ;;  %v22882_v61 = vpop.f32.mrf.mxu1  ;;  %v22966_v55 = vpop.f32.mrf.mxu0  ;;  %26679 = vmatpush1.msra.mxu0 %v34195_v37  ;;  %26567 = vmatprep.subr.mxu1 %v34046_v43  ;;  %v34307_v41 = vand.u32 4294901760, %v27239_v49 }
 0x68a   : > { %v22883_v51 = vadd.f32 %v22882_v61, %v22789_v9  ;;  %26681 = vmatprep.subr.mxu0 %v34201_v2  ;;  %26569 = vmatpush1.msra.mxu1 %v34052_v0  ;;  %v26720_v9 = vsub.f32 %v34216_v4, %v35141_v36  ;;  %v26776_v0 = vsub.f32 %v34226_v35, %v35142_v59  ;;  %v27236_v36 = vsel %vm23803_vm14, %v29071_v33, 0 }
 0x68b   : > { %v34259_v7 = vpop.f32.mrf.mxu1  ;;  %v34270_v61 = vpop.f32.mrf.mxu0  ;;  %26683 = vmatpush1.msra.mxu0 %v34210_v60  ;;  %26433 = vmatprep.mubr.f32.mxu1 %v35223_v15  ;;  %v26782_v22 = vsub.f32 %v34231_v46, %v35779_v20  ;;  %v35781_v59 = vand.u32 4294901760, %v34239_v3  ;;  %v35783_v33 = vand.u32 4294901760, %v34251_v13  ;;  %v34303_v19 = vand.u32 4294901760, %v27236_v36 }
 0x68c   : > { %v22967_v43 = vadd.f32 %v22966_v55, %v22883_v51  ;;  %35777 = vst [vmem:[#allocation120_spill] sm:$0xff] %v34270_v61  ;;  %26526 = vmatprep.mubr.f32.mxu0 %v35223_v15  ;;  %26772 = vmatprep.subr.mxu1 %v26771_v1  ;;  %v26777_v62 = vand.u32 4294901760, %v26776_v0 }
 0x68d   : > { %v22889_v25 = vpop.f32.mrf.mxu1  ;;  %v22974_v55 = vpop.f32.mrf.mxu0  ;;  %26868 = vmatprep.subr.mxu0 %v34182_v27  ;;  %26437 = vmatmul.mubr.f32.gmra.mxu1 %v35778_v57  ;;  %v26731_v20 = vsub.f32 %v34251_v13, %v35783_v33 }
 0x68e   : > { %v22890_v51 = vadd.f32 %v22889_v25, %v22800_v53  ;;  %v26788_v53 = vsub.f32 %v34239_v3, %v35781_v59  ;;  %26528 = vmatmul.mubr.f32.gmra.mxu0 %v34069_v28  ;;  %26602 = vmatprep.mubr.f32.mxu1 %v35223_v15  ;;  %v26721_v25 = vand.u32 4294901760, %v26720_v9  ;;  %v27229_v59 = vsel %vm338_vm6, %v27223_v29, %v27227_v24 }
 0x68f   : > { %v34289_v1 = vpop.f32.mrf.mxu1  ;;  %v34297_v57 = vpop.f32.mrf.mxu0  ;;  %26716 = vmatprep.mubr.f32.mxu0 %v35223_v15  ;;  %v26783_v9 = vand.u32 4294901760, %v26782_v22 }
 0x690   : > { %35780 = vst [vmem:[#allocation123_spill] sm:$0xff] %v34289_v1  ;;  %v22975_v32 = vadd.f32 %v22974_v55, %v22890_v51  ;;  %35782 = vst [vmem:[#allocation11_spill] sm:$0xff] %v34297_v57  ;;  %v21304_v55 = vadd.f32 %v33864_v14, %v33828_v45  ;;  %v26789_v33 = vand.u32 4294901760, %v26788_v53  ;;  %v26732_v45 = vand.u32 4294901760, %v26731_v20 }
 0x691   : > { %v23050_v42 = vpop.f32.mrf.mxu1  ;;  %v23137_v1 = vpop.f32.mrf.mxu0  ;;  %26604 = vmatmul.mubr.f32.vlgmr.msra.gmra.mxu1 %v34025_v54  ;;  %v27245_v54 = vsel %vm23810_vm15, %v27229_v59, 0  ;;  %v21311_v53 = vadd.f32 %v33892_v21, %v33848_v31  ;;  %v21831_v21 = vadd.f32 %v33996_v56, %v33968_v38 }
 0x692   : > { %v23051_v61 = vadd.f32 %v23050_v42, %v22967_v43  ;;  %26722 = vmatmul.mubr.f32.vlgmr.msra.gmra.mxu0 %v26721_v25  ;;  %26778 = vmatpush1.msra.mxu1 %v26777_v62  ;;  %v27225_v57 = vpop.permute.xlu1 %27224  ;;  %v27231_v42 = vsel %vm338_vm6, %v27227_v24, %v27223_v29  ;;  %v27221_v22 = vpop.permute.xlu0 %27220  ;;  %v34322_v62 = vsub.f32 %v27236_v36, %v34303_v19 }
 0x693   : > { %v34310_v51 = vpop.f32.mrf.mxu1  ;;  %v34314_v13 = vpop.f32.mrf.mxu0  ;;  %26871 = vmatpush1.msra.mxu0 %v34226_v35  ;;  %26784 = vmatprep.subr.mxu1 %v26783_v9  ;;  %v21388_v24 = vadd.f32 %v33866_v58, %v21304_v55  ;;  %v27242_v36 = vsel %vm23810_vm15, %v27231_v42, 0  ;;  %v27228_v25 = vsel %vm338_vm6, %v27221_v22, %v27225_v57  ;;  %v21396_v42 = vadd.f32 %v33894_v39, %v21311_v53 }
 0x694   : > { %v23138_v0 = vadd.f32 %v23137_v1, %v23051_v61  ;;  %26874 = vmatprep.subr.mxu0 %v34231_v46  ;;  %26790 = vmatpush1.msra.mxu1 %v26789_v33  ;;  %v34325_v61 = vsub.f32 %v27239_v49, %v34307_v41  ;;  %v34337_v49 = vand.u32 4294901760, %v27245_v54  ;;  %v35146_v59 = vand.u32 4294901760, %v34322_v62 }
 0x695   : > { %v23059_v43 = vpop.f32.mrf.mxu1  ;;  %v23144_v1 = vpop.f32.mrf.mxu0  ;;  %26877 = vmatpush1.msra.mxu0 %v34239_v3  ;;  %26609 = vmatprep.mubr.f32.mxu1 %v35223_v15  ;;  %v34353_v38 = vand.u32 4294901760, %v27242_v36  ;;  %v34355_v56 = vand.u32 4294901760, %v27228_v25  ;;  %v22358_v53 = vadd.f32 %v34134_v8, %v34088_v23  ;;  %v35785_v23 = vand.u32 4294901760, %v34226_v35 }
 0x696   : > { %v23060_v14 = vadd.f32 %v23059_v43, %v22975_v32  ;;  %26727 = vmatprep.mubr.f32.mxu0 %v35223_v15  ;;  %26956 = vmatprep.subr.mxu1 %v34167_v63  ;;  %v35784_v32 = vand.u32 4294901760, %v34182_v27  ;;  %v35145_v55 = vand.u32 4294901760, %v34325_v61  ;;  %v21472_v27 = vadd.f32 %v33920_v10, %v21388_v24 }
 0x697   : > { %v34331_v29 = vpop.f32.mrf.mxu1  ;;  %v34341_v31 = vpop.f32.mrf.mxu0  ;;  %26611 = vmatmul.mubr.f32.gmra.mxu1 %v34069_v28  ;;  %26733 = vmatmul.mubr.f32.gmra.mxu0 %v26732_v45  ;;  %v34361_v43 = vsub.f32 %v27245_v54, %v34337_v49  ;;  %v34390_v8 = vsub.f32 %v27242_v36, %v34353_v38 }
 0x698   : > { %27045 = vmatprep.subr.mxu0 %v35784_v32  ;;  %v23145_v20 = vadd.f32 %v23144_v1, %v23060_v14  ;;  %26823 = vmatprep.mubr.f32.mxu1 %v35223_v15  ;;  %v21838_v14 = vadd.f32 %v34012_v17, %v33985_v44  ;;  %v21915_v1 = vadd.f32 %v33998_v30, %v21831_v21  ;;  %v35786_v32 = vand.u32 4294901760, %v34231_v46 }
 0x699   : > { %v23218_v58 = vpop.f32.mrf.mxu1  ;;  %v23316_v33 = vpop.f32.mrf.mxu0  ;;  %26910 = vmatprep.mubr.f32.mxu0 %v35223_v15  ;;  %v34384_v44 = vsub.f32 %v34325_v61, %v35145_v55  ;;  %v21481_v21 = vadd.f32 %v33943_v52, %v21396_v42  ;;  %v21559_v35 = vadd.f32 %v33922_v16, %v21472_v27  ;;  %v35147_v36 = vand.u32 4294901760, %v34361_v43  ;;  %v35790_v27 = vld [vmem:[#allocation120_spill] sm:$0xff] }
 0x69a   : > { %v23219_v9 = vadd.f32 %v23218_v58, %v23138_v0  ;;  %v27230_v0 = vsel %vm338_vm6, %v27225_v57, %v27221_v22  ;;  %v22885_v57 = vadd.f32 %v34259_v7, %v34208_v48  ;;  %v34397_v22 = vsub.f32 %v27228_v25, %v34355_v56 }
 0x69b   : > { %v34357_v28 = vpop.f32.mrf.mxu1  ;;  %v23318_v39 = vpop.f32.mrf.mxu0  ;;  %26825 = vmatmul.mubr.f32.vlgmr.msra.gmra.mxu1 %v34188_v50  ;;  %26913 = vmatmul.mubr.f32.vlgmr.msra.gmra.mxu0 %v34216_v4  ;;  %v34394_v54 = vand.u32 4294901760, %v27230_v0  ;;  %v21999_v25 = vadd.f32 %v34033_v12, %v21915_v1  ;;  %v21923_v58 = vadd.f32 %v34015_v26, %v21838_v14  ;;  %v35787_v52 = vand.u32 4294901760, %v34239_v3  ;;  %v35791_v14 = vld [vmem:[#allocation6_spill] sm:$0xff] }
 0x69c   : > { %v34366_v45 = vadd.f32 %v23219_v9, %v34219_v11  ;;  %26958 = vmatpush1.msra.mxu1 %v34195_v37  ;;  %v34379_v11 = vsub.f32 %v34322_v62, %v35146_v59  ;;  %27049 = vmatpush1.msra.mxu0 %v35785_v23  ;;  %v22365_v46 = vadd.f32 %v34145_v5, %v34112_v6  ;;  %v35789_v9 = vld [vmem:[#allocation123_spill] sm:$0xff] }
 0x69d   : > { %v23225_v10 = vpop.f32.mrf.mxu1  ;;  %v23327_v17 = vpop.f32.mrf.mxu0  ;;  %26960 = vmatprep.subr.mxu1 %v34201_v2  ;;  %27053 = vmatprep.subr.mxu0 %v35786_v32  ;;  %v34426_v3 = vsub.f32 %v27230_v0, %v34394_v54  ;;  %v22969_v6 = vadd.f32 %v35790_v27, %v22885_v57  ;;  %v35793_v0 = vld [vmem:[#allocation91_spill] sm:$0xff]  ;;  %v35796_v27 = vld [vmem:[#allocation100_spill] sm:$0xff] }
 0x69e   : > { %v23226_v30 = vadd.f32 %v23225_v10, %v23145_v20  ;;  %26962 = vmatpush1.msra.mxu1 %v34210_v60  ;;  %v22442_v20 = vadd.f32 %v34136_v34, %v22358_v53  ;;  %27057 = vmatpush1.msra.mxu0 %v35787_v52  ;;  %v27374_v34 = vand.u32 4294901760, %v34390_v8  ;;  %v21566_v32 = vadd.f32 %v35793_v0, %v21481_v21  ;;  %v35794_v52 = vld [vmem:[#allocation102_spill] sm:$0xff]  ;;  %v35797_v59 = vld [vmem:[#allocation111_spill] sm:$0xff] }
 0x69f   : > { %v34399_v24 = vpop.f32.mrf.mxu1  ;;  %v23329_v7 = vpop.f32.mrf.mxu0  ;;  %26830 = vmatprep.mubr.f32.mxu1 %v35223_v15  ;;  %27134 = vmatprep.subr.mxu1 %v34167_v63  ;;  %v22008_v57 = vadd.f32 %v35794_v52, %v21923_v58  ;;  %v22086_v55 = vadd.f32 %v35796_v27, %v21999_v25  ;;  %v22450_v5 = vadd.f32 %v35797_v59, %v22365_v46  ;;  %v27386_v21 = vand.u32 4294901760, %v34426_v3  ;;  %v35803_v0 = vld [vmem:[#allocation94_spill] sm:$0xff]  ;;  %v35805_v27 = vld [vmem:[#allocation103_spill] sm:$0xff] }
 0x6a0   : > { %v34408_v48 = vadd.f32 %v23226_v30, %v34246_v18  ;;  %26832 = vmatmul.mubr.f32.gmra.mxu1 %v34223_v40  ;;  %v35788_v18 = vld [vmem:[#allocation112_spill] sm:$0xff]  ;;  %26918 = vmatprep.mubr.f32.mxu0 %v35223_v15  ;;  %v35792_v30 = vld [vmem:[#allocation5_spill] sm:$0xff]  ;;  %v23053_v58 = vadd.f32 %v34310_v51, %v22969_v6  ;;  %v27375_v25 = vsub.f32 %v34390_v8, %v27374_v34  ;;  %v35800_v59 = vand.u32 4294901760, %v34397_v22  ;;  %v35802_v6 = vld [vmem:[#allocation87_spill] sm:$0xff] }
 0x6a1   : > { %v23409_v16 = vpop.f32.mrf.mxu1  ;;  %v22892_v12 = vadd.f32 %v35789_v9, %v35788_v18  ;;  %v23493_v26 = vpop.f32.mrf.mxu0  ;;  %26995 = vmatprep.mubr.f32.mxu1 %v35223_v15  ;;  %26921 = vmatmul.mubr.f32.gmra.mxu0 %v35791_v14  ;;  %v21640_v23 = vadd.f32 %v35792_v30, %v21559_v35  ;;  %v22093_v30 = vadd.f32 %v35802_v6, %v22008_v57 }
 0x6a2   : > { %v23410_v42 = vadd.f32 %v23409_v16, %v23316_v33  ;;  %27276 = vmatprep.subr.mxu0 %v34337_v49  ;;  %v27369_v33 = vsub.f32 %v34361_v43, %v35147_v36  ;;  %v35795_v16 = vld [vmem:[#allocation92_spill] sm:$0xff]  ;;  %27090 = vmatprep.mubr.f32.mxu0 %v35223_v15  ;;  %v35798_v36 = vand.u32 4294901760, %v34216_v4  ;;  %v27381_v4 = vsub.f32 %v34397_v22, %v35800_v59 }
 0x6a3   : > { %v23411_v63 = vpop.f32.mrf.mxu1  ;;  %v23495_v10 = vpop.f32.mrf.mxu0  ;;  %v22526_v18 = vadd.f32 %v35795_v16, %v22442_v20 }
 0x6a4   : > { %v23412_v1 = vadd.f32 %v23411_v63, %v23318_v39  ;;  %v23494_v53 = vadd.f32 %v23493_v26, %v23410_v42  ;;  %26999 = vmatmul.mubr.f32.vlgmr.msra.gmra.mxu1 %v35798_v36  ;;  %v35799_v39 = vld [vmem:[#allocation11_spill] sm:$0xff]  ;;  %v35801_v63 = vld [vmem:[#allocation56_spill] sm:$0xff] }
 0x6a5   : > { %v23416_v9 = vpop.f32.mrf.mxu1  ;;  %v22977_v42 = vadd.f32 %v35799_v39, %v22892_v12  ;;  %v23501_v35 = vpop.f32.mrf.mxu0  ;;  %27136 = vmatpush1.msra.mxu1 %v34195_v37  ;;  %27004 = vmatprep.mubr.f32.mxu1 %v35223_v15  ;;  %v27370_v37 = vand.u32 4294901760, %v27369_v33  ;;  %v21650_v51 = vadd.f32 %v21640_v23, %v35801_v63  ;;  %v22613_v52 = vadd.f32 %v35803_v0, %v22526_v18 }
 0x6a6   : > { %v23417_v26 = vadd.f32 %v23416_v9, %v23327_v17  ;;  %27138 = vmatprep.subr.mxu1 %v34201_v2  ;;  %27092 = vmatmul.mubr.f32.vlgmr.msra.gmra.mxu0 %v34188_v50  ;;  %v23496_v20 = vadd.f32 %v23495_v10, %v23412_v1  ;;  %v35804_v9 = vld [vmem:[#allocation55_spill] sm:$0xff]  ;;  %v22535_v39 = vadd.f32 %v35805_v27, %v22450_v5  ;;  %v27320_v33 = vand.u32 4294901760, %v34379_v11 }
 0x6a7   : > { %v23418_v36 = vpop.f32.mrf.mxu1  ;;  %v23503_v12 = vpop.f32.mrf.mxu0  ;;  %27140 = vmatpush1.msra.mxu1 %v34210_v60  ;;  %27278 = vmatpush1.msra.mxu0 %v34353_v38  ;;  %v22167_v2 = vadd.f32 %v35804_v9, %v22086_v55  ;;  %v27387_v60 = vsub.f32 %v34426_v3, %v27386_v21  ;;  %v27376_v55 = vand.u32 4294901760, %v27375_v25  ;;  %v23062_v5 = vadd.f32 %v34331_v29, %v22977_v42  ;;  %v35809_v42 = vld [vmem:[#allocation98_spill] sm:$0xff]  ;;  %v35810_v25 = vld [vmem:[#allocation105_spill] sm:$0xff] }
 0x6a8   : > { %v23419_v17 = vadd.f32 %v23418_v36, %v23329_v7  ;;  %v23502_v46 = vadd.f32 %v23501_v35, %v23417_v26  ;;  %v35806_v7 = vand.u32 4294901760, %v35791_v14  ;;  %27097 = vmatprep.mubr.f32.mxu0 %v35223_v15  ;;  %27280 = vmatprep.subr.mxu0 %v34355_v56  ;;  %v23140_v14 = vadd.f32 %v34314_v13, %v23053_v58  ;;  %v35807_v35 = vld [vmem:[#allocation93_spill] sm:$0xff]  ;;  %v35808_v36 = vld [vmem:[#allocation110_spill] sm:$0xff] }
 0x6a9   : > { %v23577_v16 = vpop.f32.mrf.mxu1  ;;  %v23664_v10 = vpop.f32.mrf.mxu0  ;;  %27371 = vmatprep.subr.mxu1 %v27370_v37  ;;  %v27382_v11 = vand.u32 4294901760, %v27381_v4  ;;  %v21647_v59 = vadd.f32 %v35807_v35, %v21566_v32  ;;  %v22694_v63 = vadd.f32 %v35808_v36, %v22613_v52  ;;  %27282 = vmatpush1.msra.mxu0 %v34394_v54  ;;  %v27804_v13 = vsel %vm23810_vm15, %v35809_v42, 0  ;;  %v35811_v32 = vld [vmem:[#allocation108_spill] sm:$0xff] }
 0x6aa   : > { %27008 = vmatmul.mubr.f32.gmra.mxu1 %v35806_v7  ;;  %v23578_v1 = vadd.f32 %v23577_v16, %v23494_v53  ;;  %27099 = vmatmul.mubr.f32.gmra.mxu0 %v34223_v40  ;;  %v23504_v57 = vadd.f32 %v23503_v12, %v23419_v17  ;;  %v22177_v58 = vadd.f32 %v22167_v2, %v21650_v51  ;;  %v27388_v0 = vand.u32 4294901760, %v27387_v60  ;;  %v35812_v2 = vld [vmem:[#allocation90_spill] sm:$0xff] }
 0x6ab   : > { %27173 = vmatprep.mubr.f32.mxu1 %v35223_v15  ;;  %v23579_v23 = vpop.f32.mrf.mxu1  ;;  %v23666_v26 = vpop.f32.mrf.mxu0  ;;  %27315 = vmatprep.mubr.f32.mxu0 %v35223_v15  ;;  %v22620_v37 = vadd.f32 %v35810_v25, %v22535_v39  ;;  %v23221_v12 = vadd.f32 %v34357_v28, %v23140_v14  ;;  %v23147_v6 = vadd.f32 %v34341_v31, %v23062_v5  ;;  %v27331_v51 = vand.u32 4294901760, %v34384_v44  ;;  %v35813_v44 = vld [vmem:[#allocation113_spill] sm:$0xff] }
 0x6ac   : > { %v23580_v53 = vadd.f32 %v23579_v23, %v23496_v20  ;;  %v23665_v18 = vadd.f32 %v23664_v10, %v23578_v1  ;;  %27467 = vmatprep.subr.mxu0 %v34361_v43  ;;  %v22174_v20 = vadd.f32 %v35811_v32, %v22093_v30  ;;  %v34493_v9 = vand.u32 4294901760, %v27804_v13 }
 0x6ad   : > { %v23586_v29 = vpop.f32.mrf.mxu1  ;;  %v23671_v17 = vpop.f32.mrf.mxu0  ;;  %v21652_v27 = vadd.f32 %v21647_v59, %v35812_v2  ;;  %v22704_v28 = vadd.f32 %v22694_v63, %v22177_v58  ;;  %v22701_v7 = vadd.f32 %v35813_v44, %v22620_v37  ;;  %v23228_v60 = vadd.f32 %v34399_v24, %v23147_v6  ;;  %v35816_v58 = vld [vmem:[#allocation83_spill] sm:$0xff] }
 0x6ae   : > { %27175 = vmatmul.mubr.f32.vlgmr.msra.gmra.mxu1 %v34188_v50  ;;  %v23587_v4 = vadd.f32 %v23586_v29, %v23502_v46  ;;  %27321 = vmatmul.mubr.f32.vlgmr.msra.gmra.mxu0 %v27320_v33  ;;  %v29073_v50 = vld [vmem:[%s34867_s5 + $0x50] sm:$0xff]  ;;  %v23667_v16 = vadd.f32 %v23666_v26, %v23580_v53  ;;  %v35814_v14 = vand.u32 4294901760, %v34361_v43  ;;  %v34510_v53 = vsub.f32 %v27804_v13, %v34493_v9  ;;  %v28357_v44 = vpop.permute.xlu1 %28356 }
 0x6af   : > { %27180 = vmatprep.mubr.f32.mxu1 %v35223_v15  ;;  %27377 = vmatpush1.msra.mxu1 %v27376_v55  ;;  %v23588_v52 = vpop.f32.mrf.mxu1  ;;  %v23673_v39 = vpop.f32.mrf.mxu0  ;;  %v22179_v1 = vadd.f32 %v22174_v20, %v21652_v27  ;;  %v23231_v10 = vadd.f32 %v23221_v12, %v22704_v28  ;;  %v27795_v55 = vsel %vm23803_vm14, %v29073_v50, 0  ;;  %v34535_v25 = vand.u32 4294901760, %v35816_v58 }
 0x6b0   : > { %27383 = vmatprep.subr.mxu1 %v27382_v11  ;;  %v23589_v46 = vadd.f32 %v23588_v52, %v23504_v57  ;;  %v23672_v30 = vadd.f32 %v23671_v17, %v23587_v4  ;;  %27470 = vmatpush1.msra.mxu0 %v34390_v8  ;;  %v35815_v57 = vld [vmem:[#allocation101_spill] sm:$0xff]  ;;  %v34518_v43 = vand.u32 4294901760, %v27795_v55  ;;  %v35818_v32 = vand.u32 4294901760, %v34397_v22 }
 0x6b1   : > { %27326 = vmatprep.mubr.f32.mxu0 %v35223_v15  ;;  %v23745_v31 = vpop.f32.mrf.mxu1  ;;  %27473 = vmatprep.subr.mxu0 %v34397_v22  ;;  %v22706_v26 = vadd.f32 %v22701_v7, %v22179_v1  ;;  %v35817_v4 = vld [vmem:[#allocation85_spill] sm:$0xff]  ;;  %v35819_v52 = vand.u32 4294901760, %v34322_v62  ;;  %v35820_v27 = vand.u32 4294901760, %v34325_v61 }
 0x6b2   : > { %27182 = vmatmul.mubr.f32.gmra.mxu1 %v34223_v40  ;;  %v23746_v33 = vadd.f32 %v23745_v31, %v23665_v18  ;;  %27476 = vmatpush1.msra.mxu0 %v34426_v3  ;;  %v23674_v11 = vadd.f32 %v23673_v39, %v23589_v46  ;;  %v27801_v18 = vsel %vm23810_vm15, %v35815_v57, 0  ;;  %v34542_v17 = vand.u32 4294901760, %v35817_v4  ;;  %v28353_v39 = vpop.permute.xlu0 %28352 }
 0x6b3   : > { %27389 = vmatpush1.msra.mxu1 %v27388_v0  ;;  %v23747_v5 = vpop.f32.mrf.mxu1  ;;  %27332 = vmatmul.mubr.f32.gmra.mxu0 %v27331_v51  ;;  %v34527_v63 = vand.u32 4294901760, %v27801_v18  ;;  %v23233_v29 = vadd.f32 %v23228_v60, %v22706_v26  ;;  %v34549_v20 = vsub.f32 %v27795_v55, %v34518_v43  ;;  %v28361_v60 = vsel %vm1298_vm11, %v28357_v44, %v28353_v39 }
 0x6b4   : > { %27644 = vmatprep.subr.mxu0 %v35814_v14  ;;  %v34507_v23 = vadd.f32 %v23746_v33, %v34366_v45  ;;  %v23748_v40 = vadd.f32 %v23747_v5, %v23667_v16  ;;  %27422 = vmatprep.mubr.f32.mxu1 %v35223_v15  ;;  %v29074_v45 = vld [vmem:[%s34867_s5 + $0x58] sm:$0xf]  ;;  %v28375_v57 = vsel %vm23810_vm15, %v28361_v60, 0 }
 0x6b5   : > { %27509 = vmatprep.mubr.f32.mxu0 %v35223_v15  ;;  %v23752_v24 = vpop.f32.mrf.mxu1  ;;  %27555 = vmatprep.subr.mxu1 %v34337_v49  ;;  %v27798_v37 = vsel %vm23803_vm14, %v29074_v45, 0  ;;  %v34557_v8 = vsub.f32 %v27801_v18, %v34527_v63  ;;  %v27877_v0 = vand.u32 4294901760, %v34549_v20 }
 0x6b6   : > { %27424 = vmatmul.mubr.f32.vlgmr.msra.gmra.mxu1 %v34303_v19  ;;  %v34523_v35 = vadd.f32 %v23748_v40, %v23231_v10  ;;  %v23753_v59 = vadd.f32 %v23752_v24, %v23672_v30  ;;  %v34561_v22 = vand.u32 4294901760, %v27798_v37 }
 0x6b7   : > { %27557 = vmatpush1.msra.mxu1 %v34353_v38  ;;  %27429 = vmatprep.mubr.f32.mxu1 %v35223_v15  ;;  %v23754_v36 = vpop.f32.mrf.mxu1  ;;  %v27878_v30 = vsub.f32 %v34549_v20, %v27877_v0 }
 0x6b8   : > { %27512 = vmatmul.mubr.f32.vlgmr.msra.gmra.mxu0 %v34322_v62  ;;  %27559 = vmatprep.subr.mxu1 %v34355_v56  ;;  %v34532_v42 = vadd.f32 %v23753_v59, %v34408_v48  ;;  %v23755_v13 = vadd.f32 %v23754_v36, %v23674_v11  ;;  %v27927_v48 = vand.u32 4294901760, %v34510_v53  ;;  %v34584_v50 = vsub.f32 %v27798_v37, %v34561_v22  ;;  %v29075_v59 = vld [vmem:[%s34867_s5 + $0x80] sm:$0xff] }
 0x6b9   : > { %27648 = vmatpush1.msra.mxu0 %v27374_v34  ;;  %27517 = vmatprep.mubr.f32.mxu0 %v35223_v15  ;;  %v34565_v34 = vsub.f32 %v35816_v58, %v34535_v25  ;;  %v27879_v7 = vand.u32 4294901760, %v27878_v30  ;;  %v34630_v58 = vand.u32 4294901760, %v28375_v57 }
 0x6ba   : > { %27652 = vmatprep.subr.mxu0 %v35818_v32  ;;  %27561 = vmatpush1.msra.mxu1 %v34394_v54  ;;  %v34551_v12 = vadd.f32 %v23755_v13, %v23233_v29  ;;  %v27928_v6 = vsub.f32 %v34510_v53, %v27927_v48  ;;  %v28355_v32 = vpop.permute.xlu1 %28354 }
 0x6bb   : > { %27656 = vmatpush1.msra.mxu0 %v27386_v21  ;;  %27431 = vmatmul.mubr.f32.gmra.mxu1 %v34307_v41  ;;  %v34571_v21 = vsub.f32 %v35817_v4, %v34542_v17  ;;  %v27939_v46 = vand.u32 4294901760, %v34565_v34  ;;  %v28359_v4 = vsel %vm1298_vm11, %v28353_v39, %v28357_v44  ;;  %v34642_v30 = vsub.f32 %v28375_v57, %v34630_v58 }
 0x6bc   : > { %27835 = vmatprep.subr.mxu0 %v34493_v9  ;;  %27520 = vmatmul.mubr.f32.gmra.mxu0 %v34325_v61  ;;  %v27929_v62 = vand.u32 4294901760, %v27928_v6 }
 0x6bd   : > { %27733 = vmatprep.subr.mxu1 %v34337_v49  ;;  %27594 = vmatprep.mubr.f32.mxu1 %v35223_v15  ;;  %v23892_v3 = vpop.f32.mrf.mxu0  ;;  %v27933_v49 = vand.u32 4294901760, %v34557_v8  ;;  %v27940_v28 = vsub.f32 %v34565_v34, %v27939_v46 }
 0x6be   : > { %27689 = vmatprep.mubr.f32.mxu0 %v35223_v15 }
 0x6bf   : > { %27598 = vmatmul.mubr.f32.vlgmr.msra.gmra.mxu1 %v35819_v52  ;;  %v23894_v51 = vpop.f32.mrf.mxu0  ;;  %v27941_v55 = vand.u32 4294901760, %v27940_v28 }
 0x6c0   : > { %27691 = vmatmul.mubr.f32.vlgmr.msra.gmra.mxu0 %v34303_v19  ;;  %27735 = vmatpush1.msra.mxu1 %v34353_v38  ;;  %v27945_v38 = vand.u32 4294901760, %v34571_v21 }
 0x6c1   : > { %27837 = vmatpush1.msra.mxu0 %v34527_v63  ;;  %27737 = vmatprep.subr.mxu1 %v34355_v56  ;;  %v23903_v16 = vpop.f32.mrf.mxu0  ;;  %v27934_v56 = vsub.f32 %v34557_v8, %v27933_v49 }
 0x6c2   : > { %27839 = vmatprep.subr.mxu0 %v34535_v25  ;;  %27739 = vmatpush1.msra.mxu1 %v34394_v54  ;;  %v27888_v54 = vand.u32 4294901760, %v34584_v50  ;;  %v27946_v33 = vsub.f32 %v34571_v21, %v27945_v38 }
 0x6c3   : > { %27841 = vmatpush1.msra.mxu0 %v34542_v17  ;;  %27603 = vmatprep.mubr.f32.mxu1 %v35223_v15  ;;  %v23905_v2 = vpop.f32.mrf.mxu0  ;;  %v27935_v61 = vand.u32 4294901760, %v27934_v56 }
 0x6c4   : > { %27696 = vmatprep.mubr.f32.mxu0 %v35223_v15  ;;  %27930 = vmatprep.subr.mxu1 %v27929_v62  ;;  %v27889_v1 = vsub.f32 %v34584_v50, %v27888_v54  ;;  %v27947_v14 = vand.u32 4294901760, %v27946_v33 }
 0x6c5   : > { %28026 = vmatprep.subr.mxu0 %v34510_v53  ;;  %27607 = vmatmul.mubr.f32.gmra.mxu1 %v35820_v27  ;;  %v24083_v31 = vpop.f32.mrf.mxu0  ;;  %v23995_v5 = vpop.f32.mrf.mxu1 }
 0x6c6   : > { %27698 = vmatmul.mubr.f32.gmra.mxu0 %v34307_v41  ;;  %27772 = vmatprep.mubr.f32.mxu1 %v35223_v15  ;;  %v23996_v40 = vadd.f32 %v23995_v5, %v23892_v3  ;;  %v27890_v18 = vand.u32 4294901760, %v27889_v1 }
 0x6c7   : > { %27874 = vmatprep.mubr.f32.mxu0 %v35223_v15  ;;  %v24085_v10 = vpop.f32.mrf.mxu0  ;;  %v23997_v11 = vpop.f32.mrf.mxu1 }
 0x6c8   : > { %v23998_v24 = vadd.f32 %v23997_v11, %v23894_v51  ;;  %v24084_v26 = vadd.f32 %v24083_v31, %v23996_v40  ;;  %v28351_v51 = vpop.permute.xlu0 %28350  ;;  %v29076_v31 = vld [vmem:[%s34867_s5 + $0x88] sm:$0xf] }
 0x6c9   : > { %27774 = vmatmul.mubr.f32.vlgmr.msra.gmra.mxu1 %v34303_v19  ;;  %v28369_v47 = vsel %vm23803_vm14, %v29076_v31, 0 }
 0x6ca   : > { %27880 = vmatmul.mubr.f32.vlgmr.msra.gmra.mxu0 %v27879_v7  ;;  %27936 = vmatpush1.msra.mxu1 %v27935_v61  ;;  %v24086_v29 = vadd.f32 %v24085_v10, %v23998_v24  ;;  %v28358_v7 = vsel %vm1298_vm11, %v28351_v51, %v28355_v32 }
 0x6cb   : > { %28029 = vmatpush1.msra.mxu0 %v34557_v8  ;;  %27942 = vmatprep.subr.mxu1 %v27941_v55  ;;  %v24091_v45 = vpop.f32.mrf.mxu0  ;;  %v24002_v19 = vpop.f32.mrf.mxu1  ;;  %v34670_v60 = vand.u32 4294901760, %v28358_v7 }
 0x6cc   : > { %28032 = vmatprep.subr.mxu0 %v34565_v34  ;;  %27948 = vmatpush1.msra.mxu1 %v27947_v14  ;;  %v24003_v36 = vadd.f32 %v24002_v19, %v23903_v16  ;;  %v28366_v16 = vsel %vm23803_vm14, %v29075_v59, 0  ;;  %v28498_v34 = vand.u32 4294901760, %v34642_v30 }
 0x6cd   : > { %28035 = vmatpush1.msra.mxu0 %v34571_v21  ;;  %27779 = vmatprep.mubr.f32.mxu1 %v35223_v15  ;;  %v24093_v13 = vpop.f32.mrf.mxu0  ;;  %v24004_v37 = vpop.f32.mrf.mxu1  ;;  %v34649_v28 = vand.u32 4294901760, %v28366_v16 }
 0x6ce   : > { %27885 = vmatprep.mubr.f32.mxu0 %v35223_v15  ;;  %28114 = vmatprep.subr.mxu1 %v34493_v9  ;;  %v24005_v3 = vadd.f32 %v24004_v37, %v23905_v2  ;;  %v24092_v6 = vadd.f32 %v24091_v45, %v24003_v36  ;;  %v28360_v2 = vsel %vm1298_vm11, %v28355_v32, %v28351_v51 }
 0x6cf   : > { %28203 = vmatprep.subr.mxu0 %v27927_v48  ;;  %27781 = vmatmul.mubr.f32.gmra.mxu1 %v34307_v41  ;;  %v24262_v52 = vpop.f32.mrf.mxu0  ;;  %v24169_v53 = vpop.f32.mrf.mxu1  ;;  %v28372_v41 = vsel %vm23810_vm15, %v28359_v4, 0  ;;  %v34664_v10 = vand.u32 4294901760, %v28360_v2  ;;  %v28499_v45 = vsub.f32 %v34642_v30, %v28498_v34 }
 0x6d0   : > { %27891 = vmatmul.mubr.f32.gmra.mxu0 %v27890_v18  ;;  %27981 = vmatprep.mubr.f32.mxu1 %v35223_v15  ;;  %v24170_v48 = vadd.f32 %v24169_v53, %v24084_v26  ;;  %v24094_v62 = vadd.f32 %v24093_v13, %v24005_v3  ;;  %v34659_v33 = vand.u32 4294901760, %v28372_v41  ;;  %v34692_v26 = vsub.f32 %v28358_v7, %v34670_v60 }
 0x6d1   : > { %28068 = vmatprep.mubr.f32.mxu0 %v35223_v15  ;;  %v24171_v56 = vpop.f32.mrf.mxu1  ;;  %v24264_v27 = vpop.f32.mrf.mxu0  ;;  %v34688_v11 = vsub.f32 %v28360_v2, %v34664_v10  ;;  %v28500_v32 = vand.u32 4294901760, %v28499_v45 }
 0x6d2   : > { %v24172_v39 = vadd.f32 %v24171_v56, %v24086_v29  ;;  %v24263_v44 = vadd.f32 %v24262_v52, %v24170_v48  ;;  %v34681_v14 = vsub.f32 %v28372_v41, %v34659_v33 }
 0x6d3   : > { %27983 = vmatmul.mubr.f32.vlgmr.msra.gmra.mxu1 %v34518_v43 }
 0x6d4   : > { %28071 = vmatmul.mubr.f32.vlgmr.msra.gmra.mxu0 %v34549_v20  ;;  %28116 = vmatpush1.msra.mxu1 %v34527_v63  ;;  %v24265_v1 = vadd.f32 %v24264_v27, %v24172_v39  ;;  %v28504_v37 = vand.u32 4294901760, %v34681_v14  ;;  %v28510_v20 = vand.u32 4294901760, %v34688_v11 }
 0x6d5   : > { %28207 = vmatpush1.msra.mxu0 %v27933_v49  ;;  %28118 = vmatprep.subr.mxu1 %v34535_v25  ;;  %v24178_v61 = vpop.f32.mrf.mxu1  ;;  %v24269_v49 = vpop.f32.mrf.mxu0 }
 0x6d6   : > { %28211 = vmatprep.subr.mxu0 %v27939_v46  ;;  %28120 = vmatpush1.msra.mxu1 %v34542_v17  ;;  %v24179_v8 = vadd.f32 %v24178_v61, %v24092_v6  ;;  %v34676_v46 = vsub.f32 %v28366_v16, %v34649_v28  ;;  %v28511_v51 = vsub.f32 %v34688_v11, %v28510_v20 }
 0x6d7   : > { %28215 = vmatpush1.msra.mxu0 %v27945_v38  ;;  %27988 = vmatprep.mubr.f32.mxu1 %v35223_v15  ;;  %v24180_v55 = vpop.f32.mrf.mxu1  ;;  %v24271_v5 = vpop.f32.mrf.mxu0 }
 0x6d8   : > { %28076 = vmatprep.mubr.f32.mxu0 %v35223_v15  ;;  %28292 = vmatprep.subr.mxu1 %v34493_v9  ;;  %v24181_v21 = vadd.f32 %v24180_v55, %v24094_v62  ;;  %v24270_v38 = vadd.f32 %v24269_v49, %v24179_v8  ;;  %v34685_v9 = vand.u32 4294901760, %v28369_v47  ;;  %v28448_v19 = vand.u32 4294901760, %v34676_v46 }
 0x6d9   : > { %28406 = vmatprep.subr.mxu0 %v34630_v58  ;;  %27990 = vmatmul.mubr.f32.gmra.mxu1 %v34561_v22  ;;  %v24345_v40 = vpop.f32.mrf.mxu1  ;;  %v24451_v24 = vpop.f32.mrf.mxu0  ;;  %v28512_v39 = vand.u32 4294901760, %v28511_v51 }
 0x6da   : > { %28079 = vmatmul.mubr.f32.gmra.mxu0 %v34584_v50  ;;  %28153 = vmatprep.mubr.f32.mxu1 %v35223_v15  ;;  %v24346_v57 = vadd.f32 %v24345_v40, %v24263_v44  ;;  %v24272_v18 = vadd.f32 %v24271_v5, %v24181_v21  ;;  %v34707_v4 = vsub.f32 %v28369_v47, %v34685_v9 }
 0x6db   : > { %28248 = vmatprep.mubr.f32.mxu0 %v35223_v15  ;;  %v24347_v59 = vpop.f32.mrf.mxu1  ;;  %v24453_v13 = vpop.f32.mrf.mxu0 }
 0x6dc   : > { %v34701_v36 = vadd.f32 %v24346_v57, %v34507_v23  ;;  %v24348_v29 = vadd.f32 %v24347_v59, %v24265_v1 }
 0x6dd   : > { %28157 = vmatmul.mubr.f32.vlgmr.msra.gmra.mxu1 %v27877_v0  ;;  %v28516_v0 = vand.u32 4294901760, %v34692_v26 }
 0x6de   : > { %28250 = vmatmul.mubr.f32.vlgmr.msra.gmra.mxu0 %v34518_v43  ;;  %28294 = vmatpush1.msra.mxu1 %v34527_v63  ;;  %v34713_v23 = vadd.f32 %v24348_v29, %v34523_v35  ;;  %v28449_v63 = vsub.f32 %v34676_v46, %v28448_v19  ;;  %v28505_v35 = vsub.f32 %v34681_v14, %v28504_v37 }
 0x6df   : > { %28408 = vmatpush1.msra.mxu0 %v34659_v33  ;;  %28296 = vmatprep.subr.mxu1 %v34535_v25  ;;  %v24352_v3 = vpop.f32.mrf.mxu1  ;;  %v24462_v6 = vpop.f32.mrf.mxu0  ;;  %v28517_v62 = vsub.f32 %v34692_v26, %v28516_v0 }
 0x6e0   : > { %28410 = vmatprep.subr.mxu0 %v34664_v10  ;;  %28298 = vmatpush1.msra.mxu1 %v34542_v17  ;;  %v24353_v25 = vadd.f32 %v24352_v3, %v24270_v38  ;;  %v28459_v17 = vand.u32 4294901760, %v34707_v4  ;;  %v28450_v41 = vand.u32 4294901760, %v28449_v63  ;;  %v28506_v27 = vand.u32 4294901760, %v28505_v35 }
 0x6e1   : > { %28412 = vmatpush1.msra.mxu0 %v34670_v60  ;;  %28162 = vmatprep.mubr.f32.mxu1 %v35223_v15  ;;  %v24354_v52 = vpop.f32.mrf.mxu1  ;;  %v24464_v48 = vpop.f32.mrf.mxu0  ;;  %v28518_v1 = vand.u32 4294901760, %v28517_v62 }
 0x6e2   : > { %28255 = vmatprep.mubr.f32.mxu0 %v35223_v15  ;;  %28501 = vmatprep.subr.mxu1 %v28500_v32  ;;  %v34735_v16 = vadd.f32 %v24353_v25, %v34532_v42  ;;  %v24355_v53 = vadd.f32 %v24354_v52, %v24272_v18  ;;  %v28460_v2 = vsub.f32 %v34707_v4, %v28459_v17 }
 0x6e3   : > { %28597 = vmatprep.subr.mxu0 %v34642_v30  ;;  %28166 = vmatmul.mubr.f32.gmra.mxu1 %v27888_v54  ;;  %v24554_v50 = vpop.f32.mrf.mxu1  ;;  %v24642_v42 = vpop.f32.mrf.mxu0 }
 0x6e4   : > { %28257 = vmatmul.mubr.f32.gmra.mxu0 %v34561_v22  ;;  %28331 = vmatprep.mubr.f32.mxu1 %v35223_v15  ;;  %v34744_v54 = vadd.f32 %v24355_v53, %v34551_v12  ;;  %v24555_v56 = vadd.f32 %v24554_v50, %v24451_v24  ;;  %v28461_v47 = vand.u32 4294901760, %v28460_v2 }
 0x6e5   : > { %28445 = vmatprep.mubr.f32.mxu0 %v35223_v15  ;;  %v24556_v31 = vpop.f32.mrf.mxu1  ;;  %v24644_v61 = vpop.f32.mrf.mxu0 }
 0x6e6   : > { %v24557_v44 = vadd.f32 %v24556_v31, %v24453_v13  ;;  %v24643_v7 = vadd.f32 %v24642_v42, %v24555_v56 }
 0x6e7   : > { %28333 = vmatmul.mubr.f32.vlgmr.msra.gmra.mxu1 %v34518_v43 }
 0x6e8   : > { %28451 = vmatmul.mubr.f32.vlgmr.msra.gmra.mxu0 %v28450_v41  ;;  %28507 = vmatpush1.msra.mxu1 %v28506_v27  ;;  %v24645_v12 = vadd.f32 %v24644_v61, %v24557_v44 }
 0x6e9   : > { %28600 = vmatpush1.msra.mxu0 %v34681_v14  ;;  %28513 = vmatprep.subr.mxu1 %v28512_v39 }
 0x6ea   : > { %28603 = vmatprep.subr.mxu0 %v34688_v11  ;;  %28519 = vmatpush1.msra.mxu1 %v28518_v1  ;;  %v24561_v43 = vpop.f32.mrf.mxu1  ;;  %v24650_v49 = vpop.f32.mrf.mxu0 }
 0x6eb   : > { %28606 = vmatpush1.msra.mxu0 %v34692_v26  ;;  %28338 = vmatprep.mubr.f32.mxu1 %v35223_v15  ;;  %v24562_v8 = vadd.f32 %v24561_v43, %v24462_v6 }
 0x6ec   : > { %28456 = vmatprep.mubr.f32.mxu0 %v35223_v15  ;;  %28685 = vmatprep.subr.mxu1 %v34630_v58  ;;  %v24563_v55 = vpop.f32.mrf.mxu1  ;;  %v24652_v5 = vpop.f32.mrf.mxu0 }
 0x6ed   : > { %28774 = vmatprep.subr.mxu0 %v28498_v34  ;;  %28340 = vmatmul.mubr.f32.gmra.mxu1 %v34561_v22  ;;  %v24564_v21 = vadd.f32 %v24563_v55, %v24464_v48  ;;  %v24651_v38 = vadd.f32 %v24650_v49, %v24562_v8 }
 0x6ee   : > { %28462 = vmatmul.mubr.f32.gmra.mxu0 %v28461_v47  ;;  %28552 = vmatprep.mubr.f32.mxu1 %v35223_v15  ;;  %v24728_v40 = vpop.f32.mrf.mxu1  ;;  %v24821_v24 = vpop.f32.mrf.mxu0 }
 0x6ef   : > { %28639 = vmatprep.mubr.f32.mxu0 %v35223_v15  ;;  %v24729_v57 = vadd.f32 %v24728_v40, %v24643_v7  ;;  %v24653_v18 = vadd.f32 %v24652_v5, %v24564_v21 }
 0x6f0   : > { %v24730_v45 = vpop.f32.mrf.mxu1  ;;  %v24823_v34 = vpop.f32.mrf.mxu0 }
 0x6f1   : > { %28554 = vmatmul.mubr.f32.vlgmr.msra.gmra.mxu1 %v34649_v28  ;;  %v24731_v22 = vadd.f32 %v24730_v45, %v24645_v12  ;;  %v24822_v30 = vadd.f32 %v24821_v24, %v24729_v57 }
 0x6f2   : > { %28642 = vmatmul.mubr.f32.vlgmr.msra.gmra.mxu0 %v34676_v46  ;;  %28687 = vmatpush1.msra.mxu1 %v34659_v33 }
 0x6f3   : > { %28778 = vmatpush1.msra.mxu0 %v28504_v37  ;;  %28689 = vmatprep.subr.mxu1 %v34664_v10  ;;  %v24824_v59 = vadd.f32 %v24823_v34, %v24731_v22 }
 0x6f4   : > { %28782 = vmatprep.subr.mxu0 %v28510_v20  ;;  %28691 = vmatpush1.msra.mxu1 %v34670_v60  ;;  %v24737_v29 = vpop.f32.mrf.mxu1  ;;  %v24828_v13 = vpop.f32.mrf.mxu0 }
 0x6f5   : > { %28786 = vmatpush1.msra.mxu0 %v28516_v0  ;;  %28559 = vmatprep.mubr.f32.mxu1 %v35223_v15  ;;  %v24738_v14 = vadd.f32 %v24737_v29, %v24651_v38 }
 0x6f6   : > { %28863 = vmatprep.subr.mxu1 %v34630_v58  ;;  %28561 = vmatmul.mubr.f32.gmra.mxu1 %v34685_v9  ;;  %v24739_v11 = vpop.f32.mrf.mxu1  ;;  %v24830_v26 = vpop.f32.mrf.mxu0 }
 0x6f7   : > { %28647 = vmatprep.mubr.f32.mxu0 %v35223_v15  ;;  %28724 = vmatprep.mubr.f32.mxu1 %v35223_v15  ;;  %v24740_v37 = vadd.f32 %v24739_v11, %v24653_v18  ;;  %v24829_v20 = vadd.f32 %v24828_v13, %v24738_v14 }
 0x6f8   : > { %28650 = vmatmul.mubr.f32.gmra.mxu0 %v34707_v4  ;;  %v24904_v0 = vpop.f32.mrf.mxu1  ;;  %v25022_v63 = vpop.f32.mrf.mxu0 }
 0x6f9   : > { %28819 = vmatprep.mubr.f32.mxu0 %v35223_v15  ;;  %v24905_v58 = vadd.f32 %v24904_v0, %v24822_v30  ;;  %v24831_v32 = vadd.f32 %v24830_v26, %v24740_v37 }
 0x6fa   : > { %28728 = vmatmul.mubr.f32.vlgmr.msra.gmra.mxu1 %v28448_v19  ;;  %v24906_v3 = vpop.f32.mrf.mxu1  ;;  %v25024_v35 = vpop.f32.mrf.mxu0 }
 0x6fb   : > { %28865 = vmatpush1.msra.mxu1 %v34659_v33  ;;  %28733 = vmatprep.mubr.f32.mxu1 %v35223_v15  ;;  %v24916_v25 = vadd.f32 %v24905_v58, %v34701_v36  ;;  %v24907_v6 = vadd.f32 %v24906_v3, %v24824_v59 }
 0x6fc   : > { %28867 = vmatprep.subr.mxu1 %v34664_v10  ;;  %28821 = vmatmul.mubr.f32.vlgmr.msra.gmra.mxu0 %v34649_v28 }
 0x6fd   : > { %28869 = vmatpush1.msra.mxu1 %v34670_v60  ;;  %28826 = vmatprep.mubr.f32.mxu0 %v35223_v15  ;;  %v24917_v33 = vadd.f32 %v24907_v6, %v34713_v23 }
 0x6fe   : > { %28737 = vmatmul.mubr.f32.gmra.mxu1 %v28459_v17  ;;  %v24911_v46 = vpop.f32.mrf.mxu1  ;;  %v25033_v19 = vpop.f32.mrf.mxu0 }
 0x6ff   : > { %28902 = vmatprep.mubr.f32.mxu1 %v35223_v15  ;;  %v24912_v10 = vadd.f32 %v24911_v46, %v24829_v20 }
 0x700   : > { %28828 = vmatmul.mubr.f32.gmra.mxu0 %v34685_v9  ;;  %v24913_v52 = vpop.f32.mrf.mxu1  ;;  %v25035_v51 = vpop.f32.mrf.mxu0 }
 0x701   : > { %v24918_v36 = vadd.f32 %v24912_v10, %v34735_v16  ;;  %v24914_v60 = vadd.f32 %v24913_v52, %v24831_v32 }
 0x702   : > { %28904 = vmatmul.mubr.f32.vlgmr.msra.gmra.mxu1 %v34649_v28  ;;  %v25125_v4 = vpop.f32.mrf.mxu1  ;;  %v25213_v53 = vpop.f32.mrf.mxu0 }
 0x703   : > { %28909 = vmatprep.mubr.f32.mxu1 %v35223_v15  ;;  %v24919_v17 = vadd.f32 %v24914_v60, %v34744_v54  ;;  %v25126_v23 = vadd.f32 %v25125_v4, %v25022_v63 }
 0x704   : > { %v25127_v48 = vpop.f32.mrf.mxu1  ;;  %v25215_v50 = vpop.f32.mrf.mxu0 }
 0x705   : > { %v25128_v62 = vadd.f32 %v25127_v48, %v25024_v35  ;;  %v25214_v41 = vadd.f32 %v25213_v53, %v25126_v23 }
 0x706   : > { %28911 = vmatmul.mubr.f32.gmra.mxu1 %v34685_v9 }
 0x707   : > { %v25216_v56 = vadd.f32 %v25215_v50, %v25128_v62 }
 0x708   : > { %v25132_v42 = vpop.f32.mrf.mxu1  ;;  %v25221_v27 = vpop.f32.mrf.mxu0 }
 0x709   : > { %v25133_v28 = vadd.f32 %v25132_v42, %v25033_v19 }
 0x70a   : > { %v25134_v16 = vpop.f32.mrf.mxu1  ;;  %v25223_v39 = vpop.f32.mrf.mxu0 }
 0x70b   : > { %v25135_v2 = vadd.f32 %v25134_v16, %v25035_v51  ;;  %v25222_v31 = vadd.f32 %v25221_v27, %v25133_v28 }
 0x70c   : > { %v25299_v15 = vpop.f32.mrf.mxu1  ;;  %v25392_v54 = vpop.f32.mrf.mxu0 }
 0x70d   : > { %v25300_v44 = vadd.f32 %v25299_v15, %v25214_v41  ;;  %v25224_v7 = vadd.f32 %v25223_v39, %v25135_v2 }
 0x70e   : > { %v25301_v61 = vpop.f32.mrf.mxu1  ;;  %v25394_v47 = vpop.f32.mrf.mxu0 }
 0x70f   : > { %v25302_v1 = vadd.f32 %v25301_v61, %v25216_v56  ;;  %v25393_v12 = vadd.f32 %v25392_v54, %v25300_v44 }
 0x711   : > { %v25395_v9 = vadd.f32 %v25394_v47, %v25302_v1 }
 0x712   : > { %v25308_v43 = vpop.f32.mrf.mxu1  ;;  %v25399_v49 = vpop.f32.mrf.mxu0 }
 0x713   : > { %v25309_v8 = vadd.f32 %v25308_v43, %v25222_v31 }
 0x714   : > { %v25310_v55 = vpop.f32.mrf.mxu1  ;;  %v25401_v5 = vpop.f32.mrf.mxu0 }
 0x715   : > { %v25311_v21 = vadd.f32 %v25310_v55, %v25224_v7  ;;  %v25400_v38 = vadd.f32 %v25399_v49, %v25309_v8 }
 0x716   : > { %v25475_v40 = vpop.f32.mrf.mxu1  ;;  %v25593_v24 = vpop.f32.mrf.mxu0 }
 0x717   : > { %v25476_v57 = vadd.f32 %v25475_v40, %v25393_v12  ;;  %v25402_v18 = vadd.f32 %v25401_v5, %v25311_v21 }
 0x718   : > { %v25477_v45 = vpop.f32.mrf.mxu1  ;;  %v25595_v34 = vpop.f32.mrf.mxu0 }
 0x719   : > { %v25487_v22 = vadd.f32 %v25476_v57, %v24916_v25  ;;  %v25478_v30 = vadd.f32 %v25477_v45, %v25395_v9 }
 0x71b   : > { %v25488_v59 = vadd.f32 %v25478_v30, %v24917_v33 }
 0x71c   : > { %v25482_v29 = vpop.f32.mrf.mxu1  ;;  %v25604_v13 = vpop.f32.mrf.mxu0 }
 0x71d   : > { %v25483_v14 = vadd.f32 %v25482_v29, %v25400_v38 }
 0x71e   : > { %v25484_v11 = vpop.f32.mrf.mxu1  ;;  %v25606_v26 = vpop.f32.mrf.mxu0 }
 0x71f   : > { %v25489_v37 = vadd.f32 %v25483_v14, %v24918_v36  ;;  %v25485_v20 = vadd.f32 %v25484_v11, %v25402_v18 }
 0x720   : > { %v25696_v0 = vpop.f32.mrf.mxu1  ;;  %v25784_v63 = vpop.f32.mrf.mxu0 }
 0x721   : > { %v25490_v58 = vadd.f32 %v25485_v20, %v24919_v17  ;;  %v25697_v32 = vadd.f32 %v25696_v0, %v25593_v24 }
 0x722   : > { %v25698_v3 = vpop.f32.mrf.mxu1  ;;  %v25786_v46 = vpop.f32.mrf.mxu0 }
 0x723   : > { %v25699_v6 = vadd.f32 %v25698_v3, %v25595_v34  ;;  %v25785_v35 = vadd.f32 %v25784_v63, %v25697_v32 }
 0x725   : > { %v25787_v10 = vadd.f32 %v25786_v46, %v25699_v6 }
 0x726   : > { %v25703_v25 = vpop.f32.mrf.mxu1  ;;  %v25792_v52 = vpop.f32.mrf.mxu0 }
 0x727   : > { %v25704_v19 = vadd.f32 %v25703_v25, %v25604_v13 }
 0x728   : > { %v25705_v33 = vpop.f32.mrf.mxu1  ;;  %v25794_v4 = vpop.f32.mrf.mxu0 }
 0x729   : > { %v25706_v60 = vadd.f32 %v25705_v33, %v25606_v26  ;;  %v25793_v51 = vadd.f32 %v25792_v52, %v25704_v19 }
 0x72a   : > { %v25870_v23 = vpop.f32.mrf.mxu1  ;;  %v25963_v48 = vpop.f32.mrf.mxu0 }
 0x72b   : > { %v25871_v36 = vadd.f32 %v25870_v23, %v25785_v35  ;;  %v25795_v53 = vadd.f32 %v25794_v4, %v25706_v60 }
 0x72c   : > { %v25872_v62 = vpop.f32.mrf.mxu1  ;;  %v25965_v50 = vpop.f32.mrf.mxu0 }
 0x72d   : > { %v25873_v17 = vadd.f32 %v25872_v62, %v25787_v10  ;;  %v25964_v41 = vadd.f32 %v25963_v48, %v25871_v36 }
 0x72f   : > { %v25966_v56 = vadd.f32 %v25965_v50, %v25873_v17 }
 0x730   : > { %v25879_v42 = vpop.f32.mrf.mxu1  ;;  %v25970_v27 = vpop.f32.mrf.mxu0 }
 0x731   : > { %v25880_v28 = vadd.f32 %v25879_v42, %v25793_v51 }
 0x732   : > { %v25881_v16 = vpop.f32.mrf.mxu1  ;;  %v25972_v39 = vpop.f32.mrf.mxu0 }
 0x733   : > { %v25882_v2 = vadd.f32 %v25881_v16, %v25795_v53  ;;  %v25971_v31 = vadd.f32 %v25970_v27, %v25880_v28 }
 0x734   : > { %v26046_v15 = vpop.f32.mrf.mxu1  ;;  %v26152_v54 = vpop.f32.mrf.mxu0 }
 0x735   : > { %v26047_v44 = vadd.f32 %v26046_v15, %v25964_v41  ;;  %v25973_v7 = vadd.f32 %v25972_v39, %v25882_v2 }
 0x736   : > { %v26048_v61 = vpop.f32.mrf.mxu1  ;;  %v26154_v47 = vpop.f32.mrf.mxu0 }
 0x737   : > { %v26058_v1 = vadd.f32 %v26047_v44, %v25487_v22  ;;  %v26049_v12 = vadd.f32 %v26048_v61, %v25966_v56 }
 0x739   : > { %v26059_v9 = vadd.f32 %v26049_v12, %v25488_v59 }
 0x73a   : > { %v26053_v43 = vpop.f32.mrf.mxu1  ;;  %v26163_v49 = vpop.f32.mrf.mxu0 }
 0x73b   : > { %v26054_v8 = vadd.f32 %v26053_v43, %v25971_v31 }
 0x73c   : > { %v26055_v55 = vpop.f32.mrf.mxu1  ;;  %v26165_v5 = vpop.f32.mrf.mxu0 }
 0x73d   : > { %v26060_v21 = vadd.f32 %v26054_v8, %v25489_v37  ;;  %v26056_v38 = vadd.f32 %v26055_v55, %v25973_v7 }
 0x73e   : > { %v26255_v40 = vpop.f32.mrf.mxu1  ;;  %v26343_v24 = vpop.f32.mrf.mxu0 }
 0x73f   : > { %v26061_v57 = vadd.f32 %v26056_v38, %v25490_v58  ;;  %v26256_v18 = vadd.f32 %v26255_v40, %v26152_v54 }
 0x740   : > { %v26257_v45 = vpop.f32.mrf.mxu1  ;;  %v26345_v29 = vpop.f32.mrf.mxu0 }
 0x741   : > { %v26258_v30 = vadd.f32 %v26257_v45, %v26154_v47  ;;  %v26344_v34 = vadd.f32 %v26343_v24, %v26256_v18 }
 0x743   : > { %v26346_v14 = vadd.f32 %v26345_v29, %v26258_v30  ;;  %v26262_v22 = vpop.f32.mrf.mxu1 }
 0x744   : > { %v26263_v13 = vadd.f32 %v26262_v22, %v26163_v49  ;;  %v26351_v11 = vpop.f32.mrf.mxu0 }
 0x745   : > { %v26264_v59 = vpop.f32.mrf.mxu1 }
 0x746   : > { %v26265_v20 = vadd.f32 %v26264_v59, %v26165_v5  ;;  %v26352_v26 = vadd.f32 %v26351_v11, %v26263_v13  ;;  %v26353_v0 = vpop.f32.mrf.mxu0 }
 0x747   : > { %v26429_v32 = vpop.f32.mrf.mxu1 }
 0x748   : > { %v26430_v37 = vadd.f32 %v26429_v32, %v26344_v34  ;;  %v26354_v63 = vadd.f32 %v26353_v0, %v26265_v20  ;;  %v26522_v3 = vpop.f32.mrf.mxu0 }
 0x749   : > { %v26431_v6 = vpop.f32.mrf.mxu1 }
 0x74a   : > { %v26432_v58 = vadd.f32 %v26431_v6, %v26346_v14  ;;  %v26523_v35 = vadd.f32 %v26522_v3, %v26430_v37  ;;  %v26524_v46 = vpop.f32.mrf.mxu0 }
 0x74c   : > { %v26525_v10 = vadd.f32 %v26524_v46, %v26432_v58 }
 0x74d   : > { %v26438_v25 = vpop.f32.mrf.mxu1 }
 0x74e   : > { %v26439_v19 = vadd.f32 %v26438_v25, %v26352_v26  ;;  %v26529_v52 = vpop.f32.mrf.mxu0 }
 0x74f   : > { %v26440_v33 = vpop.f32.mrf.mxu1 }
 0x750   : > { %v26441_v60 = vadd.f32 %v26440_v33, %v26354_v63  ;;  %v26530_v51 = vadd.f32 %v26529_v52, %v26439_v19  ;;  %v26531_v4 = vpop.f32.mrf.mxu0 }
 0x751   : > { %v26605_v23 = vpop.f32.mrf.mxu1 }
 0x752   : > { %v26606_v36 = vadd.f32 %v26605_v23, %v26523_v35  ;;  %v26532_v53 = vadd.f32 %v26531_v4, %v26441_v60  ;;  %v26723_v48 = vpop.f32.mrf.mxu0 }
 0x753   : > { %v26607_v62 = vpop.f32.mrf.mxu1 }
 0x754   : > { %v26617_v17 = vadd.f32 %v26606_v36, %v26058_v1  ;;  %v26608_v41 = vadd.f32 %v26607_v62, %v26525_v10  ;;  %v26725_v50 = vpop.f32.mrf.mxu0 }
 0x756   : > { %v26618_v56 = vadd.f32 %v26608_v41, %v26059_v9 }
 0x757   : > { %v26612_v42 = vpop.f32.mrf.mxu1  ;;  %v26734_v27 = vpop.f32.mrf.mxu0 }
 0x758   : > { %v26613_v28 = vadd.f32 %v26612_v42, %v26530_v51 }
 0x759   : > { %v26614_v16 = vpop.f32.mrf.mxu1  ;;  %v26736_v39 = vpop.f32.mrf.mxu0 }
 0x75a   : > { %v26619_v2 = vadd.f32 %v26613_v28, %v26060_v21  ;;  %v26615_v31 = vadd.f32 %v26614_v16, %v26532_v53 }
 0x75b   : > { %v26826_v15 = vpop.f32.mrf.mxu1  ;;  %v26914_v54 = vpop.f32.mrf.mxu0 }
 0x75c   : > { %v26620_v44 = vadd.f32 %v26615_v31, %v26061_v57  ;;  %v26827_v7 = vadd.f32 %v26826_v15, %v26723_v48 }
 0x75d   : > { %v26828_v61 = vpop.f32.mrf.mxu1  ;;  %v26916_v43 = vpop.f32.mrf.mxu0 }
 0x75e   : > { %v26829_v12 = vadd.f32 %v26828_v61, %v26725_v50  ;;  %v26915_v47 = vadd.f32 %v26914_v54, %v26827_v7 }
 0x760   : > { %v26833_v8 = vpop.f32.mrf.mxu1  ;;  %v26917_v1 = vadd.f32 %v26916_v43, %v26829_v12 }
 0x761   : > { %v26834_v49 = vadd.f32 %v26833_v8, %v26734_v27  ;;  %v26922_v9 = vpop.f32.mrf.mxu0 }
 0x762   : > { %v26835_v55 = vpop.f32.mrf.mxu1 }
 0x763   : > { %v26836_v38 = vadd.f32 %v26835_v55, %v26736_v39  ;;  %v26923_v5 = vadd.f32 %v26922_v9, %v26834_v49  ;;  %v26924_v18 = vpop.f32.mrf.mxu0 }
 0x764   : > { %v27000_v40 = vpop.f32.mrf.mxu1 }
 0x765   : > { %v27001_v21 = vadd.f32 %v27000_v40, %v26915_v47  ;;  %v26925_v24 = vadd.f32 %v26924_v18, %v26836_v38 }
 0x766   : > { %v27002_v45 = vpop.f32.mrf.mxu1  ;;  %v27093_v30 = vpop.f32.mrf.mxu0 }
 0x767   : > { %v27003_v57 = vadd.f32 %v27002_v45, %v26917_v1  ;;  %v27094_v34 = vadd.f32 %v27093_v30, %v27001_v21 }
 0x768   : > { %v27095_v14 = vpop.f32.mrf.mxu0 }
 0x769   : > { %v27096_v13 = vadd.f32 %v27095_v14, %v27003_v57 }
 0x76a   : > { %v27009_v29 = vpop.f32.mrf.mxu1  ;;  %v27100_v59 = vpop.f32.mrf.mxu0 }
 0x76b   : > { %v27010_v22 = vadd.f32 %v27009_v29, %v26923_v5 }
 0x76c   : > { %v27011_v11 = vpop.f32.mrf.mxu1  ;;  %v27102_v32 = vpop.f32.mrf.mxu0 }
 0x76d   : > { %v27012_v20 = vadd.f32 %v27011_v11, %v26925_v24  ;;  %v27101_v26 = vadd.f32 %v27100_v59, %v27010_v22 }
 0x76e   : > { %v27176_v0 = vpop.f32.mrf.mxu1  ;;  %v27322_v6 = vpop.f32.mrf.mxu0 }
 0x76f   : > { %v27177_v37 = vadd.f32 %v27176_v0, %v27094_v34  ;;  %v27103_v63 = vadd.f32 %v27102_v32, %v27012_v20 }
 0x770   : > { %v27178_v3 = vpop.f32.mrf.mxu1  ;;  %v27324_v10 = vpop.f32.mrf.mxu0 }
 0x771   : > { %v34798_v58 = vadd.f32 %v27177_v37, %v26617_v17  ;;  %v27179_v35 = vadd.f32 %v27178_v3, %v27096_v13 }
 0x772   : > { %v27183_v46 = vpop.f32.mrf.mxu1 }
 0x773   : > { %35821 = vst [vmem:[#allocation7_spill] sm:$0xff] %v34798_v58  ;;  %v34800_v25 = vadd.f32 %v27179_v35, %v26618_v56  ;;  %v27184_v19 = vadd.f32 %v27183_v46, %v27101_v26  ;;  %v27333_v33 = vpop.f32.mrf.mxu0 }
 0x774   : > { %v27185_v52 = vpop.f32.mrf.mxu1 }
 0x775   : > { %35822 = vst [vmem:[#allocation95_spill] sm:$0xff] %v34800_v25  ;;  %v34802_v60 = vadd.f32 %v27184_v19, %v26619_v2  ;;  %v27186_v51 = vadd.f32 %v27185_v52, %v27103_v63  ;;  %v27335_v4 = vpop.f32.mrf.mxu0 }
 0x776   : > { %v27425_v23 = vpop.f32.mrf.mxu1 }
 0x777   : > { %35823 = vst [vmem:[#allocation97_spill] sm:$0xff] %v34802_v60  ;;  %v34804_v36 = vadd.f32 %v27186_v51, %v26620_v44  ;;  %v27426_v32 = vadd.f32 %v27425_v23, %v27322_v6 }
 0x778   : > { %v27427_v53 = vpop.f32.mrf.mxu1  ;;  %v27513_v48 = vpop.f32.mrf.mxu0 }
 0x779   : > { %35824 = vst [vmem:[#allocation104_spill] sm:$0xff] %v34804_v36  ;;  %v27428_v37 = vadd.f32 %v27427_v53, %v27324_v10  ;;  %v27514_v51 = vadd.f32 %v27513_v48, %v27426_v32 }
 0x77a   : > { %v27515_v62 = vpop.f32.mrf.mxu0 }
 0x77b   : > { %v27432_v17 = vpop.f32.mrf.mxu1  ;;  %v27516_v36 = vadd.f32 %v27515_v62, %v27428_v37 }
 0x77c   : > { %v27521_v41 = vpop.f32.mrf.mxu0  ;;  %v27433_v35 = vadd.f32 %v27432_v17, %v27333_v33 }
 0x77d   : > { %v27434_v50 = vpop.f32.mrf.mxu1 }
 0x77e   : > { %v34806_v42 = vpop.f32.mrf.mxu0  ;;  %v27522_v25 = vadd.f32 %v27521_v41, %v27433_v35 }
 0x77f   : > { %v27599_v56 = vpop.f32.mrf.mxu1 }
 0x780   : > { %v34808_v28 = vpop.f32.mrf.mxu0 }
 0x781   : > { %v27601_v27 = vpop.f32.mrf.mxu1 }
 0x782   : > { %v34810_v16 = vpop.f32.mrf.mxu0 }
 0x785   : > { %v27608_v2 = vpop.f32.mrf.mxu1 }
 0x786   : > { %v34812_v31 = vpop.f32.mrf.mxu0  ;;  %v27609_v6 = vadd.f32 %v27608_v2, %v27522_v25 }
 0x787   : > { %v34814_v39 = vpop.f32.mrf.mxu1 }
 0x788   : > { %v34816_v15 = vpop.f32.mrf.mxu0 }
 0x789   : > { %v34818_v44 = vpop.f32.mrf.mxu1 }
 0x78a   : > { %v27881_v7 = vpop.f32.mrf.mxu0 }
 0x78b   : > { %v34820_v54 = vpop.f32.mrf.mxu1 }
 0x78c   : > { %v27883_v61 = vpop.f32.mrf.mxu0 }
 0x78f   : > { %v34822_v12 = vpop.f32.mrf.mxu1 }
 0x790   : > { %35825 = vst [vmem:[#allocation106_spill] sm:$0xff] %v34822_v12  ;;  %v27892_v47 = vpop.f32.mrf.mxu0 }
 0x791   : > { %v34824_v43 = vpop.f32.mrf.mxu1 }
 0x792   : > { %35826 = vst [vmem:[#allocation115_spill] sm:$0xff] %v34824_v43  ;;  %v27894_v8 = vpop.f32.mrf.mxu0  ;;  %v27435_v43 = vadd.f32 %v27434_v50, %v27335_v4 }
 0x793   : > { %v27984_v1 = vpop.f32.mrf.mxu1 }
 0x794   : > { %v28072_v49 = vpop.f32.mrf.mxu0  ;;  %v27985_v46 = vadd.f32 %v27984_v1, %v27881_v7  ;;  %v27524_v7 = vadd.f32 %v34806_v42, %v27435_v43 }
 0x795   : > { %v27986_v55 = vpop.f32.mrf.mxu1 }
 0x796   : > { %v28074_v9 = vpop.f32.mrf.mxu0  ;;  %v27987_v60 = vadd.f32 %v27986_v55, %v27883_v61 }
 0x798   : > { %v28075_v10 = vadd.f32 %v28074_v9, %v27987_v60  ;;  %v27700_v60 = vadd.f32 %v34812_v31, %v27609_v6 }
 0x799   : > { %v27991_v38 = vpop.f32.mrf.mxu1 }
 0x79a   : > { %v28080_v5 = vpop.f32.mrf.mxu0  ;;  %v27992_v58 = vadd.f32 %v27991_v38, %v27892_v47 }
 0x79b   : > { %v27993_v40 = vpop.f32.mrf.mxu1 }
 0x79c   : > { %v28082_v18 = vpop.f32.mrf.mxu0  ;;  %v27994_v23 = vadd.f32 %v27993_v40, %v27894_v8  ;;  %v35832_v40 = vld [vmem:[#allocation7_spill] sm:$0xff] }
 0x79d   : > { %v28158_v21 = vpop.f32.mrf.mxu1 }
 0x79e   : > { %v28251_v24 = vpop.f32.mrf.mxu0  ;;  %v28083_v47 = vadd.f32 %v28082_v18, %v27994_v23 }
 0x79f   : > { %v28160_v45 = vpop.f32.mrf.mxu1 }
 0x7a0   : > { %v28253_v30 = vpop.f32.mrf.mxu0  ;;  %v28161_v41 = vadd.f32 %v28160_v45, %v28075_v10 }
 0x7a2   : > { %v28254_v9 = vadd.f32 %v28253_v30, %v28161_v41 }
 0x7a3   : > { %v28167_v57 = vpop.f32.mrf.mxu1 }
 0x7a4   : > { %v34826_v34 = vpop.f32.mrf.mxu0 }
 0x7a5   : > { %35827 = vst [vmem:[#allocation114_spill] sm:$0xff] %v34826_v34  ;;  %v28169_v29 = vpop.f32.mrf.mxu1  ;;  %v27600_v34 = vadd.f32 %v27599_v56, %v27514_v51  ;;  %v27611_v56 = vadd.f32 %v34814_v39, %v27524_v7 }
 0x7a6   : > { %v34828_v14 = vpop.f32.mrf.mxu0  ;;  %v28170_v38 = vadd.f32 %v28169_v29, %v28083_v47 }
 0x7a7   : > { %35828 = vst [vmem:[#allocation122_spill] sm:$0xff] %v34828_v14  ;;  %v28334_v22 = vpop.f32.mrf.mxu1  ;;  %v27693_v62 = vadd.f32 %v34808_v28, %v27600_v34 }
 0x7a8   : > { %v28452_v13 = vpop.f32.mrf.mxu0 }
 0x7a9   : > { %v34830_v11 = vpop.f32.mrf.mxu1  ;;  %v27776_v2 = vadd.f32 %v34818_v44, %v27693_v62  ;;  %v27702_v44 = vadd.f32 %v34816_v15, %v27611_v56  ;;  %v35842_v62 = vld [vmem:[#allocation104_spill] sm:$0xff] }
 0x7aa   : > { %35829 = vst [vmem:[#allocation125_spill] sm:$0xff] %v34830_v11  ;;  %v28454_v59 = vpop.f32.mrf.mxu0  ;;  %v27602_v11 = vadd.f32 %v27601_v27, %v27516_v36  ;;  %v28081_v27 = vadd.f32 %v28080_v5, %v27992_v58 }
 0x7ab   : > { %v27787_v18 = vadd.f32 %v27776_v2, %v35832_v40 }
 0x7ac   : > { %v27695_v4 = vadd.f32 %v34810_v16, %v27602_v11  ;;  %v28168_v1 = vadd.f32 %v28167_v57, %v28081_v27 }
 0x7ad   : > { %v34832_v20 = vpop.f32.mrf.mxu1 }
 0x7ae   : > { %35830 = vst [vmem:[#allocation124_spill] sm:$0xff] %v34832_v20  ;;  %v28463_v26 = vpop.f32.mrf.mxu0  ;;  %v28073_v20 = vadd.f32 %v28072_v49, %v27985_v46  ;;  %v27778_v55 = vadd.f32 %v34820_v54, %v27695_v4 }
 0x7af   : > { %v34834_v0 = vpop.f32.mrf.mxu1 }
 0x7b0   : > { %35831 = vst [vmem:[#allocation132_spill] sm:$0xff] %v34834_v0  ;;  %v28465_v63 = vpop.f32.mrf.mxu0  ;;  %v28159_v53 = vadd.f32 %v28158_v21, %v28073_v20  ;;  %v35833_v21 = vld [vmem:[#allocation106_spill] sm:$0xff]  ;;  %v35837_v20 = vld [vmem:[#allocation115_spill] sm:$0xff] }
 0x7b1   : > { %v28555_v3 = vpop.f32.mrf.mxu1  ;;  %v35834_v45 = vld [vmem:[#allocation125_spill] sm:$0xff] }
 0x7b2   : > { %v28643_v19 = vpop.f32.mrf.mxu0  ;;  %v28556_v0 = vadd.f32 %v28555_v3, %v28452_v13  ;;  %v28252_v8 = vadd.f32 %v28251_v24, %v28159_v53  ;;  %v27783_v24 = vadd.f32 %v35833_v21, %v27700_v60  ;;  %v28337_v57 = vadd.f32 %v35834_v45, %v28254_v9  ;;  %v35835_v13 = vld [vmem:[#allocation114_spill] sm:$0xff] }
 0x7b3   : > { %v28557_v52 = vpop.f32.mrf.mxu1  ;;  %v28259_v54 = vadd.f32 %v35835_v13, %v28168_v1 }
 0x7b4   : > { %v28645_v14 = vpop.f32.mrf.mxu0  ;;  %v28558_v48 = vadd.f32 %v28557_v52, %v28454_v59  ;;  %v28644_v61 = vadd.f32 %v28643_v19, %v28556_v0  ;;  %v28335_v58 = vadd.f32 %v28334_v22, %v28252_v8  ;;  %v35836_v22 = vld [vmem:[#allocation95_spill] sm:$0xff]  ;;  %v35838_v0 = vld [vmem:[#allocation122_spill] sm:$0xff]  ;;  %v35840_v52 = vld [vmem:[#allocation97_spill] sm:$0xff] }
 0x7b5   : > { %v27788_v59 = vadd.f32 %v27778_v55, %v35836_v22  ;;  %v28261_v15 = vadd.f32 %v35838_v0, %v28170_v38  ;;  %v27789_v51 = vadd.f32 %v27783_v24, %v35840_v52 }
 0x7b6   : > { %v28562_v12 = vpop.f32.mrf.mxu1  ;;  %v28646_v28 = vadd.f32 %v28645_v14, %v28558_v48  ;;  %v28346_v32 = vadd.f32 %v28335_v58, %v27787_v18 }
 0x7b7   : > { %v28563_v25 = vadd.f32 %v28562_v12, %v28463_v26  ;;  %v27785_v26 = vadd.f32 %v35837_v20, %v27702_v44  ;;  %v28347_v6 = vadd.f32 %v28337_v57, %v27788_v59  ;;  %v35841_v53 = vld [vmem:[#allocation132_spill] sm:$0xff] }
 0x7b8   : > { %v28564_v33 = vpop.f32.mrf.mxu1  ;;  %v28651_v17 = vpop.f32.mrf.mxu0 }
 0x7b9   : > { %v28565_v49 = vadd.f32 %v28564_v33, %v28465_v63  ;;  %v28652_v5 = vadd.f32 %v28651_v17, %v28563_v25  ;;  %v35839_v63 = vld [vmem:[#allocation124_spill] sm:$0xff]  ;;  %v28344_v33 = vadd.f32 %v35841_v53, %v28261_v15  ;;  %v27790_v4 = vadd.f32 %v27785_v26, %v35842_v62 }
 0x7ba   : > { %v28653_v50 = vpop.f32.mrf.mxu0  ;;  %v28729_v36 = vpop.f32.mrf.mxu1  ;;  %v28342_v3 = vadd.f32 %v35839_v63, %v28259_v54 }
 0x7bb   : > { %v28730_v16 = vadd.f32 %v28729_v36, %v28644_v61  ;;  %v28654_v30 = vadd.f32 %v28653_v50, %v28565_v49  ;;  %v28349_v25 = vadd.f32 %v28344_v33, %v27790_v4 }
 0x7bc   : > { %v28731_v42 = vpop.f32.mrf.mxu1  ;;  %v28822_v43 = vpop.f32.mrf.mxu0  ;;  %v28348_v50 = vadd.f32 %v28342_v3, %v27789_v51 }
 0x7bd   : > { %v28732_v31 = vadd.f32 %v28731_v42, %v28646_v28  ;;  %v28823_v29 = vadd.f32 %v28822_v43, %v28730_v16 }
 0x7be   : > { %v28738_v39 = vpop.f32.mrf.mxu1  ;;  %v28824_v12 = vpop.f32.mrf.mxu0 }
 0x7bf   : > { %v28739_v11 = vadd.f32 %v28738_v39, %v28652_v5  ;;  %v28825_v35 = vadd.f32 %v28824_v12, %v28732_v31 }
 0x7c0   : > { %v28740_v34 = vpop.f32.mrf.mxu1  ;;  %v28829_v14 = vpop.f32.mrf.mxu0 }
 0x7c1   : > { %v28741_v46 = vadd.f32 %v28740_v34, %v28654_v30  ;;  %v28830_v17 = vadd.f32 %v28829_v14, %v28739_v11 }
 0x7c2   : > { %v28905_v37 = vpop.f32.mrf.mxu1  ;;  %v28831_v10 = vpop.f32.mrf.mxu0 }
 0x7c3   : > { %v28906_v19 = vadd.f32 %v28905_v37, %v28823_v29  ;;  %v28832_v36 = vadd.f32 %v28831_v10, %v28741_v46 }
 0x7c4   : > { %v28907_v23 = vpop.f32.mrf.mxu1 }
 0x7c5   : > { %v28917_v7 = vadd.f32 %v28906_v19, %v28346_v32  ;;  %v28908_v48 = vadd.f32 %v28907_v23, %v28825_v35 }
 0x7c6   : > { %v28912_v41 = vpop.f32.mrf.mxu1 }
 0x7c7   : > { %28921 = vst [vmem:[%s278_s25] sm:$0xff] %v28917_v7  ;;  %v28918_v56 = vadd.f32 %v28908_v48, %v28347_v6  ;;  %v28913_v27 = vadd.f32 %v28912_v41, %v28830_v17 }
 0x7c8   : > { %v28914_v61 = vpop.f32.mrf.mxu1 }
 0x7c9   : > { %28922 = vst [vmem:[%s278_s25 + $0x8] sm:$0xff] %v28918_v56  ;;  %v28919_v60 = vadd.f32 %v28913_v27, %v28348_v50  ;;  %v28915_v2 = vadd.f32 %v28914_v61, %v28832_v36 }
 0x7cb   : > { %28923 = vst [vmem:[%s278_s25 + $0x10] sm:$0xf] %v28919_v60  ;;  %v28920_v47 = vadd.f32 %v28915_v2, %v28349_v25 }
 0x7cd   : > { %28924 = vst [vmem:[%s278_s25 + $0x18] sm:$0xf] %v28920_v47 }
 0x7ce PF: > { %s17_s24 = sadd.s32 1, %s29103_s24  }
 0x7cf   : > { %p14_p4 = scmp.ge.s32.totalorder %s17_s24, 4  }
 0x7d1   :  { %16 = sbr.rel (!%p14_p4) target bundleno = 1 (0x1), region = 126 }

</bundles_post_ra>
